<compile_context>
chip_gen: v6e
topology: v6e:2x2x1
jax: 0.10.0
libtpu: 0.0.40
codegen_flags: <defaults>
</compile_context>

<pallas_src>
import functools

import jax
import jax.numpy as jnp
from jax.experimental import pallas as pl
from jax.experimental.pallas import tpu as pltpu

# Geometry of the reference module (MNIST-style 28x28 single-channel input, defaults:
# conv_kernel_size=5, conv_stride=1, conv_padding=0, pool_kernel_size=4, pooling_stride=4).
IMG = 28
K = 5                                   # conv kernel size
POOL = 4                                # pool kernel size == pooling stride
W_CONV = (IMG - K) // 1 + 1             # 24
W_POOL = (W_CONV - POOL) // POOL + 1    # 6
N_SPATIAL = W_POOL * W_POOL             # 36 pooled positions
N_POOL_OFF = POOL * POOL                # 16 positions inside each pooling window
LANE = 128                              # TPU lane width


def _round_up(n, m):
    return ((n + m - 1) // m) * m


def _pad_axis(a, axis, size):
    pad = [(0, 0)] * a.ndim
    pad[axis] = (0, size - a.shape[axis])
    return jnp.pad(a, pad)


def _cnn_fused_kernel(patches_ref, wc_ref, bc_ref, w1_ref, b1_ref, *rest,
                      bp: int, n_extra_fc: int):
    """Entire CNN forward on full-array VMEM blocks (single grid step).

    patches_ref : (N_POOL_OFF * N_SPATIAL * bp, K*K) im2col patches,
                  rows ordered (pool_offset, pooled_position, batch)
    wc_ref      : (K*K, C) conv weight (tap-major);  bc_ref: (1, C)
    w1_ref      : (N_SPATIAL, C, Hp) first FC layer, one (C, Hp) block per pooled position
    b1_ref      : (1, Hp)
    rest        : n_extra_fc * [w (Hp, Hp), b (1, Hp)], then wo (Hp, NCp), bo (1, NCp),
                  and finally the output ref (bp, NCp).
    """
    fc_refs = rest[:2 * n_extra_fc]
    wo_ref = rest[2 * n_extra_fc]
    bo_ref = rest[2 * n_extra_fc + 1]
    out_ref = rest[2 * n_extra_fc + 2]

    # --- convolution: one MXU matmul over all (pool_offset, position, batch) rows ------
    conv = jnp.dot(patches_ref[...], wc_ref[...],
                   preferred_element_type=jnp.float32) + bc_ref[...]

    # --- 4x4 / stride-4 max pool: elementwise max over the 16 pool-offset row blocks ---
    blk = N_SPATIAL * bp
    pooled = conv[0:blk, :]
    for p in range(1, N_POOL_OFF):
        pooled = jnp.maximum(pooled, conv[p * blk:(p + 1) * blk, :])

    # activation (af = relu) applied after pooling; Dropout2d is identity at inference.
    act = jnp.maximum(pooled, 0.0)
    # TODO(synk): training-mode dropout would go here via pltpu.prng_seed/prng_random_bits.

    # --- flatten + first FC layer: contract over (pooled position, channel) ------------
    # rows of `act` are ordered (position, batch); one aligned (bp, C) x (C, Hp) dot per
    # pooled position avoids any in-kernel lane<->sublane reshape.
    h = jnp.dot(act[0:bp, :], w1_ref[0], preferred_element_type=jnp.float32)
    for s in range(1, N_SPATIAL):
        h = h + jnp.dot(act[s * bp:(s + 1) * bp, :], w1_ref[s],
                        preferred_element_type=jnp.float32)
    h = jnp.maximum(h + b1_ref[...], 0.0)          # ReLU; Dropout identity

    # --- remaining hidden FC layers -----------------------------------------------------
    for l in range(n_extra_fc):
        w_ref, b_ref = fc_refs[2 * l], fc_refs[2 * l + 1]
        h = jnp.maximum(
            jnp.dot(h, w_ref[...], preferred_element_type=jnp.float32) + b_ref[...], 0.0)

    # --- output Linear (loss_Function == 'crossEntropy' -> no log_softmax) --------------
    out_ref[...] = (jnp.dot(h, wo_ref[...], preferred_element_type=jnp.float32)
                    + bo_ref[...]).astype(out_ref.dtype)


def _im2col_pool_patches(x_img, bp):
    """(B, 28, 28) -> (N_POOL_OFF * N_SPATIAL * bp, K*K) im2col patches.

    Pure index plumbing (no FLOPs). Row = ((pr*POOL+pc)*N_SPATIAL + i*W_POOL+j)*bp + b,
    column = ki*K + kj, value = x[b, POOL*i + pr + ki, POOL*j + pc + kj].
    """
    b = x_img.shape[0]
    if b < bp:
        x_img = jnp.pad(x_img, ((0, bp - b), (0, 0), (0, 0)))
    pr = jnp.arange(POOL).reshape(POOL, 1, 1, 1, 1, 1)
    pc = jnp.arange(POOL).reshape(1, POOL, 1, 1, 1, 1)
    ii = jnp.arange(W_POOL).reshape(1, 1, W_POOL, 1, 1, 1)
    jj = jnp.arange(W_POOL).reshape(1, 1, 1, W_POOL, 1, 1)
    ki = jnp.arange(K).reshape(1, 1, 1, 1, K, 1)
    kj = jnp.arange(K).reshape(1, 1, 1, 1, 1, K)
    rows = POOL * ii + pr + ki          # conv-row index, broadcasts to (4,4,6,6,5,5)
    cols = POOL * jj + pc + kj          # conv-col index
    patches = x_img[:, rows, cols]      # (bp, 4, 4, 6, 6, 5, 5)
    patches = jnp.transpose(patches, (1, 2, 3, 4, 0, 5, 6))
    return patches.reshape(N_POOL_OFF * N_SPATIAL * bp, K * K)


def cnn_forward(x, params):
    """Fused CNN forward.  x: (B, 1, 28, 28) float32 -> logits (B, num_classes)."""
    batch = x.shape[0]
    bp = max(8, _round_up(batch, 8))                    # sublane-pad the batch
    patches = _im2col_pool_patches(x[:, 0, :, :].astype(jnp.float32), bp)

    c = params["wc"].shape[1]
    hidden = params["w1"].shape[2]
    n_cls = params["wo"].shape[1]
    hp = _round_up(hidden, LANE)                        # lane-dense hidden width
    ncp = _round_up(n_cls, LANE)                        # lane-dense logits width

    wc = params["wc"]
    bc = params["bc"].reshape(1, c)
    w1 = _pad_axis(params["w1"], 2, hp)
    b1 = _pad_axis(params["b1"].reshape(1, hidden), 1, hp)
    fc_flat = []
    for w, b in params["fc"]:
        fc_flat.append(_pad_axis(_pad_axis(w, 0, hp), 1, hp))
        fc_flat.append(_pad_axis(b.reshape(1, hidden), 1, hp))
    wo = _pad_axis(_pad_axis(params["wo"], 0, hp), 1, ncp)
    bo = _pad_axis(params["bo"].reshape(1, n_cls), 1, ncp)

    n_extra_fc = len(params["fc"])
    kernel = functools.partial(_cnn_fused_kernel, bp=bp, n_extra_fc=n_extra_fc)
    vmem = pl.BlockSpec(memory_space=pltpu.MemorySpace.VMEM)
    n_inputs = 5 + 2 * n_extra_fc + 2

    out = pl.pallas_call(
        kernel,
        out_shape=jax.ShapeDtypeStruct((bp, ncp), jnp.float32),
        in_specs=[vmem] * n_inputs,
        out_specs=vmem,
        compiler_params=pltpu.CompilerParams(vmem_limit_bytes=32 * 1024 * 1024),
    )(patches, wc, bc, w1, b1, *fc_flat, wo, bo)
    return out[:batch, :n_cls]


def init_cnn_params(key, *, conv_channels=10, num_hidden=32, num_classes=10, fc_layers=2):
    """Random parameters in the layout the fused kernel consumes.

    Correspondence with the PyTorch module (fresh init, not ported weights):
      wc[ki*K+kj, c]       ~ conv.weight[c, 0, ki, kj],  bc[c] ~ conv.bias[c]
      w1[i*W_POOL+j, c, h] ~ fc[0].weight[h, c*N_SPATIAL + i*W_POOL + j]
      fc[l] = (w, b) with w[i, o] ~ fc[l+1].weight[o, i];  wo[i, o] ~ out.weight[o, i]
    """
    def uniform(k, shape, fan_in):
        bound = 1.0 / (fan_in ** 0.5)
        return jax.random.uniform(k, shape, jnp.float32, -bound, bound)

    keys = list(jax.random.split(key, 6 + 2 * (fc_layers - 1)))
    nxt = iter(keys).__next__
    wc = uniform(nxt(), (K * K, conv_channels), K * K)
    bc = uniform(nxt(), (conv_channels,), K * K)
    fan1 = conv_channels * N_SPATIAL
    w1 = uniform(nxt(), (N_SPATIAL, conv_channels, num_hidden), fan1)
    b1 = uniform(nxt(), (num_hidden,), fan1)
    fc = []
    for _ in range(fc_layers - 1):
        fc.append((uniform(nxt(), (num_hidden, num_hidden), num_hidden),
                   uniform(nxt(), (num_hidden,), num_hidden)))
    wo = uniform(nxt(), (num_hidden, num_classes), num_hidden)
    bo = uniform(nxt(), (num_classes,), num_hidden)
    return dict(wc=wc, bc=bc, w1=w1, b1=b1, fc=fc, wo=wo, bo=bo)


def reference_forward(x, params):
    """Plain-JAX reference of the same forward pass (same parameter layout)."""
    xb = x[:, 0].astype(jnp.float32)
    bsz = xb.shape[0]
    c = params["wc"].shape[1]
    conv = jnp.zeros((bsz, W_CONV, W_CONV, c), jnp.float32)
    for ki in range(K):
        for kj in range(K):
            conv = conv + (xb[:, ki:ki + W_CONV, kj:kj + W_CONV, None]
                           * params["wc"][ki * K + kj])
    conv = conv + params["bc"]
    pooled = conv.reshape(bsz, W_POOL, POOL, W_POOL, POOL, c).max(axis=(2, 4))
    act = jnp.maximum(pooled, 0.0)                  # relu after pool; Dropout2d identity
    h = params["b1"].astype(jnp.float32)
    for s in range(N_SPATIAL):
        i, j = divmod(s, W_POOL)
        h = h + act[:, i, j, :] @ params["w1"][s]
    h = jnp.maximum(h, 0.0)
    for w, b in params["fc"]:
        h = jnp.maximum(h @ w + b, 0.0)
    return h @ params["wo"] + params["bo"]


if __name__ == "__main__":
    # CNN(dropout_pr=0.5, num_hidden=32, num_classes=10, conv_pool_layers=1, fc_layers=2)
    # on an MNIST-shaped input.  With the default conv/pool geometry the module itself
    # caps conv_pool_layers at 1 for 28x28 images.
    # TODO(synk): conv_pool_layers > 1 not implemented (reference geometry caps it at 1).
    batch = 2
    key = jax.random.PRNGKey(0)
    key, kx = jax.random.split(key)
    x = jax.random.normal(kx, (batch, 1, IMG, IMG), jnp.float32)
    params = init_cnn_params(key, conv_channels=10, num_hidden=32, num_classes=10,
                             fc_layers=2)

    fwd = jax.jit(cnn_forward)
    out = jax.block_until_ready(fwd(x, params))

    ref = reference_forward(x, params)
    assert out.shape == (batch, 10)
    assert jnp.allclose(out, ref, atol=1e-3, rtol=1e-3)
    print("KERNEL_OK")
</pallas_src>

<mosaic_0001>
module attributes {stable_mosaic.version = 11 : i64} {
  func.func @_cnn_fused_kernel(%arg0: memref<4608x25xf32, #tpu.memory_space<vmem>>, %arg1: memref<25x10xf32, #tpu.memory_space<vmem>>, %arg2: memref<1x10xf32, #tpu.memory_space<vmem>>, %arg3: memref<36x10x128xf32, #tpu.memory_space<vmem>>, %arg4: memref<1x128xf32, #tpu.memory_space<vmem>>, %arg5: memref<128x128xf32, #tpu.memory_space<vmem>>, %arg6: memref<1x128xf32, #tpu.memory_space<vmem>>, %arg7: memref<128x128xf32, #tpu.memory_space<vmem>>, %arg8: memref<1x128xf32, #tpu.memory_space<vmem>>, %arg9: memref<8x128xf32, #tpu.memory_space<vmem>>) attributes {dimension_semantics = [], scalar_prefetch = 0 : i64, scratch_operands = 0 : i64, tpu.core_type = #tpu.core_type<tc>} {
    %c0 = arith.constant 0 : index
    %c0_0 = arith.constant 0 : index
    %0 = vector.load %arg0[%c0, %c0_0] : memref<4608x25xf32, #tpu.memory_space<vmem>>, vector<4608x25xf32>
    %c0_1 = arith.constant 0 : index
    %c0_2 = arith.constant 0 : index
    %1 = vector.load %arg1[%c0_1, %c0_2] : memref<25x10xf32, #tpu.memory_space<vmem>>, vector<25x10xf32>
    %cst = arith.constant dense<0.000000e+00> : vector<4608x10xf32>
    %2 = tpu.matmul %0, %1, %cst {dimension_numbers = #tpu.dot_dimension_numbers<[1], [0], [0], [1], [0, 0, 1, 1], [], []>} : vector<4608x25xf32>, vector<25x10xf32>, vector<4608x10xf32> -> vector<4608x10xf32>
    %c0_3 = arith.constant 0 : index
    %c0_4 = arith.constant 0 : index
    %3 = vector.load %arg2[%c0_3, %c0_4] : memref<1x10xf32, #tpu.memory_space<vmem>>, vector<1x10xf32>
    %4 = vector.broadcast %3 : vector<1x10xf32> to vector<4608x10xf32>
    %5 = arith.addf %2, %4 : vector<4608x10xf32>
    %6 = vector.extract_strided_slice %5 {offsets = [0, 0], sizes = [288, 10], strides = [1, 1]} : vector<4608x10xf32> to vector<288x10xf32>
    %7 = vector.extract_strided_slice %5 {offsets = [288, 0], sizes = [288, 10], strides = [1, 1]} : vector<4608x10xf32> to vector<288x10xf32>
    %8 = arith.maximumf %6, %7 : vector<288x10xf32>
    %9 = vector.extract_strided_slice %5 {offsets = [576, 0], sizes = [288, 10], strides = [1, 1]} : vector<4608x10xf32> to vector<288x10xf32>
    %10 = arith.maximumf %8, %9 : vector<288x10xf32>
    %11 = vector.extract_strided_slice %5 {offsets = [864, 0], sizes = [288, 10], strides = [1, 1]} : vector<4608x10xf32> to vector<288x10xf32>
    %12 = arith.maximumf %10, %11 : vector<288x10xf32>
    %13 = vector.extract_strided_slice %5 {offsets = [1152, 0], sizes = [288, 10], strides = [1, 1]} : vector<4608x10xf32> to vector<288x10xf32>
    %14 = arith.maximumf %12, %13 : vector<288x10xf32>
    %15 = vector.extract_strided_slice %5 {offsets = [1440, 0], sizes = [288, 10], strides = [1, 1]} : vector<4608x10xf32> to vector<288x10xf32>
    %16 = arith.maximumf %14, %15 : vector<288x10xf32>
    %17 = vector.extract_strided_slice %5 {offsets = [1728, 0], sizes = [288, 10], strides = [1, 1]} : vector<4608x10xf32> to vector<288x10xf32>
    %18 = arith.maximumf %16, %17 : vector<288x10xf32>
    %19 = vector.extract_strided_slice %5 {offsets = [2016, 0], sizes = [288, 10], strides = [1, 1]} : vector<4608x10xf32> to vector<288x10xf32>
    %20 = arith.maximumf %18, %19 : vector<288x10xf32>
    %21 = vector.extract_strided_slice %5 {offsets = [2304, 0], sizes = [288, 10], strides = [1, 1]} : vector<4608x10xf32> to vector<288x10xf32>
    %22 = arith.maximumf %20, %21 : vector<288x10xf32>
    %23 = vector.extract_strided_slice %5 {offsets = [2592, 0], sizes = [288, 10], strides = [1, 1]} : vector<4608x10xf32> to vector<288x10xf32>
    %24 = arith.maximumf %22, %23 : vector<288x10xf32>
    %25 = vector.extract_strided_slice %5 {offsets = [2880, 0], sizes = [288, 10], strides = [1, 1]} : vector<4608x10xf32> to vector<288x10xf32>
    %26 = arith.maximumf %24, %25 : vector<288x10xf32>
    %27 = vector.extract_strided_slice %5 {offsets = [3168, 0], sizes = [288, 10], strides = [1, 1]} : vector<4608x10xf32> to vector<288x10xf32>
    %28 = arith.maximumf %26, %27 : vector<288x10xf32>
    %29 = vector.extract_strided_slice %5 {offsets = [3456, 0], sizes = [288, 10], strides = [1, 1]} : vector<4608x10xf32> to vector<288x10xf32>
    %30 = arith.maximumf %28, %29 : vector<288x10xf32>
    %31 = vector.extract_strided_slice %5 {offsets = [3744, 0], sizes = [288, 10], strides = [1, 1]} : vector<4608x10xf32> to vector<288x10xf32>
    %32 = arith.maximumf %30, %31 : vector<288x10xf32>
    %33 = vector.extract_strided_slice %5 {offsets = [4032, 0], sizes = [288, 10], strides = [1, 1]} : vector<4608x10xf32> to vector<288x10xf32>
    %34 = arith.maximumf %32, %33 : vector<288x10xf32>
    %35 = vector.extract_strided_slice %5 {offsets = [4320, 0], sizes = [288, 10], strides = [1, 1]} : vector<4608x10xf32> to vector<288x10xf32>
    %36 = arith.maximumf %34, %35 : vector<288x10xf32>
    %cst_5 = arith.constant 0.000000e+00 : f32
    %37 = vector.broadcast %cst_5 : f32 to vector<288x10xf32>
    %38 = arith.maximumf %36, %37 : vector<288x10xf32>
    %39 = vector.extract_strided_slice %38 {offsets = [0, 0], sizes = [8, 10], strides = [1, 1]} : vector<288x10xf32> to vector<8x10xf32>
    %c0_6 = arith.constant 0 : index
    %c0_7 = arith.constant 0 : index
    %c0_8 = arith.constant 0 : index
    %40 = vector.load %arg3[%c0_6, %c0_7, %c0_8] : memref<36x10x128xf32, #tpu.memory_space<vmem>>, vector<1x10x128xf32>
    %41 = vector.shape_cast %40 : vector<1x10x128xf32> to vector<10x128xf32>
    %cst_9 = arith.constant dense<0.000000e+00> : vector<8x128xf32>
    %42 = tpu.matmul %39, %41, %cst_9 {dimension_numbers = #tpu.dot_dimension_numbers<[1], [0], [0], [1], [0, 0, 1, 1], [], []>} : vector<8x10xf32>, vector<10x128xf32>, vector<8x128xf32> -> vector<8x128xf32>
    %43 = vector.extract_strided_slice %38 {offsets = [8, 0], sizes = [8, 10], strides = [1, 1]} : vector<288x10xf32> to vector<8x10xf32>
    %c1 = arith.constant 1 : index
    %c0_10 = arith.constant 0 : index
    %c0_11 = arith.constant 0 : index
    %44 = vector.load %arg3[%c1, %c0_10, %c0_11] : memref<36x10x128xf32, #tpu.memory_space<vmem>>, vector<1x10x128xf32>
    %45 = vector.shape_cast %44 : vector<1x10x128xf32> to vector<10x128xf32>
    %cst_12 = arith.constant dense<0.000000e+00> : vector<8x128xf32>
    %46 = tpu.matmul %43, %45, %cst_12 {dimension_numbers = #tpu.dot_dimension_numbers<[1], [0], [0], [1], [0, 0, 1, 1], [], []>} : vector<8x10xf32>, vector<10x128xf32>, vector<8x128xf32> -> vector<8x128xf32>
    %47 = arith.addf %42, %46 : vector<8x128xf32>
    %48 = vector.extract_strided_slice %38 {offsets = [16, 0], sizes = [8, 10], strides = [1, 1]} : vector<288x10xf32> to vector<8x10xf32>
    %c2 = arith.constant 2 : index
    %c0_13 = arith.constant 0 : index
    %c0_14 = arith.constant 0 : index
    %49 = vector.load %arg3[%c2, %c0_13, %c0_14] : memref<36x10x128xf32, #tpu.memory_space<vmem>>, vector<1x10x128xf32>
    %50 = vector.shape_cast %49 : vector<1x10x128xf32> to vector<10x128xf32>
    %cst_15 = arith.constant dense<0.000000e+00> : vector<8x128xf32>
    %51 = tpu.matmul %48, %50, %cst_15 {dimension_numbers = #tpu.dot_dimension_numbers<[1], [0], [0], [1], [0, 0, 1, 1], [], []>} : vector<8x10xf32>, vector<10x128xf32>, vector<8x128xf32> -> vector<8x128xf32>
    %52 = arith.addf %47, %51 : vector<8x128xf32>
    %53 = vector.extract_strided_slice %38 {offsets = [24, 0], sizes = [8, 10], strides = [1, 1]} : vector<288x10xf32> to vector<8x10xf32>
    %c3 = arith.constant 3 : index
    %c0_16 = arith.constant 0 : index
    %c0_17 = arith.constant 0 : index
    %54 = vector.load %arg3[%c3, %c0_16, %c0_17] : memref<36x10x128xf32, #tpu.memory_space<vmem>>, vector<1x10x128xf32>
    %55 = vector.shape_cast %54 : vector<1x10x128xf32> to vector<10x128xf32>
    %cst_18 = arith.constant dense<0.000000e+00> : vector<8x128xf32>
    %56 = tpu.matmul %53, %55, %cst_18 {dimension_numbers = #tpu.dot_dimension_numbers<[1], [0], [0], [1], [0, 0, 1, 1], [], []>} : vector<8x10xf32>, vector<10x128xf32>, vector<8x128xf32> -> vector<8x128xf32>
    %57 = arith.addf %52, %56 : vector<8x128xf32>
    %58 = vector.extract_strided_slice %38 {offsets = [32, 0], sizes = [8, 10], strides = [1, 1]} : vector<288x10xf32> to vector<8x10xf32>
    %c4 = arith.constant 4 : index
    %c0_19 = arith.constant 0 : index
    %c0_20 = arith.constant 0 : index
    %59 = vector.load %arg3[%c4, %c0_19, %c0_20] : memref<36x10x128xf32, #tpu.memory_space<vmem>>, vector<1x10x128xf32>
    %60 = vector.shape_cast %59 : vector<1x10x128xf32> to vector<10x128xf32>
    %cst_21 = arith.constant dense<0.000000e+00> : vector<8x128xf32>
    %61 = tpu.matmul %58, %60, %cst_21 {dimension_numbers = #tpu.dot_dimension_numbers<[1], [0], [0], [1], [0, 0, 1, 1], [], []>} : vector<8x10xf32>, vector<10x128xf32>, vector<8x128xf32> -> vector<8x128xf32>
    %62 = arith.addf %57, %61 : vector<8x128xf32>
    %63 = vector.extract_strided_slice %38 {offsets = [40, 0], sizes = [8, 10], strides = [1, 1]} : vector<288x10xf32> to vector<8x10xf32>
    %c5 = arith.constant 5 : index
    %c0_22 = arith.constant 0 : index
    %c0_23 = arith.constant 0 : index
    %64 = vector.load %arg3[%c5, %c0_22, %c0_23] : memref<36x10x128xf32, #tpu.memory_space<vmem>>, vector<1x10x128xf32>
    %65 = vector.shape_cast %64 : vector<1x10x128xf32> to vector<10x128xf32>
    %cst_24 = arith.constant dense<0.000000e+00> : vector<8x128xf32>
    %66 = tpu.matmul %63, %65, %cst_24 {dimension_numbers = #tpu.dot_dimension_numbers<[1], [0], [0], [1], [0, 0, 1, 1], [], []>} : vector<8x10xf32>, vector<10x128xf32>, vector<8x128xf32> -> vector<8x128xf32>
    %67 = arith.addf %62, %66 : vector<8x128xf32>
    %68 = vector.extract_strided_slice %38 {offsets = [48, 0], sizes = [8, 10], strides = [1, 1]} : vector<288x10xf32> to vector<8x10xf32>
    %c6 = arith.constant 6 : index
    %c0_25 = arith.constant 0 : index
    %c0_26 = arith.constant 0 : index
    %69 = vector.load %arg3[%c6, %c0_25, %c0_26] : memref<36x10x128xf32, #tpu.memory_space<vmem>>, vector<1x10x128xf32>
    %70 = vector.shape_cast %69 : vector<1x10x128xf32> to vector<10x128xf32>
    %cst_27 = arith.constant dense<0.000000e+00> : vector<8x128xf32>
    %71 = tpu.matmul %68, %70, %cst_27 {dimension_numbers = #tpu.dot_dimension_numbers<[1], [0], [0], [1], [0, 0, 1, 1], [], []>} : vector<8x10xf32>, vector<10x128xf32>, vector<8x128xf32> -> vector<8x128xf32>
    %72 = arith.addf %67, %71 : vector<8x128xf32>
    %73 = vector.extract_strided_slice %38 {offsets = [56, 0], sizes = [8, 10], strides = [1, 1]} : vector<288x10xf32> to vector<8x10xf32>
    %c7 = arith.constant 7 : index
    %c0_28 = arith.constant 0 : index
    %c0_29 = arith.constant 0 : index
    %74 = vector.load %arg3[%c7, %c0_28, %c0_29] : memref<36x10x128xf32, #tpu.memory_space<vmem>>, vector<1x10x128xf32>
    %75 = vector.shape_cast %74 : vector<1x10x128xf32> to vector<10x128xf32>
    %cst_30 = arith.constant dense<0.000000e+00> : vector<8x128xf32>
    %76 = tpu.matmul %73, %75, %cst_30 {dimension_numbers = #tpu.dot_dimension_numbers<[1], [0], [0], [1], [0, 0, 1, 1], [], []>} : vector<8x10xf32>, vector<10x128xf32>, vector<8x128xf32> -> vector<8x128xf32>
    %77 = arith.addf %72, %76 : vector<8x128xf32>
    %78 = vector.extract_strided_slice %38 {offsets = [64, 0], sizes = [8, 10], strides = [1, 1]} : vector<288x10xf32> to vector<8x10xf32>
    %c8 = arith.constant 8 : index
    %c0_31 = arith.constant 0 : index
    %c0_32 = arith.constant 0 : index
    %79 = vector.load %arg3[%c8, %c0_31, %c0_32] : memref<36x10x128xf32, #tpu.memory_space<vmem>>, vector<1x10x128xf32>
    %80 = vector.shape_cast %79 : vector<1x10x128xf32> to vector<10x128xf32>
    %cst_33 = arith.constant dense<0.000000e+00> : vector<8x128xf32>
    %81 = tpu.matmul %78, %80, %cst_33 {dimension_numbers = #tpu.dot_dimension_numbers<[1], [0], [0], [1], [0, 0, 1, 1], [], []>} : vector<8x10xf32>, vector<10x128xf32>, vector<8x128xf32> -> vector<8x128xf32>
    %82 = arith.addf %77, %81 : vector<8x128xf32>
    %83 = vector.extract_strided_slice %38 {offsets = [72, 0], sizes = [8, 10], strides = [1, 1]} : vector<288x10xf32> to vector<8x10xf32>
    %c9 = arith.constant 9 : index
    %c0_34 = arith.constant 0 : index
    %c0_35 = arith.constant 0 : index
    %84 = vector.load %arg3[%c9, %c0_34, %c0_35] : memref<36x10x128xf32, #tpu.memory_space<vmem>>, vector<1x10x128xf32>
    %85 = vector.shape_cast %84 : vector<1x10x128xf32> to vector<10x128xf32>
    %cst_36 = arith.constant dense<0.000000e+00> : vector<8x128xf32>
    %86 = tpu.matmul %83, %85, %cst_36 {dimension_numbers = #tpu.dot_dimension_numbers<[1], [0], [0], [1], [0, 0, 1, 1], [], []>} : vector<8x10xf32>, vector<10x128xf32>, vector<8x128xf32> -> vector<8x128xf32>
    %87 = arith.addf %82, %86 : vector<8x128xf32>
    %88 = vector.extract_strided_slice %38 {offsets = [80, 0], sizes = [8, 10], strides = [1, 1]} : vector<288x10xf32> to vector<8x10xf32>
    %c10 = arith.constant 10 : index
    %c0_37 = arith.constant 0 : index
    %c0_38 = arith.constant 0 : index
    %89 = vector.load %arg3[%c10, %c0_37, %c0_38] : memref<36x10x128xf32, #tpu.memory_space<vmem>>, vector<1x10x128xf32>
    %90 = vector.shape_cast %89 : vector<1x10x128xf32> to vector<10x128xf32>
    %cst_39 = arith.constant dense<0.000000e+00> : vector<8x128xf32>
    %91 = tpu.matmul %88, %90, %cst_39 {dimension_numbers = #tpu.dot_dimension_numbers<[1], [0], [0], [1], [0, 0, 1, 1], [], []>} : vector<8x10xf32>, vector<10x128xf32>, vector<8x128xf32> -> vector<8x128xf32>
    %92 = arith.addf %87, %91 : vector<8x128xf32>
    %93 = vector.extract_strided_slice %38 {offsets = [88, 0], sizes = [8, 10], strides = [1, 1]} : vector<288x10xf32> to vector<8x10xf32>
    %c11 = arith.constant 11 : index
    %c0_40 = arith.constant 0 : index
    %c0_41 = arith.constant 0 : index
    %94 = vector.load %arg3[%c11, %c0_40, %c0_41] : memref<36x10x128xf32, #tpu.memory_space<vmem>>, vector<1x10x128xf32>
    %95 = vector.shape_cast %94 : vector<1x10x128xf32> to vector<10x128xf32>
    %cst_42 = arith.constant dense<0.000000e+00> : vector<8x128xf32>
    %96 = tpu.matmul %93, %95, %cst_42 {dimension_numbers = #tpu.dot_dimension_numbers<[1], [0], [0], [1], [0, 0, 1, 1], [], []>} : vector<8x10xf32>, vector<10x128xf32>, vector<8x128xf32> -> vector<8x128xf32>
    %97 = arith.addf %92, %96 : vector<8x128xf32>
    %98 = vector.extract_strided_slice %38 {offsets = [96, 0], sizes = [8, 10], strides = [1, 1]} : vector<288x10xf32> to vector<8x10xf32>
    %c12 = arith.constant 12 : index
    %c0_43 = arith.constant 0 : index
    %c0_44 = arith.constant 0 : index
    %99 = vector.load %arg3[%c12, %c0_43, %c0_44] : memref<36x10x128xf32, #tpu.memory_space<vmem>>, vector<1x10x128xf32>
    %100 = vector.shape_cast %99 : vector<1x10x128xf32> to vector<10x128xf32>
    %cst_45 = arith.constant dense<0.000000e+00> : vector<8x128xf32>
    %101 = tpu.matmul %98, %100, %cst_45 {dimension_numbers = #tpu.dot_dimension_numbers<[1], [0], [0], [1], [0, 0, 1, 1], [], []>} : vector<8x10xf32>, vector<10x128xf32>, vector<8x128xf32> -> vector<8x128xf32>
    %102 = arith.addf %97, %101 : vector<8x128xf32>
    %103 = vector.extract_strided_slice %38 {offsets = [104, 0], sizes = [8, 10], strides = [1, 1]} : vector<288x10xf32> to vector<8x10xf32>
    %c13 = arith.constant 13 : index
    %c0_46 = arith.constant 0 : index
    %c0_47 = arith.constant 0 : index
    %104 = vector.load %arg3[%c13, %c0_46, %c0_47] : memref<36x10x128xf32, #tpu.memory_space<vmem>>, vector<1x10x128xf32>
    %105 = vector.shape_cast %104 : vector<1x10x128xf32> to vector<10x128xf32>
    %cst_48 = arith.constant dense<0.000000e+00> : vector<8x128xf32>
    %106 = tpu.matmul %103, %105, %cst_48 {dimension_numbers = #tpu.dot_dimension_numbers<[1], [0], [0], [1], [0, 0, 1, 1], [], []>} : vector<8x10xf32>, vector<10x128xf32>, vector<8x128xf32> -> vector<8x128xf32>
    %107 = arith.addf %102, %106 : vector<8x128xf32>
    %108 = vector.extract_strided_slice %38 {offsets = [112, 0], sizes = [8, 10], strides = [1, 1]} : vector<288x10xf32> to vector<8x10xf32>
    %c14 = arith.constant 14 : index
    %c0_49 = arith.constant 0 : index
    %c0_50 = arith.constant 0 : index
    %109 = vector.load %arg3[%c14, %c0_49, %c0_50] : memref<36x10x128xf32, #tpu.memory_space<vmem>>, vector<1x10x128xf32>
    %110 = vector.shape_cast %109 : vector<1x10x128xf32> to vector<10x128xf32>
    %cst_51 = arith.constant dense<0.000000e+00> : vector<8x128xf32>
    %111 = tpu.matmul %108, %110, %cst_51 {dimension_numbers = #tpu.dot_dimension_numbers<[1], [0], [0], [1], [0, 0, 1, 1], [], []>} : vector<8x10xf32>, vector<10x128xf32>, vector<8x128xf32> -> vector<8x128xf32>
    %112 = arith.addf %107, %111 : vector<8x128xf32>
    %113 = vector.extract_strided_slice %38 {offsets = [120, 0], sizes = [8, 10], strides = [1, 1]} : vector<288x10xf32> to vector<8x10xf32>
    %c15 = arith.constant 15 : index
    %c0_52 = arith.constant 0 : index
    %c0_53 = arith.constant 0 : index
    %114 = vector.load %arg3[%c15, %c0_52, %c0_53] : memref<36x10x128xf32, #tpu.memory_space<vmem>>, vector<1x10x128xf32>
    %115 = vector.shape_cast %114 : vector<1x10x128xf32> to vector<10x128xf32>
    %cst_54 = arith.constant dense<0.000000e+00> : vector<8x128xf32>
    %116 = tpu.matmul %113, %115, %cst_54 {dimension_numbers = #tpu.dot_dimension_numbers<[1], [0], [0], [1], [0, 0, 1, 1], [], []>} : vector<8x10xf32>, vector<10x128xf32>, vector<8x128xf32> -> vector<8x128xf32>
    %117 = arith.addf %112, %116 : vector<8x128xf32>
    %118 = vector.extract_strided_slice %38 {offsets = [128, 0], sizes = [8, 10], strides = [1, 1]} : vector<288x10xf32> to vector<8x10xf32>
    %c16 = arith.constant 16 : index
    %c0_55 = arith.constant 0 : index
    %c0_56 = arith.constant 0 : index
    %119 = vector.load %arg3[%c16, %c0_55, %c0_56] : memref<36x10x128xf32, #tpu.memory_space<vmem>>, vector<1x10x128xf32>
    %120 = vector.shape_cast %119 : vector<1x10x128xf32> to vector<10x128xf32>
    %cst_57 = arith.constant dense<0.000000e+00> : vector<8x128xf32>
    %121 = tpu.matmul %118, %120, %cst_57 {dimension_numbers = #tpu.dot_dimension_numbers<[1], [0], [0], [1], [0, 0, 1, 1], [], []>} : vector<8x10xf32>, vector<10x128xf32>, vector<8x128xf32> -> vector<8x128xf32>
    %122 = arith.addf %117, %121 : vector<8x128xf32>
    %123 = vector.extract_strided_slice %38 {offsets = [136, 0], sizes = [8, 10], strides = [1, 1]} : vector<288x10xf32> to vector<8x10xf32>
    %c17 = arith.constant 17 : index
    %c0_58 = arith.constant 0 : index
    %c0_59 = arith.constant 0 : index
    %124 = vector.load %arg3[%c17, %c0_58, %c0_59] : memref<36x10x128xf32, #tpu.memory_space<vmem>>, vector<1x10x128xf32>
    %125 = vector.shape_cast %124 : vector<1x10x128xf32> to vector<10x128xf32>
    %cst_60 = arith.constant dense<0.000000e+00> : vector<8x128xf32>
    %126 = tpu.matmul %123, %125, %cst_60 {dimension_numbers = #tpu.dot_dimension_numbers<[1], [0], [0], [1], [0, 0, 1, 1], [], []>} : vector<8x10xf32>, vector<10x128xf32>, vector<8x128xf32> -> vector<8x128xf32>
    %127 = arith.addf %122, %126 : vector<8x128xf32>
    %128 = vector.extract_strided_slice %38 {offsets = [144, 0], sizes = [8, 10], strides = [1, 1]} : vector<288x10xf32> to vector<8x10xf32>
    %c18 = arith.constant 18 : index
    %c0_61 = arith.constant 0 : index
    %c0_62 = arith.constant 0 : index
    %129 = vector.load %arg3[%c18, %c0_61, %c0_62] : memref<36x10x128xf32, #tpu.memory_space<vmem>>, vector<1x10x128xf32>
    %130 = vector.shape_cast %129 : vector<1x10x128xf32> to vector<10x128xf32>
    %cst_63 = arith.constant dense<0.000000e+00> : vector<8x128xf32>
    %131 = tpu.matmul %128, %130, %cst_63 {dimension_numbers = #tpu.dot_dimension_numbers<[1], [0], [0], [1], [0, 0, 1, 1], [], []>} : vector<8x10xf32>, vector<10x128xf32>, vector<8x128xf32> -> vector<8x128xf32>
    %132 = arith.addf %127, %131 : vector<8x128xf32>
    %133 = vector.extract_strided_slice %38 {offsets = [152, 0], sizes = [8, 10], strides = [1, 1]} : vector<288x10xf32> to vector<8x10xf32>
    %c19 = arith.constant 19 : index
    %c0_64 = arith.constant 0 : index
    %c0_65 = arith.constant 0 : index
    %134 = vector.load %arg3[%c19, %c0_64, %c0_65] : memref<36x10x128xf32, #tpu.memory_space<vmem>>, vector<1x10x128xf32>
    %135 = vector.shape_cast %134 : vector<1x10x128xf32> to vector<10x128xf32>
    %cst_66 = arith.constant dense<0.000000e+00> : vector<8x128xf32>
    %136 = tpu.matmul %133, %135, %cst_66 {dimension_numbers = #tpu.dot_dimension_numbers<[1], [0], [0], [1], [0, 0, 1, 1], [], []>} : vector<8x10xf32>, vector<10x128xf32>, vector<8x128xf32> -> vector<8x128xf32>
    %137 = arith.addf %132, %136 : vector<8x128xf32>
    %138 = vector.extract_strided_slice %38 {offsets = [160, 0], sizes = [8, 10], strides = [1, 1]} : vector<288x10xf32> to vector<8x10xf32>
    %c20 = arith.constant 20 : index
    %c0_67 = arith.constant 0 : index
    %c0_68 = arith.constant 0 : index
    %139 = vector.load %arg3[%c20, %c0_67, %c0_68] : memref<36x10x128xf32, #tpu.memory_space<vmem>>, vector<1x10x128xf32>
    %140 = vector.shape_cast %139 : vector<1x10x128xf32> to vector<10x128xf32>
    %cst_69 = arith.constant dense<0.000000e+00> : vector<8x128xf32>
    %141 = tpu.matmul %138, %140, %cst_69 {dimension_numbers = #tpu.dot_dimension_numbers<[1], [0], [0], [1], [0, 0, 1, 1], [], []>} : vector<8x10xf32>, vector<10x128xf32>, vector<8x128xf32> -> vector<8x128xf32>
    %142 = arith.addf %137, %141 : vector<8x128xf32>
    %143 = vector.extract_strided_slice %38 {offsets = [168, 0], sizes = [8, 10], strides = [1, 1]} : vector<288x10xf32> to vector<8x10xf32>
    %c21 = arith.constant 21 : index
    %c0_70 = arith.constant 0 : index
    %c0_71 = arith.constant 0 : index
    %144 = vector.load %arg3[%c21, %c0_70, %c0_71] : memref<36x10x128xf32, #tpu.memory_space<vmem>>, vector<1x10x128xf32>
    %145 = vector.shape_cast %144 : vector<1x10x128xf32> to vector<10x128xf32>
    %cst_72 = arith.constant dense<0.000000e+00> : vector<8x128xf32>
    %146 = tpu.matmul %143, %145, %cst_72 {dimension_numbers = #tpu.dot_dimension_numbers<[1], [0], [0], [1], [0, 0, 1, 1], [], []>} : vector<8x10xf32>, vector<10x128xf32>, vector<8x128xf32> -> vector<8x128xf32>
    %147 = arith.addf %142, %146 : vector<8x128xf32>
    %148 = vector.extract_strided_slice %38 {offsets = [176, 0], sizes = [8, 10], strides = [1, 1]} : vector<288x10xf32> to vector<8x10xf32>
    %c22 = arith.constant 22 : index
    %c0_73 = arith.constant 0 : index
    %c0_74 = arith.constant 0 : index
    %149 = vector.load %arg3[%c22, %c0_73, %c0_74] : memref<36x10x128xf32, #tpu.memory_space<vmem>>, vector<1x10x128xf32>
    %150 = vector.shape_cast %149 : vector<1x10x128xf32> to vector<10x128xf32>
    %cst_75 = arith.constant dense<0.000000e+00> : vector<8x128xf32>
    %151 = tpu.matmul %148, %150, %cst_75 {dimension_numbers = #tpu.dot_dimension_numbers<[1], [0], [0], [1], [0, 0, 1, 1], [], []>} : vector<8x10xf32>, vector<10x128xf32>, vector<8x128xf32> -> vector<8x128xf32>
    %152 = arith.addf %147, %151 : vector<8x128xf32>
    %153 = vector.extract_strided_slice %38 {offsets = [184, 0], sizes = [8, 10], strides = [1, 1]} : vector<288x10xf32> to vector<8x10xf32>
    %c23 = arith.constant 23 : index
    %c0_76 = arith.constant 0 : index
    %c0_77 = arith.constant 0 : index
    %154 = vector.load %arg3[%c23, %c0_76, %c0_77] : memref<36x10x128xf32, #tpu.memory_space<vmem>>, vector<1x10x128xf32>
    %155 = vector.shape_cast %154 : vector<1x10x128xf32> to vector<10x128xf32>
    %cst_78 = arith.constant dense<0.000000e+00> : vector<8x128xf32>
    %156 = tpu.matmul %153, %155, %cst_78 {dimension_numbers = #tpu.dot_dimension_numbers<[1], [0], [0], [1], [0, 0, 1, 1], [], []>} : vector<8x10xf32>, vector<10x128xf32>, vector<8x128xf32> -> vector<8x128xf32>
    %157 = arith.addf %152, %156 : vector<8x128xf32>
    %158 = vector.extract_strided_slice %38 {offsets = [192, 0], sizes = [8, 10], strides = [1, 1]} : vector<288x10xf32> to vector<8x10xf32>
    %c24 = arith.constant 24 : index
    %c0_79 = arith.constant 0 : index
    %c0_80 = arith.constant 0 : index
    %159 = vector.load %arg3[%c24, %c0_79, %c0_80] : memref<36x10x128xf32, #tpu.memory_space<vmem>>, vector<1x10x128xf32>
    %160 = vector.shape_cast %159 : vector<1x10x128xf32> to vector<10x128xf32>
    %cst_81 = arith.constant dense<0.000000e+00> : vector<8x128xf32>
    %161 = tpu.matmul %158, %160, %cst_81 {dimension_numbers = #tpu.dot_dimension_numbers<[1], [0], [0], [1], [0, 0, 1, 1], [], []>} : vector<8x10xf32>, vector<10x128xf32>, vector<8x128xf32> -> vector<8x128xf32>
    %162 = arith.addf %157, %161 : vector<8x128xf32>
    %163 = vector.extract_strided_slice %38 {offsets = [200, 0], sizes = [8, 10], strides = [1, 1]} : vector<288x10xf32> to vector<8x10xf32>
    %c25 = arith.constant 25 : index
    %c0_82 = arith.constant 0 : index
    %c0_83 = arith.constant 0 : index
    %164 = vector.load %arg3[%c25, %c0_82, %c0_83] : memref<36x10x128xf32, #tpu.memory_space<vmem>>, vector<1x10x128xf32>
    %165 = vector.shape_cast %164 : vector<1x10x128xf32> to vector<10x128xf32>
    %cst_84 = arith.constant dense<0.000000e+00> : vector<8x128xf32>
    %166 = tpu.matmul %163, %165, %cst_84 {dimension_numbers = #tpu.dot_dimension_numbers<[1], [0], [0], [1], [0, 0, 1, 1], [], []>} : vector<8x10xf32>, vector<10x128xf32>, vector<8x128xf32> -> vector<8x128xf32>
    %167 = arith.addf %162, %166 : vector<8x128xf32>
    %168 = vector.extract_strided_slice %38 {offsets = [208, 0], sizes = [8, 10], strides = [1, 1]} : vector<288x10xf32> to vector<8x10xf32>
    %c26 = arith.constant 26 : index
    %c0_85 = arith.constant 0 : index
    %c0_86 = arith.constant 0 : index
    %169 = vector.load %arg3[%c26, %c0_85, %c0_86] : memref<36x10x128xf32, #tpu.memory_space<vmem>>, vector<1x10x128xf32>
    %170 = vector.shape_cast %169 : vector<1x10x128xf32> to vector<10x128xf32>
    %cst_87 = arith.constant dense<0.000000e+00> : vector<8x128xf32>
    %171 = tpu.matmul %168, %170, %cst_87 {dimension_numbers = #tpu.dot_dimension_numbers<[1], [0], [0], [1], [0, 0, 1, 1], [], []>} : vector<8x10xf32>, vector<10x128xf32>, vector<8x128xf32> -> vector<8x128xf32>
    %172 = arith.addf %167, %171 : vector<8x128xf32>
    %173 = vector.extract_strided_slice %38 {offsets = [216, 0], sizes = [8, 10], strides = [1, 1]} : vector<288x10xf32> to vector<8x10xf32>
    %c27 = arith.constant 27 : index
    %c0_88 = arith.constant 0 : index
    %c0_89 = arith.constant 0 : index
    %174 = vector.load %arg3[%c27, %c0_88, %c0_89] : memref<36x10x128xf32, #tpu.memory_space<vmem>>, vector<1x10x128xf32>
    %175 = vector.shape_cast %174 : vector<1x10x128xf32> to vector<10x128xf32>
    %cst_90 = arith.constant dense<0.000000e+00> : vector<8x128xf32>
    %176 = tpu.matmul %173, %175, %cst_90 {dimension_numbers = #tpu.dot_dimension_numbers<[1], [0], [0], [1], [0, 0, 1, 1], [], []>} : vector<8x10xf32>, vector<10x128xf32>, vector<8x128xf32> -> vector<8x128xf32>
    %177 = arith.addf %172, %176 : vector<8x128xf32>
    %178 = vector.extract_strided_slice %38 {offsets = [224, 0], sizes = [8, 10], strides = [1, 1]} : vector<288x10xf32> to vector<8x10xf32>
    %c28 = arith.constant 28 : index
    %c0_91 = arith.constant 0 : index
    %c0_92 = arith.constant 0 : index
    %179 = vector.load %arg3[%c28, %c0_91, %c0_92] : memref<36x10x128xf32, #tpu.memory_space<vmem>>, vector<1x10x128xf32>
    %180 = vector.shape_cast %179 : vector<1x10x128xf32> to vector<10x128xf32>
    %cst_93 = arith.constant dense<0.000000e+00> : vector<8x128xf32>
    %181 = tpu.matmul %178, %180, %cst_93 {dimension_numbers = #tpu.dot_dimension_numbers<[1], [0], [0], [1], [0, 0, 1, 1], [], []>} : vector<8x10xf32>, vector<10x128xf32>, vector<8x128xf32> -> vector<8x128xf32>
    %182 = arith.addf %177, %181 : vector<8x128xf32>
    %183 = vector.extract_strided_slice %38 {offsets = [232, 0], sizes = [8, 10], strides = [1, 1]} : vector<288x10xf32> to vector<8x10xf32>
    %c29 = arith.constant 29 : index
    %c0_94 = arith.constant 0 : index
    %c0_95 = arith.constant 0 : index
    %184 = vector.load %arg3[%c29, %c0_94, %c0_95] : memref<36x10x128xf32, #tpu.memory_space<vmem>>, vector<1x10x128xf32>
    %185 = vector.shape_cast %184 : vector<1x10x128xf32> to vector<10x128xf32>
    %cst_96 = arith.constant dense<0.000000e+00> : vector<8x128xf32>
    %186 = tpu.matmul %183, %185, %cst_96 {dimension_numbers = #tpu.dot_dimension_numbers<[1], [0], [0], [1], [0, 0, 1, 1], [], []>} : vector<8x10xf32>, vector<10x128xf32>, vector<8x128xf32> -> vector<8x128xf32>
    %187 = arith.addf %182, %186 : vector<8x128xf32>
    %188 = vector.extract_strided_slice %38 {offsets = [240, 0], sizes = [8, 10], strides = [1, 1]} : vector<288x10xf32> to vector<8x10xf32>
    %c30 = arith.constant 30 : index
    %c0_97 = arith.constant 0 : index
    %c0_98 = arith.constant 0 : index
    %189 = vector.load %arg3[%c30, %c0_97, %c0_98] : memref<36x10x128xf32, #tpu.memory_space<vmem>>, vector<1x10x128xf32>
    %190 = vector.shape_cast %189 : vector<1x10x128xf32> to vector<10x128xf32>
    %cst_99 = arith.constant dense<0.000000e+00> : vector<8x128xf32>
    %191 = tpu.matmul %188, %190, %cst_99 {dimension_numbers = #tpu.dot_dimension_numbers<[1], [0], [0], [1], [0, 0, 1, 1], [], []>} : vector<8x10xf32>, vector<10x128xf32>, vector<8x128xf32> -> vector<8x128xf32>
    %192 = arith.addf %187, %191 : vector<8x128xf32>
    %193 = vector.extract_strided_slice %38 {offsets = [248, 0], sizes = [8, 10], strides = [1, 1]} : vector<288x10xf32> to vector<8x10xf32>
    %c31 = arith.constant 31 : index
    %c0_100 = arith.constant 0 : index
    %c0_101 = arith.constant 0 : index
    %194 = vector.load %arg3[%c31, %c0_100, %c0_101] : memref<36x10x128xf32, #tpu.memory_space<vmem>>, vector<1x10x128xf32>
    %195 = vector.shape_cast %194 : vector<1x10x128xf32> to vector<10x128xf32>
    %cst_102 = arith.constant dense<0.000000e+00> : vector<8x128xf32>
    %196 = tpu.matmul %193, %195, %cst_102 {dimension_numbers = #tpu.dot_dimension_numbers<[1], [0], [0], [1], [0, 0, 1, 1], [], []>} : vector<8x10xf32>, vector<10x128xf32>, vector<8x128xf32> -> vector<8x128xf32>
    %197 = arith.addf %192, %196 : vector<8x128xf32>
    %198 = vector.extract_strided_slice %38 {offsets = [256, 0], sizes = [8, 10], strides = [1, 1]} : vector<288x10xf32> to vector<8x10xf32>
    %c32 = arith.constant 32 : index
    %c0_103 = arith.constant 0 : index
    %c0_104 = arith.constant 0 : index
    %199 = vector.load %arg3[%c32, %c0_103, %c0_104] : memref<36x10x128xf32, #tpu.memory_space<vmem>>, vector<1x10x128xf32>
    %200 = vector.shape_cast %199 : vector<1x10x128xf32> to vector<10x128xf32>
    %cst_105 = arith.constant dense<0.000000e+00> : vector<8x128xf32>
    %201 = tpu.matmul %198, %200, %cst_105 {dimension_numbers = #tpu.dot_dimension_numbers<[1], [0], [0], [1], [0, 0, 1, 1], [], []>} : vector<8x10xf32>, vector<10x128xf32>, vector<8x128xf32> -> vector<8x128xf32>
    %202 = arith.addf %197, %201 : vector<8x128xf32>
    %203 = vector.extract_strided_slice %38 {offsets = [264, 0], sizes = [8, 10], strides = [1, 1]} : vector<288x10xf32> to vector<8x10xf32>
    %c33 = arith.constant 33 : index
    %c0_106 = arith.constant 0 : index
    %c0_107 = arith.constant 0 : index
    %204 = vector.load %arg3[%c33, %c0_106, %c0_107] : memref<36x10x128xf32, #tpu.memory_space<vmem>>, vector<1x10x128xf32>
    %205 = vector.shape_cast %204 : vector<1x10x128xf32> to vector<10x128xf32>
    %cst_108 = arith.constant dense<0.000000e+00> : vector<8x128xf32>
    %206 = tpu.matmul %203, %205, %cst_108 {dimension_numbers = #tpu.dot_dimension_numbers<[1], [0], [0], [1], [0, 0, 1, 1], [], []>} : vector<8x10xf32>, vector<10x128xf32>, vector<8x128xf32> -> vector<8x128xf32>
    %207 = arith.addf %202, %206 : vector<8x128xf32>
    %208 = vector.extract_strided_slice %38 {offsets = [272, 0], sizes = [8, 10], strides = [1, 1]} : vector<288x10xf32> to vector<8x10xf32>
    %c34 = arith.constant 34 : index
    %c0_109 = arith.constant 0 : index
    %c0_110 = arith.constant 0 : index
    %209 = vector.load %arg3[%c34, %c0_109, %c0_110] : memref<36x10x128xf32, #tpu.memory_space<vmem>>, vector<1x10x128xf32>
    %210 = vector.shape_cast %209 : vector<1x10x128xf32> to vector<10x128xf32>
    %cst_111 = arith.constant dense<0.000000e+00> : vector<8x128xf32>
    %211 = tpu.matmul %208, %210, %cst_111 {dimension_numbers = #tpu.dot_dimension_numbers<[1], [0], [0], [1], [0, 0, 1, 1], [], []>} : vector<8x10xf32>, vector<10x128xf32>, vector<8x128xf32> -> vector<8x128xf32>
    %212 = arith.addf %207, %211 : vector<8x128xf32>
    %213 = vector.extract_strided_slice %38 {offsets = [280, 0], sizes = [8, 10], strides = [1, 1]} : vector<288x10xf32> to vector<8x10xf32>
    %c35 = arith.constant 35 : index
    %c0_112 = arith.constant 0 : index
    %c0_113 = arith.constant 0 : index
    %214 = vector.load %arg3[%c35, %c0_112, %c0_113] : memref<36x10x128xf32, #tpu.memory_space<vmem>>, vector<1x10x128xf32>
    %215 = vector.shape_cast %214 : vector<1x10x128xf32> to vector<10x128xf32>
    %cst_114 = arith.constant dense<0.000000e+00> : vector<8x128xf32>
    %216 = tpu.matmul %213, %215, %cst_114 {dimension_numbers = #tpu.dot_dimension_numbers<[1], [0], [0], [1], [0, 0, 1, 1], [], []>} : vector<8x10xf32>, vector<10x128xf32>, vector<8x128xf32> -> vector<8x128xf32>
    %217 = arith.addf %212, %216 : vector<8x128xf32>
    %c0_115 = arith.constant 0 : index
    %c0_116 = arith.constant 0 : index
    %218 = vector.load %arg4[%c0_115, %c0_116] : memref<1x128xf32, #tpu.memory_space<vmem>>, vector<1x128xf32>
    %219 = vector.broadcast %218 : vector<1x128xf32> to vector<8x128xf32>
    %220 = arith.addf %217, %219 : vector<8x128xf32>
    %cst_117 = arith.constant 0.000000e+00 : f32
    %221 = vector.broadcast %cst_117 : f32 to vector<8x128xf32>
    %222 = arith.maximumf %220, %221 : vector<8x128xf32>
    %c0_118 = arith.constant 0 : index
    %c0_119 = arith.constant 0 : index
    %223 = vector.load %arg5[%c0_118, %c0_119] : memref<128x128xf32, #tpu.memory_space<vmem>>, vector<128x128xf32>
    %cst_120 = arith.constant dense<0.000000e+00> : vector<8x128xf32>
    %224 = tpu.matmul %222, %223, %cst_120 {dimension_numbers = #tpu.dot_dimension_numbers<[1], [0], [0], [1], [0, 0, 1, 1], [], []>} : vector<8x128xf32>, vector<128x128xf32>, vector<8x128xf32> -> vector<8x128xf32>
    %c0_121 = arith.constant 0 : index
    %c0_122 = arith.constant 0 : index
    %225 = vector.load %arg6[%c0_121, %c0_122] : memref<1x128xf32, #tpu.memory_space<vmem>>, vector<1x128xf32>
    %226 = vector.broadcast %225 : vector<1x128xf32> to vector<8x128xf32>
    %227 = arith.addf %224, %226 : vector<8x128xf32>
    %cst_123 = arith.constant 0.000000e+00 : f32
    %228 = vector.broadcast %cst_123 : f32 to vector<8x128xf32>
    %229 = arith.maximumf %227, %228 : vector<8x128xf32>
    %c0_124 = arith.constant 0 : index
    %c0_125 = arith.constant 0 : index
    %230 = vector.load %arg7[%c0_124, %c0_125] : memref<128x128xf32, #tpu.memory_space<vmem>>, vector<128x128xf32>
    %cst_126 = arith.constant dense<0.000000e+00> : vector<8x128xf32>
    %231 = tpu.matmul %229, %230, %cst_126 {dimension_numbers = #tpu.dot_dimension_numbers<[1], [0], [0], [1], [0, 0, 1, 1], [], []>} : vector<8x128xf32>, vector<128x128xf32>, vector<8x128xf32> -> vector<8x128xf32>
    %c0_127 = arith.constant 0 : index
    %c0_128 = arith.constant 0 : index
    %232 = vector.load %arg8[%c0_127, %c0_128] : memref<1x128xf32, #tpu.memory_space<vmem>>, vector<1x128xf32>
    %233 = vector.broadcast %232 : vector<1x128xf32> to vector<8x128xf32>
    %234 = arith.addf %231, %233 : vector<8x128xf32>
    %c0_129 = arith.constant 0 : index
    %c0_130 = arith.constant 0 : index
    %235 = vector.load %arg9[%c0_129, %c0_130] : memref<8x128xf32, #tpu.memory_space<vmem>>, vector<8x128xf32>
    tpu.vector_store %arg9[%c0_129, %c0_130], %234 {strides = array<i32>} : memref<8x128xf32, #tpu.memory_space<vmem>>, vector<8x128xf32>,
    return
  }
}

</mosaic_0001>

<bundles_post_ra>
// kernel: cnn_forward.1
= control target key start
LH: loop header
LB: loop body
LE: loop exit
PB: predicated region body
PF: predicated region fallthrough
CT: control target
= control target key end

     0   :  { %vm2348_vm0 = vcmask 1040384   ;;  %vm619_vm1 = vcmask 203776   ;;  %vm5882_vm2 = vcmask 1041408   ;;  %vm11608_vm3 = vmmov 0   ;;  %s17652_s1 = inlined_call_operand.vmem [shape: f32[25,10], index: 1, kind: input, shape index: {}]   ;;  %s17653_s0 = inlined_call_operand.vmem [shape: f32[4608,25], index: 0, kind: input, shape index: {}]   ;;  %s17654_s2 = inlined_call_operand.vmem [shape: f32[1,10], index: 2, kind: input, shape index: {}]   ;;  %s17655_s3 = inlined_call_operand.vmem [shape: f32[36,10,128], index: 3, kind: input, shape index: {}]   ;;  %s17656_s5 = inlined_call_operand.vmem [shape: f32[128,128], index: 5, kind: input, shape index: {}]   ;;  %s17657_s4 = inlined_call_operand.vmem [shape: f32[1,128], index: 4, kind: input, shape index: {}]   ;;  %s17658_s7 = inlined_call_operand.vmem [shape: f32[128,128], index: 7, kind: input, shape index: {}]   ;;  %s17659_s6 = inlined_call_operand.vmem [shape: f32[1,128], index: 6, kind: input, shape index: {}]   ;;  %s17660_s8 = inlined_call_operand.vmem [shape: f32[1,128], index: 8, kind: input, shape index: {}]   ;;  %s17661_s9 = inlined_call_operand.vmem [shape: f32[8,128], index: 9, kind: output, shape index: {}]  }
   0x1   :  { %v611_v0 = vld [vmem:[%s17652_s1 + $0x18] sm:$0x1]  ;;  %v610_v1 = vld [vmem:[%s17652_s1 + $0x10] sm:$0xff]  ;;  %v32_v2 = vld [vmem:[%s17653_s0] sm:$0xff]  ;;  %vm5878_vm4 = vcmask 80896  }
   0x2   :  { %10398 = vmatprep.subr.msk.mxu0 %vm2348_vm0, %v611_v0  ;;  %11592 = vmatprep.subr.msk.mxu1 %vm2348_vm0, %v611_v0  ;;  %v609_v3 = vld [vmem:[%s17652_s1 + $0x8] sm:$0xff]  ;;  %v608_v4 = vld [vmem:[%s17652_s1] sm:$0xff]  ;;  %v34_v6 = vld [vmem:[%s17653_s0 + $0x10] sm:$0xff] }
   0x3   :  { %10399 = vmatpush3.msk.msra.mxu0 %vm2348_vm0, %v611_v0  ;;  %10406 = vmatprep.mubr.msk.f32.mxu0 %vm619_vm1, %v32_v2  ;;  %v33_v5 = vld [vmem:[%s17653_s0 + $0x8] sm:$0xff]  ;;  %v35_v7 = vld [vmem:[%s17653_s0 + $0x18] sm:$0xff]  ;;  %v36_v8 = vld [vmem:[%s17653_s0 + $0x20] sm:$0xff] }
   0x4   :  { %10400 = vmatprep.subr.mxu0 %v610_v1  ;;  %11596 = vmatpush3.msk.msra.mxu1 %vm2348_vm0, %v611_v0  ;;  %v37_v9 = vld [vmem:[%s17653_s0 + $0x28] sm:$0xff]  ;;  %v38_v10 = vld [vmem:[%s17653_s0 + $0x30] sm:$0xff]  ;;  %v39_v11 = vld [vmem:[%s17653_s0 + $0x38] sm:$0xff] }
   0x5   :  { %10401 = vmatpush3.msra.mxu0 %v610_v1  ;;  %11593 = vmatprep.subr.mxu1 %v610_v1  ;;  %v40_v12 = vld [vmem:[%s17653_s0 + $0x40] sm:$0xff]  ;;  %v41_v13 = vld [vmem:[%s17653_s0 + $0x48] sm:$0xff]  ;;  %v42_v14 = vld [vmem:[%s17653_s0 + $0x50] sm:$0xff] }
   0x6   :  { %10402 = vmatprep.subr.mxu0 %v609_v3  ;;  %11597 = vmatpush3.msra.mxu1 %v610_v1  ;;  %v43_v15 = vld [vmem:[%s17653_s0 + $0x58] sm:$0xff]  ;;  %v44_v16 = vld [vmem:[%s17653_s0 + $0x60] sm:$0xff]  ;;  %v45_v17 = vld [vmem:[%s17653_s0 + $0x68] sm:$0xff] }
   0x7   :  { %10403 = vmatpush3.msra.mxu0 %v609_v3  ;;  %11594 = vmatprep.subr.mxu1 %v609_v3  ;;  %v46_v18 = vld [vmem:[%s17653_s0 + $0x70] sm:$0xff]  ;;  %v47_v19 = vld [vmem:[%s17653_s0 + $0x78] sm:$0xff]  ;;  %v48_v20 = vld [vmem:[%s17653_s0 + $0x80] sm:$0xff] }
   0x8   :  { %10404 = vmatprep.subr.mxu0 %v608_v4  ;;  %11598 = vmatpush3.msra.mxu1 %v609_v3  ;;  %v49_v21 = vld [vmem:[%s17653_s0 + $0x88] sm:$0xff]  ;;  %v50_v22 = vld [vmem:[%s17653_s0 + $0x90] sm:$0xff]  ;;  %v51_v23 = vld [vmem:[%s17653_s0 + $0x98] sm:$0xff] }
   0x9   :  { %10405 = vmatpush3.msra.mxu0 %v608_v4  ;;  %11595 = vmatprep.subr.mxu1 %v608_v4  ;;  %v52_v24 = vld [vmem:[%s17653_s0 + $0xa0] sm:$0xff]  ;;  %v53_v25 = vld [vmem:[%s17653_s0 + $0xa8] sm:$0xff]  ;;  %v54_v26 = vld [vmem:[%s17653_s0 + $0xb0] sm:$0xff] }
   0xa   :  { %10407 = vmatmul.mubr.msk.f32.vlgmr.msra.gmra.mxu0 %vm619_vm1, %v33_v5  ;;  %11599 = vmatpush3.msra.mxu1 %v608_v4  ;;  %v55_v27 = vld [vmem:[%s17653_s0 + $0xb8] sm:$0xff]  ;;  %v56_v28 = vld [vmem:[%s17653_s0 + $0xc0] sm:$0xff]  ;;  %v57_v29 = vld [vmem:[%s17653_s0 + $0xc8] sm:$0xff] }
   0xb   :  { %10409 = vmatprep.mubr.msk.f32.mxu0 %vm619_vm1, %v34_v6  ;;  %v58_v30 = vld [vmem:[%s17653_s0 + $0xd0] sm:$0xff]  ;;  %v372_v31 = vld [vmem:[%s17653_s0 + $0xaa0] sm:$0xff]  ;;  %v59_v32 = vld [vmem:[%s17653_s0 + $0xd8] sm:$0xff] }
   0xc   :  { %10916 = vmatprep.mubr.msk.f32.mxu1 %vm619_vm1, %v372_v31  ;;  %v373_v33 = vld [vmem:[%s17653_s0 + $0xaa8] sm:$0xff]  ;;  %v60_v34 = vld [vmem:[%s17653_s0 + $0xe0] sm:$0xff]  ;;  %v374_v35 = vld [vmem:[%s17653_s0 + $0xab0] sm:$0xff] }
   0xd   :  { %10917 = vmatmul.mubr.msk.f32.vlgmr.msra.gmra.mxu1 %vm619_vm1, %v373_v33  ;;  %v61_v36 = vld [vmem:[%s17653_s0 + $0xe8] sm:$0xff]  ;;  %v375_v37 = vld [vmem:[%s17653_s0 + $0xab8] sm:$0xff]  ;;  %v62_v38 = vld [vmem:[%s17653_s0 + $0xf0] sm:$0xff] }
   0xe   :  { %10410 = vmatmul.mubr.msk.f32.gmra.mxu0 %vm619_vm1, %v35_v7  ;;  %10919 = vmatprep.mubr.msk.f32.mxu1 %vm619_vm1, %v374_v35  ;;  %v376_v39 = vld [vmem:[%s17653_s0 + $0xac0] sm:$0xff]  ;;  %v63_v40 = vld [vmem:[%s17653_s0 + $0xf8] sm:$0xff]  ;;  %v377_v41 = vld [vmem:[%s17653_s0 + $0xac8] sm:$0xff] }
   0xf   :  { %10412 = vmatprep.mubr.msk.f32.mxu0 %vm619_vm1, %v36_v8  ;;  %v64_v42 = vld [vmem:[%s17653_s0 + $0x100] sm:$0xff]  ;;  %v378_v43 = vld [vmem:[%s17653_s0 + $0xad0] sm:$0xff]  ;;  %v65_v44 = vld [vmem:[%s17653_s0 + $0x108] sm:$0xff] }
  0x10   :  { %v379_v45 = vld [vmem:[%s17653_s0 + $0xad8] sm:$0xff]  ;;  %v66_v46 = vld [vmem:[%s17653_s0 + $0x110] sm:$0xff]  ;;  %v380_v47 = vld [vmem:[%s17653_s0 + $0xae0] sm:$0xff] }
  0x11   :  { %10920 = vmatmul.mubr.msk.f32.gmra.mxu1 %vm619_vm1, %v375_v37  ;;  %v67_v48 = vld [vmem:[%s17653_s0 + $0x118] sm:$0xff]  ;;  %v381_v49 = vld [vmem:[%s17653_s0 + $0xae8] sm:$0xff]  ;;  %v68_v50 = vld [vmem:[%s17653_s0 + $0x120] sm:$0xff] }
  0x12   :  { %10413 = vmatmul.mubr.msk.f32.gmra.mxu0 %vm619_vm1, %v37_v9  ;;  %10922 = vmatprep.mubr.msk.f32.mxu1 %vm619_vm1, %v376_v39  ;;  %v382_v51 = vld [vmem:[%s17653_s0 + $0xaf0] sm:$0xff]  ;;  %v69_v52 = vld [vmem:[%s17653_s0 + $0x128] sm:$0xff]  ;;  %v383_v53 = vld [vmem:[%s17653_s0 + $0xaf8] sm:$0xff] }
  0x13   :  { %10415 = vmatprep.mubr.msk.f32.mxu0 %vm619_vm1, %v38_v10  ;;  %v70_v54 = vld [vmem:[%s17653_s0 + $0x130] sm:$0xff]  ;;  %v384_v55 = vld [vmem:[%s17653_s0 + $0xb00] sm:$0xff]  ;;  %v71_v56 = vld [vmem:[%s17653_s0 + $0x138] sm:$0xff] }
  0x14   :  { %v385_v57 = vld [vmem:[%s17653_s0 + $0xb08] sm:$0xff]  ;;  %v72_v58 = vld [vmem:[%s17653_s0 + $0x140] sm:$0xff]  ;;  %v386_v59 = vld [vmem:[%s17653_s0 + $0xb10] sm:$0xff] }
  0x15   :  { %10923 = vmatmul.mubr.msk.f32.gmra.mxu1 %vm619_vm1, %v377_v41  ;;  %v73_v60 = vld [vmem:[%s17653_s0 + $0x148] sm:$0xff]  ;;  %v387_v61 = vld [vmem:[%s17653_s0 + $0xb18] sm:$0xff]  ;;  %v74_v62 = vld [vmem:[%s17653_s0 + $0x150] sm:$0xff] }
  0x16   :  { %10416 = vmatmul.mubr.msk.f32.gmra.mxu0 %vm619_vm1, %v39_v11  ;;  %10925 = vmatprep.mubr.msk.f32.mxu1 %vm619_vm1, %v378_v43  ;;  %v388_v63 = vld [vmem:[%s17653_s0 + $0xb20] sm:$0xff]  ;;  %v75_v0 = vld [vmem:[%s17653_s0 + $0x158] sm:$0xff]  ;;  %v389_v1 = vld [vmem:[%s17653_s0 + $0xb28] sm:$0xff] }
  0x17   :  { %10418 = vmatprep.mubr.msk.f32.mxu0 %vm619_vm1, %v40_v12  ;;  %v76_v2 = vld [vmem:[%s17653_s0 + $0x160] sm:$0xff]  ;;  %v390_v3 = vld [vmem:[%s17653_s0 + $0xb30] sm:$0xff]  ;;  %v77_v4 = vld [vmem:[%s17653_s0 + $0x168] sm:$0xff] }
  0x18   :  { %v391_v5 = vld [vmem:[%s17653_s0 + $0xb38] sm:$0xff]  ;;  %v78_v6 = vld [vmem:[%s17653_s0 + $0x170] sm:$0xff]  ;;  %v392_v7 = vld [vmem:[%s17653_s0 + $0xb40] sm:$0xff] }
  0x19   :  { %10926 = vmatmul.mubr.msk.f32.gmra.mxu1 %vm619_vm1, %v379_v45  ;;  %v79_v8 = vld [vmem:[%s17653_s0 + $0x178] sm:$0xff]  ;;  %v393_v9 = vld [vmem:[%s17653_s0 + $0xb48] sm:$0xff]  ;;  %v80_v10 = vld [vmem:[%s17653_s0 + $0x180] sm:$0xff] }
  0x1a   :  { %10419 = vmatmul.mubr.msk.f32.gmra.mxu0 %vm619_vm1, %v41_v13  ;;  %10928 = vmatprep.mubr.msk.f32.mxu1 %vm619_vm1, %v380_v47  ;;  %v394_v11 = vld [vmem:[%s17653_s0 + $0xb50] sm:$0xff]  ;;  %v81_v12 = vld [vmem:[%s17653_s0 + $0x188] sm:$0xff]  ;;  %v395_v13 = vld [vmem:[%s17653_s0 + $0xb58] sm:$0xff] }
  0x1b   :  { %10421 = vmatprep.mubr.msk.f32.mxu0 %vm619_vm1, %v42_v14  ;;  %v82_v14 = vld [vmem:[%s17653_s0 + $0x190] sm:$0xff]  ;;  %v404_v31 = vld [vmem:[%s17653_s0 + $0xba0] sm:$0xff]  ;;  %v405_v33 = vld [vmem:[%s17653_s0 + $0xba8] sm:$0xff] }
  0x1c   :  { %v406_v35 = vld [vmem:[%s17653_s0 + $0xbb0] sm:$0xff]  ;;  %v407_v37 = vld [vmem:[%s17653_s0 + $0xbb8] sm:$0xff]  ;;  %v408_v39 = vld [vmem:[%s17653_s0 + $0xbc0] sm:$0xff] }
  0x1d   :  { %10929 = vmatmul.mubr.msk.f32.gmra.mxu1 %vm619_vm1, %v381_v49  ;;  %v409_v41 = vld [vmem:[%s17653_s0 + $0xbc8] sm:$0xff]  ;;  %v410_v43 = vld [vmem:[%s17653_s0 + $0xbd0] sm:$0xff]  ;;  %v411_v45 = vld [vmem:[%s17653_s0 + $0xbd8] sm:$0xff] }
  0x1e   :  { %10422 = vmatmul.mubr.msk.f32.gmra.mxu0 %vm619_vm1, %v43_v15  ;;  %10931 = vmatprep.mubr.msk.f32.mxu1 %vm619_vm1, %v382_v51  ;;  %v396_v15 = vld [vmem:[%s17653_s0 + $0xb60] sm:$0xff]  ;;  %v413_v49 = vld [vmem:[%s17653_s0 + $0xbe8] sm:$0xff]  ;;  %v414_v51 = vld [vmem:[%s17653_s0 + $0xbf0] sm:$0xff] }
  0x1f   :  { %10424 = vmatprep.mubr.msk.f32.mxu0 %vm619_vm1, %v44_v16  ;;  %v83_v16 = vld [vmem:[%s17653_s0 + $0x198] sm:$0xff]  ;;  %v412_v47 = vld [vmem:[%s17653_s0 + $0xbe0] sm:$0xff] }
  0x21   :  { %10932 = vmatmul.mubr.msk.f32.gmra.mxu1 %vm619_vm1, %v383_v53  ;;  %v415_v53 = vld [vmem:[%s17653_s0 + $0xbf8] sm:$0xff] }
  0x22   :  { %10425 = vmatmul.mubr.msk.f32.gmra.mxu0 %vm619_vm1, %v45_v17  ;;  %10934 = vmatprep.mubr.msk.f32.mxu1 %vm619_vm1, %v384_v55  ;;  %v397_v17 = vld [vmem:[%s17653_s0 + $0xb68] sm:$0xff]  ;;  %v416_v55 = vld [vmem:[%s17653_s0 + $0xc00] sm:$0xff] }
  0x23   :  { %10427 = vmatprep.mubr.msk.f32.mxu0 %vm619_vm1, %v46_v18  ;;  %v84_v18 = vld [vmem:[%s17653_s0 + $0x1a0] sm:$0xff] }
  0x25   :  { %10935 = vmatmul.mubr.msk.f32.gmra.mxu1 %vm619_vm1, %v385_v57  ;;  %v417_v57 = vld [vmem:[%s17653_s0 + $0xc08] sm:$0xff] }
  0x26   :  { %10428 = vmatmul.mubr.msk.f32.gmra.mxu0 %vm619_vm1, %v47_v19  ;;  %10937 = vmatprep.mubr.msk.f32.mxu1 %vm619_vm1, %v386_v59  ;;  %v398_v19 = vld [vmem:[%s17653_s0 + $0xb70] sm:$0xff] }
  0x27   :  { %10430 = vmatprep.mubr.msk.f32.mxu0 %vm619_vm1, %v48_v20  ;;  %v85_v20 = vld [vmem:[%s17653_s0 + $0x1a8] sm:$0xff]  ;;  %v418_v59 = vld [vmem:[%s17653_s0 + $0xc10] sm:$0xff] }
  0x29   :  { %10938 = vmatmul.mubr.msk.f32.gmra.mxu1 %vm619_vm1, %v387_v61  ;;  %v419_v61 = vld [vmem:[%s17653_s0 + $0xc18] sm:$0xff] }
  0x2a   :  { %10431 = vmatmul.mubr.msk.f32.gmra.mxu0 %vm619_vm1, %v49_v21  ;;  %10940 = vmatprep.mubr.msk.f32.mxu1 %vm619_vm1, %v388_v63  ;;  %v399_v21 = vld [vmem:[%s17653_s0 + $0xb78] sm:$0xff]  ;;  %v420_v63 = vld [vmem:[%s17653_s0 + $0xc20] sm:$0xff] }
  0x2b   :  { %10433 = vmatprep.mubr.msk.f32.mxu0 %vm619_vm1, %v50_v22  ;;  %v86_v22 = vld [vmem:[%s17653_s0 + $0x1b0] sm:$0xff] }
  0x2d   :  { %10941 = vmatmul.mubr.msk.f32.gmra.mxu1 %vm619_vm1, %v389_v1  ;;  %v421_v1 = vld [vmem:[%s17653_s0 + $0xc28] sm:$0xff] }
  0x2e   :  { %10434 = vmatmul.mubr.msk.f32.gmra.mxu0 %vm619_vm1, %v51_v23  ;;  %10943 = vmatprep.mubr.msk.f32.mxu1 %vm619_vm1, %v390_v3  ;;  %v400_v23 = vld [vmem:[%s17653_s0 + $0xb80] sm:$0xff]  ;;  %v422_v3 = vld [vmem:[%s17653_s0 + $0xc30] sm:$0xff] }
  0x2f   :  { %10436 = vmatprep.mubr.msk.f32.mxu0 %vm619_vm1, %v52_v24  ;;  %v87_v24 = vld [vmem:[%s17653_s0 + $0x1b8] sm:$0xff] }
  0x31   :  { %10944 = vmatmul.mubr.msk.f32.gmra.mxu1 %vm619_vm1, %v391_v5  ;;  %v423_v5 = vld [vmem:[%s17653_s0 + $0xc38] sm:$0xff] }
  0x32   :  { %10437 = vmatmul.mubr.msk.f32.gmra.mxu0 %vm619_vm1, %v53_v25  ;;  %10946 = vmatprep.mubr.msk.f32.mxu1 %vm619_vm1, %v392_v7  ;;  %v401_v25 = vld [vmem:[%s17653_s0 + $0xb88] sm:$0xff]  ;;  %v424_v7 = vld [vmem:[%s17653_s0 + $0xc40] sm:$0xff] }
  0x33   :  { %10439 = vmatprep.mubr.msk.f32.mxu0 %vm619_vm1, %v54_v26  ;;  %v88_v26 = vld [vmem:[%s17653_s0 + $0x1c0] sm:$0xff] }
  0x35   :  { %10947 = vmatmul.mubr.msk.f32.gmra.mxu1 %vm619_vm1, %v393_v9  ;;  %v425_v9 = vld [vmem:[%s17653_s0 + $0xc48] sm:$0xff] }
  0x36   :  { %10440 = vmatmul.mubr.msk.f32.gmra.mxu0 %vm619_vm1, %v55_v27  ;;  %10949 = vmatprep.mubr.msk.f32.mxu1 %vm619_vm1, %v394_v11  ;;  %v402_v27 = vld [vmem:[%s17653_s0 + $0xb90] sm:$0xff] }
  0x37   :  { %10442 = vmatprep.mubr.msk.f32.mxu0 %vm619_vm1, %v56_v28  ;;  %v89_v28 = vld [vmem:[%s17653_s0 + $0x1c8] sm:$0xff]  ;;  %v426_v11 = vld [vmem:[%s17653_s0 + $0xc50] sm:$0xff] }
  0x39   :  { %10950 = vmatmul.mubr.msk.f32.gmra.mxu1 %vm619_vm1, %v395_v13  ;;  %v427_v13 = vld [vmem:[%s17653_s0 + $0xc58] sm:$0xff] }
  0x3a   :  { %10443 = vmatmul.mubr.msk.f32.gmra.mxu0 %vm619_vm1, %v57_v29  ;;  %10952 = vmatprep.mubr.msk.f32.mxu1 %vm619_vm1, %v396_v15  ;;  %v403_v29 = vld [vmem:[%s17653_s0 + $0xb98] sm:$0xff]  ;;  %v428_v15 = vld [vmem:[%s17653_s0 + $0xc60] sm:$0xff] }
  0x3b   :  { %10445 = vmatprep.mubr.msk.f32.mxu0 %vm619_vm1, %v58_v30  ;;  %v90_v30 = vld [vmem:[%s17653_s0 + $0x1d0] sm:$0xff] }
  0x3d   :  { %10953 = vmatmul.mubr.msk.f32.gmra.mxu1 %vm619_vm1, %v397_v17  ;;  %v429_v17 = vld [vmem:[%s17653_s0 + $0xc68] sm:$0xff] }
  0x3e   :  { %10446 = vmatmul.mubr.msk.f32.gmra.mxu0 %vm619_vm1, %v59_v32  ;;  %10955 = vmatprep.mubr.msk.f32.mxu1 %vm619_vm1, %v398_v19  ;;  %v91_v32 = vld [vmem:[%s17653_s0 + $0x1d8] sm:$0xff]  ;;  %v430_v19 = vld [vmem:[%s17653_s0 + $0xc70] sm:$0xff] }
  0x3f   :  { %10448 = vmatprep.mubr.msk.f32.mxu0 %vm619_vm1, %v60_v34  ;;  %v92_v34 = vld [vmem:[%s17653_s0 + $0x1e0] sm:$0xff] }
  0x41   :  { %10956 = vmatmul.mubr.msk.f32.gmra.mxu1 %vm619_vm1, %v399_v21  ;;  %v431_v21 = vld [vmem:[%s17653_s0 + $0xc78] sm:$0xff] }
  0x42   :  { %10449 = vmatmul.mubr.msk.f32.gmra.mxu0 %vm619_vm1, %v61_v36  ;;  %10958 = vmatprep.mubr.msk.f32.mxu1 %vm619_vm1, %v400_v23  ;;  %v93_v36 = vld [vmem:[%s17653_s0 + $0x1e8] sm:$0xff]  ;;  %v432_v23 = vld [vmem:[%s17653_s0 + $0xc80] sm:$0xff] }
  0x43   :  { %10451 = vmatprep.mubr.msk.f32.mxu0 %vm619_vm1, %v62_v38  ;;  %v94_v38 = vld [vmem:[%s17653_s0 + $0x1f0] sm:$0xff] }
  0x45   :  { %10959 = vmatmul.mubr.msk.f32.gmra.mxu1 %vm619_vm1, %v401_v25  ;;  %v433_v25 = vld [vmem:[%s17653_s0 + $0xc88] sm:$0xff] }
  0x46   :  { %10452 = vmatmul.mubr.msk.f32.gmra.mxu0 %vm619_vm1, %v63_v40  ;;  %10961 = vmatprep.mubr.msk.f32.mxu1 %vm619_vm1, %v402_v27  ;;  %v95_v40 = vld [vmem:[%s17653_s0 + $0x1f8] sm:$0xff]  ;;  %v434_v27 = vld [vmem:[%s17653_s0 + $0xc90] sm:$0xff] }
  0x47   :  { %10454 = vmatprep.mubr.msk.f32.mxu0 %vm619_vm1, %v64_v42  ;;  %v96_v42 = vld [vmem:[%s17653_s0 + $0x200] sm:$0xff] }
  0x49   :  { %10962 = vmatmul.mubr.msk.f32.gmra.mxu1 %vm619_vm1, %v403_v29  ;;  %v435_v29 = vld [vmem:[%s17653_s0 + $0xc98] sm:$0xff] }
  0x4a   :  { %10455 = vmatmul.mubr.msk.f32.gmra.mxu0 %vm619_vm1, %v65_v44  ;;  %10964 = vmatprep.mubr.msk.f32.mxu1 %vm619_vm1, %v404_v31  ;;  %v97_v44 = vld [vmem:[%s17653_s0 + $0x208] sm:$0xff]  ;;  %v436_v31 = vld [vmem:[%s17653_s0 + $0xca0] sm:$0xff] }
  0x4b   :  { %10457 = vmatprep.mubr.msk.f32.mxu0 %vm619_vm1, %v66_v46  ;;  %v98_v46 = vld [vmem:[%s17653_s0 + $0x210] sm:$0xff] }
  0x4d   :  { %10965 = vmatmul.mubr.msk.f32.gmra.mxu1 %vm619_vm1, %v405_v33  ;;  %v437_v33 = vld [vmem:[%s17653_s0 + $0xca8] sm:$0xff] }
  0x4e   :  { %10458 = vmatmul.mubr.msk.f32.gmra.mxu0 %vm619_vm1, %v67_v48  ;;  %10967 = vmatprep.mubr.msk.f32.mxu1 %vm619_vm1, %v406_v35  ;;  %v99_v48 = vld [vmem:[%s17653_s0 + $0x218] sm:$0xff]  ;;  %v438_v35 = vld [vmem:[%s17653_s0 + $0xcb0] sm:$0xff] }
  0x4f   :  { %10460 = vmatprep.mubr.msk.f32.mxu0 %vm619_vm1, %v68_v50  ;;  %v100_v50 = vld [vmem:[%s17653_s0 + $0x220] sm:$0xff] }
  0x51   :  { %10968 = vmatmul.mubr.msk.f32.gmra.mxu1 %vm619_vm1, %v407_v37  ;;  %v439_v37 = vld [vmem:[%s17653_s0 + $0xcb8] sm:$0xff] }
  0x52   :  { %10461 = vmatmul.mubr.msk.f32.gmra.mxu0 %vm619_vm1, %v69_v52  ;;  %10970 = vmatprep.mubr.msk.f32.mxu1 %vm619_vm1, %v408_v39  ;;  %v101_v52 = vld [vmem:[%s17653_s0 + $0x228] sm:$0xff]  ;;  %v440_v39 = vld [vmem:[%s17653_s0 + $0xcc0] sm:$0xff] }
  0x53   :  { %10463 = vmatprep.mubr.msk.f32.mxu0 %vm619_vm1, %v70_v54  ;;  %v102_v54 = vld [vmem:[%s17653_s0 + $0x230] sm:$0xff] }
  0x55   :  { %10971 = vmatmul.mubr.msk.f32.gmra.mxu1 %vm619_vm1, %v409_v41  ;;  %v441_v41 = vld [vmem:[%s17653_s0 + $0xcc8] sm:$0xff] }
  0x56   :  { %10464 = vmatmul.mubr.msk.f32.gmra.mxu0 %vm619_vm1, %v71_v56  ;;  %10973 = vmatprep.mubr.msk.f32.mxu1 %vm619_vm1, %v410_v43  ;;  %v103_v56 = vld [vmem:[%s17653_s0 + $0x238] sm:$0xff]  ;;  %v442_v43 = vld [vmem:[%s17653_s0 + $0xcd0] sm:$0xff] }
  0x57   :  { %10466 = vmatprep.mubr.msk.f32.mxu0 %vm619_vm1, %v72_v58  ;;  %v104_v58 = vld [vmem:[%s17653_s0 + $0x240] sm:$0xff] }
  0x59   :  { %10974 = vmatmul.mubr.msk.f32.gmra.mxu1 %vm619_vm1, %v411_v45  ;;  %v443_v45 = vld [vmem:[%s17653_s0 + $0xcd8] sm:$0xff] }
  0x5a   :  { %10467 = vmatmul.mubr.msk.f32.gmra.mxu0 %vm619_vm1, %v73_v60  ;;  %10976 = vmatprep.mubr.msk.f32.mxu1 %vm619_vm1, %v412_v47  ;;  %v105_v60 = vld [vmem:[%s17653_s0 + $0x248] sm:$0xff] }
  0x5b   :  { %10469 = vmatprep.mubr.msk.f32.mxu0 %vm619_vm1, %v74_v62  ;;  %v106_v62 = vld [vmem:[%s17653_s0 + $0x250] sm:$0xff] }
  0x5d   :  { %10977 = vmatmul.mubr.msk.f32.gmra.mxu1 %vm619_vm1, %v413_v49  ;;  %v131_v49 = vld [vmem:[%s17653_s0 + $0x318] sm:$0xff] }
  0x5e   :  { %10470 = vmatmul.mubr.msk.f32.gmra.mxu0 %vm619_vm1, %v75_v0  ;;  %10979 = vmatprep.mubr.msk.f32.mxu1 %vm619_vm1, %v414_v51  ;;  %v107_v0 = vld [vmem:[%s17653_s0 + $0x258] sm:$0xff] }
  0x5f   :  { %10472 = vmatprep.mubr.msk.f32.mxu0 %vm619_vm1, %v76_v2  ;;  %v108_v2 = vld [vmem:[%s17653_s0 + $0x260] sm:$0xff] }
  0x61   :  { %10980 = vmatmul.mubr.msk.f32.gmra.mxu1 %vm619_vm1, %v415_v53 }
  0x62   :  { %10473 = vmatmul.mubr.msk.f32.gmra.mxu0 %vm619_vm1, %v77_v4  ;;  %10982 = vmatprep.mubr.msk.f32.mxu1 %vm619_vm1, %v416_v55  ;;  %v109_v4 = vld [vmem:[%s17653_s0 + $0x268] sm:$0xff] }
  0x63   :  { %10475 = vmatprep.mubr.msk.f32.mxu0 %vm619_vm1, %v78_v6  ;;  %v110_v6 = vld [vmem:[%s17653_s0 + $0x270] sm:$0xff]  ;;  %v133_v55 = vld [vmem:[%s17653_s0 + $0x328] sm:$0xff] }
  0x65   :  { %10983 = vmatmul.mubr.msk.f32.gmra.mxu1 %vm619_vm1, %v417_v57 }
  0x66   :  { %10476 = vmatmul.mubr.msk.f32.gmra.mxu0 %vm619_vm1, %v79_v8  ;;  %10985 = vmatprep.mubr.msk.f32.mxu1 %vm619_vm1, %v418_v59  ;;  %v111_v8 = vld [vmem:[%s17653_s0 + $0x278] sm:$0xff] }
  0x67   :  { %10478 = vmatprep.mubr.msk.f32.mxu0 %vm619_vm1, %v80_v10  ;;  %v112_v10 = vld [vmem:[%s17653_s0 + $0x280] sm:$0xff] }
  0x69   :  { %10986 = vmatmul.mubr.msk.f32.gmra.mxu1 %vm619_vm1, %v419_v61  ;;  %v135_v61 = vld [vmem:[%s17653_s0 + $0x338] sm:$0xff] }
  0x6a   :  { %10479 = vmatmul.mubr.msk.f32.gmra.mxu0 %vm619_vm1, %v81_v12  ;;  %10988 = vmatprep.mubr.msk.f32.mxu1 %vm619_vm1, %v420_v63  ;;  %v113_v12 = vld [vmem:[%s17653_s0 + $0x288] sm:$0xff] }
  0x6b   :  { %10481 = vmatprep.mubr.msk.f32.mxu0 %vm619_vm1, %v82_v14  ;;  %v114_v14 = vld [vmem:[%s17653_s0 + $0x290] sm:$0xff] }
  0x6d   :  { %10989 = vmatmul.mubr.msk.f32.gmra.mxu1 %vm619_vm1, %v421_v1 }
  0x6e   :  { %10482 = vmatmul.mubr.msk.f32.gmra.mxu0 %vm619_vm1, %v83_v16  ;;  %10991 = vmatprep.mubr.msk.f32.mxu1 %vm619_vm1, %v422_v3  ;;  %v115_v16 = vld [vmem:[%s17653_s0 + $0x298] sm:$0xff]  ;;  %v137_v3 = vld [vmem:[%s17653_s0 + $0x348] sm:$0xff] }
  0x6f   :  { %10484 = vmatprep.mubr.msk.f32.mxu0 %vm619_vm1, %v84_v18  ;;  %v116_v18 = vld [vmem:[%s17653_s0 + $0x2a0] sm:$0xff] }
  0x71   :  { %10992 = vmatmul.mubr.msk.f32.gmra.mxu1 %vm619_vm1, %v423_v5 }
  0x72   :  { %10485 = vmatmul.mubr.msk.f32.gmra.mxu0 %vm619_vm1, %v85_v20  ;;  %10994 = vmatprep.mubr.msk.f32.mxu1 %vm619_vm1, %v424_v7  ;;  %v117_v20 = vld [vmem:[%s17653_s0 + $0x2a8] sm:$0xff] }
  0x73   :  { %10487 = vmatprep.mubr.msk.f32.mxu0 %vm619_vm1, %v86_v22  ;;  %v118_v22 = vld [vmem:[%s17653_s0 + $0x2b0] sm:$0xff] }
  0x75   :  { %10995 = vmatmul.mubr.msk.f32.gmra.mxu1 %vm619_vm1, %v425_v9  ;;  %v139_v9 = vld [vmem:[%s17653_s0 + $0x358] sm:$0xff] }
  0x76   :  { %10488 = vmatmul.mubr.msk.f32.gmra.mxu0 %vm619_vm1, %v87_v24  ;;  %10997 = vmatprep.mubr.msk.f32.mxu1 %vm619_vm1, %v426_v11  ;;  %v119_v24 = vld [vmem:[%s17653_s0 + $0x2b8] sm:$0xff] }
  0x77   :  { %10490 = vmatprep.mubr.msk.f32.mxu0 %vm619_vm1, %v88_v26  ;;  %v120_v26 = vld [vmem:[%s17653_s0 + $0x2c0] sm:$0xff] }
  0x79   :  { %10998 = vmatmul.mubr.msk.f32.gmra.mxu1 %vm619_vm1, %v427_v13 }
  0x7a   :  { %10491 = vmatmul.mubr.msk.f32.gmra.mxu0 %vm619_vm1, %v89_v28  ;;  %11000 = vmatprep.mubr.msk.f32.mxu1 %vm619_vm1, %v428_v15  ;;  %v121_v28 = vld [vmem:[%s17653_s0 + $0x2c8] sm:$0xff] }
  0x7b   :  { %10493 = vmatprep.mubr.msk.f32.mxu0 %vm619_vm1, %v90_v30  ;;  %v122_v30 = vld [vmem:[%s17653_s0 + $0x2d0] sm:$0xff]  ;;  %v141_v15 = vld [vmem:[%s17653_s0 + $0x368] sm:$0xff] }
  0x7d   :  { %11001 = vmatmul.mubr.msk.f32.gmra.mxu1 %vm619_vm1, %v429_v17 }
  0x7e   :  { %10494 = vmatmul.mubr.msk.f32.gmra.mxu0 %vm619_vm1, %v91_v32  ;;  %11003 = vmatprep.mubr.msk.f32.mxu1 %vm619_vm1, %v430_v19  ;;  %v123_v32 = vld [vmem:[%s17653_s0 + $0x2d8] sm:$0xff] }
  0x7f   :  { %10496 = vmatprep.mubr.msk.f32.mxu0 %vm619_vm1, %v92_v34  ;;  %v124_v34 = vld [vmem:[%s17653_s0 + $0x2e0] sm:$0xff] }
  0x81   :  { %11004 = vmatmul.mubr.msk.f32.gmra.mxu1 %vm619_vm1, %v431_v21  ;;  %v143_v21 = vld [vmem:[%s17653_s0 + $0x378] sm:$0xff] }
  0x82   :  { %10497 = vmatmul.mubr.msk.f32.gmra.mxu0 %vm619_vm1, %v93_v36  ;;  %11006 = vmatprep.mubr.msk.f32.mxu1 %vm619_vm1, %v432_v23  ;;  %v125_v36 = vld [vmem:[%s17653_s0 + $0x2e8] sm:$0xff] }
  0x83   :  { %10499 = vmatprep.mubr.msk.f32.mxu0 %vm619_vm1, %v94_v38  ;;  %v126_v38 = vld [vmem:[%s17653_s0 + $0x2f0] sm:$0xff] }
  0x85   :  { %11007 = vmatmul.mubr.msk.f32.gmra.mxu1 %vm619_vm1, %v433_v25 }
  0x86   :  { %10500 = vmatmul.mubr.msk.f32.gmra.mxu0 %vm619_vm1, %v95_v40  ;;  %11009 = vmatprep.mubr.msk.f32.mxu1 %vm619_vm1, %v434_v27  ;;  %v127_v40 = vld [vmem:[%s17653_s0 + $0x2f8] sm:$0xff]  ;;  %v145_v27 = vld [vmem:[%s17653_s0 + $0x388] sm:$0xff] }
  0x87   :  { %10502 = vmatprep.mubr.msk.f32.mxu0 %vm619_vm1, %v96_v42  ;;  %v128_v42 = vld [vmem:[%s17653_s0 + $0x300] sm:$0xff] }
  0x89   :  { %11010 = vmatmul.mubr.msk.f32.gmra.mxu1 %vm619_vm1, %v435_v29 }
  0x8a   :  { %10503 = vmatmul.mubr.msk.f32.gmra.mxu0 %vm619_vm1, %v97_v44  ;;  %11012 = vmatprep.mubr.msk.f32.mxu1 %vm619_vm1, %v436_v31  ;;  %v129_v44 = vld [vmem:[%s17653_s0 + $0x308] sm:$0xff] }
  0x8b   :  { %10505 = vmatprep.mubr.msk.f32.mxu0 %vm619_vm1, %v98_v46  ;;  %v130_v46 = vld [vmem:[%s17653_s0 + $0x310] sm:$0xff] }
  0x8d   :  { %11013 = vmatmul.mubr.msk.f32.gmra.mxu1 %vm619_vm1, %v437_v33  ;;  %v147_v33 = vld [vmem:[%s17653_s0 + $0x398] sm:$0xff] }
  0x8e   :  { %10506 = vmatmul.mubr.msk.f32.gmra.mxu0 %vm619_vm1, %v99_v48  ;;  %11015 = vmatprep.mubr.msk.f32.mxu1 %vm619_vm1, %v438_v35  ;;  %v444_v48 = vld [vmem:[%s17653_s0 + $0xce0] sm:$0xff] }
  0x8f   :  { %10508 = vmatprep.mubr.msk.f32.mxu0 %vm619_vm1, %v100_v50  ;;  %v445_v50 = vld [vmem:[%s17653_s0 + $0xce8] sm:$0xff] }
  0x91   :  { %11016 = vmatmul.mubr.msk.f32.gmra.mxu1 %vm619_vm1, %v439_v37 }
  0x92   :  { %10509 = vmatmul.mubr.msk.f32.gmra.mxu0 %vm619_vm1, %v101_v52  ;;  %11018 = vmatprep.mubr.msk.f32.mxu1 %vm619_vm1, %v440_v39  ;;  %v132_v52 = vld [vmem:[%s17653_s0 + $0x320] sm:$0xff]  ;;  %v149_v39 = vld [vmem:[%s17653_s0 + $0x3a8] sm:$0xff] }
  0x93   :  { %10511 = vmatprep.mubr.msk.f32.mxu0 %vm619_vm1, %v102_v54  ;;  %v446_v54 = vld [vmem:[%s17653_s0 + $0xcf0] sm:$0xff] }
  0x95   :  { %11019 = vmatmul.mubr.msk.f32.gmra.mxu1 %vm619_vm1, %v441_v41 }
  0x96   :  { %10512 = vmatmul.mubr.msk.f32.gmra.mxu0 %vm619_vm1, %v103_v56  ;;  %11021 = vmatprep.mubr.msk.f32.mxu1 %vm619_vm1, %v442_v43  ;;  %v447_v56 = vld [vmem:[%s17653_s0 + $0xcf8] sm:$0xff] }
  0x97   :  { %10514 = vmatprep.mubr.msk.f32.mxu0 %vm619_vm1, %v104_v58  ;;  %v134_v58 = vld [vmem:[%s17653_s0 + $0x330] sm:$0xff] }
  0x99   :  { %11022 = vmatmul.mubr.msk.f32.gmra.mxu1 %vm619_vm1, %v443_v45  ;;  %v151_v45 = vld [vmem:[%s17653_s0 + $0x3b8] sm:$0xff] }
  0x9a   :  { %10515 = vmatmul.mubr.msk.f32.gmra.mxu0 %vm619_vm1, %v105_v60  ;;  %11024 = vmatprep.mubr.msk.f32.mxu1 %vm619_vm1, %v444_v48  ;;  %v448_v60 = vld [vmem:[%s17653_s0 + $0xd00] sm:$0xff] }
  0x9b   :  { %10517 = vmatprep.mubr.msk.f32.mxu0 %vm619_vm1, %v106_v62  ;;  %v449_v62 = vld [vmem:[%s17653_s0 + $0xd08] sm:$0xff] }
  0x9d   :  { %11025 = vmatmul.mubr.msk.f32.gmra.mxu1 %vm619_vm1, %v445_v50 }
  0x9e   :  { %10518 = vmatmul.mubr.msk.f32.gmra.mxu0 %vm619_vm1, %v107_v0  ;;  %11027 = vmatprep.mubr.msk.f32.mxu1 %vm619_vm1, %v446_v54  ;;  %v136_v0 = vld [vmem:[%s17653_s0 + $0x340] sm:$0xff]  ;;  %v153_v54 = vld [vmem:[%s17653_s0 + $0x3c8] sm:$0xff] }
  0x9f   :  { %10520 = vmatprep.mubr.msk.f32.mxu0 %vm619_vm1, %v108_v2  ;;  %v450_v2 = vld [vmem:[%s17653_s0 + $0xd10] sm:$0xff] }
  0xa1   :  { %11028 = vmatmul.mubr.msk.f32.gmra.mxu1 %vm619_vm1, %v447_v56 }
  0xa2   :  { %10521 = vmatmul.mubr.msk.f32.gmra.mxu0 %vm619_vm1, %v109_v4  ;;  %11030 = vmatprep.mubr.msk.f32.mxu1 %vm619_vm1, %v448_v60  ;;  %v451_v4 = vld [vmem:[%s17653_s0 + $0xd18] sm:$0xff] }
  0xa3   :  { %10523 = vmatprep.mubr.msk.f32.mxu0 %vm619_vm1, %v110_v6  ;;  %v138_v6 = vld [vmem:[%s17653_s0 + $0x350] sm:$0xff] }
  0xa5   :  { %11031 = vmatmul.mubr.msk.f32.gmra.mxu1 %vm619_vm1, %v449_v62  ;;  %v155_v62 = vld [vmem:[%s17653_s0 + $0x3d8] sm:$0xff] }
  0xa6   :  { %10524 = vmatmul.mubr.msk.f32.gmra.mxu0 %vm619_vm1, %v111_v8  ;;  %11033 = vmatprep.mubr.msk.f32.mxu1 %vm619_vm1, %v450_v2  ;;  %v452_v8 = vld [vmem:[%s17653_s0 + $0xd20] sm:$0xff] }
  0xa7   :  { %10526 = vmatprep.mubr.msk.f32.mxu0 %vm619_vm1, %v112_v10  ;;  %v453_v10 = vld [vmem:[%s17653_s0 + $0xd28] sm:$0xff] }
  0xa9   :  { %11034 = vmatmul.mubr.msk.f32.gmra.mxu1 %vm619_vm1, %v451_v4 }
  0xaa   :  { %10527 = vmatmul.mubr.msk.f32.gmra.mxu0 %vm619_vm1, %v113_v12  ;;  %11036 = vmatprep.mubr.msk.f32.mxu1 %vm619_vm1, %v452_v8  ;;  %v140_v12 = vld [vmem:[%s17653_s0 + $0x360] sm:$0xff] }
  0xab   :  { %10529 = vmatprep.mubr.msk.f32.mxu0 %vm619_vm1, %v114_v14  ;;  %v454_v14 = vld [vmem:[%s17653_s0 + $0xd30] sm:$0xff] }
  0xad   :  { %11037 = vmatmul.mubr.msk.f32.gmra.mxu1 %vm619_vm1, %v453_v10  ;;  %v157_v10 = vld [vmem:[%s17653_s0 + $0x3e8] sm:$0xff] }
  0xae   :  { %10530 = vmatmul.mubr.msk.f32.gmra.mxu0 %vm619_vm1, %v115_v16  ;;  %11039 = vmatprep.mubr.msk.f32.mxu1 %vm619_vm1, %v454_v14  ;;  %v455_v16 = vld [vmem:[%s17653_s0 + $0xd38] sm:$0xff] }
  0xaf   :  { %10532 = vmatprep.mubr.msk.f32.mxu0 %vm619_vm1, %v116_v18  ;;  %v142_v18 = vld [vmem:[%s17653_s0 + $0x370] sm:$0xff] }
  0xb1   :  { %11040 = vmatmul.mubr.msk.f32.gmra.mxu1 %vm619_vm1, %v455_v16 }
  0xb2   :  { %10533 = vmatmul.mubr.msk.f32.gmra.mxu0 %vm619_vm1, %v117_v20  ;;  %v456_v20 = vld [vmem:[%s17653_s0 + $0xd40] sm:$0xff] }
  0xb3   :  { %10535 = vmatprep.mubr.msk.f32.mxu0 %vm619_vm1, %v118_v22  ;;  %11042 = vmatprep.mubr.msk.f32.mxu1 %vm619_vm1, %v456_v20  ;;  %v457_v22 = vld [vmem:[%s17653_s0 + $0xd48] sm:$0xff] }
  0xb5   :  { %11043 = vmatmul.mubr.msk.f32.gmra.mxu1 %vm619_vm1, %v457_v22  ;;  %v159_v22 = vld [vmem:[%s17653_s0 + $0x3f8] sm:$0xff] }
  0xb6   :  { %10536 = vmatmul.mubr.msk.f32.gmra.mxu0 %vm619_vm1, %v119_v24  ;;  %v144_v24 = vld [vmem:[%s17653_s0 + $0x380] sm:$0xff] }
  0xb7   :  { %10538 = vmatprep.mubr.msk.f32.mxu0 %vm619_vm1, %v120_v26  ;;  %v458_v26 = vld [vmem:[%s17653_s0 + $0xd50] sm:$0xff] }
  0xb8   :  { %11045 = vmatprep.mubr.msk.f32.mxu1 %vm619_vm1, %v458_v26 }
  0xba   :  { %10539 = vmatmul.mubr.msk.f32.gmra.mxu0 %vm619_vm1, %v121_v28  ;;  %v459_v28 = vld [vmem:[%s17653_s0 + $0xd58] sm:$0xff] }
  0xbb   :  { %10541 = vmatprep.mubr.msk.f32.mxu0 %vm619_vm1, %v122_v30  ;;  %v146_v30 = vld [vmem:[%s17653_s0 + $0x390] sm:$0xff]  ;;  %11046 = vmatmul.mubr.msk.f32.gmra.mxu1 %vm619_vm1, %v459_v28 }
  0xbe   :  { %10542 = vmatmul.mubr.msk.f32.gmra.mxu0 %vm619_vm1, %v123_v32  ;;  %v460_v32 = vld [vmem:[%s17653_s0 + $0xd60] sm:$0xff] }
  0xbf   :  { %10544 = vmatprep.mubr.msk.f32.mxu0 %vm619_vm1, %v124_v34  ;;  %11048 = vmatprep.mubr.msk.f32.mxu1 %vm619_vm1, %v460_v32  ;;  %v461_v34 = vld [vmem:[%s17653_s0 + $0xd68] sm:$0xff] }
  0xc0   :  { %11049 = vmatmul.mubr.msk.f32.gmra.mxu1 %vm619_vm1, %v461_v34  ;;  %v161_v34 = vld [vmem:[%s17653_s0 + $0x408] sm:$0xff] }
  0xc2   :  { %10545 = vmatmul.mubr.msk.f32.gmra.mxu0 %vm619_vm1, %v125_v36  ;;  %v148_v36 = vld [vmem:[%s17653_s0 + $0x3a0] sm:$0xff] }
  0xc3   :  { %10547 = vmatprep.mubr.msk.f32.mxu0 %vm619_vm1, %v126_v38  ;;  %v462_v38 = vld [vmem:[%s17653_s0 + $0xd70] sm:$0xff] }
  0xc4   :  { %11051 = vmatprep.mubr.msk.f32.mxu1 %vm619_vm1, %v462_v38 }
  0xc6   :  { %10548 = vmatmul.mubr.msk.f32.gmra.mxu0 %vm619_vm1, %v127_v40  ;;  %v463_v40 = vld [vmem:[%s17653_s0 + $0xd78] sm:$0xff] }
  0xc7   :  { %10550 = vmatprep.mubr.msk.f32.mxu0 %vm619_vm1, %v128_v42  ;;  %v150_v42 = vld [vmem:[%s17653_s0 + $0x3b0] sm:$0xff]  ;;  %11052 = vmatmul.mubr.msk.f32.gmra.mxu1 %vm619_vm1, %v463_v40 }
  0xca   :  { %v12353_v47 = vpop.f32.mrf.mxu0  ;;  %10551 = vmatmul.mubr.msk.f32.gmra.mxu0 %vm619_vm1, %v129_v44  ;;  %v464_v44 = vld [vmem:[%s17653_s0 + $0xd80] sm:$0xff] }
  0xcb   :  { %10553 = vmatprep.mubr.msk.f32.mxu0 %vm619_vm1, %v130_v46  ;;  %11054 = vmatprep.mubr.msk.f32.mxu1 %vm619_vm1, %v464_v44  ;;  %v465_v46 = vld [vmem:[%s17653_s0 + $0xd88] sm:$0xff] }
  0xcc   :  { %v12367_v51 = vpop.f32.mrf.mxu0  ;;  %11055 = vmatmul.mubr.msk.f32.gmra.mxu1 %vm619_vm1, %v465_v46  ;;  %v163_v46 = vld [vmem:[%s17653_s0 + $0x418] sm:$0xff] }
  0xcd   :  { %v12612_v4 = vpop.f32.mrf.mxu1 }
  0xce   :  { %v12373_v53 = vpop.f32.mrf.mxu0  ;;  %10554 = vmatmul.mubr.msk.f32.gmra.mxu0 %vm619_vm1, %v131_v49  ;;  %v152_v49 = vld [vmem:[%s17653_s0 + $0x3c0] sm:$0xff]  ;;  %17738 = vst [vmem:[#allocation2_spill] sm:$0xff] %v12612_v4 }
  0xcf   :  { %10556 = vmatprep.mubr.msk.f32.mxu0 %vm619_vm1, %v132_v52  ;;  %v466_v52 = vld [vmem:[%s17653_s0 + $0xd90] sm:$0xff]  ;;  %v12618_v8 = vpop.f32.mrf.mxu1 }
  0xd0   :  { %v12387_v57 = vpop.f32.mrf.mxu0  ;;  %11057 = vmatprep.mubr.msk.f32.mxu1 %vm619_vm1, %v466_v52  ;;  %17739 = vst [vmem:[#allocation3_spill] sm:$0xff] %v12618_v8 }
  0xd1   :  { %v12636_v16 = vpop.f32.mrf.mxu1 }
  0xd2   :  { %v12393_v59 = vpop.f32.mrf.mxu0  ;;  %10557 = vmatmul.mubr.msk.f32.gmra.mxu0 %vm619_vm1, %v133_v55  ;;  %v467_v55 = vld [vmem:[%s17653_s0 + $0xd98] sm:$0xff]  ;;  %17740 = vst [vmem:[#allocation4_spill] sm:$0xff] %v12636_v16 }
  0xd3   :  { %10559 = vmatprep.mubr.msk.f32.mxu0 %vm619_vm1, %v134_v58  ;;  %v154_v58 = vld [vmem:[%s17653_s0 + $0x3d0] sm:$0xff]  ;;  %11058 = vmatmul.mubr.msk.f32.gmra.mxu1 %vm619_vm1, %v467_v55  ;;  %v12642_v20 = vpop.f32.mrf.mxu1 }
  0xd4   :  { %v12407_v63 = vpop.f32.mrf.mxu0  ;;  %17741 = vst [vmem:[#allocation5_spill] sm:$0xff] %v12642_v20 }
  0xd5   :  { %v12660_v28 = vpop.f32.mrf.mxu1 }
  0xd6   :  { %v12413_v1 = vpop.f32.mrf.mxu0  ;;  %10560 = vmatmul.mubr.msk.f32.gmra.mxu0 %vm619_vm1, %v135_v61  ;;  %v468_v61 = vld [vmem:[%s17653_s0 + $0xda0] sm:$0xff]  ;;  %17742 = vst [vmem:[#allocation6_spill] sm:$0xff] %v12660_v28 }
  0xd7   :  { %10562 = vmatprep.mubr.msk.f32.mxu0 %vm619_vm1, %v136_v0  ;;  %11060 = vmatprep.mubr.msk.f32.mxu1 %vm619_vm1, %v468_v61  ;;  %v469_v0 = vld [vmem:[%s17653_s0 + $0xda8] sm:$0xff]  ;;  %v12666_v32 = vpop.f32.mrf.mxu1 }
  0xd8   :  { %v12427_v5 = vpop.f32.mrf.mxu0  ;;  %11061 = vmatmul.mubr.msk.f32.gmra.mxu1 %vm619_vm1, %v469_v0  ;;  %17743 = vst [vmem:[#allocation7_spill] sm:$0xff] %v12666_v32  ;;  %v165_v0 = vld [vmem:[%s17653_s0 + $0x428] sm:$0xff] }
  0xd9   :  { %v12684_v40 = vpop.f32.mrf.mxu1 }
  0xda   :  { %v12433_v7 = vpop.f32.mrf.mxu0  ;;  %10563 = vmatmul.mubr.msk.f32.gmra.mxu0 %vm619_vm1, %v137_v3  ;;  %v156_v3 = vld [vmem:[%s17653_s0 + $0x3e0] sm:$0xff]  ;;  %17744 = vst [vmem:[#allocation8_spill] sm:$0xff] %v12684_v40 }
  0xdb   :  { %10565 = vmatprep.mubr.msk.f32.mxu0 %vm619_vm1, %v138_v6  ;;  %v12690_v44 = vpop.f32.mrf.mxu1 }
  0xdc   :  { %v12447_v11 = vpop.f32.mrf.mxu0  ;;  %17745 = vst [vmem:[#allocation9_spill] sm:$0xff] %v12690_v44 }
  0xdd   :  { %v12708_v55 = vpop.f32.mrf.mxu1 }
  0xde   :  { %v12453_v13 = vpop.f32.mrf.mxu0  ;;  %10566 = vmatmul.mubr.msk.f32.gmra.mxu0 %vm619_vm1, %v139_v9  ;;  %v470_v9 = vld [vmem:[%s17653_s0 + $0xdb0] sm:$0xff]  ;;  %17746 = vst [vmem:[#allocation10_spill] sm:$0xff] %v12708_v55 }
  0xdf   :  { %10568 = vmatprep.mubr.msk.f32.mxu0 %vm619_vm1, %v140_v12  ;;  %11063 = vmatprep.mubr.msk.f32.mxu1 %vm619_vm1, %v470_v9  ;;  %v471_v12 = vld [vmem:[%s17653_s0 + $0xdb8] sm:$0xff]  ;;  %v12714_v61 = vpop.f32.mrf.mxu1  ;;  %v12730_v9 = vld [vmem:[%s17654_s2] ss:$0 sm:$0xff] }
  0xe0   :  { %v12467_v17 = vpop.f32.mrf.mxu0  ;;  %11064 = vmatmul.mubr.msk.f32.gmra.mxu1 %vm619_vm1, %v471_v12  ;;  %17747 = vst [vmem:[#allocation11_spill] sm:$0xff] %v12714_v61  ;;  %v166_v12 = vld [vmem:[%s17653_s0 + $0x430] sm:$0xff] }
  0xe2   :  { %v12473_v19 = vpop.f32.mrf.mxu0  ;;  %10569 = vmatmul.mubr.msk.f32.gmra.mxu0 %vm619_vm1, %v141_v15  ;;  %v158_v15 = vld [vmem:[%s17653_s0 + $0x3f0] sm:$0xff] }
  0xe3   :  { %10571 = vmatprep.mubr.msk.f32.mxu0 %vm619_vm1, %v142_v18 }
  0xe4   :  { %v12487_v23 = vpop.f32.mrf.mxu0 }
  0xe6   :  { %v12493_v25 = vpop.f32.mrf.mxu0  ;;  %10572 = vmatmul.mubr.msk.f32.gmra.mxu0 %vm619_vm1, %v143_v21  ;;  %v472_v21 = vld [vmem:[%s17653_s0 + $0xdc0] sm:$0xff] }
  0xe7   :  { %10574 = vmatprep.mubr.msk.f32.mxu0 %vm619_vm1, %v144_v24  ;;  %11066 = vmatprep.mubr.msk.f32.mxu1 %vm619_vm1, %v472_v21  ;;  %v473_v24 = vld [vmem:[%s17653_s0 + $0xdc8] sm:$0xff]  ;;  %v9532_v21 = vld [vmem:[%s17655_s3 + $0x18] sm:$0x3] }
  0xe8   :  { %v12507_v29 = vpop.f32.mrf.mxu0  ;;  %11067 = vmatmul.mubr.msk.f32.gmra.mxu1 %vm619_vm1, %v473_v24 }
  0xea   :  { %v12513_v31 = vpop.f32.mrf.mxu0  ;;  %10575 = vmatmul.mubr.msk.f32.gmra.mxu0 %vm619_vm1, %v145_v27  ;;  %v160_v27 = vld [vmem:[%s17653_s0 + $0x400] sm:$0xff] }
  0xeb   :  { %10577 = vmatprep.mubr.msk.f32.mxu0 %vm619_vm1, %v146_v30 }
  0xec   :  { %v12527_v35 = vpop.f32.mrf.mxu0 }
  0xee   :  { %v12533_v37 = vpop.f32.mrf.mxu0  ;;  %10578 = vmatmul.mubr.msk.f32.gmra.mxu0 %vm619_vm1, %v147_v33  ;;  %v474_v33 = vld [vmem:[%s17653_s0 + $0xdd0] sm:$0xff] }
  0xef   :  { %10580 = vmatprep.mubr.msk.f32.mxu0 %vm619_vm1, %v148_v36  ;;  %11069 = vmatprep.mubr.msk.f32.mxu1 %vm619_vm1, %v474_v33  ;;  %v475_v36 = vld [vmem:[%s17653_s0 + $0xdd8] sm:$0xff]  ;;  %v480_v33 = vld [vmem:[%s17653_s0 + $0xe00] sm:$0xff] }
  0xf0   :  { %v12547_v41 = vpop.f32.mrf.mxu0  ;;  %11070 = vmatmul.mubr.msk.f32.gmra.mxu1 %vm619_vm1, %v475_v36 }
  0xf2   :  { %v12553_v43 = vpop.f32.mrf.mxu0  ;;  %10581 = vmatmul.mubr.msk.f32.gmra.mxu0 %vm619_vm1, %v149_v39  ;;  %v162_v39 = vld [vmem:[%s17653_s0 + $0x410] sm:$0xff] }
  0xf3   :  { %10583 = vmatprep.mubr.msk.f32.mxu0 %vm619_vm1, %v150_v42 }
  0xf4   :  { %v12567_v48 = vpop.f32.mrf.mxu0 }
  0xf6   :  { %v12573_v50 = vpop.f32.mrf.mxu0  ;;  %10584 = vmatmul.mubr.msk.f32.gmra.mxu0 %vm619_vm1, %v151_v45  ;;  %v476_v45 = vld [vmem:[%s17653_s0 + $0xde0] sm:$0xff] }
  0xf7   :  { %10586 = vmatprep.mubr.msk.f32.mxu0 %vm619_vm1, %v152_v49  ;;  %11072 = vmatprep.mubr.msk.f32.mxu1 %vm619_vm1, %v476_v45  ;;  %v477_v49 = vld [vmem:[%s17653_s0 + $0xde8] sm:$0xff] }
  0xf8   :  { %v12587_v56 = vpop.f32.mrf.mxu0  ;;  %11073 = vmatmul.mubr.msk.f32.gmra.mxu1 %vm619_vm1, %v477_v49  ;;  %v481_v45 = vld [vmem:[%s17653_s0 + $0xe08] sm:$0xff] }
  0xfa   :  { %v12593_v60 = vpop.f32.mrf.mxu0  ;;  %10587 = vmatmul.mubr.msk.f32.gmra.mxu0 %vm619_vm1, %v153_v54  ;;  %v164_v54 = vld [vmem:[%s17653_s0 + $0x420] sm:$0xff] }
  0xfb   :  { %10589 = vmatprep.mubr.msk.f32.mxu0 %vm619_vm1, %v154_v58 }
  0xfc   :  { %v12607_v2 = vpop.f32.mrf.mxu0 }
  0xfe   :  { %v12615_v6 = vpop.f32.mrf.mxu0  ;;  %10590 = vmatmul.mubr.msk.f32.gmra.mxu0 %vm619_vm1, %v155_v62  ;;  %v478_v62 = vld [vmem:[%s17653_s0 + $0xdf0] sm:$0xff] }
  0xff   :  { %10592 = vmatprep.mubr.msk.f32.mxu0 %vm619_vm1, %v156_v3  ;;  %11075 = vmatprep.mubr.msk.f32.mxu1 %vm619_vm1, %v478_v62  ;;  %v479_v3 = vld [vmem:[%s17653_s0 + $0xdf8] sm:$0xff] }
 0x100   :  { %v12631_v14 = vpop.f32.mrf.mxu0  ;;  %11076 = vmatmul.mubr.msk.f32.gmra.mxu1 %vm619_vm1, %v479_v3 }
 0x101   :  { %11078 = vmatprep.mubr.msk.f32.mxu1 %vm619_vm1, %v480_v33 }
 0x102   :  { %v12639_v18 = vpop.f32.mrf.mxu0  ;;  %10593 = vmatmul.mubr.msk.f32.gmra.mxu0 %vm619_vm1, %v157_v10 }
 0x103   :  { %10595 = vmatprep.mubr.msk.f32.mxu0 %vm619_vm1, %v158_v15  ;;  %v17662_v15 = vmov 0.0  }
 0x104   :  { %v12655_v26 = vpop.f32.mrf.mxu0  ;;  %11270 = vmatprep.subr.mxu1 %v17662_v15  ;;  %11079 = vmatmul.mubr.msk.f32.gmra.mxu1 %vm619_vm1, %v481_v45  ;;  %v483_v45 = vld [vmem:[%s17653_s0 + $0xe18] sm:$0xff] }
 0x105   :  { %11271 = vmatpush3.msk.msra.mxu1 %vm5882_vm2, %v9532_v21  ;;  %v482_v21 = vld [vmem:[%s17653_s0 + $0xe10] sm:$0xff] }
 0x106   :  { %v12663_v30 = vpop.f32.mrf.mxu0  ;;  %10596 = vmatmul.mubr.msk.f32.gmra.mxu0 %vm619_vm1, %v159_v22  ;;  %v12741_v22 = vpop.f32.mrf.mxu1  ;;  %11272 = vmatprep.subr.mxu1 %v17662_v15 }
 0x107   :  { %10598 = vmatprep.mubr.msk.f32.mxu0 %vm619_vm1, %v160_v27  ;;  %17748 = vst [vmem:[#allocation12_spill] sm:$0xff] %v12741_v22  ;;  %11081 = vmatprep.mubr.msk.f32.mxu1 %vm619_vm1, %v482_v21 }
 0x108   :  { %v12679_v38 = vpop.f32.mrf.mxu0  ;;  %v12746_v27 = vpop.f32.mrf.mxu1  ;;  %11082 = vmatmul.mubr.msk.f32.gmra.mxu1 %vm619_vm1, %v483_v45  ;;  %v12828_v45 = vadd.f32 %v12393_v59, %v12730_v9 }
 0x109   :  { %17749 = vst [vmem:[#allocation13_spill] sm:$0xff] %v12746_v27 }
 0x10a   :  { %v12687_v42 = vpop.f32.mrf.mxu0  ;;  %10599 = vmatmul.mubr.msk.f32.gmra.mxu0 %vm619_vm1, %v161_v34  ;;  %v12754_v34 = vadd.f32 %v12353_v47, %v12730_v9  ;;  %v168_v47 = vld [vmem:[%s17653_s0 + $0x440] sm:$0xff]  ;;  %v12770_v49 = vpop.f32.mrf.mxu1 }
 0x10b   :  { %10601 = vmatprep.mubr.msk.f32.mxu0 %vm619_vm1, %v162_v39  ;;  %v167_v39 = vld [vmem:[%s17653_s0 + $0x438] sm:$0xff]  ;;  %17750 = vst [vmem:[#allocation14_spill] sm:$0xff] %v12770_v49 }
 0x10c   :  { %v12703_v52 = vpop.f32.mrf.mxu0 }
 0x10e   :  { %v12711_v58 = vpop.f32.mrf.mxu0  ;;  %10602 = vmatmul.mubr.msk.f32.gmra.mxu0 %vm619_vm1, %v163_v46 }
 0x10f   :  { %10604 = vmatprep.mubr.msk.f32.mxu0 %vm619_vm1, %v164_v54  ;;  %v12775_v54 = vadd.f32 %v12730_v9, %v12367_v51 }
 0x110   :  { %v12732_v10 = vpop.f32.mrf.mxu0 }
 0x112   :  { %v10462_v24 = vpop.f32.mrf.mxu0  ;;  %10605 = vmatmul.mubr.msk.f32.gmra.mxu0 %vm619_vm1, %v165_v0 }
 0x113   :  { %v12757_v36 = vadd.f32 %v10462_v24, %v12730_v9  ;;  %10607 = vmatprep.mubr.msk.f32.mxu0 %vm619_vm1, %v166_v12  ;;  %v12783_v12 = vpop.f32.mrf.mxu1  ;;  %v12790_v24 = vadd.f32 %v12373_v53, %v12730_v9 }
 0x114   :  { %v2598_v46 = vpop.f32.mrf.mxu0  ;;  %17751 = vst [vmem:[#allocation15_spill] sm:$0xff] %v12783_v12 }
 0x115   :  { %v12780_v0 = vadd.f32 %v12730_v9, %v2598_v46  ;;  %v170_v46 = vld [vmem:[%s17653_s0 + $0x450] sm:$0xff]  ;;  %v12808_v15 = vpop.f32.mrf.mxu1 }
 0x116   :  { %v10465_v3 = vpop.f32.mrf.mxu0  ;;  %10608 = vmatmul.mubr.msk.f32.gmra.mxu0 %vm619_vm1, %v167_v39  ;;  %v169_v39 = vld [vmem:[%s17653_s0 + $0x448] sm:$0xff]  ;;  %17752 = vst [vmem:[#allocation16_spill] sm:$0xff] %v12808_v15  ;;  %v484_v15 = vld [vmem:[%s17653_s0 + $0xe20] sm:$0xff] }
 0x117   :  { %v12795_v33 = vadd.f32 %v10465_v3, %v12730_v9  ;;  %10610 = vmatprep.mubr.msk.f32.mxu0 %vm619_vm1, %v168_v47  ;;  %v12813_v47 = vadd.f32 %v12730_v9, %v12387_v57  ;;  %v12821_v62 = vpop.f32.mrf.mxu1  ;;  %11084 = vmatprep.mubr.msk.f32.mxu1 %vm619_vm1, %v484_v15  ;;  %v172_v57 = vld [vmem:[%s17653_s0 + $0x460] sm:$0xff] }
 0x118   :  { %v2608_v53 = vpop.f32.mrf.mxu0  ;;  %17753 = vst [vmem:[#allocation17_spill] sm:$0xff] %v12821_v62 }
 0x119   :  { %v12818_v21 = vadd.f32 %v12730_v9, %v2608_v53  ;;  %v485_v53 = vld [vmem:[%s17653_s0 + $0xe28] sm:$0xff]  ;;  %v12846_v62 = vpop.f32.mrf.mxu1 }
 0x11a   :  { %v10468_v51 = vpop.f32.mrf.mxu0  ;;  %10611 = vmatmul.mubr.msk.f32.gmra.mxu0 %vm619_vm1, %v169_v39  ;;  %v171_v39 = vld [vmem:[%s17653_s0 + $0x458] sm:$0xff]  ;;  %17754 = vst [vmem:[#allocation18_spill] sm:$0xff] %v12846_v62  ;;  %11085 = vmatmul.mubr.msk.f32.gmra.mxu1 %vm619_vm1, %v485_v53  ;;  %v486_v62 = vld [vmem:[%s17653_s0 + $0xe30] sm:$0xff]  ;;  %v12866_v53 = vadd.f32 %v12413_v1, %v12730_v9 }
 0x11b   :  { %v12833_v3 = vadd.f32 %v10468_v51, %v12730_v9  ;;  %10613 = vmatprep.mubr.msk.f32.mxu0 %vm619_vm1, %v170_v46  ;;  %v12851_v51 = vadd.f32 %v12730_v9, %v12407_v63  ;;  %v12859_v49 = vpop.f32.mrf.mxu1  ;;  %11087 = vmatprep.mubr.msk.f32.mxu1 %vm619_vm1, %v486_v62  ;;  %v174_v63 = vld [vmem:[%s17653_s0 + $0x470] sm:$0xff] }
 0x11c   :  { %v2618_v59 = vpop.f32.mrf.mxu0  ;;  %17755 = vst [vmem:[#allocation19_spill] sm:$0xff] %v12859_v49 }
 0x11d   :  { %v12856_v46 = vadd.f32 %v12730_v9, %v2618_v59  ;;  %v487_v59 = vld [vmem:[%s17653_s0 + $0xe38] sm:$0xff]  ;;  %v12884_v49 = vpop.f32.mrf.mxu1 }
 0x11e   :  { %v10471_v12 = vpop.f32.mrf.mxu0  ;;  %10614 = vmatmul.mubr.msk.f32.gmra.mxu0 %vm619_vm1, %v171_v39  ;;  %v173_v39 = vld [vmem:[%s17653_s0 + $0x468] sm:$0xff]  ;;  %17756 = vst [vmem:[#allocation20_spill] sm:$0xff] %v12884_v49  ;;  %11088 = vmatmul.mubr.msk.f32.gmra.mxu1 %vm619_vm1, %v487_v59  ;;  %v488_v49 = vld [vmem:[%s17653_s0 + $0xe40] sm:$0xff]  ;;  %v12904_v59 = vadd.f32 %v12433_v7, %v12730_v9 }
 0x11f   :  { %v12871_v15 = vadd.f32 %v10471_v12, %v12730_v9  ;;  %10616 = vmatprep.mubr.msk.f32.mxu0 %vm619_vm1, %v172_v57  ;;  %v12889_v12 = vadd.f32 %v12730_v9, %v12427_v5  ;;  %v12897_v22 = vpop.f32.mrf.mxu1  ;;  %11090 = vmatprep.mubr.msk.f32.mxu1 %vm619_vm1, %v488_v49  ;;  %v176_v5 = vld [vmem:[%s17653_s0 + $0x480] sm:$0xff] }
 0x120   :  { %v2628_v1 = vpop.f32.mrf.mxu0  ;;  %17757 = vst [vmem:[#allocation21_spill] sm:$0xff] %v12897_v22 }
 0x121   :  { %v12894_v57 = vadd.f32 %v12730_v9, %v2628_v1  ;;  %v489_v1 = vld [vmem:[%s17653_s0 + $0xe48] sm:$0xff]  ;;  %v12922_v22 = vpop.f32.mrf.mxu1 }
 0x122   :  { %v10474_v27 = vpop.f32.mrf.mxu0  ;;  %10617 = vmatmul.mubr.msk.f32.gmra.mxu0 %vm619_vm1, %v173_v39  ;;  %v175_v39 = vld [vmem:[%s17653_s0 + $0x478] sm:$0xff]  ;;  %17758 = vst [vmem:[#allocation22_spill] sm:$0xff] %v12922_v22  ;;  %11091 = vmatmul.mubr.msk.f32.gmra.mxu1 %vm619_vm1, %v489_v1  ;;  %v490_v22 = vld [vmem:[%s17653_s0 + $0xe50] sm:$0xff]  ;;  %v12942_v1 = vadd.f32 %v12453_v13, %v12730_v9 }
 0x123   :  { %v12909_v62 = vadd.f32 %v10474_v27, %v12730_v9  ;;  %10619 = vmatprep.mubr.msk.f32.mxu0 %vm619_vm1, %v174_v63  ;;  %v12927_v27 = vadd.f32 %v12730_v9, %v12447_v11  ;;  %v12935_v55 = vpop.f32.mrf.mxu1  ;;  %11093 = vmatprep.mubr.msk.f32.mxu1 %vm619_vm1, %v490_v22  ;;  %v178_v11 = vld [vmem:[%s17653_s0 + $0x490] sm:$0xff] }
 0x124   :  { %v2638_v7 = vpop.f32.mrf.mxu0  ;;  %17759 = vst [vmem:[#allocation23_spill] sm:$0xff] %v12935_v55 }
 0x125   :  { %v12932_v63 = vadd.f32 %v12730_v9, %v2638_v7  ;;  %v491_v7 = vld [vmem:[%s17653_s0 + $0xe58] sm:$0xff]  ;;  %v12960_v55 = vpop.f32.mrf.mxu1 }
 0x126   :  { %v10477_v61 = vpop.f32.mrf.mxu0  ;;  %10620 = vmatmul.mubr.msk.f32.gmra.mxu0 %vm619_vm1, %v175_v39  ;;  %v177_v39 = vld [vmem:[%s17653_s0 + $0x488] sm:$0xff]  ;;  %17760 = vst [vmem:[#allocation24_spill] sm:$0xff] %v12960_v55  ;;  %11094 = vmatmul.mubr.msk.f32.gmra.mxu1 %vm619_vm1, %v491_v7  ;;  %v492_v55 = vld [vmem:[%s17653_s0 + $0xe60] sm:$0xff]  ;;  %v12980_v7 = vadd.f32 %v12473_v19, %v12730_v9 }
 0x127   :  { %v12947_v49 = vadd.f32 %v10477_v61, %v12730_v9  ;;  %10622 = vmatprep.mubr.msk.f32.mxu0 %vm619_vm1, %v176_v5  ;;  %v12965_v61 = vadd.f32 %v12730_v9, %v12467_v17  ;;  %v12973_v40 = vpop.f32.mrf.mxu1  ;;  %11096 = vmatprep.mubr.msk.f32.mxu1 %vm619_vm1, %v492_v55  ;;  %v180_v17 = vld [vmem:[%s17653_s0 + $0x4a0] sm:$0xff] }
 0x128   :  { %v2648_v13 = vpop.f32.mrf.mxu0  ;;  %17761 = vst [vmem:[#allocation25_spill] sm:$0xff] %v12973_v40 }
 0x129   :  { %v12970_v5 = vadd.f32 %v12730_v9, %v2648_v13  ;;  %v493_v13 = vld [vmem:[%s17653_s0 + $0xe68] sm:$0xff]  ;;  %v12998_v40 = vpop.f32.mrf.mxu1 }
 0x12a   :  { %v10480_v44 = vpop.f32.mrf.mxu0  ;;  %10623 = vmatmul.mubr.msk.f32.gmra.mxu0 %vm619_vm1, %v177_v39  ;;  %v179_v39 = vld [vmem:[%s17653_s0 + $0x498] sm:$0xff]  ;;  %17762 = vst [vmem:[#allocation26_spill] sm:$0xff] %v12998_v40  ;;  %11097 = vmatmul.mubr.msk.f32.gmra.mxu1 %vm619_vm1, %v493_v13  ;;  %v494_v40 = vld [vmem:[%s17653_s0 + $0xe70] sm:$0xff]  ;;  %v13018_v13 = vadd.f32 %v12493_v25, %v12730_v9 }
 0x12b   :  { %v12985_v22 = vadd.f32 %v10480_v44, %v12730_v9  ;;  %10625 = vmatprep.mubr.msk.f32.mxu0 %vm619_vm1, %v178_v11  ;;  %v13003_v44 = vadd.f32 %v12730_v9, %v12487_v23  ;;  %v13011_v28 = vpop.f32.mrf.mxu1  ;;  %11099 = vmatprep.mubr.msk.f32.mxu1 %vm619_vm1, %v494_v40  ;;  %v182_v23 = vld [vmem:[%s17653_s0 + $0x4b0] sm:$0xff] }
 0x12c   :  { %v2658_v19 = vpop.f32.mrf.mxu0  ;;  %17763 = vst [vmem:[#allocation27_spill] sm:$0xff] %v13011_v28 }
 0x12d   :  { %v13008_v11 = vadd.f32 %v12730_v9, %v2658_v19  ;;  %v495_v19 = vld [vmem:[%s17653_s0 + $0xe78] sm:$0xff]  ;;  %v13036_v28 = vpop.f32.mrf.mxu1 }
 0x12e   :  { %v10483_v32 = vpop.f32.mrf.mxu0  ;;  %10626 = vmatmul.mubr.msk.f32.gmra.mxu0 %vm619_vm1, %v179_v39  ;;  %v181_v39 = vld [vmem:[%s17653_s0 + $0x4a8] sm:$0xff]  ;;  %17764 = vst [vmem:[#allocation28_spill] sm:$0xff] %v13036_v28  ;;  %11100 = vmatmul.mubr.msk.f32.gmra.mxu1 %vm619_vm1, %v495_v19  ;;  %v496_v28 = vld [vmem:[%s17653_s0 + $0xe80] sm:$0xff]  ;;  %v13056_v19 = vadd.f32 %v12513_v31, %v12730_v9 }
 0x12f   :  { %v13023_v55 = vadd.f32 %v10483_v32, %v12730_v9  ;;  %10628 = vmatprep.mubr.msk.f32.mxu0 %vm619_vm1, %v180_v17  ;;  %v13041_v32 = vadd.f32 %v12730_v9, %v12507_v29  ;;  %v13049_v16 = vpop.f32.mrf.mxu1  ;;  %11102 = vmatprep.mubr.msk.f32.mxu1 %vm619_vm1, %v496_v28  ;;  %v184_v29 = vld [vmem:[%s17653_s0 + $0x4c0] sm:$0xff] }
 0x130   :  { %v2668_v25 = vpop.f32.mrf.mxu0  ;;  %17765 = vst [vmem:[#allocation29_spill] sm:$0xff] %v13049_v16 }
 0x131   :  { %v13046_v17 = vadd.f32 %v12730_v9, %v2668_v25  ;;  %v497_v25 = vld [vmem:[%s17653_s0 + $0xe88] sm:$0xff]  ;;  %v13074_v16 = vpop.f32.mrf.mxu1 }
 0x132   :  { %v10486_v20 = vpop.f32.mrf.mxu0  ;;  %10629 = vmatmul.mubr.msk.f32.gmra.mxu0 %vm619_vm1, %v181_v39  ;;  %v183_v39 = vld [vmem:[%s17653_s0 + $0x4b8] sm:$0xff]  ;;  %17766 = vst [vmem:[#allocation30_spill] sm:$0xff] %v13074_v16  ;;  %11103 = vmatmul.mubr.msk.f32.gmra.mxu1 %vm619_vm1, %v497_v25  ;;  %v498_v16 = vld [vmem:[%s17653_s0 + $0xe90] sm:$0xff]  ;;  %v13094_v25 = vadd.f32 %v12533_v37, %v12730_v9 }
 0x133   :  { %v13061_v40 = vadd.f32 %v10486_v20, %v12730_v9  ;;  %10631 = vmatprep.mubr.msk.f32.mxu0 %vm619_vm1, %v182_v23  ;;  %v13079_v20 = vadd.f32 %v12730_v9, %v12527_v35  ;;  %v13087_v4 = vpop.f32.mrf.mxu1  ;;  %11105 = vmatprep.mubr.msk.f32.mxu1 %vm619_vm1, %v498_v16  ;;  %v186_v35 = vld [vmem:[%s17653_s0 + $0x4d0] sm:$0xff] }
 0x134   :  { %v2678_v31 = vpop.f32.mrf.mxu0  ;;  %17769 = vst [vmem:[#allocation33_spill] sm:$0xff] %v13087_v4 }
 0x135   :  { %17767 = vst [vmem:[#allocation31_spill] sm:$0xff] %v13079_v20  ;;  %v13084_v23 = vadd.f32 %v12730_v9, %v2678_v31  ;;  %v499_v31 = vld [vmem:[%s17653_s0 + $0xe98] sm:$0xff]  ;;  %v13112_v4 = vpop.f32.mrf.mxu1 }
 0x136   :  { %v10489_v8 = vpop.f32.mrf.mxu0  ;;  %10632 = vmatmul.mubr.msk.f32.gmra.mxu0 %vm619_vm1, %v183_v39  ;;  %v185_v39 = vld [vmem:[%s17653_s0 + $0x4c8] sm:$0xff]  ;;  %17770 = vst [vmem:[#allocation34_spill] sm:$0xff] %v13112_v4  ;;  %11106 = vmatmul.mubr.msk.f32.gmra.mxu1 %vm619_vm1, %v499_v31  ;;  %v500_v4 = vld [vmem:[%s17653_s0 + $0xea0] sm:$0xff]  ;;  %v13132_v31 = vadd.f32 %v12553_v43, %v12730_v9 }
 0x137   :  { %17768 = vst [vmem:[#allocation32_spill] sm:$0xff] %v13084_v23  ;;  %v13099_v28 = vadd.f32 %v10489_v8, %v12730_v9  ;;  %10634 = vmatprep.mubr.msk.f32.mxu0 %vm619_vm1, %v184_v29  ;;  %v13117_v8 = vadd.f32 %v12730_v9, %v12547_v41  ;;  %v13125_v20 = vpop.f32.mrf.mxu1  ;;  %11108 = vmatprep.mubr.msk.f32.mxu1 %vm619_vm1, %v500_v4  ;;  %v188_v41 = vld [vmem:[%s17653_s0 + $0x4e0] sm:$0xff] }
 0x138   :  { %v2688_v37 = vpop.f32.mrf.mxu0  ;;  %17773 = vst [vmem:[#allocation37_spill] sm:$0xff] %v13125_v20 }
 0x139   :  { %17771 = vst [vmem:[#allocation35_spill] sm:$0xff] %v13117_v8  ;;  %v13122_v29 = vadd.f32 %v12730_v9, %v2688_v37  ;;  %v501_v37 = vld [vmem:[%s17653_s0 + $0xea8] sm:$0xff]  ;;  %v13150_v20 = vpop.f32.mrf.mxu1 }
 0x13a   :  { %v10492_v23 = vpop.f32.mrf.mxu0  ;;  %10635 = vmatmul.mubr.msk.f32.gmra.mxu0 %vm619_vm1, %v185_v39  ;;  %v187_v39 = vld [vmem:[%s17653_s0 + $0x4d8] sm:$0xff]  ;;  %17774 = vst [vmem:[#allocation38_spill] sm:$0xff] %v13150_v20  ;;  %11109 = vmatmul.mubr.msk.f32.gmra.mxu1 %vm619_vm1, %v501_v37  ;;  %v502_v20 = vld [vmem:[%s17653_s0 + $0xeb0] sm:$0xff]  ;;  %v13170_v37 = vadd.f32 %v12573_v50, %v12730_v9 }
 0x13b   :  { %17772 = vst [vmem:[#allocation36_spill] sm:$0xff] %v13122_v29  ;;  %v13137_v16 = vadd.f32 %v10492_v23, %v12730_v9  ;;  %10637 = vmatprep.mubr.msk.f32.mxu0 %vm619_vm1, %v186_v35  ;;  %v13155_v23 = vadd.f32 %v12730_v9, %v12567_v48  ;;  %v13163_v8 = vpop.f32.mrf.mxu1  ;;  %11111 = vmatprep.mubr.msk.f32.mxu1 %vm619_vm1, %v502_v20  ;;  %v190_v48 = vld [vmem:[%s17653_s0 + $0x4f0] sm:$0xff] }
 0x13c   :  { %v2698_v43 = vpop.f32.mrf.mxu0  ;;  %17777 = vst [vmem:[#allocation41_spill] sm:$0xff] %v13163_v8 }
 0x13d   :  { %17775 = vst [vmem:[#allocation39_spill] sm:$0xff] %v13155_v23  ;;  %v13160_v35 = vadd.f32 %v12730_v9, %v2698_v43  ;;  %v503_v43 = vld [vmem:[%s17653_s0 + $0xeb8] sm:$0xff]  ;;  %v13188_v8 = vpop.f32.mrf.mxu1 }
 0x13e   :  { %v10495_v29 = vpop.f32.mrf.mxu0  ;;  %10638 = vmatmul.mubr.msk.f32.gmra.mxu0 %vm619_vm1, %v187_v39  ;;  %v189_v39 = vld [vmem:[%s17653_s0 + $0x4e8] sm:$0xff]  ;;  %17778 = vst [vmem:[#allocation42_spill] sm:$0xff] %v13188_v8  ;;  %11112 = vmatmul.mubr.msk.f32.gmra.mxu1 %vm619_vm1, %v503_v43  ;;  %v504_v8 = vld [vmem:[%s17653_s0 + $0xec0] sm:$0xff]  ;;  %v13208_v43 = vadd.f32 %v12593_v60, %v12730_v9 }
 0x13f   :  { %17776 = vst [vmem:[#allocation40_spill] sm:$0xff] %v13160_v35  ;;  %v13175_v4 = vadd.f32 %v10495_v29, %v12730_v9  ;;  %10640 = vmatprep.mubr.msk.f32.mxu0 %vm619_vm1, %v188_v41  ;;  %v13193_v29 = vadd.f32 %v12730_v9, %v12587_v56  ;;  %v13201_v23 = vpop.f32.mrf.mxu1  ;;  %11114 = vmatprep.mubr.msk.f32.mxu1 %vm619_vm1, %v504_v8  ;;  %v192_v56 = vld [vmem:[%s17653_s0 + $0x500] sm:$0xff] }
 0x140   :  { %v2708_v50 = vpop.f32.mrf.mxu0  ;;  %17781 = vst [vmem:[#allocation45_spill] sm:$0xff] %v13201_v23 }
 0x141   :  { %17779 = vst [vmem:[#allocation43_spill] sm:$0xff] %v13193_v29  ;;  %v13198_v41 = vadd.f32 %v12730_v9, %v2708_v50  ;;  %v505_v50 = vld [vmem:[%s17653_s0 + $0xec8] sm:$0xff]  ;;  %v13226_v23 = vpop.f32.mrf.mxu1 }
 0x142   :  { %v10498_v35 = vpop.f32.mrf.mxu0  ;;  %10641 = vmatmul.mubr.msk.f32.gmra.mxu0 %vm619_vm1, %v189_v39  ;;  %v191_v39 = vld [vmem:[%s17653_s0 + $0x4f8] sm:$0xff]  ;;  %17782 = vst [vmem:[#allocation46_spill] sm:$0xff] %v13226_v23  ;;  %11115 = vmatmul.mubr.msk.f32.gmra.mxu1 %vm619_vm1, %v505_v50  ;;  %v506_v23 = vld [vmem:[%s17653_s0 + $0xed0] sm:$0xff]  ;;  %v13246_v50 = vadd.f32 %v12615_v6, %v12730_v9 }
 0x143   :  { %17780 = vst [vmem:[#allocation44_spill] sm:$0xff] %v13198_v41  ;;  %v13213_v20 = vadd.f32 %v10498_v35, %v12730_v9  ;;  %10643 = vmatprep.mubr.msk.f32.mxu0 %vm619_vm1, %v190_v48  ;;  %v13231_v35 = vadd.f32 %v12730_v9, %v12607_v2  ;;  %v13239_v29 = vpop.f32.mrf.mxu1  ;;  %11117 = vmatprep.mubr.msk.f32.mxu1 %vm619_vm1, %v506_v23  ;;  %v194_v2 = vld [vmem:[%s17653_s0 + $0x510] sm:$0xff] }
 0x144   :  { %v2718_v60 = vpop.f32.mrf.mxu0  ;;  %17785 = vst [vmem:[#allocation49_spill] sm:$0xff] %v13239_v29 }
 0x145   :  { %17783 = vst [vmem:[#allocation47_spill] sm:$0xff] %v13231_v35  ;;  %v13236_v48 = vadd.f32 %v12730_v9, %v2718_v60  ;;  %v507_v60 = vld [vmem:[%s17653_s0 + $0xed8] sm:$0xff]  ;;  %v13264_v29 = vpop.f32.mrf.mxu1 }
 0x146   :  { %v10501_v41 = vpop.f32.mrf.mxu0  ;;  %10644 = vmatmul.mubr.msk.f32.gmra.mxu0 %vm619_vm1, %v191_v39  ;;  %v193_v39 = vld [vmem:[%s17653_s0 + $0x508] sm:$0xff]  ;;  %17786 = vst [vmem:[#allocation50_spill] sm:$0xff] %v13264_v29  ;;  %11118 = vmatmul.mubr.msk.f32.gmra.mxu1 %vm619_vm1, %v507_v60  ;;  %v508_v29 = vld [vmem:[%s17653_s0 + $0xee0] sm:$0xff]  ;;  %v13284_v60 = vadd.f32 %v12639_v18, %v12730_v9 }
 0x147   :  { %17784 = vst [vmem:[#allocation48_spill] sm:$0xff] %v13236_v48  ;;  %v13251_v8 = vadd.f32 %v10501_v41, %v12730_v9  ;;  %10646 = vmatprep.mubr.msk.f32.mxu0 %vm619_vm1, %v192_v56  ;;  %v13269_v41 = vadd.f32 %v12730_v9, %v12631_v14  ;;  %v13277_v35 = vpop.f32.mrf.mxu1  ;;  %11120 = vmatprep.mubr.msk.f32.mxu1 %vm619_vm1, %v508_v29  ;;  %v196_v14 = vld [vmem:[%s17653_s0 + $0x520] sm:$0xff] }
 0x148   :  { %v2728_v6 = vpop.f32.mrf.mxu0  ;;  %17789 = vst [vmem:[#allocation53_spill] sm:$0xff] %v13277_v35 }
 0x149   :  { %17787 = vst [vmem:[#allocation51_spill] sm:$0xff] %v13269_v41  ;;  %v13274_v56 = vadd.f32 %v12730_v9, %v2728_v6  ;;  %v509_v6 = vld [vmem:[%s17653_s0 + $0xee8] sm:$0xff]  ;;  %v13302_v35 = vpop.f32.mrf.mxu1 }
 0x14a   :  { %v10504_v48 = vpop.f32.mrf.mxu0  ;;  %10647 = vmatmul.mubr.msk.f32.gmra.mxu0 %vm619_vm1, %v193_v39  ;;  %v195_v39 = vld [vmem:[%s17653_s0 + $0x518] sm:$0xff]  ;;  %17790 = vst [vmem:[#allocation54_spill] sm:$0xff] %v13302_v35  ;;  %11121 = vmatmul.mubr.msk.f32.gmra.mxu1 %vm619_vm1, %v509_v6  ;;  %v510_v35 = vld [vmem:[%s17653_s0 + $0xef0] sm:$0xff]  ;;  %v13322_v6 = vadd.f32 %v12663_v30, %v12730_v9 }
 0x14b   :  { %17788 = vst [vmem:[#allocation52_spill] sm:$0xff] %v13274_v56  ;;  %v13289_v23 = vadd.f32 %v10504_v48, %v12730_v9  ;;  %10649 = vmatprep.mubr.msk.f32.mxu0 %vm619_vm1, %v194_v2  ;;  %v13307_v48 = vadd.f32 %v12730_v9, %v12655_v26  ;;  %v13315_v41 = vpop.f32.mrf.mxu1  ;;  %11123 = vmatprep.mubr.msk.f32.mxu1 %vm619_vm1, %v510_v35  ;;  %v198_v26 = vld [vmem:[%s17653_s0 + $0x530] sm:$0xff] }
 0x14c   :  { %v2738_v18 = vpop.f32.mrf.mxu0  ;;  %17793 = vst [vmem:[#allocation57_spill] sm:$0xff] %v13315_v41 }
 0x14d   :  { %17791 = vst [vmem:[#allocation55_spill] sm:$0xff] %v13307_v48  ;;  %v13312_v2 = vadd.f32 %v12730_v9, %v2738_v18  ;;  %v511_v18 = vld [vmem:[%s17653_s0 + $0xef8] sm:$0xff]  ;;  %v13340_v41 = vpop.f32.mrf.mxu1 }
 0x14e   :  { %v10507_v56 = vpop.f32.mrf.mxu0  ;;  %10650 = vmatmul.mubr.msk.f32.gmra.mxu0 %vm619_vm1, %v195_v39  ;;  %v197_v39 = vld [vmem:[%s17653_s0 + $0x528] sm:$0xff]  ;;  %17794 = vst [vmem:[#allocation58_spill] sm:$0xff] %v13340_v41  ;;  %11124 = vmatmul.mubr.msk.f32.gmra.mxu1 %vm619_vm1, %v511_v18  ;;  %v512_v41 = vld [vmem:[%s17653_s0 + $0xf00] sm:$0xff]  ;;  %v13360_v18 = vadd.f32 %v12687_v42, %v12730_v9 }
 0x14f   :  { %17792 = vst [vmem:[#allocation56_spill] sm:$0xff] %v13312_v2  ;;  %v13327_v29 = vadd.f32 %v10507_v56, %v12730_v9  ;;  %10652 = vmatprep.mubr.msk.f32.mxu0 %vm619_vm1, %v196_v14  ;;  %v13345_v56 = vadd.f32 %v12730_v9, %v12679_v38  ;;  %v13353_v48 = vpop.f32.mrf.mxu1  ;;  %11126 = vmatprep.mubr.msk.f32.mxu1 %vm619_vm1, %v512_v41  ;;  %v200_v38 = vld [vmem:[%s17653_s0 + $0x540] sm:$0xff] }
 0x150   :  { %v2748_v30 = vpop.f32.mrf.mxu0  ;;  %17797 = vst [vmem:[#allocation61_spill] sm:$0xff] %v13353_v48 }
 0x151   :  { %17795 = vst [vmem:[#allocation59_spill] sm:$0xff] %v13345_v56  ;;  %v13350_v14 = vadd.f32 %v12730_v9, %v2748_v30  ;;  %v513_v30 = vld [vmem:[%s17653_s0 + $0xf08] sm:$0xff]  ;;  %v13378_v48 = vpop.f32.mrf.mxu1 }
 0x152   :  { %v10510_v2 = vpop.f32.mrf.mxu0  ;;  %10653 = vmatmul.mubr.msk.f32.gmra.mxu0 %vm619_vm1, %v197_v39  ;;  %v199_v39 = vld [vmem:[%s17653_s0 + $0x538] sm:$0xff]  ;;  %17798 = vst [vmem:[#allocation62_spill] sm:$0xff] %v13378_v48  ;;  %11127 = vmatmul.mubr.msk.f32.gmra.mxu1 %vm619_vm1, %v513_v30  ;;  %v514_v48 = vld [vmem:[%s17653_s0 + $0xf10] sm:$0xff]  ;;  %v13398_v30 = vadd.f32 %v12711_v58, %v12730_v9 }
 0x153   :  { %17796 = vst [vmem:[#allocation60_spill] sm:$0xff] %v13350_v14  ;;  %v13365_v35 = vadd.f32 %v10510_v2, %v12730_v9  ;;  %10655 = vmatprep.mubr.msk.f32.mxu0 %vm619_vm1, %v198_v26  ;;  %v13383_v2 = vadd.f32 %v12730_v9, %v12703_v52  ;;  %v13391_v56 = vpop.f32.mrf.mxu1  ;;  %11129 = vmatprep.mubr.msk.f32.mxu1 %vm619_vm1, %v514_v48  ;;  %v202_v52 = vld [vmem:[%s17653_s0 + $0x550] sm:$0xff] }
 0x154   :  { %v2758_v42 = vpop.f32.mrf.mxu0  ;;  %17801 = vst [vmem:[#allocation65_spill] sm:$0xff] %v13391_v56 }
 0x155   :  { %17799 = vst [vmem:[#allocation63_spill] sm:$0xff] %v13383_v2  ;;  %v13388_v26 = vadd.f32 %v12730_v9, %v2758_v42  ;;  %v515_v42 = vld [vmem:[%s17653_s0 + $0xf18] sm:$0xff]  ;;  %v13416_v56 = vpop.f32.mrf.mxu1 }
 0x156   :  { %v10513_v14 = vpop.f32.mrf.mxu0  ;;  %10656 = vmatmul.mubr.msk.f32.gmra.mxu0 %vm619_vm1, %v199_v39  ;;  %v201_v39 = vld [vmem:[%s17653_s0 + $0x548] sm:$0xff]  ;;  %17803 = vst [vmem:[#allocation67_spill] sm:$0xff] %v13416_v56  ;;  %11130 = vmatmul.mubr.msk.f32.gmra.mxu1 %vm619_vm1, %v515_v42  ;;  %v516_v56 = vld [vmem:[%s17653_s0 + $0xf20] sm:$0xff] }
 0x157   :  { %17800 = vst [vmem:[#allocation64_spill] sm:$0xff] %v13388_v26  ;;  %v13403_v41 = vadd.f32 %v10513_v14, %v12730_v9  ;;  %10658 = vmatprep.mubr.msk.f32.mxu0 %vm619_vm1, %v200_v38  ;;  %v13421_v14 = vadd.f32 %v12730_v9, %v12732_v10  ;;  %v13429_v2 = vpop.f32.mrf.mxu1  ;;  %11132 = vmatprep.mubr.msk.f32.mxu1 %vm619_vm1, %v516_v56 }
 0x158   :  { %v2768_v58 = vpop.f32.mrf.mxu0  ;;  %17806 = vst [vmem:[#allocation70_spill] sm:$0xff] %v13429_v2  ;;  %v204_v2 = vld [vmem:[%s17653_s0 + $0x560] sm:$0xff] }
 0x159   :  { %17802 = vst [vmem:[#allocation66_spill] sm:$0xff] %v13403_v41  ;;  %17804 = vst [vmem:[#allocation68_spill] sm:$0xff] %v13421_v14  ;;  %v13426_v38 = vadd.f32 %v12730_v9, %v2768_v58  ;;  %v203_v58 = vld [vmem:[%s17653_s0 + $0x558] sm:$0xff]  ;;  %v13448_v42 = vpop.f32.mrf.mxu1  ;;  %v518_v41 = vld [vmem:[%s17653_s0 + $0xf30] sm:$0xff] }
 0x15a   :  { %v10516_v26 = vpop.f32.mrf.mxu0  ;;  %10659 = vmatmul.mubr.msk.f32.gmra.mxu0 %vm619_vm1, %v201_v39  ;;  %v517_v39 = vld [vmem:[%s17653_s0 + $0xf28] sm:$0xff]  ;;  %17807 = vst [vmem:[#allocation71_spill] sm:$0xff] %v13448_v42  ;;  %v17810_v42 = vmax.f32 %v12775_v54, %v12780_v0  ;;  %v206_v54 = vld [vmem:[%s17653_s0 + $0x570] sm:$0xff] }
 0x15b   :  { %17805 = vst [vmem:[#allocation69_spill] sm:$0xff] %v13426_v38  ;;  %v2784_v10 = vadd.f32 %v10516_v26, %v12730_v9  ;;  %10661 = vmatprep.mubr.msk.f32.mxu0 %vm619_vm1, %v202_v52  ;;  %11133 = vmatmul.mubr.msk.f32.gmra.mxu1 %vm619_vm1, %v517_v39  ;;  %v17808_v26 = vmax.f32 %v12754_v34, %v12757_v36  ;;  %v13458_v14 = vpop.f32.mrf.mxu1  ;;  %v205_v36 = vld [vmem:[%s17653_s0 + $0x568] sm:$0xff] }
 0x15c   :  { %v2778_v48 = vpop.f32.mrf.mxu0  ;;  %17809 = vst [vmem:[#allocation72_spill] sm:$0xff] %v13458_v14  ;;  %11135 = vmatprep.mubr.msk.f32.mxu1 %vm619_vm1, %v518_v41 }
 0x15d   :  { %v13454_v52 = vmax.f32 %v17808_v26, %v2784_v10  ;;  %v2779_v56 = vadd.f32 %v12730_v9, %v2778_v48  ;;  %v519_v48 = vld [vmem:[%s17653_s0 + $0xf38] sm:$0xff]  ;;  %v13480_v0 = vpop.f32.mrf.mxu1  ;;  %v520_v26 = vld [vmem:[%s17653_s0 + $0xf40] sm:$0xff] }
 0x15e   :  { %v10519_v38 = vpop.f32.mrf.mxu0  ;;  %10662 = vmatmul.mubr.msk.f32.gmra.mxu0 %vm619_vm1, %v203_v58  ;;  %17811 = vst [vmem:[#allocation73_spill] sm:$0xff] %v13480_v0 }
 0x15f   :  { %v13466_v39 = vmax.f32 %v17810_v42, %v2779_v56  ;;  %v2794_v34 = vadd.f32 %v10519_v38, %v12730_v9  ;;  %10664 = vmatprep.mubr.msk.f32.mxu0 %vm619_vm1, %v204_v2  ;;  %11136 = vmatmul.mubr.msk.f32.gmra.mxu1 %vm619_vm1, %v519_v48  ;;  %v17812_v2 = vmax.f32 %v12790_v24, %v12795_v33  ;;  %v13490_v58 = vpop.f32.mrf.mxu1  ;;  %v207_v33 = vld [vmem:[%s17653_s0 + $0x578] sm:$0xff] }
 0x160   :  { %v2788_v10 = vpop.f32.mrf.mxu0  ;;  %17813 = vst [vmem:[#allocation74_spill] sm:$0xff] %v13490_v58  ;;  %v17814_v56 = vmax.f32 %v12813_v47, %v12818_v21  ;;  %11138 = vmatprep.mubr.msk.f32.mxu1 %vm619_vm1, %v520_v26  ;;  %v208_v47 = vld [vmem:[%s17653_s0 + $0x580] sm:$0xff]  ;;  %v522_v26 = vld [vmem:[%s17653_s0 + $0xf50] sm:$0xff] }
 0x161   :  { %v13486_v38 = vmax.f32 %v17812_v2, %v2794_v34  ;;  %v2789_v41 = vadd.f32 %v12730_v9, %v2788_v10  ;;  %v521_v34 = vld [vmem:[%s17653_s0 + $0xf48] sm:$0xff]  ;;  %v13512_v21 = vpop.f32.mrf.mxu1  ;;  %v17816_v10 = vmax.f32 %v12828_v45, %v12833_v3 }
 0x162   :  { %v10522_v42 = vpop.f32.mrf.mxu0  ;;  %10665 = vmatmul.mubr.msk.f32.gmra.mxu0 %vm619_vm1, %v205_v36  ;;  %17815 = vst [vmem:[#allocation75_spill] sm:$0xff] %v13512_v21  ;;  %v209_v45 = vld [vmem:[%s17653_s0 + $0x588] sm:$0xff] }
 0x163   :  { %v13498_v48 = vmax.f32 %v17814_v56, %v2789_v41  ;;  %v2804_v24 = vadd.f32 %v10522_v42, %v12730_v9  ;;  %10667 = vmatprep.mubr.msk.f32.mxu0 %vm619_vm1, %v206_v54  ;;  %11139 = vmatmul.mubr.msk.f32.gmra.mxu1 %vm619_vm1, %v521_v34  ;;  %v13522_v42 = vpop.f32.mrf.mxu1  ;;  %v17818_v56 = vmax.f32 %v12851_v51, %v12856_v46  ;;  %v210_v51 = vld [vmem:[%s17653_s0 + $0x590] sm:$0xff] }
 0x164   :  { %v2798_v36 = vpop.f32.mrf.mxu0  ;;  %17817 = vst [vmem:[#allocation76_spill] sm:$0xff] %v13522_v42  ;;  %11141 = vmatprep.mubr.msk.f32.mxu1 %vm619_vm1, %v522_v26  ;;  %v524_v26 = vld [vmem:[%s17653_s0 + $0xf60] sm:$0xff] }
 0x165   :  { %v13518_v54 = vmax.f32 %v17816_v10, %v2804_v24  ;;  %v2799_v2 = vadd.f32 %v12730_v9, %v2798_v36  ;;  %v523_v24 = vld [vmem:[%s17653_s0 + $0xf58] sm:$0xff]  ;;  %v13544_v46 = vpop.f32.mrf.mxu1  ;;  %v17820_v36 = vmax.f32 %v12866_v53, %v12871_v15 }
 0x166   :  { %v10525_v41 = vpop.f32.mrf.mxu0  ;;  %10668 = vmatmul.mubr.msk.f32.gmra.mxu0 %vm619_vm1, %v207_v33  ;;  %17819 = vst [vmem:[#allocation77_spill] sm:$0xff] %v13544_v46  ;;  %v211_v53 = vld [vmem:[%s17653_s0 + $0x598] sm:$0xff] }
 0x167   :  { %v13530_v34 = vmax.f32 %v17818_v56, %v2799_v2  ;;  %v2814_v3 = vadd.f32 %v10525_v41, %v12730_v9  ;;  %10670 = vmatprep.mubr.msk.f32.mxu0 %vm619_vm1, %v208_v47  ;;  %11142 = vmatmul.mubr.msk.f32.gmra.mxu1 %vm619_vm1, %v523_v24  ;;  %v13554_v41 = vpop.f32.mrf.mxu1  ;;  %v17822_v56 = vmax.f32 %v12889_v12, %v12894_v57  ;;  %v212_v12 = vld [vmem:[%s17653_s0 + $0x5a0] sm:$0xff] }
 0x168   :  { %v2808_v33 = vpop.f32.mrf.mxu0  ;;  %17821 = vst [vmem:[#allocation78_spill] sm:$0xff] %v13554_v41  ;;  %11144 = vmatprep.mubr.msk.f32.mxu1 %vm619_vm1, %v524_v26  ;;  %v526_v26 = vld [vmem:[%s17653_s0 + $0xf70] sm:$0xff] }
 0x169   :  { %v13550_v47 = vmax.f32 %v17820_v36, %v2814_v3  ;;  %v2809_v10 = vadd.f32 %v12730_v9, %v2808_v33  ;;  %v525_v3 = vld [vmem:[%s17653_s0 + $0xf68] sm:$0xff]  ;;  %v13576_v57 = vpop.f32.mrf.mxu1  ;;  %v17824_v33 = vmax.f32 %v12904_v59, %v12909_v62 }
 0x16a   :  { %v10528_v2 = vpop.f32.mrf.mxu0  ;;  %10671 = vmatmul.mubr.msk.f32.gmra.mxu0 %vm619_vm1, %v209_v45  ;;  %17823 = vst [vmem:[#allocation79_spill] sm:$0xff] %v13576_v57  ;;  %v213_v59 = vld [vmem:[%s17653_s0 + $0x5a8] sm:$0xff] }
 0x16b   :  { %v13562_v24 = vmax.f32 %v17822_v56, %v2809_v10  ;;  %v2824_v15 = vadd.f32 %v10528_v2, %v12730_v9  ;;  %10673 = vmatprep.mubr.msk.f32.mxu0 %vm619_vm1, %v210_v51  ;;  %11145 = vmatmul.mubr.msk.f32.gmra.mxu1 %vm619_vm1, %v525_v3  ;;  %v13586_v2 = vpop.f32.mrf.mxu1  ;;  %v17826_v56 = vmax.f32 %v12927_v27, %v12932_v63  ;;  %v214_v27 = vld [vmem:[%s17653_s0 + $0x5b0] sm:$0xff] }
 0x16c   :  { %v2818_v45 = vpop.f32.mrf.mxu0  ;;  %17825 = vst [vmem:[#allocation80_spill] sm:$0xff] %v13586_v2  ;;  %11147 = vmatprep.mubr.msk.f32.mxu1 %vm619_vm1, %v526_v26  ;;  %v528_v26 = vld [vmem:[%s17653_s0 + $0xf80] sm:$0xff] }
 0x16d   :  { %v13582_v51 = vmax.f32 %v17824_v33, %v2824_v15  ;;  %v2819_v36 = vadd.f32 %v12730_v9, %v2818_v45  ;;  %v527_v15 = vld [vmem:[%s17653_s0 + $0xf78] sm:$0xff]  ;;  %v13608_v63 = vpop.f32.mrf.mxu1  ;;  %v17828_v45 = vmax.f32 %v12942_v1, %v12947_v49 }
 0x16e   :  { %v10531_v10 = vpop.f32.mrf.mxu0  ;;  %10674 = vmatmul.mubr.msk.f32.gmra.mxu0 %vm619_vm1, %v211_v53  ;;  %17827 = vst [vmem:[#allocation81_spill] sm:$0xff] %v13608_v63  ;;  %v215_v1 = vld [vmem:[%s17653_s0 + $0x5b8] sm:$0xff] }
 0x16f   :  { %v13594_v3 = vmax.f32 %v17826_v56, %v2819_v36  ;;  %v2834_v62 = vadd.f32 %v10531_v10, %v12730_v9  ;;  %10676 = vmatprep.mubr.msk.f32.mxu0 %vm619_vm1, %v212_v12  ;;  %11148 = vmatmul.mubr.msk.f32.gmra.mxu1 %vm619_vm1, %v527_v15  ;;  %v13618_v10 = vpop.f32.mrf.mxu1  ;;  %v17830_v56 = vmax.f32 %v12965_v61, %v12970_v5  ;;  %v216_v61 = vld [vmem:[%s17653_s0 + $0x5c0] sm:$0xff]  ;;  %v17866_v63 = vld [vmem:[#allocation9_spill] sm:$0xff] }
 0x170   :  { %v2828_v53 = vpop.f32.mrf.mxu0  ;;  %17829 = vst [vmem:[#allocation82_spill] sm:$0xff] %v13618_v10  ;;  %11150 = vmatprep.mubr.msk.f32.mxu1 %vm619_vm1, %v528_v26  ;;  %v530_v26 = vld [vmem:[%s17653_s0 + $0xf90] sm:$0xff] }
 0x171   :  { %v13614_v12 = vmax.f32 %v17828_v45, %v2834_v62  ;;  %v2829_v33 = vadd.f32 %v12730_v9, %v2828_v53  ;;  %v529_v62 = vld [vmem:[%s17653_s0 + $0xf88] sm:$0xff]  ;;  %v13640_v5 = vpop.f32.mrf.mxu1  ;;  %v17832_v53 = vmax.f32 %v12980_v7, %v12985_v22 }
 0x172   :  { %v10534_v36 = vpop.f32.mrf.mxu0  ;;  %10677 = vmatmul.mubr.msk.f32.gmra.mxu0 %vm619_vm1, %v213_v59  ;;  %17831 = vst [vmem:[#allocation83_spill] sm:$0xff] %v13640_v5  ;;  %v217_v7 = vld [vmem:[%s17653_s0 + $0x5c8] sm:$0xff] }
 0x173   :  { %v13626_v15 = vmax.f32 %v17830_v56, %v2829_v33  ;;  %v2844_v49 = vadd.f32 %v10534_v36, %v12730_v9  ;;  %10679 = vmatprep.mubr.msk.f32.mxu0 %vm619_vm1, %v214_v27  ;;  %11151 = vmatmul.mubr.msk.f32.gmra.mxu1 %vm619_vm1, %v529_v62  ;;  %v13650_v36 = vpop.f32.mrf.mxu1  ;;  %v17834_v56 = vmax.f32 %v13003_v44, %v13008_v11  ;;  %v218_v44 = vld [vmem:[%s17653_s0 + $0x5d0] sm:$0xff] }
 0x174   :  { %v2838_v59 = vpop.f32.mrf.mxu0  ;;  %17833 = vst [vmem:[#allocation84_spill] sm:$0xff] %v13650_v36  ;;  %11153 = vmatprep.mubr.msk.f32.mxu1 %vm619_vm1, %v530_v26  ;;  %v532_v26 = vld [vmem:[%s17653_s0 + $0xfa0] sm:$0xff] }
 0x175   :  { %v13646_v27 = vmax.f32 %v17832_v53, %v2844_v49  ;;  %v2839_v45 = vadd.f32 %v12730_v9, %v2838_v59  ;;  %v531_v49 = vld [vmem:[%s17653_s0 + $0xf98] sm:$0xff]  ;;  %v13672_v11 = vpop.f32.mrf.mxu1  ;;  %v17836_v59 = vmax.f32 %v13018_v13, %v13023_v55 }
 0x176   :  { %v10537_v33 = vpop.f32.mrf.mxu0  ;;  %10680 = vmatmul.mubr.msk.f32.gmra.mxu0 %vm619_vm1, %v215_v1  ;;  %17835 = vst [vmem:[#allocation85_spill] sm:$0xff] %v13672_v11  ;;  %v219_v13 = vld [vmem:[%s17653_s0 + $0x5d8] sm:$0xff]  ;;  %v17845_v11 = vld [vmem:[#allocation32_spill] sm:$0xff] }
 0x177   :  { %v13658_v62 = vmax.f32 %v17834_v56, %v2839_v45  ;;  %v2854_v22 = vadd.f32 %v10537_v33, %v12730_v9  ;;  %10682 = vmatprep.mubr.msk.f32.mxu0 %vm619_vm1, %v216_v61  ;;  %11154 = vmatmul.mubr.msk.f32.gmra.mxu1 %vm619_vm1, %v531_v49  ;;  %v13682_v33 = vpop.f32.mrf.mxu1  ;;  %v17838_v56 = vmax.f32 %v13041_v32, %v13046_v17  ;;  %v533_v32 = vld [vmem:[%s17653_s0 + $0xfa8] sm:$0xff] }
 0x178   :  { %v2848_v1 = vpop.f32.mrf.mxu0  ;;  %17837 = vst [vmem:[#allocation86_spill] sm:$0xff] %v13682_v33  ;;  %11156 = vmatprep.mubr.msk.f32.mxu1 %vm619_vm1, %v532_v26  ;;  %v17842_v26 = vld [vmem:[#allocation3_spill] sm:$0xff] }
 0x179   :  { %v13678_v61 = vmax.f32 %v17836_v59, %v2854_v22  ;;  %v2849_v53 = vadd.f32 %v12730_v9, %v2848_v1  ;;  %v17839_v22 = vld [vmem:[#allocation2_spill] sm:$0xff]  ;;  %v17841_v59 = vmax.f32 %v13056_v19, %v13061_v40 }
 0x17a   :  { %v10540_v45 = vpop.f32.mrf.mxu0  ;;  %10683 = vmatmul.mubr.msk.f32.gmra.mxu0 %vm619_vm1, %v217_v7  ;;  %v13699_v7 = vadd.f32 %v17839_v22, %v12730_v9  ;;  %v220_v1 = vld [vmem:[%s17653_s0 + $0x5e0] sm:$0xff] }
 0x17b   :  { %v13690_v49 = vmax.f32 %v17838_v56, %v2849_v53  ;;  %v2864_v55 = vadd.f32 %v10540_v45, %v12730_v9  ;;  %10685 = vmatprep.mubr.msk.f32.mxu0 %vm619_vm1, %v218_v44  ;;  %v13708_v44 = vpop.f32.mrf.mxu1  ;;  %11157 = vmatmul.mubr.msk.f32.gmra.mxu1 %vm619_vm1, %v533_v32  ;;  %v13719_v56 = vadd.f32 %v12730_v9, %v17842_v26  ;;  %v534_v32 = vld [vmem:[%s17653_s0 + $0xfb0] sm:$0xff] }
 0x17c   :  { %v2858_v17 = vpop.f32.mrf.mxu0  ;;  %17840 = vst [vmem:[#allocation2_spill] sm:$0xff] %v13708_v44  ;;  %v17844_v44 = vld [vmem:[#allocation31_spill] sm:$0xff]  ;;  %11159 = vmatprep.mubr.msk.f32.mxu1 %vm619_vm1, %v534_v32 }
 0x17d   :  { %v13714_v53 = vmax.f32 %v17841_v59, %v2864_v55  ;;  %v2859_v45 = vadd.f32 %v12730_v9, %v2858_v17  ;;  %v13722_v33 = vpop.f32.mrf.mxu1  ;;  %v17846_v40 = vmax.f32 %v17844_v44, %v17845_v11  ;;  %v221_v17 = vld [vmem:[%s17653_s0 + $0x5e8] sm:$0xff]  ;;  %v17847_v59 = vld [vmem:[#allocation4_spill] sm:$0xff]  ;;  %v535_v11 = vld [vmem:[%s17653_s0 + $0xfb8] sm:$0xff] }
 0x17e   :  { %v10543_v22 = vpop.f32.mrf.mxu0  ;;  %10686 = vmatmul.mubr.msk.f32.gmra.mxu0 %vm619_vm1, %v219_v13  ;;  %17843 = vst [vmem:[#allocation3_spill] sm:$0xff] %v13722_v33  ;;  %v13741_v26 = vadd.f32 %v17847_v59, %v12730_v9  ;;  %v17850_v33 = vld [vmem:[#allocation5_spill] sm:$0xff] }
 0x17f   :  { %v13730_v19 = vmax.f32 %v17846_v40, %v2859_v45  ;;  %v2874_v55 = vadd.f32 %v10543_v22, %v12730_v9  ;;  %10688 = vmatprep.mubr.msk.f32.mxu0 %vm619_vm1, %v220_v1  ;;  %v222_v1 = vld [vmem:[%s17653_s0 + $0x5f0] sm:$0xff]  ;;  %v13750_v45 = vpop.f32.mrf.mxu1  ;;  %v17849_v22 = vmax.f32 %v13094_v25, %v13099_v28  ;;  %v13762_v36 = vadd.f32 %v12730_v9, %v17850_v33  ;;  %v536_v28 = vld [vmem:[%s17653_s0 + $0xfc0] sm:$0xff]  ;;  %v17852_v25 = vld [vmem:[#allocation35_spill] sm:$0xff] }
 0x180   :  { %v2868_v44 = vpop.f32.mrf.mxu0  ;;  %17848 = vst [vmem:[#allocation31_spill] sm:$0xff] %v13750_v45  ;;  %11160 = vmatmul.mubr.msk.f32.gmra.mxu1 %vm619_vm1, %v535_v11  ;;  %v223_v33 = vld [vmem:[%s17653_s0 + $0x5f8] sm:$0xff]  ;;  %v17855_v11 = vld [vmem:[#allocation6_spill] sm:$0xff]  ;;  %v17858_v45 = vld [vmem:[#allocation7_spill] sm:$0xff] }
 0x181   :  { %v13755_v40 = vmax.f32 %v17849_v22, %v2874_v55  ;;  %v2869_v59 = vadd.f32 %v12730_v9, %v2868_v44  ;;  %v13766_v32 = vpop.f32.mrf.mxu1  ;;  %v17853_v55 = vld [vmem:[#allocation36_spill] sm:$0xff]  ;;  %11162 = vmatprep.mubr.msk.f32.mxu1 %vm619_vm1, %v536_v28 }
 0x182   :  { %v10546_v5 = vpop.f32.mrf.mxu0  ;;  %10689 = vmatmul.mubr.msk.f32.gmra.mxu0 %vm619_vm1, %v221_v17  ;;  %17851 = vst [vmem:[#allocation32_spill] sm:$0xff] %v13766_v32  ;;  %v17854_v44 = vmax.f32 %v17852_v25, %v17853_v55  ;;  %v13785_v32 = vadd.f32 %v17855_v11, %v12730_v9  ;;  %v17857_v55 = vmax.f32 %v13132_v31, %v13137_v16  ;;  %v538_v31 = vld [vmem:[%s17653_s0 + $0xfd0] sm:$0xff] }
 0x183   :  { %v2884_v13 = vadd.f32 %v10546_v5, %v12730_v9  ;;  %10691 = vmatprep.mubr.msk.f32.mxu0 %vm619_vm1, %v222_v1  ;;  %v224_v5 = vld [vmem:[%s17653_s0 + $0x600] sm:$0xff]  ;;  %v13794_v1 = vpop.f32.mrf.mxu1 }
 0x184   :  { %v13774_v22 = vmax.f32 %v17854_v44, %v2869_v59  ;;  %v537_v59 = vld [vmem:[%s17653_s0 + $0xfc8] sm:$0xff]  ;;  %v2878_v25 = vpop.f32.mrf.mxu0  ;;  %17856 = vst [vmem:[#allocation4_spill] sm:$0xff] %v13794_v1  ;;  %v13804_v9 = vld [vmem:[%s17654_s2] ss:$0 sm:$0xff] }
 0x185   :  { %v13799_v44 = vmax.f32 %v17857_v55, %v2884_v13  ;;  %v2879_v11 = vadd.f32 %v13804_v9, %v2878_v25  ;;  %v13811_v28 = vadd.f32 %v13804_v9, %v17858_v45  ;;  %11163 = vmatmul.mubr.msk.f32.gmra.mxu1 %vm619_vm1, %v537_v59  ;;  %v13815_v16 = vpop.f32.mrf.mxu1  ;;  %v17860_v13 = vld [vmem:[#allocation39_spill] sm:$0xff]  ;;  %v17861_v25 = vld [vmem:[#allocation40_spill] sm:$0xff]  ;;  %v13855_v2 = vadd.f32 %v13804_v9, %v17866_v63  ;;  %v227_v63 = vld [vmem:[%s17653_s0 + $0x618] sm:$0xff] }
 0x186   :  { %v10549_v1 = vpop.f32.mrf.mxu0  ;;  %10692 = vmatmul.mubr.msk.f32.gmra.mxu0 %vm619_vm1, %v223_v33  ;;  %17859 = vst [vmem:[#allocation5_spill] sm:$0xff] %v13815_v16  ;;  %v17862_v55 = vmax.f32 %v17860_v13, %v17861_v25  ;;  %v225_v45 = vld [vmem:[%s17653_s0 + $0x608] sm:$0xff]  ;;  %v17863_v59 = vld [vmem:[#allocation8_spill] sm:$0xff]  ;;  %11165 = vmatprep.mubr.msk.f32.mxu1 %vm619_vm1, %v538_v31  ;;  %v17865_v25 = vmax.f32 %v13170_v37, %v13175_v4  ;;  %v540_v4 = vld [vmem:[%s17653_s0 + $0xfe0] sm:$0xff] }
 0x187   :  { %v2894_v17 = vadd.f32 %v13804_v9, %v10549_v1  ;;  %10694 = vmatprep.mubr.msk.f32.mxu0 %vm619_vm1, %v224_v5  ;;  %v13834_v16 = vadd.f32 %v13804_v9, %v17863_v59  ;;  %v226_v5 = vld [vmem:[%s17653_s0 + $0x610] sm:$0xff]  ;;  %v13843_v1 = vpop.f32.mrf.mxu1  ;;  %v17868_v37 = vld [vmem:[#allocation43_spill] sm:$0xff] }
 0x188   :  { %v13823_v10 = vmax.f32 %v17862_v55, %v2879_v11  ;;  %v539_v11 = vld [vmem:[%s17653_s0 + $0xfd8] sm:$0xff]  ;;  %v2888_v13 = vpop.f32.mrf.mxu0  ;;  %17864 = vst [vmem:[#allocation35_spill] sm:$0xff] %v13843_v1  ;;  %v17874_v1 = vld [vmem:[#allocation11_spill] sm:$0xff] }
 0x189   :  { %v13848_v55 = vmax.f32 %v17865_v25, %v2894_v17  ;;  %v2889_v59 = vadd.f32 %v13804_v9, %v2888_v13  ;;  %11166 = vmatmul.mubr.msk.f32.gmra.mxu1 %vm619_vm1, %v539_v11  ;;  %v13859_v31 = vpop.f32.mrf.mxu1  ;;  %v17869_v17 = vld [vmem:[#allocation44_spill] sm:$0xff]  ;;  %v17871_v11 = vld [vmem:[#allocation10_spill] sm:$0xff]  ;;  %v13899_v41 = vadd.f32 %v13804_v9, %v17874_v1  ;;  %v229_v1 = vld [vmem:[%s17653_s0 + $0x628] sm:$0xff] }
 0x18a   :  { %v10552_v57 = vpop.f32.mrf.mxu0  ;;  %10695 = vmatmul.mubr.msk.f32.gmra.mxu0 %vm619_vm1, %v225_v45  ;;  %17867 = vst [vmem:[#allocation36_spill] sm:$0xff] %v13859_v31  ;;  %v17870_v13 = vmax.f32 %v17868_v37, %v17869_v17  ;;  %v13878_v31 = vadd.f32 %v13804_v9, %v17871_v11  ;;  %11168 = vmatprep.mubr.msk.f32.mxu1 %vm619_vm1, %v540_v4 }
 0x18b   :  { %v2904_v33 = vadd.f32 %v13804_v9, %v10552_v57  ;;  %10697 = vmatprep.mubr.msk.f32.mxu0 %vm619_vm1, %v226_v5  ;;  %v228_v57 = vld [vmem:[%s17653_s0 + $0x620] sm:$0xff]  ;;  %v13887_v5 = vpop.f32.mrf.mxu1  ;;  %v17873_v17 = vmax.f32 %v13208_v43, %v13213_v20  ;;  %v542_v20 = vld [vmem:[%s17653_s0 + $0xff0] sm:$0xff]  ;;  %v17876_v43 = vld [vmem:[#allocation47_spill] sm:$0xff] }
 0x18c   :  { %v13867_v25 = vmax.f32 %v17870_v13, %v2889_v59  ;;  %v541_v59 = vld [vmem:[%s17653_s0 + $0xfe8] sm:$0xff]  ;;  %v2898_v37 = vpop.f32.mrf.mxu0  ;;  %17872 = vst [vmem:[#allocation6_spill] sm:$0xff] %v13887_v5  ;;  %v17882_v5 = vld [vmem:[#allocation13_spill] sm:$0xff] }
 0x18d   :  { %v13892_v13 = vmax.f32 %v17873_v17, %v2904_v33  ;;  %v2899_v11 = vadd.f32 %v13804_v9, %v2898_v37  ;;  %11169 = vmatmul.mubr.msk.f32.gmra.mxu1 %vm619_vm1, %v541_v59  ;;  %v13903_v4 = vpop.f32.mrf.mxu1  ;;  %v17877_v33 = vld [vmem:[#allocation48_spill] sm:$0xff]  ;;  %v13943_v42 = vadd.f32 %v13804_v9, %v17882_v5  ;;  %v231_v5 = vld [vmem:[%s17653_s0 + $0x638] sm:$0xff] }
 0x18e   :  { %v10555_v46 = vpop.f32.mrf.mxu0  ;;  %10698 = vmatmul.mubr.msk.f32.gmra.mxu0 %vm619_vm1, %v227_v63  ;;  %17875 = vst [vmem:[#allocation7_spill] sm:$0xff] %v13903_v4  ;;  %v17878_v37 = vmax.f32 %v17876_v43, %v17877_v33  ;;  %v17879_v59 = vld [vmem:[#allocation12_spill] sm:$0xff]  ;;  %11171 = vmatprep.mubr.msk.f32.mxu1 %vm619_vm1, %v542_v20  ;;  %v17881_v33 = vmax.f32 %v13246_v50, %v13251_v8  ;;  %v544_v8 = vld [vmem:[%s17653_s0 + $0x1000] sm:$0xff]  ;;  %v17884_v50 = vld [vmem:[#allocation51_spill] sm:$0xff] }
 0x18f   :  { %v2914_v45 = vadd.f32 %v13804_v9, %v10555_v46  ;;  %10700 = vmatprep.mubr.msk.f32.mxu0 %vm619_vm1, %v228_v57  ;;  %v13922_v4 = vadd.f32 %v13804_v9, %v17879_v59  ;;  %v230_v46 = vld [vmem:[%s17653_s0 + $0x630] sm:$0xff]  ;;  %v13931_v57 = vpop.f32.mrf.mxu1 }
 0x190   :  { %v13911_v17 = vmax.f32 %v17878_v37, %v2899_v11  ;;  %v543_v11 = vld [vmem:[%s17653_s0 + $0xff8] sm:$0xff]  ;;  %v2908_v43 = vpop.f32.mrf.mxu0  ;;  %17880 = vst [vmem:[#allocation39_spill] sm:$0xff] %v13931_v57  ;;  %v17891_v57 = vld [vmem:[#allocation15_spill] sm:$0xff] }
 0x191   :  { %v13936_v37 = vmax.f32 %v17881_v33, %v2914_v45  ;;  %v2909_v59 = vadd.f32 %v13804_v9, %v2908_v43  ;;  %11172 = vmatmul.mubr.msk.f32.gmra.mxu1 %vm619_vm1, %v543_v11  ;;  %v13947_v20 = vpop.f32.mrf.mxu1  ;;  %v17885_v45 = vld [vmem:[#allocation52_spill] sm:$0xff]  ;;  %v17887_v11 = vld [vmem:[#allocation14_spill] sm:$0xff]  ;;  %v13987_v58 = vadd.f32 %v13804_v9, %v17891_v57  ;;  %v233_v57 = vld [vmem:[%s17653_s0 + $0x648] sm:$0xff] }
 0x192   :  { %v10558_v21 = vpop.f32.mrf.mxu0  ;;  %10701 = vmatmul.mubr.msk.f32.gmra.mxu0 %vm619_vm1, %v229_v1  ;;  %17883 = vst [vmem:[#allocation40_spill] sm:$0xff] %v13947_v20  ;;  %v17886_v43 = vmax.f32 %v17884_v50, %v17885_v45  ;;  %v13966_v20 = vadd.f32 %v13804_v9, %v17887_v11  ;;  %11174 = vmatprep.mubr.msk.f32.mxu1 %vm619_vm1, %v544_v8 }
 0x193   :  { %v2924_v63 = vadd.f32 %v13804_v9, %v10558_v21  ;;  %10703 = vmatprep.mubr.msk.f32.mxu0 %vm619_vm1, %v230_v46  ;;  %v232_v21 = vld [vmem:[%s17653_s0 + $0x640] sm:$0xff]  ;;  %v13975_v46 = vpop.f32.mrf.mxu1  ;;  %v17890_v45 = vmax.f32 %v13284_v60, %v13289_v23  ;;  %v546_v23 = vld [vmem:[%s17653_s0 + $0x1010] sm:$0xff]  ;;  %v17893_v60 = vld [vmem:[#allocation55_spill] sm:$0xff] }
 0x194   :  { %v13955_v33 = vmax.f32 %v17886_v43, %v2909_v59  ;;  %17888 = vst [vmem:[#allocation8_spill] sm:$0xff] %v13966_v20  ;;  %v545_v59 = vld [vmem:[%s17653_s0 + $0x1008] sm:$0xff]  ;;  %v2918_v50 = vpop.f32.mrf.mxu0  ;;  %17889 = vst [vmem:[#allocation9_spill] sm:$0xff] %v13975_v46  ;;  %v17901_v46 = vld [vmem:[#allocation17_spill] sm:$0xff] }
 0x195   :  { %v13980_v43 = vmax.f32 %v17890_v45, %v2924_v63  ;;  %v2919_v11 = vadd.f32 %v13804_v9, %v2918_v50  ;;  %11175 = vmatmul.mubr.msk.f32.gmra.mxu1 %vm619_vm1, %v545_v59  ;;  %v13991_v8 = vpop.f32.mrf.mxu1  ;;  %v17894_v63 = vld [vmem:[#allocation56_spill] sm:$0xff]  ;;  %v14031_v14 = vadd.f32 %v13804_v9, %v17901_v46  ;;  %v235_v46 = vld [vmem:[%s17653_s0 + $0x658] sm:$0xff] }
 0x196   :  { %v10561_v0 = vpop.f32.mrf.mxu0  ;;  %10704 = vmatmul.mubr.msk.f32.gmra.mxu0 %vm619_vm1, %v231_v5  ;;  %17892 = vst [vmem:[#allocation43_spill] sm:$0xff] %v13991_v8  ;;  %v17895_v50 = vmax.f32 %v17893_v60, %v17894_v63  ;;  %v17896_v59 = vld [vmem:[#allocation16_spill] sm:$0xff]  ;;  %11177 = vmatprep.mubr.msk.f32.mxu1 %vm619_vm1, %v546_v23  ;;  %v17899_v63 = vmax.f32 %v13322_v6, %v13327_v29  ;;  %v548_v29 = vld [vmem:[%s17653_s0 + $0x1020] sm:$0xff]  ;;  %v17904_v6 = vld [vmem:[#allocation59_spill] sm:$0xff] }
 0x197   :  { %v2934_v1 = vadd.f32 %v13804_v9, %v10561_v0  ;;  %10706 = vmatprep.mubr.msk.f32.mxu0 %vm619_vm1, %v232_v21  ;;  %v14010_v8 = vadd.f32 %v13804_v9, %v17896_v59  ;;  %v234_v0 = vld [vmem:[%s17653_s0 + $0x650] sm:$0xff]  ;;  %v14019_v21 = vpop.f32.mrf.mxu1  ;;  %17902 = vst [vmem:[#allocation47_spill] sm:$0xff] %v14031_v14 }
 0x198   :  { %v13999_v45 = vmax.f32 %v17895_v50, %v2919_v11  ;;  %v547_v11 = vld [vmem:[%s17653_s0 + $0x1018] sm:$0xff]  ;;  %v2928_v60 = vpop.f32.mrf.mxu0  ;;  %17898 = vst [vmem:[#allocation10_spill] sm:$0xff] %v14019_v21  ;;  %v17912_v21 = vld [vmem:[#allocation19_spill] sm:$0xff] }
 0x199   :  { %17897 = vst [vmem:[#allocation44_spill] sm:$0xff] %v14010_v8  ;;  %v14024_v50 = vmax.f32 %v17899_v63, %v2934_v1  ;;  %v2929_v59 = vadd.f32 %v13804_v9, %v2928_v60  ;;  %11178 = vmatmul.mubr.msk.f32.gmra.mxu1 %vm619_vm1, %v547_v11  ;;  %v14035_v23 = vpop.f32.mrf.mxu1  ;;  %v17905_v1 = vld [vmem:[#allocation60_spill] sm:$0xff]  ;;  %v17907_v11 = vld [vmem:[#allocation18_spill] sm:$0xff]  ;;  %v14075_v8 = vadd.f32 %v13804_v9, %v17912_v21  ;;  %v237_v21 = vld [vmem:[%s17653_s0 + $0x668] sm:$0xff] }
 0x19a   :  { %v10564_v20 = vpop.f32.mrf.mxu0  ;;  %10707 = vmatmul.mubr.msk.f32.gmra.mxu0 %vm619_vm1, %v233_v57  ;;  %17903 = vst [vmem:[#allocation48_spill] sm:$0xff] %v14035_v23  ;;  %v17906_v60 = vmax.f32 %v17904_v6, %v17905_v1  ;;  %v14054_v23 = vadd.f32 %v13804_v9, %v17907_v11  ;;  %11180 = vmatprep.mubr.msk.f32.mxu1 %vm619_vm1, %v548_v29 }
 0x19b   :  { %17900 = vst [vmem:[#allocation11_spill] sm:$0xff] %v14024_v50  ;;  %v2944_v5 = vadd.f32 %v13804_v9, %v10564_v20  ;;  %10709 = vmatprep.mubr.msk.f32.mxu0 %vm619_vm1, %v234_v0  ;;  %v236_v20 = vld [vmem:[%s17653_s0 + $0x660] sm:$0xff]  ;;  %v14063_v0 = vpop.f32.mrf.mxu1  ;;  %v17910_v1 = vmax.f32 %v13360_v18, %v13365_v35  ;;  %v550_v35 = vld [vmem:[%s17653_s0 + $0x1030] sm:$0xff]  ;;  %v17914_v18 = vld [vmem:[#allocation63_spill] sm:$0xff] }
 0x19c   :  { %v14043_v63 = vmax.f32 %v17906_v60, %v2929_v59  ;;  %17908 = vst [vmem:[#allocation12_spill] sm:$0xff] %v14054_v23  ;;  %v549_v59 = vld [vmem:[%s17653_s0 + $0x1028] sm:$0xff]  ;;  %v2938_v6 = vpop.f32.mrf.mxu0  ;;  %17909 = vst [vmem:[#allocation13_spill] sm:$0xff] %v14063_v0  ;;  %v17923_v23 = vld [vmem:[#allocation21_spill] sm:$0xff] }
 0x19d   :  { %v14068_v60 = vmax.f32 %v17910_v1, %v2944_v5  ;;  %v2939_v11 = vadd.f32 %v13804_v9, %v2938_v6  ;;  %11181 = vmatmul.mubr.msk.f32.gmra.mxu1 %vm619_vm1, %v549_v59  ;;  %v14079_v29 = vpop.f32.mrf.mxu1  ;;  %v17915_v5 = vld [vmem:[#allocation64_spill] sm:$0xff] }
 0x19e   :  { %v10567_v50 = vpop.f32.mrf.mxu0  ;;  %10710 = vmatmul.mubr.msk.f32.gmra.mxu0 %vm619_vm1, %v235_v46  ;;  %17913 = vst [vmem:[#allocation52_spill] sm:$0xff] %v14079_v29  ;;  %v17916_v6 = vmax.f32 %v17914_v18, %v17915_v5  ;;  %v17917_v59 = vld [vmem:[#allocation20_spill] sm:$0xff]  ;;  %11183 = vmatprep.mubr.msk.f32.mxu1 %vm619_vm1, %v550_v35  ;;  %v17920_v5 = vld [vmem:[#allocation66_spill] sm:$0xff] }
 0x19f   :  { %17911 = vst [vmem:[#allocation51_spill] sm:$0xff] %v14068_v60  ;;  %v2954_v57 = vadd.f32 %v13804_v9, %v10567_v50  ;;  %10712 = vmatprep.mubr.msk.f32.mxu0 %vm619_vm1, %v236_v20  ;;  %v14098_v29 = vadd.f32 %v13804_v9, %v17917_v59  ;;  %v238_v50 = vld [vmem:[%s17653_s0 + $0x670] sm:$0xff]  ;;  %v14107_v20 = vpop.f32.mrf.mxu1  ;;  %v14119_v60 = vadd.f32 %v13804_v9, %v17923_v23  ;;  %v239_v23 = vld [vmem:[%s17653_s0 + $0x678] sm:$0xff] }
 0x1a0   :  { %v14087_v1 = vmax.f32 %v17916_v6, %v2939_v11  ;;  %v551_v11 = vld [vmem:[%s17653_s0 + $0x1038] sm:$0xff]  ;;  %v2948_v18 = vpop.f32.mrf.mxu0  ;;  %17919 = vst [vmem:[#allocation15_spill] sm:$0xff] %v14107_v20  ;;  %v17921_v6 = vmax.f32 %v13398_v30, %v17920_v5  ;;  %v552_v30 = vld [vmem:[%s17653_s0 + $0x1040] sm:$0xff] }
 0x1a1   :  { %17918 = vst [vmem:[#allocation14_spill] sm:$0xff] %v14098_v29  ;;  %v2949_v59 = vadd.f32 %v13804_v9, %v2948_v18  ;;  %11184 = vmatmul.mubr.msk.f32.gmra.mxu1 %vm619_vm1, %v551_v11  ;;  %v14123_v35 = vpop.f32.mrf.mxu1  ;;  %v17926_v18 = vld [vmem:[#allocation69_spill] sm:$0xff]  ;;  %v17928_v11 = vld [vmem:[#allocation22_spill] sm:$0xff] }
 0x1a2   :  { %v14112_v46 = vmax.f32 %v17921_v6, %v2954_v57  ;;  %v10570_v14 = vpop.f32.mrf.mxu0  ;;  %10713 = vmatmul.mubr.msk.f32.gmra.mxu0 %vm619_vm1, %v237_v21  ;;  %17924 = vst [vmem:[#allocation56_spill] sm:$0xff] %v14123_v35  ;;  %v17925_v57 = vld [vmem:[#allocation68_spill] sm:$0xff]  ;;  %v4224_v35 = vadd.f32 %v13804_v9, %v17928_v11  ;;  %11186 = vmatprep.mubr.msk.f32.mxu1 %vm619_vm1, %v552_v30  ;;  %v17930_v21 = vld [vmem:[#allocation23_spill] sm:$0xff]  ;;  %v555_v11 = vld [vmem:[%s17653_s0 + $0x1058] sm:$0xff] }
 0x1a3   :  { %v17927_v5 = vmax.f32 %v17925_v57, %v17926_v18  ;;  %v2964_v0 = vadd.f32 %v13804_v9, %v10570_v14  ;;  %10715 = vmatprep.mubr.msk.f32.mxu0 %vm619_vm1, %v238_v50  ;;  %v553_v57 = vld [vmem:[%s17653_s0 + $0x1048] sm:$0xff]  ;;  %v240_v14 = vld [vmem:[%s17653_s0 + $0x680] sm:$0xff]  ;;  %v14149_v50 = vpop.f32.mrf.mxu1  ;;  %v4219_v20 = vadd.f32 %v13804_v9, %v17930_v21  ;;  %v554_v30 = vld [vmem:[%s17653_s0 + $0x1050] sm:$0xff] }
 0x1a4   :  { %17922 = vst [vmem:[#allocation55_spill] sm:$0xff] %v14112_v46  ;;  %17929 = vst [vmem:[#allocation16_spill] sm:$0xff] %v14149_v50  ;;  %v241_v21 = vld [vmem:[%s17653_s0 + $0x688] sm:$0xff] }
 0x1a5   :  { %v14131_v6 = vmax.f32 %v17927_v5, %v2949_v59  ;;  %v2958_v59 = vpop.f32.mrf.mxu0  ;;  %v5370_v18 = vmax.f32 %v13454_v52, %v2964_v0  ;;  %11187 = vmatmul.mubr.msk.f32.gmra.mxu1 %vm619_vm1, %v553_v57  ;;  %v14159_v46 = vpop.f32.mrf.mxu1 }
 0x1a6   :  { %v2959_v5 = vadd.f32 %v13804_v9, %v2958_v59  ;;  %10716 = vmatmul.mubr.msk.f32.gmra.mxu0 %vm619_vm1, %v239_v23  ;;  %17931 = vst [vmem:[#allocation17_spill] sm:$0xff] %v14159_v46  ;;  %v17933_v59 = vld [vmem:[#allocation24_spill] sm:$0xff]  ;;  %11189 = vmatprep.mubr.msk.f32.mxu1 %vm619_vm1, %v554_v30  ;;  %v556_v30 = vld [vmem:[%s17653_s0 + $0x1060] sm:$0xff] }
 0x1a7   :  { %v10573_v29 = vpop.f32.mrf.mxu0  ;;  %10718 = vmatprep.mubr.msk.f32.mxu0 %vm619_vm1, %v240_v14  ;;  %v14170_v57 = vmax.f32 %v5370_v18, %v4224_v35  ;;  %v4234_v23 = vadd.f32 %v13804_v9, %v17933_v59 }
 0x1a8   :  { %v5369_v52 = vmax.f32 %v13466_v39, %v2959_v5  ;;  %v2974_v0 = vadd.f32 %v13804_v9, %v10573_v29  ;;  %v242_v39 = vld [vmem:[%s17653_s0 + $0x690] sm:$0xff]  ;;  %v14181_v29 = vpop.f32.mrf.mxu1  ;;  %v17935_v5 = vld [vmem:[#allocation25_spill] sm:$0xff] }
 0x1a9   :  { %17932 = vst [vmem:[#allocation59_spill] sm:$0xff] %v14170_v57  ;;  %v2968_v46 = vpop.f32.mrf.mxu0  ;;  %17934 = vst [vmem:[#allocation60_spill] sm:$0xff] %v14181_v29  ;;  %v4229_v59 = vadd.f32 %v13804_v9, %v17935_v5  ;;  %11190 = vmatmul.mubr.msk.f32.gmra.mxu1 %vm619_vm1, %v555_v11 }
 0x1aa   :  { %v5372_v14 = vmax.f32 %v13486_v38, %v2974_v0  ;;  %v2969_v35 = vadd.f32 %v13804_v9, %v2968_v46  ;;  %v14185_v18 = vmax.f32 %v5369_v52, %v4219_v20  ;;  %10719 = vmatmul.mubr.msk.f32.gmra.mxu0 %vm619_vm1, %v241_v21  ;;  %v14191_v57 = vpop.f32.mrf.mxu1  ;;  %v243_v20 = vld [vmem:[%s17653_s0 + $0x698] sm:$0xff]  ;;  %v17937_v52 = vld [vmem:[#allocation26_spill] sm:$0xff]  ;;  %v557_v21 = vld [vmem:[%s17653_s0 + $0x1068] sm:$0xff]  ;;  %11192 = vmatprep.mubr.msk.f32.mxu1 %vm619_vm1, %v556_v30 }
 0x1ab   :  { %v10576_v50 = vpop.f32.mrf.mxu0  ;;  %17936 = vst [vmem:[#allocation18_spill] sm:$0xff] %v14191_v57  ;;  %10721 = vmatprep.mubr.msk.f32.mxu0 %vm619_vm1, %v242_v39  ;;  %v4244_v0 = vadd.f32 %v13804_v9, %v17937_v52  ;;  %v558_v30 = vld [vmem:[%s17653_s0 + $0x1070] sm:$0xff] }
 0x1ac   :  { %v5371_v38 = vmax.f32 %v13498_v48, %v2969_v35  ;;  %v2984_v46 = vadd.f32 %v13804_v9, %v10576_v50  ;;  %v14202_v11 = vmax.f32 %v5372_v14, %v4234_v23  ;;  %v244_v48 = vld [vmem:[%s17653_s0 + $0x6a0] sm:$0xff]  ;;  %v14213_v50 = vpop.f32.mrf.mxu1  ;;  %v17939_v35 = vld [vmem:[#allocation27_spill] sm:$0xff] }
 0x1ad   :  { %v2978_v5 = vpop.f32.mrf.mxu0  ;;  %17938 = vst [vmem:[#allocation19_spill] sm:$0xff] %v14213_v50  ;;  %v4239_v52 = vadd.f32 %v13804_v9, %v17939_v35  ;;  %11193 = vmatmul.mubr.msk.f32.gmra.mxu1 %vm619_vm1, %v557_v21  ;;  %v17941_v21 = vld [vmem:[#allocation28_spill] sm:$0xff] }
 0x1ae   :  { %v5374_v39 = vmax.f32 %v13518_v54, %v2984_v46  ;;  %v2979_v23 = vadd.f32 %v13804_v9, %v2978_v5  ;;  %v14217_v14 = vmax.f32 %v5371_v38, %v4229_v59  ;;  %10722 = vmatmul.mubr.msk.f32.gmra.mxu0 %vm619_vm1, %v243_v20  ;;  %v14223_v29 = vpop.f32.mrf.mxu1  ;;  %v245_v59 = vld [vmem:[%s17653_s0 + $0x6a8] sm:$0xff]  ;;  %v4254_v20 = vadd.f32 %v13804_v9, %v17941_v21  ;;  %v559_v5 = vld [vmem:[%s17653_s0 + $0x1078] sm:$0xff] }
 0x1af   :  { %v10579_v57 = vpop.f32.mrf.mxu0  ;;  %17940 = vst [vmem:[#allocation63_spill] sm:$0xff] %v14223_v29  ;;  %10724 = vmatprep.mubr.msk.f32.mxu0 %vm619_vm1, %v244_v48  ;;  %11195 = vmatprep.mubr.msk.f32.mxu1 %vm619_vm1, %v558_v30  ;;  %v560_v30 = vld [vmem:[%s17653_s0 + $0x1080] sm:$0xff] }
 0x1b0   :  { %v5373_v54 = vmax.f32 %v13530_v34, %v2979_v23  ;;  %v2994_v46 = vadd.f32 %v13804_v9, %v10579_v57  ;;  %v14234_v38 = vmax.f32 %v5374_v39, %v4244_v0  ;;  %v246_v34 = vld [vmem:[%s17653_s0 + $0x6b0] sm:$0xff]  ;;  %v14245_v57 = vpop.f32.mrf.mxu1  ;;  %v17943_v23 = vld [vmem:[#allocation29_spill] sm:$0xff] }
 0x1b1   :  { %v2988_v35 = vpop.f32.mrf.mxu0  ;;  %17942 = vst [vmem:[#allocation64_spill] sm:$0xff] %v14245_v57  ;;  %v4249_v21 = vadd.f32 %v13804_v9, %v17943_v23  ;;  %11196 = vmatmul.mubr.msk.f32.gmra.mxu1 %vm619_vm1, %v559_v5  ;;  %v17945_v5 = vld [vmem:[#allocation30_spill] sm:$0xff] }
 0x1b2   :  { %v5376_v48 = vmax.f32 %v13550_v47, %v2994_v46  ;;  %v2989_v0 = vadd.f32 %v13804_v9, %v2988_v35  ;;  %v14249_v39 = vmax.f32 %v5373_v54, %v4239_v52  ;;  %10725 = vmatmul.mubr.msk.f32.gmra.mxu0 %vm619_vm1, %v245_v59  ;;  %v14255_v50 = vpop.f32.mrf.mxu1  ;;  %v247_v52 = vld [vmem:[%s17653_s0 + $0x6b8] sm:$0xff]  ;;  %v4264_v59 = vadd.f32 %v13804_v9, %v17945_v5  ;;  %v561_v35 = vld [vmem:[%s17653_s0 + $0x1088] sm:$0xff] }
 0x1b3   :  { %v10582_v29 = vpop.f32.mrf.mxu0  ;;  %17944 = vst [vmem:[#allocation20_spill] sm:$0xff] %v14255_v50  ;;  %10727 = vmatprep.mubr.msk.f32.mxu0 %vm619_vm1, %v246_v34  ;;  %11198 = vmatprep.mubr.msk.f32.mxu1 %vm619_vm1, %v560_v30  ;;  %v562_v30 = vld [vmem:[%s17653_s0 + $0x1090] sm:$0xff] }
 0x1b4   :  { %v5375_v47 = vmax.f32 %v13562_v24, %v2989_v0  ;;  %v3004_v46 = vadd.f32 %v13804_v9, %v10582_v29  ;;  %v14266_v54 = vmax.f32 %v5376_v48, %v4254_v20  ;;  %v248_v24 = vld [vmem:[%s17653_s0 + $0x6c0] sm:$0xff]  ;;  %v14277_v29 = vpop.f32.mrf.mxu1  ;;  %v17947_v0 = vld [vmem:[#allocation33_spill] sm:$0xff] }
 0x1b5   :  { %v2998_v23 = vpop.f32.mrf.mxu0  ;;  %17946 = vst [vmem:[#allocation66_spill] sm:$0xff] %v14277_v29  ;;  %v4259_v5 = vadd.f32 %v13804_v9, %v17947_v0  ;;  %11199 = vmatmul.mubr.msk.f32.gmra.mxu1 %vm619_vm1, %v561_v35  ;;  %v17949_v35 = vld [vmem:[#allocation34_spill] sm:$0xff] }
 0x1b6   :  { %v5378_v34 = vmax.f32 %v13582_v51, %v3004_v46  ;;  %v2999_v20 = vadd.f32 %v13804_v9, %v2998_v23  ;;  %v14281_v48 = vmax.f32 %v5375_v47, %v4249_v21  ;;  %10728 = vmatmul.mubr.msk.f32.gmra.mxu0 %vm619_vm1, %v247_v52  ;;  %v14287_v57 = vpop.f32.mrf.mxu1  ;;  %v249_v21 = vld [vmem:[%s17653_s0 + $0x6c8] sm:$0xff]  ;;  %v4274_v52 = vadd.f32 %v13804_v9, %v17949_v35  ;;  %v563_v23 = vld [vmem:[%s17653_s0 + $0x1098] sm:$0xff] }
 0x1b7   :  { %v10585_v50 = vpop.f32.mrf.mxu0  ;;  %17948 = vst [vmem:[#allocation21_spill] sm:$0xff] %v14287_v57  ;;  %10730 = vmatprep.mubr.msk.f32.mxu0 %vm619_vm1, %v248_v24  ;;  %11201 = vmatprep.mubr.msk.f32.mxu1 %vm619_vm1, %v562_v30  ;;  %v564_v30 = vld [vmem:[%s17653_s0 + $0x10a0] sm:$0xff] }
 0x1b8   :  { %v5377_v51 = vmax.f32 %v13594_v3, %v2999_v20  ;;  %v3014_v46 = vadd.f32 %v13804_v9, %v10585_v50  ;;  %v14298_v47 = vmax.f32 %v5378_v34, %v4264_v59  ;;  %v250_v3 = vld [vmem:[%s17653_s0 + $0x6d0] sm:$0xff]  ;;  %v14309_v50 = vpop.f32.mrf.mxu1  ;;  %v17951_v20 = vld [vmem:[#allocation37_spill] sm:$0xff] }
 0x1b9   :  { %v3008_v0 = vpop.f32.mrf.mxu0  ;;  %17950 = vst [vmem:[#allocation68_spill] sm:$0xff] %v14309_v50  ;;  %v4269_v35 = vadd.f32 %v13804_v9, %v17951_v20  ;;  %11202 = vmatmul.mubr.msk.f32.gmra.mxu1 %vm619_vm1, %v563_v23  ;;  %v17953_v23 = vld [vmem:[#allocation38_spill] sm:$0xff] }
 0x1ba   :  { %v5380_v24 = vmax.f32 %v13614_v12, %v3014_v46  ;;  %v3009_v59 = vadd.f32 %v13804_v9, %v3008_v0  ;;  %v14313_v34 = vmax.f32 %v5377_v51, %v4259_v5  ;;  %10731 = vmatmul.mubr.msk.f32.gmra.mxu0 %vm619_vm1, %v249_v21  ;;  %v14319_v29 = vpop.f32.mrf.mxu1  ;;  %v251_v5 = vld [vmem:[%s17653_s0 + $0x6d8] sm:$0xff]  ;;  %v4284_v21 = vadd.f32 %v13804_v9, %v17953_v23  ;;  %v565_v0 = vld [vmem:[%s17653_s0 + $0x10a8] sm:$0xff] }
 0x1bb   :  { %v10588_v57 = vpop.f32.mrf.mxu0  ;;  %17952 = vst [vmem:[#allocation69_spill] sm:$0xff] %v14319_v29  ;;  %10733 = vmatprep.mubr.msk.f32.mxu0 %vm619_vm1, %v250_v3  ;;  %11204 = vmatprep.mubr.msk.f32.mxu1 %vm619_vm1, %v564_v30  ;;  %v566_v30 = vld [vmem:[%s17653_s0 + $0x10b0] sm:$0xff] }
 0x1bc   :  { %v5379_v12 = vmax.f32 %v13626_v15, %v3009_v59  ;;  %v3024_v46 = vadd.f32 %v13804_v9, %v10588_v57  ;;  %v14330_v51 = vmax.f32 %v5380_v24, %v4274_v52  ;;  %v252_v15 = vld [vmem:[%s17653_s0 + $0x6e0] sm:$0xff]  ;;  %v14341_v57 = vpop.f32.mrf.mxu1  ;;  %v17955_v59 = vld [vmem:[#allocation41_spill] sm:$0xff] }
 0x1bd   :  { %v3018_v20 = vpop.f32.mrf.mxu0  ;;  %17954 = vst [vmem:[#allocation22_spill] sm:$0xff] %v14341_v57  ;;  %v4279_v23 = vadd.f32 %v13804_v9, %v17955_v59  ;;  %11205 = vmatmul.mubr.msk.f32.gmra.mxu1 %vm619_vm1, %v565_v0  ;;  %v17957_v0 = vld [vmem:[#allocation42_spill] sm:$0xff] }
 0x1be   :  { %v5382_v3 = vmax.f32 %v13646_v27, %v3024_v46  ;;  %v3019_v52 = vadd.f32 %v13804_v9, %v3018_v20  ;;  %v14345_v24 = vmax.f32 %v5379_v12, %v4269_v35  ;;  %10734 = vmatmul.mubr.msk.f32.gmra.mxu0 %vm619_vm1, %v251_v5  ;;  %v14351_v50 = vpop.f32.mrf.mxu1  ;;  %v253_v35 = vld [vmem:[%s17653_s0 + $0x6e8] sm:$0xff]  ;;  %v4294_v5 = vadd.f32 %v13804_v9, %v17957_v0  ;;  %v567_v20 = vld [vmem:[%s17653_s0 + $0x10b8] sm:$0xff] }
 0x1bf   :  { %v10591_v29 = vpop.f32.mrf.mxu0  ;;  %17956 = vst [vmem:[#allocation23_spill] sm:$0xff] %v14351_v50  ;;  %10736 = vmatprep.mubr.msk.f32.mxu0 %vm619_vm1, %v252_v15  ;;  %11207 = vmatprep.mubr.msk.f32.mxu1 %vm619_vm1, %v566_v30  ;;  %v568_v30 = vld [vmem:[%s17653_s0 + $0x10c0] sm:$0xff] }
 0x1c0   :  { %v5381_v27 = vmax.f32 %v13658_v62, %v3019_v52  ;;  %v3034_v46 = vadd.f32 %v13804_v9, %v10591_v29  ;;  %v14362_v12 = vmax.f32 %v5382_v3, %v4284_v21  ;;  %v254_v62 = vld [vmem:[%s17653_s0 + $0x6f0] sm:$0xff]  ;;  %v14373_v29 = vpop.f32.mrf.mxu1  ;;  %v17959_v52 = vld [vmem:[#allocation45_spill] sm:$0xff] }
 0x1c1   :  { %v3028_v59 = vpop.f32.mrf.mxu0  ;;  %17958 = vst [vmem:[#allocation24_spill] sm:$0xff] %v14373_v29  ;;  %v4289_v0 = vadd.f32 %v13804_v9, %v17959_v52  ;;  %11208 = vmatmul.mubr.msk.f32.gmra.mxu1 %vm619_vm1, %v567_v20  ;;  %v17961_v20 = vld [vmem:[#allocation46_spill] sm:$0xff] }
 0x1c2   :  { %v5384_v15 = vmax.f32 %v13678_v61, %v3034_v46  ;;  %v3029_v21 = vadd.f32 %v13804_v9, %v3028_v59  ;;  %v14377_v3 = vmax.f32 %v5381_v27, %v4279_v23  ;;  %10737 = vmatmul.mubr.msk.f32.gmra.mxu0 %vm619_vm1, %v253_v35  ;;  %v14383_v57 = vpop.f32.mrf.mxu1  ;;  %v255_v23 = vld [vmem:[%s17653_s0 + $0x6f8] sm:$0xff]  ;;  %v14398_v35 = vadd.f32 %v13804_v9, %v17961_v20  ;;  %v569_v59 = vld [vmem:[%s17653_s0 + $0x10c8] sm:$0xff] }
 0x1c3   :  { %v10594_v50 = vpop.f32.mrf.mxu0  ;;  %17960 = vst [vmem:[#allocation25_spill] sm:$0xff] %v14383_v57  ;;  %10739 = vmatprep.mubr.msk.f32.mxu0 %vm619_vm1, %v254_v62  ;;  %11210 = vmatprep.mubr.msk.f32.mxu1 %vm619_vm1, %v568_v30  ;;  %v17964_v20 = vld [vmem:[#allocation49_spill] sm:$0xff] }
 0x1c4   :  { %v5383_v61 = vmax.f32 %v13690_v49, %v3029_v21  ;;  %v3044_v46 = vadd.f32 %v13804_v9, %v10594_v50  ;;  %v14394_v27 = vmax.f32 %v5384_v15, %v4294_v5  ;;  %v256_v49 = vld [vmem:[%s17653_s0 + $0x700] sm:$0xff]  ;;  %v14407_v50 = vpop.f32.mrf.mxu1  ;;  %v17963_v5 = vmax.f32 %v13714_v53, %v13699_v7  ;;  %v570_v7 = vld [vmem:[%s17653_s0 + $0x10d0] sm:$0xff] }
 0x1c5   :  { %v3038_v52 = vpop.f32.mrf.mxu0  ;;  %17962 = vst [vmem:[#allocation26_spill] sm:$0xff] %v14407_v50  ;;  %v14419_v57 = vadd.f32 %v13804_v9, %v17964_v20  ;;  %11211 = vmatmul.mubr.msk.f32.gmra.mxu1 %vm619_vm1, %v569_v59  ;;  %v17966_v53 = vmax.f32 %v13730_v19, %v13719_v56  ;;  %v17967_v59 = vld [vmem:[#allocation50_spill] sm:$0xff]  ;;  %v571_v56 = vld [vmem:[%s17653_s0 + $0x10d8] sm:$0xff] }
 0x1c6   :  { %v14412_v62 = vmax.f32 %v17963_v5, %v3044_v46  ;;  %v3039_v15 = vadd.f32 %v13804_v9, %v3038_v52  ;;  %v14415_v21 = vmax.f32 %v5383_v61, %v4289_v0  ;;  %10740 = vmatmul.mubr.msk.f32.gmra.mxu0 %vm619_vm1, %v255_v23  ;;  %v14423_v30 = vpop.f32.mrf.mxu1  ;;  %v257_v46 = vld [vmem:[%s17653_s0 + $0x708] sm:$0xff]  ;;  %v14442_v52 = vadd.f32 %v13804_v9, %v17967_v59  ;;  %v17970_v59 = vld [vmem:[#allocation53_spill] sm:$0xff] }
 0x1c7   :  { %v10597_v29 = vpop.f32.mrf.mxu0  ;;  %17965 = vst [vmem:[#allocation27_spill] sm:$0xff] %v14423_v30  ;;  %10742 = vmatprep.mubr.msk.f32.mxu0 %vm619_vm1, %v256_v49  ;;  %11213 = vmatprep.mubr.msk.f32.mxu1 %vm619_vm1, %v570_v7  ;;  %v17969_v5 = vmax.f32 %v13755_v40, %v13741_v26  ;;  %v14463_v23 = vadd.f32 %v13804_v9, %v17970_v59  ;;  %v572_v26 = vld [vmem:[%s17653_s0 + $0x10e0] sm:$0xff] }
 0x1c8   :  { %v14431_v0 = vmax.f32 %v17966_v53, %v3039_v15  ;;  %v3054_v61 = vadd.f32 %v13804_v9, %v10597_v29  ;;  %v258_v29 = vld [vmem:[%s17653_s0 + $0x710] sm:$0xff]  ;;  %v14451_v49 = vpop.f32.mrf.mxu1  ;;  %v17972_v40 = vmax.f32 %v13774_v22, %v13762_v36  ;;  %v573_v36 = vld [vmem:[%s17653_s0 + $0x10e8] sm:$0xff]  ;;  %v17976_v53 = vld [vmem:[#allocation57_spill] sm:$0xff] }
 0x1c9   :  { %v3048_v19 = vpop.f32.mrf.mxu0  ;;  %17968 = vst [vmem:[#allocation28_spill] sm:$0xff] %v14451_v49  ;;  %11214 = vmatmul.mubr.msk.f32.gmra.mxu1 %vm619_vm1, %v571_v56  ;;  %v259_v56 = vld [vmem:[%s17653_s0 + $0x718] sm:$0xff] }
 0x1ca   :  { %v14456_v15 = vmax.f32 %v17969_v5, %v3054_v61  ;;  %v3049_v20 = vadd.f32 %v13804_v9, %v3048_v19  ;;  %10743 = vmatmul.mubr.msk.f32.gmra.mxu0 %vm619_vm1, %v257_v46  ;;  %v14467_v7 = vpop.f32.mrf.mxu1  ;;  %v17973_v5 = vld [vmem:[#allocation54_spill] sm:$0xff]  ;;  %11216 = vmatprep.mubr.msk.f32.mxu1 %vm619_vm1, %v572_v26  ;;  %v17982_v46 = vld [vmem:[#allocation61_spill] sm:$0xff] }
 0x1cb   :  { %v10600_v30 = vpop.f32.mrf.mxu0  ;;  %17971 = vst [vmem:[#allocation29_spill] sm:$0xff] %v14467_v7  ;;  %10745 = vmatprep.mubr.msk.f32.mxu0 %vm619_vm1, %v258_v29  ;;  %v14486_v59 = vadd.f32 %v13804_v9, %v17973_v5  ;;  %v14507_v7 = vadd.f32 %v13804_v9, %v17976_v53  ;;  %v261_v53 = vld [vmem:[%s17653_s0 + $0x728] sm:$0xff] }
 0x1cc   :  { %v14475_v61 = vmax.f32 %v17972_v40, %v3049_v20  ;;  %v3064_v19 = vadd.f32 %v13804_v9, %v10600_v30  ;;  %v260_v30 = vld [vmem:[%s17653_s0 + $0x720] sm:$0xff]  ;;  %v14495_v29 = vpop.f32.mrf.mxu1  ;;  %v17975_v20 = vmax.f32 %v13799_v44, %v13785_v32  ;;  %v574_v32 = vld [vmem:[%s17653_s0 + $0x10f0] sm:$0xff]  ;;  %v17978_v44 = vmax.f32 %v13823_v10, %v13811_v28  ;;  %v575_v10 = vld [vmem:[%s17653_s0 + $0x10f8] sm:$0xff] }
 0x1cd   :  { %v3058_v22 = vpop.f32.mrf.mxu0  ;;  %17974 = vst [vmem:[#allocation30_spill] sm:$0xff] %v14495_v29  ;;  %11217 = vmatmul.mubr.msk.f32.gmra.mxu1 %vm619_vm1, %v573_v36  ;;  %v17979_v36 = vld [vmem:[#allocation58_spill] sm:$0xff] }
 0x1ce   :  { %v14500_v40 = vmax.f32 %v17975_v20, %v3064_v19  ;;  %v3059_v5 = vadd.f32 %v13804_v9, %v3058_v22  ;;  %10746 = vmatmul.mubr.msk.f32.gmra.mxu0 %vm619_vm1, %v259_v56  ;;  %v14511_v26 = vpop.f32.mrf.mxu1  ;;  %v14530_v20 = vadd.f32 %v13804_v9, %v17979_v36  ;;  %11219 = vmatprep.mubr.msk.f32.mxu1 %vm619_vm1, %v574_v32  ;;  %v17988_v56 = vld [vmem:[#allocation65_spill] sm:$0xff] }
 0x1cf   :  { %v10603_v49 = vpop.f32.mrf.mxu0  ;;  %17977 = vst [vmem:[#allocation33_spill] sm:$0xff] %v14511_v26  ;;  %10748 = vmatprep.mubr.msk.f32.mxu0 %vm619_vm1, %v260_v30  ;;  %v14551_v26 = vadd.f32 %v13804_v9, %v17982_v46  ;;  %v263_v46 = vld [vmem:[%s17653_s0 + $0x738] sm:$0xff] }
 0x1d0   :  { %v14519_v19 = vmax.f32 %v17978_v44, %v3059_v5  ;;  %v3074_v22 = vadd.f32 %v13804_v9, %v10603_v49  ;;  %v262_v49 = vld [vmem:[%s17653_s0 + $0x730] sm:$0xff]  ;;  %v14539_v30 = vpop.f32.mrf.mxu1  ;;  %v17981_v5 = vmax.f32 %v13848_v55, %v13834_v16  ;;  %v576_v16 = vld [vmem:[%s17653_s0 + $0x1100] sm:$0xff]  ;;  %v17984_v55 = vmax.f32 %v13867_v25, %v13855_v2  ;;  %v577_v2 = vld [vmem:[%s17653_s0 + $0x1108] sm:$0xff] }
 0x1d1   :  { %v3068_v28 = vpop.f32.mrf.mxu0  ;;  %17980 = vst [vmem:[#allocation34_spill] sm:$0xff] %v14539_v30  ;;  %11220 = vmatmul.mubr.msk.f32.gmra.mxu1 %vm619_vm1, %v575_v10  ;;  %v17985_v10 = vld [vmem:[#allocation62_spill] sm:$0xff] }
 0x1d2   :  { %v14544_v44 = vmax.f32 %v17981_v5, %v3074_v22  ;;  %v3069_v36 = vadd.f32 %v13804_v9, %v3068_v28  ;;  %10749 = vmatmul.mubr.msk.f32.gmra.mxu0 %vm619_vm1, %v261_v53  ;;  %v14555_v32 = vpop.f32.mrf.mxu1  ;;  %v14574_v5 = vadd.f32 %v13804_v9, %v17985_v10  ;;  %11222 = vmatprep.mubr.msk.f32.mxu1 %vm619_vm1, %v576_v16  ;;  %v17994_v53 = vld [vmem:[#allocation70_spill] sm:$0xff] }
 0x1d3   :  { %v10606_v29 = vpop.f32.mrf.mxu0  ;;  %17983 = vst [vmem:[#allocation37_spill] sm:$0xff] %v14555_v32  ;;  %10751 = vmatprep.mubr.msk.f32.mxu0 %vm619_vm1, %v262_v49  ;;  %v14595_v32 = vadd.f32 %v13804_v9, %v17988_v56  ;;  %v265_v56 = vld [vmem:[%s17653_s0 + $0x748] sm:$0xff] }
 0x1d4   :  { %v14563_v22 = vmax.f32 %v17984_v55, %v3069_v36  ;;  %v3084_v28 = vadd.f32 %v13804_v9, %v10606_v29  ;;  %v264_v29 = vld [vmem:[%s17653_s0 + $0x740] sm:$0xff]  ;;  %v14583_v49 = vpop.f32.mrf.mxu1  ;;  %v17987_v36 = vmax.f32 %v13892_v13, %v13878_v31  ;;  %v578_v31 = vld [vmem:[%s17653_s0 + $0x1110] sm:$0xff]  ;;  %v17990_v13 = vmax.f32 %v13911_v17, %v13899_v41  ;;  %v579_v41 = vld [vmem:[%s17653_s0 + $0x1118] sm:$0xff] }
 0x1d5   :  { %v3078_v25 = vpop.f32.mrf.mxu0  ;;  %17986 = vst [vmem:[#allocation38_spill] sm:$0xff] %v14583_v49  ;;  %11223 = vmatmul.mubr.msk.f32.gmra.mxu1 %vm619_vm1, %v577_v2  ;;  %v17991_v2 = vld [vmem:[#allocation67_spill] sm:$0xff] }
 0x1d6   :  { %v14588_v55 = vmax.f32 %v17987_v36, %v3084_v28  ;;  %v3079_v10 = vadd.f32 %v13804_v9, %v3078_v25  ;;  %10752 = vmatmul.mubr.msk.f32.gmra.mxu0 %vm619_vm1, %v263_v46  ;;  %v14599_v16 = vpop.f32.mrf.mxu1  ;;  %v14618_v36 = vadd.f32 %v13804_v9, %v17991_v2  ;;  %11225 = vmatprep.mubr.msk.f32.mxu1 %vm619_vm1, %v578_v31 }
 0x1d7   :  { %v10609_v30 = vpop.f32.mrf.mxu0  ;;  %17989 = vst [vmem:[#allocation41_spill] sm:$0xff] %v14599_v16  ;;  %10754 = vmatprep.mubr.msk.f32.mxu0 %vm619_vm1, %v264_v29  ;;  %v14639_v16 = vadd.f32 %v13804_v9, %v17994_v53  ;;  %v267_v53 = vld [vmem:[%s17653_s0 + $0x758] sm:$0xff] }
 0x1d8   :  { %v14607_v28 = vmax.f32 %v17990_v13, %v3079_v10  ;;  %v3094_v25 = vadd.f32 %v13804_v9, %v10609_v30  ;;  %v266_v30 = vld [vmem:[%s17653_s0 + $0x750] sm:$0xff]  ;;  %v14627_v29 = vpop.f32.mrf.mxu1  ;;  %v17993_v10 = vmax.f32 %v13936_v37, %v13922_v4  ;;  %v580_v4 = vld [vmem:[%s17653_s0 + $0x1120] sm:$0xff]  ;;  %v17996_v37 = vmax.f32 %v13955_v33, %v13943_v42  ;;  %v581_v42 = vld [vmem:[%s17653_s0 + $0x1128] sm:$0xff] }
 0x1d9   :  { %v3088_v17 = vpop.f32.mrf.mxu0  ;;  %17992 = vst [vmem:[#allocation42_spill] sm:$0xff] %v14627_v29  ;;  %11226 = vmatmul.mubr.msk.f32.gmra.mxu1 %vm619_vm1, %v579_v41  ;;  %v17997_v41 = vld [vmem:[#allocation71_spill] sm:$0xff] }
 0x1da   :  { %v14632_v13 = vmax.f32 %v17993_v10, %v3094_v25  ;;  %v3089_v2 = vadd.f32 %v13804_v9, %v3088_v17  ;;  %10755 = vmatmul.mubr.msk.f32.gmra.mxu0 %vm619_vm1, %v265_v56  ;;  %v14643_v31 = vpop.f32.mrf.mxu1  ;;  %v14662_v10 = vadd.f32 %v13804_v9, %v17997_v41  ;;  %11228 = vmatprep.mubr.msk.f32.mxu1 %vm619_vm1, %v580_v4 }
 0x1db   :  { %v10612_v49 = vpop.f32.mrf.mxu0  ;;  %17995 = vst [vmem:[#allocation45_spill] sm:$0xff] %v14643_v31  ;;  %10757 = vmatprep.mubr.msk.f32.mxu0 %vm619_vm1, %v266_v30  ;;  %v18003_v31 = vld [vmem:[#allocation72_spill] sm:$0xff] }
 0x1dc   :  { %v14651_v25 = vmax.f32 %v17996_v37, %v3089_v2  ;;  %v3104_v17 = vadd.f32 %v13804_v9, %v10612_v49  ;;  %17998 = vst [vmem:[#allocation46_spill] sm:$0xff] %v14662_v10  ;;  %v268_v49 = vld [vmem:[%s17653_s0 + $0x760] sm:$0xff]  ;;  %v14671_v30 = vpop.f32.mrf.mxu1  ;;  %v18000_v2 = vld [vmem:[#allocation8_spill] sm:$0xff]  ;;  %v14683_v29 = vadd.f32 %v13804_v9, %v18003_v31  ;;  %v269_v31 = vld [vmem:[%s17653_s0 + $0x768] sm:$0xff] }
 0x1dd   :  { %v3098_v33 = vpop.f32.mrf.mxu0  ;;  %17999 = vst [vmem:[#allocation49_spill] sm:$0xff] %v14671_v30  ;;  %v18001_v37 = vmax.f32 %v13980_v43, %v18000_v2  ;;  %11229 = vmatmul.mubr.msk.f32.gmra.mxu1 %vm619_vm1, %v581_v42  ;;  %v582_v43 = vld [vmem:[%s17653_s0 + $0x1130] sm:$0xff]  ;;  %v18007_v42 = vld [vmem:[#allocation73_spill] sm:$0xff]  ;;  %v18014_v30 = vld [vmem:[#allocation74_spill] sm:$0xff] }
 0x1de   :  { %v3099_v41 = vadd.f32 %v13804_v9, %v3098_v33  ;;  %18004 = vst [vmem:[#allocation53_spill] sm:$0xff] %v14683_v29  ;;  %10758 = vmatmul.mubr.msk.f32.gmra.mxu0 %vm619_vm1, %v267_v53  ;;  %v14687_v4 = vpop.f32.mrf.mxu1  ;;  %11231 = vmatprep.mubr.msk.f32.mxu1 %vm619_vm1, %v582_v43  ;;  %v14727_v10 = vadd.f32 %v13804_v9, %v18014_v30  ;;  %v271_v30 = vld [vmem:[%s17653_s0 + $0x778] sm:$0xff] }
 0x1df   :  { %v14676_v56 = vmax.f32 %v18001_v37, %v3104_v17  ;;  %v10615_v50 = vpop.f32.mrf.mxu0  ;;  %18005 = vst [vmem:[#allocation54_spill] sm:$0xff] %v14687_v4  ;;  %v18006_v17 = vmax.f32 %v13999_v45, %v13987_v58  ;;  %10760 = vmatprep.mubr.msk.f32.mxu0 %vm619_vm1, %v268_v49  ;;  %v14706_v37 = vadd.f32 %v13804_v9, %v18007_v42  ;;  %v583_v58 = vld [vmem:[%s17653_s0 + $0x1138] sm:$0xff] }
 0x1e0   :  { %v3114_v2 = vadd.f32 %v13804_v9, %v10615_v50  ;;  %v270_v50 = vld [vmem:[%s17653_s0 + $0x770] sm:$0xff]  ;;  %v14715_v49 = vpop.f32.mrf.mxu1 }
 0x1e1   :  { %18002 = vst [vmem:[#allocation50_spill] sm:$0xff] %v14676_v56  ;;  %v14695_v33 = vmax.f32 %v18006_v17, %v3099_v41  ;;  %18008 = vst [vmem:[#allocation57_spill] sm:$0xff] %v14706_v37  ;;  %v3108_v45 = vpop.f32.mrf.mxu0  ;;  %v18010_v41 = vld [vmem:[#allocation11_spill] sm:$0xff]  ;;  %v18011_v17 = vld [vmem:[#allocation44_spill] sm:$0xff]  ;;  %11232 = vmatmul.mubr.msk.f32.gmra.mxu1 %vm619_vm1, %v583_v58 }
 0x1e2   :  { %18009 = vst [vmem:[#allocation58_spill] sm:$0xff] %v14715_v49  ;;  %v18012_v53 = vmax.f32 %v18010_v41, %v18011_v17  ;;  %v3109_v42 = vadd.f32 %v13804_v9, %v3108_v45  ;;  %10761 = vmatmul.mubr.msk.f32.gmra.mxu0 %vm619_vm1, %v269_v31  ;;  %v14731_v43 = vpop.f32.mrf.mxu1  ;;  %v18018_v58 = vld [vmem:[#allocation75_spill] sm:$0xff]  ;;  %v18025_v37 = vld [vmem:[#allocation76_spill] sm:$0xff] }
 0x1e3   :  { %v10618_v56 = vpop.f32.mrf.mxu0  ;;  %18015 = vst [vmem:[#allocation62_spill] sm:$0xff] %v14731_v43  ;;  %10763 = vmatprep.mubr.msk.f32.mxu0 %vm619_vm1, %v270_v50  ;;  %v14750_v4 = vadd.f32 %v13804_v9, %v18018_v58 }
 0x1e4   :  { %v14720_v46 = vmax.f32 %v18012_v53, %v3114_v2  ;;  %v584_v2 = vld [vmem:[%s17653_s0 + $0x1140] sm:$0xff]  ;;  %v18016_v53 = vld [vmem:[#allocation47_spill] sm:$0xff]  ;;  %v3124_v17 = vadd.f32 %v13804_v9, %v10618_v56  ;;  %v14759_v50 = vpop.f32.mrf.mxu1 }
 0x1e5   :  { %v18017_v45 = vmax.f32 %v14043_v63, %v18016_v53  ;;  %18019 = vst [vmem:[#allocation65_spill] sm:$0xff] %v14750_v4  ;;  %v585_v63 = vld [vmem:[%s17653_s0 + $0x1148] sm:$0xff]  ;;  %v272_v56 = vld [vmem:[%s17653_s0 + $0x780] sm:$0xff]  ;;  %11234 = vmatprep.mubr.msk.f32.mxu1 %vm619_vm1, %v584_v2  ;;  %18020 = vst [vmem:[#allocation67_spill] sm:$0xff] %v14759_v50 }
 0x1e6   :  { %18013 = vst [vmem:[#allocation61_spill] sm:$0xff] %v14720_v46  ;;  %v18021_v53 = vld [vmem:[#allocation51_spill] sm:$0xff]  ;;  %v14771_v46 = vadd.f32 %v13804_v9, %v18025_v37  ;;  %11235 = vmatmul.mubr.msk.f32.gmra.mxu1 %vm619_vm1, %v585_v63  ;;  %10764 = vmatmul.mubr.msk.f32.gmra.mxu0 %vm619_vm1, %v271_v30  ;;  %v14775_v2 = vpop.f32.mrf.mxu1  ;;  %v18028_v63 = vld [vmem:[#allocation77_spill] sm:$0xff]  ;;  %v18034_v50 = vld [vmem:[#allocation78_spill] sm:$0xff] }
 0x1e7   :  { %v14739_v41 = vmax.f32 %v18017_v45, %v3109_v42  ;;  %v3118_v42 = vpop.f32.mrf.mxu0  ;;  %v18022_v45 = vld [vmem:[#allocation12_spill] sm:$0xff]  ;;  %18026 = vst [vmem:[#allocation71_spill] sm:$0xff] %v14775_v2  ;;  %10766 = vmatprep.mubr.msk.f32.mxu0 %vm619_vm1, %v272_v56  ;;  %v273_v37 = vld [vmem:[%s17653_s0 + $0x788] sm:$0xff]  ;;  %v14815_v4 = vadd.f32 %v13804_v9, %v18034_v50  ;;  %v275_v50 = vld [vmem:[%s17653_s0 + $0x798] sm:$0xff] }
 0x1e8   :  { %v18023_v31 = vmax.f32 %v18021_v53, %v18022_v45  ;;  %v3119_v58 = vadd.f32 %v13804_v9, %v3118_v42  ;;  %v14794_v45 = vadd.f32 %v13804_v9, %v18028_v63  ;;  %v14803_v56 = vpop.f32.mrf.mxu1  ;;  %v18040_v2 = vld [vmem:[#allocation80_spill] sm:$0xff] }
 0x1e9   :  { %v10621_v29 = vpop.f32.mrf.mxu0  ;;  %18030 = vst [vmem:[#allocation72_spill] sm:$0xff] %v14803_v56 }
 0x1ea   :  { %v14764_v43 = vmax.f32 %v18023_v31, %v3124_v17  ;;  %v586_v17 = vld [vmem:[%s17653_s0 + $0x1150] sm:$0xff]  ;;  %v18027_v31 = vmax.f32 %v14087_v1, %v14075_v8  ;;  %v3134_v53 = vadd.f32 %v13804_v9, %v10621_v29  ;;  %18029 = vst [vmem:[#allocation8_spill] sm:$0xff] %v14794_v45  ;;  %v587_v8 = vld [vmem:[%s17653_s0 + $0x1158] sm:$0xff]  ;;  %10767 = vmatmul.mubr.msk.f32.gmra.mxu0 %vm619_vm1, %v273_v37 }
 0x1eb   :  { %v3128_v1 = vpop.f32.mrf.mxu0  ;;  %v274_v29 = vld [vmem:[%s17653_s0 + $0x790] sm:$0xff]  ;;  %11237 = vmatprep.mubr.msk.f32.mxu1 %vm619_vm1, %v586_v17  ;;  %v14819_v17 = vpop.f32.mrf.mxu1 }
 0x1ec   :  { %18024 = vst [vmem:[#allocation70_spill] sm:$0xff] %v14764_v43  ;;  %v14783_v42 = vmax.f32 %v18027_v31, %v3119_v58  ;;  %v18031_v58 = vld [vmem:[#allocation55_spill] sm:$0xff]  ;;  %v18032_v31 = vld [vmem:[#allocation14_spill] sm:$0xff]  ;;  %v3129_v63 = vadd.f32 %v13804_v9, %v3128_v1  ;;  %11238 = vmatmul.mubr.msk.f32.gmra.mxu1 %vm619_vm1, %v587_v8  ;;  %18035 = vst [vmem:[#allocation73_spill] sm:$0xff] %v14819_v17  ;;  %10769 = vmatprep.mubr.msk.f32.mxu0 %vm619_vm1, %v274_v29 }
 0x1ed   :  { %v18033_v30 = vmax.f32 %v18031_v58, %v18032_v31  ;;  %v10624_v43 = vpop.f32.mrf.mxu0  ;;  %v14839_v8 = vld [vmem:[%s17654_s2] ss:$0 sm:$0xff]  ;;  %v18037_v31 = vld [vmem:[#allocation79_spill] sm:$0xff]  ;;  %v14850_v29 = vpop.f32.mrf.mxu1 }
 0x1ee   :  { %v3144_v58 = vadd.f32 %v13804_v9, %v10624_v43  ;;  %v589_v9 = vld [vmem:[%s17653_s0 + $0x1168] sm:$0xff]  ;;  %v276_v43 = vld [vmem:[%s17653_s0 + $0x7a0] sm:$0xff]  ;;  %18038 = vst [vmem:[#allocation11_spill] sm:$0xff] %v14850_v29  ;;  %v4399_v17 = vadd.f32 %v14839_v8, %v18040_v2  ;;  %10770 = vmatmul.mubr.msk.f32.gmra.mxu0 %vm619_vm1, %v275_v50 }
 0x1ef   :  { %v14808_v49 = vmax.f32 %v18033_v30, %v3134_v53  ;;  %v588_v53 = vld [vmem:[%s17653_s0 + $0x1160] sm:$0xff]  ;;  %v18036_v30 = vmax.f32 %v14131_v6, %v14119_v60  ;;  %v4404_v60 = vadd.f32 %v14839_v8, %v18037_v31  ;;  %v3138_v6 = vpop.f32.mrf.mxu0  ;;  %v14860_v45 = vpop.f32.mrf.mxu1  ;;  %10772 = vmatprep.mubr.msk.f32.mxu0 %vm619_vm1, %v276_v43  ;;  %v277_v2 = vld [vmem:[%s17653_s0 + $0x7a8] sm:$0xff]  ;;  %v591_v31 = vld [vmem:[%s17653_s0 + $0x1178] sm:$0xff] }
 0x1f0   :  { %11240 = vmatprep.mubr.msk.f32.mxu1 %vm619_vm1, %v588_v53  ;;  %v3139_v37 = vadd.f32 %v14839_v8, %v3138_v6  ;;  %18041 = vst [vmem:[#allocation44_spill] sm:$0xff] %v14860_v45  ;;  %v590_v53 = vld [vmem:[%s17653_s0 + $0x1170] sm:$0xff] }
 0x1f1   :  { %v14827_v1 = vmax.f32 %v18036_v30, %v3129_v63  ;;  %v18039_v63 = vld [vmem:[#allocation59_spill] sm:$0xff]  ;;  %11241 = vmatmul.mubr.msk.f32.gmra.mxu1 %vm619_vm1, %v589_v9  ;;  %v10627_v56 = vpop.f32.mrf.mxu0 }
 0x1f2   :  { %v5442_v30 = vmax.f32 %v18039_v63, %v3144_v58  ;;  %v5441_v58 = vmax.f32 %v14185_v18, %v3139_v37  ;;  %v3154_v6 = vadd.f32 %v14839_v8, %v10627_v56  ;;  %v18043_v63 = vld [vmem:[#allocation81_spill] sm:$0xff]  ;;  %v278_v18 = vld [vmem:[%s17653_s0 + $0x7b0] sm:$0xff]  ;;  %11243 = vmatprep.mubr.msk.f32.mxu1 %vm619_vm1, %v590_v53  ;;  %v14882_v56 = vpop.f32.mrf.mxu1  ;;  %10773 = vmatmul.mubr.msk.f32.gmra.mxu0 %vm619_vm1, %v277_v2  ;;  %v592_v53 = vld [vmem:[%s17653_s0 + $0x1180] sm:$0xff] }
 0x1f3   :  { %v4414_v50 = vadd.f32 %v14839_v8, %v18043_v63  ;;  %v3148_v45 = vpop.f32.mrf.mxu0  ;;  %18044 = vst [vmem:[#allocation47_spill] sm:$0xff] %v14882_v56  ;;  %10775 = vmatprep.mubr.msk.f32.mxu0 %vm619_vm1, %v278_v18  ;;  %v593_v2 = vld [vmem:[%s17653_s0 + $0x1188] sm:$0xff] }
 0x1f4   :  { %v14871_v9 = vmax.f32 %v5442_v30, %v4404_v60  ;;  %v5444_v37 = vmax.f32 %v14202_v11, %v3154_v6  ;;  %v3149_v60 = vadd.f32 %v14839_v8, %v3148_v45  ;;  %v14886_v43 = vmax.f32 %v5441_v58, %v4399_v17  ;;  %v18045_v30 = vld [vmem:[#allocation82_spill] sm:$0xff]  ;;  %v279_v17 = vld [vmem:[%s17653_s0 + $0x7b8] sm:$0xff]  ;;  %v18047_v58 = vld [vmem:[#allocation83_spill] sm:$0xff] }
 0x1f5   :  { %v4409_v63 = vadd.f32 %v14839_v8, %v18045_v30  ;;  %11244 = vmatmul.mubr.msk.f32.gmra.mxu1 %vm619_vm1, %v591_v31  ;;  %v10630_v29 = vpop.f32.mrf.mxu0  ;;  %v4424_v6 = vadd.f32 %v14839_v8, %v18047_v58 }
 0x1f6   :  { %18042 = vst [vmem:[#allocation74_spill] sm:$0xff] %v14871_v9  ;;  %v14892_v9 = vpop.f32.mrf.mxu1  ;;  %v5443_v11 = vmax.f32 %v14217_v14, %v3149_v60  ;;  %v3164_v45 = vadd.f32 %v14839_v8, %v10630_v29  ;;  %v14903_v31 = vmax.f32 %v5444_v37, %v4414_v50  ;;  %v280_v14 = vld [vmem:[%s17653_s0 + $0x7c0] sm:$0xff]  ;;  %11246 = vmatprep.mubr.msk.f32.mxu1 %vm619_vm1, %v592_v53  ;;  %v18049_v60 = vld [vmem:[#allocation84_spill] sm:$0xff] }
 0x1f7   :  { %18046 = vst [vmem:[#allocation75_spill] sm:$0xff] %v14892_v9  ;;  %v3158_v30 = vpop.f32.mrf.mxu0  ;;  %v4419_v58 = vadd.f32 %v14839_v8, %v18049_v60  ;;  %10776 = vmatmul.mubr.msk.f32.gmra.mxu0 %vm619_vm1, %v279_v17  ;;  %v594_v53 = vld [vmem:[%s17653_s0 + $0x1190] sm:$0xff] }
 0x1f8   :  { %v14914_v29 = vpop.f32.mrf.mxu1  ;;  %v5446_v18 = vmax.f32 %v14234_v38, %v3164_v45  ;;  %v3159_v50 = vadd.f32 %v14839_v8, %v3158_v30  ;;  %v14918_v37 = vmax.f32 %v5443_v11, %v4409_v63  ;;  %10778 = vmatprep.mubr.msk.f32.mxu0 %vm619_vm1, %v280_v14  ;;  %v281_v63 = vld [vmem:[%s17653_s0 + $0x7c8] sm:$0xff]  ;;  %v595_v30 = vld [vmem:[%s17653_s0 + $0x1198] sm:$0xff] }
 0x1f9   :  { %18048 = vst [vmem:[#allocation51_spill] sm:$0xff] %v14914_v29  ;;  %11247 = vmatmul.mubr.msk.f32.gmra.mxu1 %vm619_vm1, %v593_v2  ;;  %v10633_v9 = vpop.f32.mrf.mxu0  ;;  %v18051_v2 = vld [vmem:[#allocation85_spill] sm:$0xff] }
 0x1fa   :  { %v14924_v56 = vpop.f32.mrf.mxu1  ;;  %v5445_v38 = vmax.f32 %v14249_v39, %v3159_v50  ;;  %v3174_v45 = vadd.f32 %v14839_v8, %v10633_v9  ;;  %v14935_v11 = vmax.f32 %v5446_v18, %v4424_v6  ;;  %v4434_v17 = vadd.f32 %v14839_v8, %v18051_v2  ;;  %v282_v39 = vld [vmem:[%s17653_s0 + $0x7d0] sm:$0xff]  ;;  %11249 = vmatprep.mubr.msk.f32.mxu1 %vm619_vm1, %v594_v53  ;;  %v18053_v50 = vld [vmem:[#allocation86_spill] sm:$0xff] }
 0x1fb   :  { %18050 = vst [vmem:[#allocation12_spill] sm:$0xff] %v14924_v56  ;;  %v3168_v60 = vpop.f32.mrf.mxu0  ;;  %v4429_v2 = vadd.f32 %v14839_v8, %v18053_v50  ;;  %10779 = vmatmul.mubr.msk.f32.gmra.mxu0 %vm619_vm1, %v281_v63  ;;  %v596_v53 = vld [vmem:[%s17653_s0 + $0x11a0] sm:$0xff] }
 0x1fc   :  { %v14946_v9 = vpop.f32.mrf.mxu1  ;;  %v5448_v14 = vmax.f32 %v14266_v54, %v3174_v45  ;;  %v3169_v6 = vadd.f32 %v14839_v8, %v3168_v60  ;;  %v14950_v18 = vmax.f32 %v5445_v38, %v4419_v58  ;;  %10781 = vmatprep.mubr.msk.f32.mxu0 %vm619_vm1, %v282_v39  ;;  %v283_v58 = vld [vmem:[%s17653_s0 + $0x7d8] sm:$0xff]  ;;  %v9531_v60 = vld [vmem:[%s17655_s3 + $0x10] sm:$0xff]  ;;  %v284_v39 = vld [vmem:[%s17653_s0 + $0x7e0] sm:$0xff] }
 0x1fd   :  { %18052 = vst [vmem:[#allocation76_spill] sm:$0xff] %v14946_v9  ;;  %11250 = vmatmul.mubr.msk.f32.gmra.mxu1 %vm619_vm1, %v595_v30  ;;  %v10636_v56 = vpop.f32.mrf.mxu0  ;;  %v18056_v30 = vld [vmem:[#allocation2_spill] sm:$0xff] }
 0x1fe   :  { %v14956_v29 = vpop.f32.mrf.mxu1  ;;  %v5447_v54 = vmax.f32 %v14281_v48, %v3169_v6  ;;  %v3184_v45 = vadd.f32 %v14839_v8, %v10636_v56  ;;  %v14967_v38 = vmax.f32 %v5448_v14, %v4434_v17  ;;  %v4444_v63 = vadd.f32 %v14839_v8, %v18056_v30  ;;  %v597_v48 = vld [vmem:[%s17653_s0 + $0x11a8] sm:$0xff]  ;;  %11273 = vmatpush3.msra.mxu1 %v9531_v60 }
 0x1ff   :  { %18054 = vst [vmem:[#allocation77_spill] sm:$0xff] %v14956_v29  ;;  %v3178_v56 = vpop.f32.mrf.mxu0  ;;  %11252 = vmatprep.mubr.msk.f32.mxu1 %vm619_vm1, %v596_v53  ;;  %v18058_v30 = vld [vmem:[#allocation3_spill] sm:$0xff]  ;;  %10782 = vmatmul.mubr.msk.f32.gmra.mxu0 %vm619_vm1, %v283_v58  ;;  %v598_v53 = vld [vmem:[%s17653_s0 + $0x11b0] sm:$0xff]  ;;  %v18060_v60 = vmov 0.0  }
 0x200   :  { %18055 = vst [vmem:[#allocation55_spill] sm:$0xff] %v14967_v38  ;;  %v14981_v17 = vpop.f32.mrf.mxu1  ;;  %v5450_v14 = vmax.f32 %v14298_v47, %v3184_v45  ;;  %v3179_v6 = vadd.f32 %v14839_v8, %v3178_v56  ;;  %v14985_v50 = vmax.f32 %v5447_v54, %v4429_v2  ;;  %v4439_v29 = vadd.f32 %v14839_v8, %v18058_v30  ;;  %v285_v54 = vld [vmem:[%s17653_s0 + $0x7e8] sm:$0xff]  ;;  %v599_v56 = vld [vmem:[%s17653_s0 + $0x11b8] sm:$0xff] }
 0x201   :  { %18057 = vst [vmem:[#allocation14_spill] sm:$0xff] %v14981_v17  ;;  %11253 = vmatmul.mubr.msk.f32.gmra.mxu1 %vm619_vm1, %v597_v48  ;;  %v10639_v9 = vpop.f32.mrf.mxu0  ;;  %11277 = vmatprep.subr.mxu1 %v18060_v60  ;;  %v18061_v58 = vld [vmem:[#allocation31_spill] sm:$0xff] }
 0x202   :  { %v14991_v38 = vpop.f32.mrf.mxu1  ;;  %v5449_v47 = vmax.f32 %v14313_v34, %v3179_v6  ;;  %v3194_v2 = vadd.f32 %v14839_v8, %v10639_v9  ;;  %10784 = vmatprep.mubr.msk.f32.mxu0 %vm619_vm1, %v284_v39  ;;  %v15003_v45 = vmax.f32 %v5450_v14, %v4444_v63  ;;  %v4454_v48 = vadd.f32 %v14839_v8, %v18061_v58  ;;  %v286_v34 = vld [vmem:[%s17653_s0 + $0x7f0] sm:$0xff] }
 0x203   :  { %18059 = vst [vmem:[#allocation78_spill] sm:$0xff] %v14991_v38  ;;  %v3188_v30 = vpop.f32.mrf.mxu0  ;;  %11255 = vmatprep.mubr.msk.f32.mxu1 %vm619_vm1, %v598_v53  ;;  %v18063_v6 = vld [vmem:[#allocation32_spill] sm:$0xff]  ;;  %10785 = vmatmul.mubr.msk.f32.gmra.mxu0 %vm619_vm1, %v285_v54  ;;  %v600_v53 = vld [vmem:[%s17653_s0 + $0x11c0] sm:$0xff] }
 0x204   :  { %v15014_v9 = vpop.f32.mrf.mxu1  ;;  %v5452_v39 = vmax.f32 %v14330_v51, %v3194_v2  ;;  %v3189_v63 = vadd.f32 %v14839_v8, %v3188_v30  ;;  %v15018_v14 = vmax.f32 %v5449_v47, %v4439_v29  ;;  %v4449_v58 = vadd.f32 %v14839_v8, %v18063_v6  ;;  %10787 = vmatprep.mubr.msk.f32.mxu0 %vm619_vm1, %v286_v34  ;;  %v287_v29 = vld [vmem:[%s17653_s0 + $0x7f8] sm:$0xff]  ;;  %v601_v30 = vld [vmem:[%s17653_s0 + $0x11c8] sm:$0xff] }
 0x205   :  { %18062 = vst [vmem:[#allocation79_spill] sm:$0xff] %v15014_v9  ;;  %11256 = vmatmul.mubr.msk.f32.gmra.mxu1 %vm619_vm1, %v599_v56  ;;  %v10642_v60 = vpop.f32.mrf.mxu0  ;;  %v18065_v56 = vld [vmem:[#allocation4_spill] sm:$0xff] }
 0x206   :  { %v15024_v38 = vpop.f32.mrf.mxu1  ;;  %v5451_v51 = vmax.f32 %v14345_v24, %v3189_v63  ;;  %v3204_v2 = vadd.f32 %v14839_v8, %v10642_v60  ;;  %v15035_v47 = vmax.f32 %v5452_v39, %v4454_v48  ;;  %v4464_v54 = vadd.f32 %v14839_v8, %v18065_v56  ;;  %v288_v24 = vld [vmem:[%s17653_s0 + $0x800] sm:$0xff]  ;;  %11258 = vmatprep.mubr.msk.f32.mxu1 %vm619_vm1, %v600_v53  ;;  %v18067_v63 = vld [vmem:[#allocation5_spill] sm:$0xff]  ;;  %v602_v53 = vld [vmem:[%s17653_s0 + $0x11d0] sm:$0xff] }
 0x207   :  { %18064 = vst [vmem:[#allocation59_spill] sm:$0xff] %v15024_v38  ;;  %v3198_v6 = vpop.f32.mrf.mxu0  ;;  %v4459_v56 = vadd.f32 %v14839_v8, %v18067_v63  ;;  %10788 = vmatmul.mubr.msk.f32.gmra.mxu0 %vm619_vm1, %v287_v29 }
 0x208   :  { %v15046_v60 = vpop.f32.mrf.mxu1  ;;  %v5454_v34 = vmax.f32 %v14362_v12, %v3204_v2  ;;  %v3199_v48 = vadd.f32 %v14839_v8, %v3198_v6  ;;  %v15050_v39 = vmax.f32 %v5451_v51, %v4449_v58  ;;  %10790 = vmatprep.mubr.msk.f32.mxu0 %vm619_vm1, %v288_v24  ;;  %v289_v58 = vld [vmem:[%s17653_s0 + $0x808] sm:$0xff]  ;;  %v603_v6 = vld [vmem:[%s17653_s0 + $0x11d8] sm:$0xff] }
 0x209   :  { %18066 = vst [vmem:[#allocation80_spill] sm:$0xff] %v15046_v60  ;;  %11259 = vmatmul.mubr.msk.f32.gmra.mxu1 %vm619_vm1, %v601_v30  ;;  %v10645_v38 = vpop.f32.mrf.mxu0  ;;  %v18069_v30 = vld [vmem:[#allocation35_spill] sm:$0xff] }
 0x20a   :  { %v15056_v9 = vpop.f32.mrf.mxu1  ;;  %v5453_v12 = vmax.f32 %v14377_v3, %v3199_v48  ;;  %v3214_v2 = vadd.f32 %v14839_v8, %v10645_v38  ;;  %v15067_v51 = vmax.f32 %v5454_v34, %v4464_v54  ;;  %v4474_v29 = vadd.f32 %v14839_v8, %v18069_v30  ;;  %v290_v3 = vld [vmem:[%s17653_s0 + $0x810] sm:$0xff]  ;;  %11261 = vmatprep.mubr.msk.f32.mxu1 %vm619_vm1, %v602_v53  ;;  %v604_v53 = vld [vmem:[%s17653_s0 + $0x11e0] sm:$0xff] }
 0x20b   :  { %18068 = vst [vmem:[#allocation81_spill] sm:$0xff] %v15056_v9  ;;  %v3208_v63 = vpop.f32.mrf.mxu0  ;;  %v18071_v48 = vld [vmem:[#allocation36_spill] sm:$0xff]  ;;  %10791 = vmatmul.mubr.msk.f32.gmra.mxu0 %vm619_vm1, %v289_v58 }
 0x20c   :  { %v15078_v38 = vpop.f32.mrf.mxu1  ;;  %v5456_v24 = vmax.f32 %v14394_v27, %v3214_v2  ;;  %v3209_v54 = vadd.f32 %v14839_v8, %v3208_v63  ;;  %v15082_v34 = vmax.f32 %v5453_v12, %v4459_v56  ;;  %v4469_v30 = vadd.f32 %v14839_v8, %v18071_v48  ;;  %10793 = vmatprep.mubr.msk.f32.mxu0 %vm619_vm1, %v290_v3  ;;  %v291_v56 = vld [vmem:[%s17653_s0 + $0x818] sm:$0xff]  ;;  %v605_v63 = vld [vmem:[%s17653_s0 + $0x11e8] sm:$0xff] }
 0x20d   :  { %18070 = vst [vmem:[#allocation82_spill] sm:$0xff] %v15078_v38  ;;  %11262 = vmatmul.mubr.msk.f32.gmra.mxu1 %vm619_vm1, %v603_v6  ;;  %v10648_v9 = vpop.f32.mrf.mxu0  ;;  %v18073_v6 = vld [vmem:[#allocation6_spill] sm:$0xff] }
 0x20e   :  { %v15088_v60 = vpop.f32.mrf.mxu1  ;;  %v5455_v27 = vmax.f32 %v14415_v21, %v3209_v54  ;;  %v3224_v2 = vadd.f32 %v14839_v8, %v10648_v9  ;;  %v15099_v12 = vmax.f32 %v5456_v24, %v4474_v29  ;;  %v15103_v58 = vadd.f32 %v14839_v8, %v18073_v6  ;;  %v292_v21 = vld [vmem:[%s17653_s0 + $0x820] sm:$0xff]  ;;  %11264 = vmatprep.mubr.msk.f32.mxu1 %vm619_vm1, %v604_v53  ;;  %v18076_v6 = vld [vmem:[#allocation7_spill] sm:$0xff]  ;;  %v606_v53 = vld [vmem:[%s17653_s0 + $0x11f0] sm:$0xff] }
 0x20f   :  { %18072 = vst [vmem:[#allocation83_spill] sm:$0xff] %v15088_v60  ;;  %v3218_v48 = vpop.f32.mrf.mxu0  ;;  %v18075_v29 = vmax.f32 %v14412_v62, %v14398_v35  ;;  %v15124_v60 = vadd.f32 %v14839_v8, %v18076_v6  ;;  %10794 = vmatmul.mubr.msk.f32.gmra.mxu0 %vm619_vm1, %v291_v56  ;;  %v18077_v35 = vmax.f32 %v14431_v0, %v14419_v57  ;;  %v18078_v56 = vld [vmem:[#allocation39_spill] sm:$0xff]  ;;  %v607_v57 = vld [vmem:[%s17653_s0 + $0x11f8] sm:$0xff] }
 0x210   :  { %v15112_v9 = vpop.f32.mrf.mxu1  ;;  %v3219_v24 = vadd.f32 %v14839_v8, %v3218_v48  ;;  %v15120_v54 = vmax.f32 %v5455_v27, %v4469_v30  ;;  %10796 = vmatprep.mubr.msk.f32.mxu0 %vm619_vm1, %v292_v21  ;;  %v293_v27 = vld [vmem:[%s17653_s0 + $0x828] sm:$0xff]  ;;  %v18080_v21 = vmax.f32 %v14456_v15, %v14442_v52  ;;  %v18087_v6 = vmax.f32 %v14519_v19, %v14507_v7  ;;  %v298_v7 = vld [vmem:[%s17653_s0 + $0x850] sm:$0xff] }
 0x211   :  { %18074 = vst [vmem:[#allocation84_spill] sm:$0xff] %v15112_v9  ;;  %v15117_v3 = vmax.f32 %v18075_v29, %v3224_v2  ;;  %11265 = vmatmul.mubr.msk.f32.gmra.mxu1 %vm619_vm1, %v605_v63  ;;  %v10651_v38 = vpop.f32.mrf.mxu0  ;;  %v15145_v63 = vadd.f32 %v14839_v8, %v18078_v56  ;;  %v18111_v9 = vld [vmem:[#allocation53_spill] sm:$0xff] }
 0x212   :  { %v15134_v62 = vmax.f32 %v18077_v35, %v3219_v24  ;;  %v3234_v30 = vadd.f32 %v14839_v8, %v10651_v38  ;;  %v294_v38 = vld [vmem:[%s17653_s0 + $0x830] sm:$0xff]  ;;  %v15153_v48 = vpop.f32.mrf.mxu1  ;;  %11267 = vmatprep.mubr.msk.f32.mxu1 %vm619_vm1, %v606_v53  ;;  %v18082_v53 = vmax.f32 %v14475_v61, %v14463_v23  ;;  %v296_v23 = vld [vmem:[%s17653_s0 + $0x840] sm:$0xff] }
 0x213   :  { %v3228_v0 = vpop.f32.mrf.mxu0  ;;  %18079 = vst [vmem:[#allocation85_spill] sm:$0xff] %v15153_v48  ;;  %v18081_v35 = vld [vmem:[#allocation40_spill] sm:$0xff]  ;;  %10797 = vmatmul.mubr.msk.f32.gmra.mxu0 %vm619_vm1, %v293_v27 }
 0x214   :  { %v15159_v29 = vmax.f32 %v18080_v21, %v3234_v30  ;;  %v3229_v24 = vadd.f32 %v14839_v8, %v3228_v0  ;;  %v15166_v56 = vadd.f32 %v14839_v8, %v18081_v35  ;;  %10799 = vmatprep.mubr.msk.f32.mxu0 %vm619_vm1, %v294_v38  ;;  %v295_v30 = vld [vmem:[%s17653_s0 + $0x838] sm:$0xff]  ;;  %v15189_v61 = vpop.f32.mrf.mxu1  ;;  %v18092_v35 = vmax.f32 %v14563_v22, %v14551_v26  ;;  %v300_v26 = vld [vmem:[%s17653_s0 + $0x860] sm:$0xff] }
 0x215   :  { %11268 = vmatmul.mubr.msk.f32.gmra.mxu1 %vm619_vm1, %v607_v57  ;;  %v10654_v2 = vpop.f32.mrf.mxu0  ;;  %v18083_v57 = vld [vmem:[#allocation9_spill] sm:$0xff]  ;;  %18084 = vst [vmem:[#allocation86_spill] sm:$0xff] %v15189_v61 }
 0x216   :  { %v15173_v52 = vmax.f32 %v18082_v53, %v3229_v24  ;;  %v3244_v15 = vadd.f32 %v14839_v8, %v10654_v2  ;;  %v15184_v21 = vadd.f32 %v14839_v8, %v18083_v57  ;;  %v18085_v2 = vmax.f32 %v14500_v40, %v14486_v59  ;;  %v18086_v53 = vld [vmem:[#allocation43_spill] sm:$0xff]  ;;  %v15223_v19 = vpop.f32.mrf.mxu1 }
 0x217   :  { %v3238_v27 = vpop.f32.mrf.mxu0  ;;  %v15201_v57 = vadd.f32 %v14839_v8, %v18086_v53  ;;  %10800 = vmatmul.mubr.msk.f32.gmra.mxu0 %vm619_vm1, %v295_v30  ;;  %v297_v40 = vld [vmem:[%s17653_s0 + $0x848] sm:$0xff]  ;;  %18089 = vst [vmem:[#allocation2_spill] sm:$0xff] %v15223_v19  ;;  %v18091_v53 = vld [vmem:[#allocation48_spill] sm:$0xff] }
 0x218   :  { %v15194_v38 = vmax.f32 %v18085_v2, %v3244_v15  ;;  %v3239_v24 = vadd.f32 %v14839_v8, %v3238_v27  ;;  %10802 = vmatprep.mubr.msk.f32.mxu0 %vm619_vm1, %v296_v23  ;;  %v18088_v27 = vld [vmem:[#allocation10_spill] sm:$0xff]  ;;  %v15257_v22 = vpop.f32.mrf.mxu1 }
 0x219   :  { %v10657_v0 = vpop.f32.mrf.mxu0  ;;  %v15218_v2 = vadd.f32 %v14839_v8, %v18088_v27  ;;  %v15235_v27 = vadd.f32 %v14839_v8, %v18091_v53  ;;  %18094 = vst [vmem:[#allocation3_spill] sm:$0xff] %v15257_v22  ;;  %v18096_v53 = vld [vmem:[#allocation52_spill] sm:$0xff] }
 0x21a   :  { %v15207_v48 = vmax.f32 %v18087_v6, %v3239_v24  ;;  %v3254_v59 = vadd.f32 %v14839_v8, %v10657_v0  ;;  %v18090_v6 = vmax.f32 %v14544_v44, %v14530_v20  ;;  %v299_v44 = vld [vmem:[%s17653_s0 + $0x858] sm:$0xff]  ;;  %v18097_v24 = vmax.f32 %v14607_v28, %v14595_v32  ;;  %v302_v32 = vld [vmem:[%s17653_s0 + $0x870] sm:$0xff]  ;;  %v15291_v28 = vpop.f32.mrf.mxu1 }
 0x21b   :  { %v3248_v30 = vpop.f32.mrf.mxu0  ;;  %10803 = vmatmul.mubr.msk.f32.gmra.mxu0 %vm619_vm1, %v297_v40  ;;  %18099 = vst [vmem:[#allocation31_spill] sm:$0xff] %v15291_v28 }
 0x21c   :  { %v15228_v0 = vmax.f32 %v18090_v6, %v3254_v59  ;;  %v3249_v23 = vadd.f32 %v14839_v8, %v3248_v30  ;;  %10805 = vmatprep.mubr.msk.f32.mxu0 %vm619_vm1, %v298_v7  ;;  %v18093_v30 = vld [vmem:[#allocation13_spill] sm:$0xff] }
 0x21d   :  { %v10660_v15 = vpop.f32.mrf.mxu0  ;;  %v15252_v6 = vadd.f32 %v14839_v8, %v18093_v30  ;;  %v15269_v30 = vadd.f32 %v14839_v8, %v18096_v53  ;;  %v18101_v53 = vld [vmem:[#allocation56_spill] sm:$0xff] }
 0x21e   :  { %v15241_v19 = vmax.f32 %v18092_v35, %v3249_v23  ;;  %v3264_v20 = vadd.f32 %v14839_v8, %v10660_v15  ;;  %v18095_v35 = vmax.f32 %v14588_v55, %v14574_v5  ;;  %v301_v55 = vld [vmem:[%s17653_s0 + $0x868] sm:$0xff]  ;;  %v18102_v23 = vmax.f32 %v14651_v25, %v14639_v16  ;;  %v304_v16 = vld [vmem:[%s17653_s0 + $0x880] sm:$0xff]  ;;  %v15325_v25 = vpop.f32.mrf.mxu1 }
 0x21f   :  { %v3258_v40 = vpop.f32.mrf.mxu0  ;;  %10806 = vmatmul.mubr.msk.f32.gmra.mxu0 %vm619_vm1, %v299_v44  ;;  %18105 = vst [vmem:[#allocation4_spill] sm:$0xff] %v15325_v25  ;;  %v18112_v25 = vmax.f32 %v14695_v33, %v18111_v9  ;;  %v306_v33 = vld [vmem:[%s17653_s0 + $0x890] sm:$0xff] }
 0x220   :  { %v15262_v15 = vmax.f32 %v18095_v35, %v3264_v20  ;;  %v3259_v7 = vadd.f32 %v14839_v8, %v3258_v40  ;;  %10808 = vmatprep.mubr.msk.f32.mxu0 %vm619_vm1, %v300_v26  ;;  %v18098_v40 = vld [vmem:[#allocation15_spill] sm:$0xff]  ;;  %v15359_v9 = vpop.f32.mrf.mxu1 }
 0x221   :  { %v10663_v59 = vpop.f32.mrf.mxu0  ;;  %v15286_v35 = vadd.f32 %v14839_v8, %v18098_v40  ;;  %v15303_v40 = vadd.f32 %v14839_v8, %v18101_v53  ;;  %18115 = vst [vmem:[#allocation36_spill] sm:$0xff] %v15359_v9  ;;  %v18121_v9 = vmax.f32 %v14739_v41, %v14727_v10  ;;  %v308_v10 = vld [vmem:[%s17653_s0 + $0x8a0] sm:$0xff] }
 0x222   :  { %v15275_v22 = vmax.f32 %v18097_v24, %v3259_v7  ;;  %v3274_v5 = vadd.f32 %v14839_v8, %v10663_v59  ;;  %v18100_v24 = vmax.f32 %v14632_v13, %v14618_v36  ;;  %v303_v13 = vld [vmem:[%s17653_s0 + $0x878] sm:$0xff]  ;;  %v15393_v41 = vpop.f32.mrf.mxu1 }
 0x223   :  { %v3268_v44 = vpop.f32.mrf.mxu0  ;;  %10809 = vmatmul.mubr.msk.f32.gmra.mxu0 %vm619_vm1, %v301_v55  ;;  %v18110_v7 = vld [vmem:[#allocation17_spill] sm:$0xff]  ;;  %18124 = vst [vmem:[#allocation39_spill] sm:$0xff] %v15393_v41  ;;  %v18129_v41 = vmax.f32 %v14783_v42, %v14771_v46  ;;  %v310_v46 = vld [vmem:[%s17653_s0 + $0x8b0] sm:$0xff] }
 0x224   :  { %v15296_v59 = vmax.f32 %v18100_v24, %v3274_v5  ;;  %v3269_v26 = vadd.f32 %v14839_v8, %v3268_v44  ;;  %10811 = vmatprep.mubr.msk.f32.mxu0 %vm619_vm1, %v302_v32  ;;  %v18103_v44 = vld [vmem:[#allocation16_spill] sm:$0xff]  ;;  %v18120_v5 = vld [vmem:[#allocation18_spill] sm:$0xff]  ;;  %v15427_v42 = vpop.f32.mrf.mxu1 }
 0x225   :  { %v10666_v20 = vpop.f32.mrf.mxu0  ;;  %v15320_v24 = vadd.f32 %v14839_v8, %v18103_v44  ;;  %v15337_v44 = vadd.f32 %v14839_v8, %v18110_v7  ;;  %v18128_v7 = vld [vmem:[#allocation63_spill] sm:$0xff]  ;;  %18132 = vst [vmem:[#allocation9_spill] sm:$0xff] %v15427_v42  ;;  %v18136_v42 = vmax.f32 %v14827_v1, %v14815_v4  ;;  %v312_v4 = vld [vmem:[%s17653_s0 + $0x8c0] sm:$0xff] }
 0x226   :  { %v15309_v28 = vmax.f32 %v18102_v23, %v3269_v26  ;;  %v3284_v36 = vadd.f32 %v14839_v8, %v10666_v20  ;;  %v18106_v23 = vld [vmem:[#allocation50_spill] sm:$0xff]  ;;  %v15459_v1 = vpop.f32.mrf.mxu1 }
 0x227   :  { %18104 = vst [vmem:[#allocation32_spill] sm:$0xff] %v15320_v24  ;;  %v3278_v55 = vpop.f32.mrf.mxu0  ;;  %v18107_v20 = vld [vmem:[#allocation46_spill] sm:$0xff]  ;;  %10812 = vmatmul.mubr.msk.f32.gmra.mxu0 %vm619_vm1, %v303_v13  ;;  %18138 = vst [vmem:[#allocation43_spill] sm:$0xff] %v15459_v1 }
 0x228   :  { %v18108_v32 = vmax.f32 %v18106_v23, %v18107_v20  ;;  %v3279_v53 = vadd.f32 %v14839_v8, %v3278_v55  ;;  %10814 = vmatprep.mubr.msk.f32.mxu0 %vm619_vm1, %v304_v16  ;;  %v305_v55 = vld [vmem:[%s17653_s0 + $0x888] sm:$0xff]  ;;  %v18113_v23 = vld [vmem:[#allocation60_spill] sm:$0xff]  ;;  %v18117_v16 = vld [vmem:[#allocation57_spill] sm:$0xff] }
 0x229   :  { %v10669_v61 = vpop.f32.mrf.mxu0  ;;  %v15354_v20 = vadd.f32 %v14839_v8, %v18113_v23  ;;  %v15371_v23 = vadd.f32 %v14839_v8, %v18120_v5 }
 0x22a   :  { %v15330_v26 = vmax.f32 %v18108_v32, %v3284_v36  ;;  %v15343_v17 = vmax.f32 %v18112_v25, %v3279_v53  ;;  %v3294_v36 = vadd.f32 %v14839_v8, %v10669_v61  ;;  %v18116_v61 = vld [vmem:[#allocation61_spill] sm:$0xff] }
 0x22b   :  { %18114 = vst [vmem:[#allocation35_spill] sm:$0xff] %v15354_v20  ;;  %v3288_v13 = vpop.f32.mrf.mxu0  ;;  %v18118_v25 = vmax.f32 %v18116_v61, %v18117_v16  ;;  %10815 = vmatmul.mubr.msk.f32.gmra.mxu0 %vm619_vm1, %v305_v55  ;;  %v18122_v61 = vld [vmem:[#allocation19_spill] sm:$0xff] }
 0x22c   :  { %18109 = vst [vmem:[#allocation5_spill] sm:$0xff] %v15330_v26  ;;  %v3289_v53 = vadd.f32 %v14839_v8, %v3288_v13  ;;  %10817 = vmatprep.mubr.msk.f32.mxu0 %vm619_vm1, %v306_v33  ;;  %v307_v13 = vld [vmem:[%s17653_s0 + $0x898] sm:$0xff]  ;;  %v15388_v16 = vadd.f32 %v14839_v8, %v18122_v61  ;;  %v15405_v61 = vadd.f32 %v14839_v8, %v18128_v7  ;;  %v18135_v7 = vld [vmem:[#allocation20_spill] sm:$0xff] }
 0x22d   :  { %v15364_v32 = vmax.f32 %v18118_v25, %v3294_v36  ;;  %v10672_v24 = vpop.f32.mrf.mxu0  ;;  %v18126_v33 = vld [vmem:[#allocation65_spill] sm:$0xff] }
 0x22e   :  { %v15377_v26 = vmax.f32 %v18121_v9, %v3289_v53  ;;  %v3304_v36 = vadd.f32 %v14839_v8, %v10672_v24  ;;  %18123 = vst [vmem:[#allocation7_spill] sm:$0xff] %v15388_v16  ;;  %v18125_v24 = vld [vmem:[#allocation70_spill] sm:$0xff] }
 0x22f   :  { %18119 = vst [vmem:[#allocation6_spill] sm:$0xff] %v15364_v32  ;;  %v3298_v55 = vpop.f32.mrf.mxu0  ;;  %v18127_v9 = vmax.f32 %v18125_v24, %v18126_v33  ;;  %10818 = vmatmul.mubr.msk.f32.gmra.mxu0 %vm619_vm1, %v307_v13  ;;  %v18130_v24 = vld [vmem:[#allocation64_spill] sm:$0xff] }
 0x230   :  { %v3299_v53 = vadd.f32 %v14839_v8, %v3298_v55  ;;  %10820 = vmatprep.mubr.msk.f32.mxu0 %vm619_vm1, %v308_v10  ;;  %v309_v55 = vld [vmem:[%s17653_s0 + $0x8a8] sm:$0xff]  ;;  %v15422_v33 = vadd.f32 %v14839_v8, %v18130_v24  ;;  %v15439_v24 = vadd.f32 %v14839_v8, %v18135_v7 }
 0x231   :  { %v15398_v25 = vmax.f32 %v18127_v9, %v3304_v36  ;;  %v10675_v20 = vpop.f32.mrf.mxu0 }
 0x232   :  { %v15411_v32 = vmax.f32 %v18129_v41, %v3299_v53  ;;  %v3314_v36 = vadd.f32 %v14839_v8, %v10675_v20  ;;  %18131 = vst [vmem:[#allocation40_spill] sm:$0xff] %v15422_v33  ;;  %v18133_v20 = vld [vmem:[#allocation8_spill] sm:$0xff] }
 0x233   :  { %v3308_v13 = vpop.f32.mrf.mxu0  ;;  %v18134_v10 = vmax.f32 %v14808_v49, %v18133_v20  ;;  %10821 = vmatmul.mubr.msk.f32.gmra.mxu0 %vm619_vm1, %v309_v55 }
 0x234   :  { %v3309_v9 = vadd.f32 %v14839_v8, %v3308_v13  ;;  %10823 = vmatprep.mubr.msk.f32.mxu0 %vm619_vm1, %v310_v46  ;;  %v18137_v13 = vld [vmem:[#allocation66_spill] sm:$0xff] }
 0x235   :  { %v15432_v41 = vmax.f32 %v18134_v10, %v3314_v36  ;;  %v10678_v5 = vpop.f32.mrf.mxu0  ;;  %v311_v36 = vld [vmem:[%s17653_s0 + $0x8b8] sm:$0xff]  ;;  %v4584_v20 = vadd.f32 %v14839_v8, %v18137_v13 }
 0x236   :  { %v15445_v16 = vmax.f32 %v18136_v42, %v3309_v9  ;;  %v3324_v49 = vadd.f32 %v14839_v8, %v10678_v5  ;;  %v18139_v5 = vld [vmem:[#allocation74_spill] sm:$0xff]  ;;  %v18140_v9 = vld [vmem:[#allocation21_spill] sm:$0xff] }
 0x237   :  { %v3318_v55 = vpop.f32.mrf.mxu0  ;;  %v4579_v7 = vadd.f32 %v14839_v8, %v18140_v9  ;;  %10824 = vmatmul.mubr.msk.f32.gmra.mxu0 %vm619_vm1, %v311_v36  ;;  %v314_v36 = vld [vmem:[%s17653_s0 + $0x8d0] sm:$0xff]  ;;  %v15481_v9 = vpop.f32.mrf.mxu1 }
 0x238   :  { %v5514_v42 = vmax.f32 %v18139_v5, %v3324_v49  ;;  %v3319_v46 = vadd.f32 %v14839_v8, %v3318_v55  ;;  %10826 = vmatprep.mubr.msk.f32.mxu0 %vm619_vm1, %v312_v4  ;;  %v313_v49 = vld [vmem:[%s17653_s0 + $0x8c8] sm:$0xff]  ;;  %v18142_v5 = vld [vmem:[#allocation68_spill] sm:$0xff]  ;;  %18143 = vst [vmem:[#allocation48_spill] sm:$0xff] %v15481_v9 }
 0x239   :  { %v10681_v53 = vpop.f32.mrf.mxu0  ;;  %v4594_v10 = vadd.f32 %v14839_v8, %v18142_v5 }
 0x23a   :  { %v5513_v13 = vmax.f32 %v14886_v43, %v3319_v46  ;;  %v3334_v33 = vadd.f32 %v14839_v8, %v10681_v53  ;;  %v15474_v55 = vmax.f32 %v5514_v42, %v4584_v20  ;;  %v18144_v46 = vld [vmem:[#allocation69_spill] sm:$0xff] }
 0x23b   :  { %v3328_v1 = vpop.f32.mrf.mxu0  ;;  %v4589_v20 = vadd.f32 %v14839_v8, %v18144_v46  ;;  %10827 = vmatmul.mubr.msk.f32.gmra.mxu0 %vm619_vm1, %v313_v49  ;;  %v316_v49 = vld [vmem:[%s17653_s0 + $0x8e0] sm:$0xff]  ;;  %v15503_v46 = vpop.f32.mrf.mxu1 }
 0x23c   :  { %18141 = vst [vmem:[#allocation10_spill] sm:$0xff] %v15474_v55  ;;  %v5516_v43 = vmax.f32 %v14903_v31, %v3334_v33  ;;  %v3329_v53 = vadd.f32 %v14839_v8, %v3328_v1  ;;  %v15485_v4 = vmax.f32 %v5513_v13, %v4579_v7  ;;  %10829 = vmatprep.mubr.msk.f32.mxu0 %vm619_vm1, %v314_v36  ;;  %v315_v31 = vld [vmem:[%s17653_s0 + $0x8d8] sm:$0xff]  ;;  %v18145_v7 = vld [vmem:[#allocation22_spill] sm:$0xff]  ;;  %18146 = vst [vmem:[#allocation13_spill] sm:$0xff] %v15503_v46 }
 0x23d   :  { %v10684_v42 = vpop.f32.mrf.mxu0  ;;  %v4604_v1 = vadd.f32 %v14839_v8, %v18145_v7  ;;  %v18153_v46 = vld [vmem:[#allocation25_spill] sm:$0xff] }
 0x23e   :  { %v5515_v5 = vmax.f32 %v14918_v37, %v3329_v53  ;;  %v3344_v55 = vadd.f32 %v14839_v8, %v10684_v42  ;;  %v15496_v33 = vmax.f32 %v5516_v43, %v4594_v10  ;;  %v18148_v42 = vld [vmem:[#allocation23_spill] sm:$0xff] }
 0x23f   :  { %v3338_v13 = vpop.f32.mrf.mxu0  ;;  %v4599_v10 = vadd.f32 %v14839_v8, %v18148_v42  ;;  %10830 = vmatmul.mubr.msk.f32.gmra.mxu0 %vm619_vm1, %v315_v31  ;;  %v318_v31 = vld [vmem:[%s17653_s0 + $0x8f0] sm:$0xff]  ;;  %v15525_v42 = vpop.f32.mrf.mxu1 }
 0x240   :  { %v5518_v37 = vmax.f32 %v14935_v11, %v3344_v55  ;;  %v3339_v36 = vadd.f32 %v14839_v8, %v3338_v13  ;;  %v15507_v53 = vmax.f32 %v5515_v5, %v4589_v20  ;;  %10832 = vmatprep.mubr.msk.f32.mxu0 %vm619_vm1, %v316_v49  ;;  %v317_v11 = vld [vmem:[%s17653_s0 + $0x8e8] sm:$0xff]  ;;  %v18150_v20 = vld [vmem:[#allocation24_spill] sm:$0xff]  ;;  %18151 = vst [vmem:[#allocation56_spill] sm:$0xff] %v15525_v42 }
 0x241   :  { %v10687_v43 = vpop.f32.mrf.mxu0  ;;  %v4614_v5 = vadd.f32 %v14839_v8, %v18150_v20 }
 0x242   :  { %18147 = vst [vmem:[#allocation52_spill] sm:$0xff] %v15507_v53  ;;  %v5517_v7 = vmax.f32 %v14950_v18, %v3339_v36  ;;  %v3354_v9 = vadd.f32 %v14839_v8, %v10687_v43  ;;  %v15518_v55 = vmax.f32 %v5518_v37, %v4604_v1  ;;  %v18152_v18 = vld [vmem:[#allocation55_spill] sm:$0xff]  ;;  %v4609_v1 = vadd.f32 %v14839_v8, %v18153_v46  ;;  %v320_v46 = vld [vmem:[%s17653_s0 + $0x900] sm:$0xff] }
 0x243   :  { %v3348_v13 = vpop.f32.mrf.mxu0  ;;  %10833 = vmatmul.mubr.msk.f32.gmra.mxu0 %vm619_vm1, %v317_v11  ;;  %v15547_v11 = vpop.f32.mrf.mxu1 }
 0x244   :  { %18149 = vst [vmem:[#allocation15_spill] sm:$0xff] %v15518_v55  ;;  %v5520_v36 = vmax.f32 %v18152_v18, %v3354_v9  ;;  %v3349_v49 = vadd.f32 %v14839_v8, %v3348_v13  ;;  %v15529_v43 = vmax.f32 %v5517_v7, %v4599_v10  ;;  %10835 = vmatprep.mubr.msk.f32.mxu0 %vm619_vm1, %v318_v31  ;;  %v319_v9 = vld [vmem:[%s17653_s0 + $0x8f8] sm:$0xff]  ;;  %v18154_v10 = vld [vmem:[#allocation26_spill] sm:$0xff]  ;;  %18155 = vst [vmem:[#allocation16_spill] sm:$0xff] %v15547_v11 }
 0x245   :  { %v10690_v37 = vpop.f32.mrf.mxu0  ;;  %v4624_v7 = vadd.f32 %v14839_v8, %v18154_v10 }
 0x246   :  { %v5519_v20 = vmax.f32 %v14985_v50, %v3349_v49  ;;  %v3364_v55 = vadd.f32 %v14839_v8, %v10690_v37  ;;  %v15540_v18 = vmax.f32 %v5520_v36, %v4614_v5  ;;  %v18156_v37 = vld [vmem:[#allocation27_spill] sm:$0xff] }
 0x247   :  { %v3358_v13 = vpop.f32.mrf.mxu0  ;;  %v4619_v5 = vadd.f32 %v14839_v8, %v18156_v37  ;;  %10836 = vmatmul.mubr.msk.f32.gmra.mxu0 %vm619_vm1, %v319_v9  ;;  %v322_v9 = vld [vmem:[%s17653_s0 + $0x910] sm:$0xff]  ;;  %v15569_v37 = vpop.f32.mrf.mxu1 }
 0x248   :  { %v5522_v50 = vmax.f32 %v15003_v45, %v3364_v55  ;;  %v3359_v31 = vadd.f32 %v14839_v8, %v3358_v13  ;;  %v15551_v49 = vmax.f32 %v5519_v20, %v4609_v1  ;;  %10838 = vmatprep.mubr.msk.f32.mxu0 %vm619_vm1, %v320_v46  ;;  %v321_v45 = vld [vmem:[%s17653_s0 + $0x908] sm:$0xff]  ;;  %v18157_v1 = vld [vmem:[#allocation28_spill] sm:$0xff]  ;;  %18158 = vst [vmem:[#allocation50_spill] sm:$0xff] %v15569_v37 }
 0x249   :  { %v10693_v36 = vpop.f32.mrf.mxu0  ;;  %v4634_v20 = vadd.f32 %v14839_v8, %v18157_v1 }
 0x24a   :  { %v5521_v10 = vmax.f32 %v15018_v14, %v3359_v31  ;;  %v3374_v42 = vadd.f32 %v14839_v8, %v10693_v36  ;;  %v15562_v55 = vmax.f32 %v5522_v50, %v4624_v7  ;;  %v18159_v36 = vld [vmem:[#allocation29_spill] sm:$0xff] }
 0x24b   :  { %v3368_v13 = vpop.f32.mrf.mxu0  ;;  %v4629_v7 = vadd.f32 %v14839_v8, %v18159_v36  ;;  %10839 = vmatmul.mubr.msk.f32.gmra.mxu0 %vm619_vm1, %v321_v45  ;;  %v324_v45 = vld [vmem:[%s17653_s0 + $0x920] sm:$0xff]  ;;  %v15591_v36 = vpop.f32.mrf.mxu1 }
 0x24c   :  { %v5524_v14 = vmax.f32 %v15035_v47, %v3374_v42  ;;  %v3369_v46 = vadd.f32 %v14839_v8, %v3368_v13  ;;  %v15573_v31 = vmax.f32 %v5521_v10, %v4619_v5  ;;  %10841 = vmatprep.mubr.msk.f32.mxu0 %vm619_vm1, %v322_v9  ;;  %v323_v47 = vld [vmem:[%s17653_s0 + $0x918] sm:$0xff]  ;;  %v18160_v5 = vld [vmem:[#allocation30_spill] sm:$0xff]  ;;  %18161 = vst [vmem:[#allocation46_spill] sm:$0xff] %v15591_v36 }
 0x24d   :  { %v10696_v50 = vpop.f32.mrf.mxu0  ;;  %v4644_v10 = vadd.f32 %v14839_v8, %v18160_v5 }
 0x24e   :  { %v5523_v1 = vmax.f32 %v15050_v39, %v3369_v46  ;;  %v3384_v11 = vadd.f32 %v14839_v8, %v10696_v50  ;;  %v15584_v42 = vmax.f32 %v5524_v14, %v4634_v20  ;;  %v18162_v50 = vld [vmem:[#allocation33_spill] sm:$0xff] }
 0x24f   :  { %v3378_v13 = vpop.f32.mrf.mxu0  ;;  %v4639_v20 = vadd.f32 %v14839_v8, %v18162_v50  ;;  %10842 = vmatmul.mubr.msk.f32.gmra.mxu0 %vm619_vm1, %v323_v47  ;;  %v326_v47 = vld [vmem:[%s17653_s0 + $0x930] sm:$0xff]  ;;  %v15613_v50 = vpop.f32.mrf.mxu1 }
 0x250   :  { %v5526_v39 = vmax.f32 %v15067_v51, %v3384_v11  ;;  %v3379_v9 = vadd.f32 %v14839_v8, %v3378_v13  ;;  %v15595_v46 = vmax.f32 %v5523_v1, %v4629_v7  ;;  %10844 = vmatprep.mubr.msk.f32.mxu0 %vm619_vm1, %v324_v45  ;;  %v325_v51 = vld [vmem:[%s17653_s0 + $0x928] sm:$0xff]  ;;  %v18163_v7 = vld [vmem:[#allocation34_spill] sm:$0xff]  ;;  %18164 = vst [vmem:[#allocation17_spill] sm:$0xff] %v15613_v50 }
 0x251   :  { %v10699_v14 = vpop.f32.mrf.mxu0  ;;  %v4654_v1 = vadd.f32 %v14839_v8, %v18163_v7  ;;  %v18170_v50 = vmax.f32 %v15134_v62, %v15124_v60  ;;  %v330_v60 = vld [vmem:[%s17653_s0 + $0x950] sm:$0xff] }
 0x252   :  { %v5525_v5 = vmax.f32 %v15082_v34, %v3379_v9  ;;  %v3394_v37 = vadd.f32 %v14839_v8, %v10699_v14  ;;  %v15606_v11 = vmax.f32 %v5526_v39, %v4644_v10  ;;  %v18165_v14 = vld [vmem:[#allocation37_spill] sm:$0xff] }
 0x253   :  { %v3388_v13 = vpop.f32.mrf.mxu0  ;;  %v4649_v10 = vadd.f32 %v14839_v8, %v18165_v14  ;;  %10845 = vmatmul.mubr.msk.f32.gmra.mxu0 %vm619_vm1, %v325_v51  ;;  %v328_v51 = vld [vmem:[%s17653_s0 + $0x940] sm:$0xff] }
 0x254   :  { %v5528_v34 = vmax.f32 %v15099_v12, %v3394_v37  ;;  %v3389_v45 = vadd.f32 %v14839_v8, %v3388_v13  ;;  %v15617_v9 = vmax.f32 %v5525_v5, %v4639_v20  ;;  %10847 = vmatprep.mubr.msk.f32.mxu0 %vm619_vm1, %v326_v47  ;;  %v327_v12 = vld [vmem:[%s17653_s0 + $0x938] sm:$0xff]  ;;  %v18166_v20 = vld [vmem:[#allocation38_spill] sm:$0xff]  ;;  %v18168_v47 = vmax.f32 %v15117_v3, %v15103_v58  ;;  %v329_v3 = vld [vmem:[%s17653_s0 + $0x948] sm:$0xff] }
 0x255   :  { %v10702_v39 = vpop.f32.mrf.mxu0  ;;  %v15632_v5 = vadd.f32 %v14839_v8, %v18166_v20 }
 0x256   :  { %v5527_v7 = vmax.f32 %v15120_v54, %v3389_v45  ;;  %v3404_v36 = vadd.f32 %v14839_v8, %v10702_v39  ;;  %v15628_v37 = vmax.f32 %v5528_v34, %v4654_v1  ;;  %v15637_v54 = vpop.f32.mrf.mxu1  ;;  %v18169_v34 = vld [vmem:[#allocation41_spill] sm:$0xff] }
 0x257   :  { %v3398_v13 = vpop.f32.mrf.mxu0  ;;  %18167 = vst [vmem:[#allocation53_spill] sm:$0xff] %v15637_v54  ;;  %v15649_v39 = vadd.f32 %v14839_v8, %v18169_v34  ;;  %10848 = vmatmul.mubr.msk.f32.gmra.mxu0 %vm619_vm1, %v327_v12 }
 0x258   :  { %v15642_v45 = vmax.f32 %v18168_v47, %v3404_v36  ;;  %v3399_v14 = vadd.f32 %v14839_v8, %v3398_v13  ;;  %v15645_v1 = vmax.f32 %v5527_v7, %v4649_v10  ;;  %10850 = vmatprep.mubr.msk.f32.mxu0 %vm619_vm1, %v328_v51  ;;  %v18171_v10 = vld [vmem:[#allocation42_spill] sm:$0xff]  ;;  %v15671_v62 = vpop.f32.mrf.mxu1  ;;  %v18180_v47 = vmax.f32 %v15207_v48, %v15201_v57  ;;  %v334_v48 = vld [vmem:[%s17653_s0 + $0x970] sm:$0xff] }
 0x259   :  { %v10705_v20 = vpop.f32.mrf.mxu0  ;;  %v15666_v7 = vadd.f32 %v14839_v8, %v18171_v10  ;;  %18172 = vst [vmem:[#allocation60_spill] sm:$0xff] %v15671_v62  ;;  %v18175_v10 = vmax.f32 %v15173_v52, %v15166_v56  ;;  %v332_v56 = vld [vmem:[%s17653_s0 + $0x960] sm:$0xff] }
 0x25a   :  { %v15655_v54 = vmax.f32 %v18170_v50, %v3399_v14  ;;  %v3414_v58 = vadd.f32 %v14839_v8, %v10705_v20  ;;  %v18173_v50 = vmax.f32 %v15159_v29, %v15145_v63  ;;  %v18174_v14 = vld [vmem:[#allocation45_spill] sm:$0xff]  ;;  %v15705_v52 = vpop.f32.mrf.mxu1 }
 0x25b   :  { %v3408_v12 = vpop.f32.mrf.mxu0  ;;  %v15683_v34 = vadd.f32 %v14839_v8, %v18174_v14  ;;  %10851 = vmatmul.mubr.msk.f32.gmra.mxu0 %vm619_vm1, %v329_v3  ;;  %v331_v29 = vld [vmem:[%s17653_s0 + $0x958] sm:$0xff]  ;;  %18177 = vst [vmem:[#allocation61_spill] sm:$0xff] %v15705_v52 }
 0x25c   :  { %v15676_v13 = vmax.f32 %v18173_v50, %v3414_v58  ;;  %v3409_v51 = vadd.f32 %v14839_v8, %v3408_v12  ;;  %10853 = vmatprep.mubr.msk.f32.mxu0 %vm619_vm1, %v330_v60  ;;  %v18176_v12 = vld [vmem:[#allocation49_spill] sm:$0xff]  ;;  %v18178_v60 = vmax.f32 %v15194_v38, %v15184_v21  ;;  %v333_v38 = vld [vmem:[%s17653_s0 + $0x968] sm:$0xff]  ;;  %v15739_v57 = vpop.f32.mrf.mxu1 }
 0x25d   :  { %v10708_v20 = vpop.f32.mrf.mxu0  ;;  %v15700_v50 = vadd.f32 %v14839_v8, %v18176_v12  ;;  %18182 = vst [vmem:[#allocation57_spill] sm:$0xff] %v15739_v57 }
 0x25e   :  { %v15689_v36 = vmax.f32 %v18175_v10, %v3409_v51  ;;  %v3424_v63 = vadd.f32 %v14839_v8, %v10708_v20  ;;  %v18179_v10 = vld [vmem:[#allocation54_spill] sm:$0xff]  ;;  %v18185_v20 = vmax.f32 %v15241_v19, %v15235_v27  ;;  %v15773_v27 = vpop.f32.mrf.mxu1 }
 0x25f   :  { %v3418_v3 = vpop.f32.mrf.mxu0  ;;  %v15717_v12 = vadd.f32 %v14839_v8, %v18179_v10  ;;  %10854 = vmatmul.mubr.msk.f32.gmra.mxu0 %vm619_vm1, %v331_v29  ;;  %v18184_v10 = vld [vmem:[#allocation62_spill] sm:$0xff]  ;;  %18187 = vst [vmem:[#allocation18_spill] sm:$0xff] %v15773_v27 }
 0x260   :  { %v15710_v51 = vmax.f32 %v18178_v60, %v3424_v63  ;;  %v3419_v14 = vadd.f32 %v14839_v8, %v3418_v3  ;;  %10856 = vmatprep.mubr.msk.f32.mxu0 %vm619_vm1, %v332_v56  ;;  %v18181_v3 = vld [vmem:[#allocation58_spill] sm:$0xff] }
 0x261   :  { %v10711_v58 = vpop.f32.mrf.mxu0  ;;  %v15734_v60 = vadd.f32 %v14839_v8, %v18181_v3  ;;  %v15751_v3 = vadd.f32 %v14839_v8, %v18184_v10  ;;  %v336_v19 = vld [vmem:[%s17653_s0 + $0x980] sm:$0xff]  ;;  %v18189_v10 = vld [vmem:[#allocation71_spill] sm:$0xff] }
 0x262   :  { %v15723_v62 = vmax.f32 %v18180_v47, %v3419_v14  ;;  %v3434_v21 = vadd.f32 %v14839_v8, %v10711_v58  ;;  %v18183_v47 = vmax.f32 %v15228_v0, %v15218_v2  ;;  %v335_v0 = vld [vmem:[%s17653_s0 + $0x978] sm:$0xff]  ;;  %v18190_v14 = vmax.f32 %v15275_v22, %v15269_v30 }
 0x263   :  { %v3428_v29 = vpop.f32.mrf.mxu0  ;;  %10857 = vmatmul.mubr.msk.f32.gmra.mxu0 %vm619_vm1, %v333_v38 }
 0x264   :  { %v15744_v58 = vmax.f32 %v18183_v47, %v3434_v21  ;;  %v3429_v56 = vadd.f32 %v14839_v8, %v3428_v29  ;;  %10859 = vmatprep.mubr.msk.f32.mxu0 %vm619_vm1, %v334_v48  ;;  %v18186_v29 = vld [vmem:[#allocation67_spill] sm:$0xff] }
 0x265   :  { %v10714_v63 = vpop.f32.mrf.mxu0  ;;  %v15768_v47 = vadd.f32 %v14839_v8, %v18186_v29  ;;  %v15785_v29 = vadd.f32 %v14839_v8, %v18189_v10  ;;  %v18195_v10 = vld [vmem:[#allocation73_spill] sm:$0xff] }
 0x266   :  { %v15757_v57 = vmax.f32 %v18185_v20, %v3429_v56  ;;  %v3444_v2 = vadd.f32 %v14839_v8, %v10714_v63  ;;  %v18188_v20 = vmax.f32 %v15262_v15, %v15252_v6  ;;  %v337_v15 = vld [vmem:[%s17653_s0 + $0x988] sm:$0xff]  ;;  %v18196_v56 = vmax.f32 %v15309_v28, %v15303_v40  ;;  %v340_v28 = vld [vmem:[%s17653_s0 + $0x9a0] sm:$0xff] }
 0x267   :  { %v3438_v38 = vpop.f32.mrf.mxu0  ;;  %10860 = vmatmul.mubr.msk.f32.gmra.mxu0 %vm619_vm1, %v335_v0  ;;  %v15803_v0 = vld [vmem:[%s17654_s2] ss:$0 sm:$0xff] }
 0x268   :  { %v15778_v63 = vmax.f32 %v18188_v20, %v3444_v2  ;;  %v3439_v48 = vadd.f32 %v14839_v8, %v3438_v38  ;;  %10862 = vmatprep.mubr.msk.f32.mxu0 %vm619_vm1, %v336_v19  ;;  %v18191_v38 = vld [vmem:[#allocation72_spill] sm:$0xff] }
 0x269   :  { %v10717_v21 = vpop.f32.mrf.mxu0  ;;  %v15807_v22 = vadd.f32 %v15803_v0, %v18191_v38  ;;  %v15824_v38 = vadd.f32 %v15803_v0, %v18195_v10 }
 0x26a   :  { %v15791_v27 = vmax.f32 %v18190_v14, %v3439_v48  ;;  %v3454_v6 = vadd.f32 %v14839_v8, %v10717_v21  ;;  %v338_v8 = vld [vmem:[%s17653_s0 + $0x990] sm:$0xff]  ;;  %v15812_v14 = vpop.f32.mrf.mxu1  ;;  %v18194_v21 = vmax.f32 %v15296_v59, %v15286_v35  ;;  %v339_v59 = vld [vmem:[%s17653_s0 + $0x998] sm:$0xff] }
 0x26b   :  { %18192 = vst [vmem:[#allocation19_spill] sm:$0xff] %v15807_v22  ;;  %v3448_v30 = vpop.f32.mrf.mxu0  ;;  %18193 = vst [vmem:[#allocation70_spill] sm:$0xff] %v15812_v14  ;;  %10863 = vmatmul.mubr.msk.f32.gmra.mxu0 %vm619_vm1, %v337_v15  ;;  %v18204_v48 = vld [vmem:[#allocation44_spill] sm:$0xff] }
 0x26c   :  { %v15817_v19 = vmax.f32 %v18194_v21, %v3454_v6  ;;  %v3449_v20 = vadd.f32 %v15803_v0, %v3448_v30  ;;  %10865 = vmatprep.mubr.msk.f32.mxu0 %vm619_vm1, %v338_v8  ;;  %v18197_v30 = vld [vmem:[#allocation11_spill] sm:$0xff]  ;;  %v15846_v40 = vpop.f32.mrf.mxu1 }
 0x26d   :  { %v10720_v2 = vpop.f32.mrf.mxu0  ;;  %v15841_v21 = vadd.f32 %v15803_v0, %v18197_v30  ;;  %18199 = vst [vmem:[#allocation63_spill] sm:$0xff] %v15846_v40  ;;  %v15858_v30 = vadd.f32 %v15803_v0, %v18204_v48  ;;  %v18205_v40 = vmax.f32 %v15343_v17, %v15337_v44  ;;  %v342_v17 = vld [vmem:[%s17653_s0 + $0x9b0] sm:$0xff]  ;;  %v18211_v6 = vld [vmem:[#allocation75_spill] sm:$0xff] }
 0x26e   :  { %v15830_v14 = vmax.f32 %v18196_v56, %v3449_v20  ;;  %v3464_v35 = vadd.f32 %v15803_v0, %v10720_v2  ;;  %v18200_v56 = vld [vmem:[#allocation5_spill] sm:$0xff]  ;;  %v18201_v2 = vld [vmem:[#allocation32_spill] sm:$0xff]  ;;  %v15880_v44 = vpop.f32.mrf.mxu1 }
 0x26f   :  { %18198 = vst [vmem:[#allocation65_spill] sm:$0xff] %v15841_v21  ;;  %v3458_v15 = vpop.f32.mrf.mxu0  ;;  %v18202_v8 = vmax.f32 %v18200_v56, %v18201_v2  ;;  %10866 = vmatmul.mubr.msk.f32.gmra.mxu0 %vm619_vm1, %v339_v59  ;;  %v18206_v56 = vld [vmem:[#allocation47_spill] sm:$0xff]  ;;  %18207 = vst [vmem:[#allocation8_spill] sm:$0xff] %v15880_v44  ;;  %v18212_v44 = vmax.f32 %v15377_v26, %v15371_v23  ;;  %v344_v26 = vld [vmem:[%s17653_s0 + $0x9c0] sm:$0xff] }
 0x270   :  { %v3459_v10 = vadd.f32 %v15803_v0, %v3458_v15  ;;  %10868 = vmatprep.mubr.msk.f32.mxu0 %vm619_vm1, %v340_v28  ;;  %v341_v15 = vld [vmem:[%s17653_s0 + $0x9a8] sm:$0xff]  ;;  %v15875_v2 = vadd.f32 %v15803_v0, %v18206_v56  ;;  %v15892_v56 = vadd.f32 %v15803_v0, %v18211_v6  ;;  %v15914_v23 = vpop.f32.mrf.mxu1 }
 0x271   :  { %v15851_v20 = vmax.f32 %v18202_v8, %v3464_v35  ;;  %v10723_v52 = vpop.f32.mrf.mxu0  ;;  %v18209_v28 = vld [vmem:[#allocation35_spill] sm:$0xff]  ;;  %18214 = vst [vmem:[#allocation20_spill] sm:$0xff] %v15914_v23 }
 0x272   :  { %v15864_v22 = vmax.f32 %v18205_v40, %v3459_v10  ;;  %v3474_v35 = vadd.f32 %v15803_v0, %v10723_v52  ;;  %v18208_v52 = vld [vmem:[#allocation6_spill] sm:$0xff] }
 0x273   :  { %18203 = vst [vmem:[#allocation64_spill] sm:$0xff] %v15851_v20  ;;  %v3468_v59 = vpop.f32.mrf.mxu0  ;;  %v18210_v40 = vmax.f32 %v18208_v52, %v18209_v28  ;;  %10869 = vmatmul.mubr.msk.f32.gmra.mxu0 %vm619_vm1, %v341_v15  ;;  %v18213_v52 = vld [vmem:[#allocation51_spill] sm:$0xff] }
 0x274   :  { %v3469_v10 = vadd.f32 %v15803_v0, %v3468_v59  ;;  %10871 = vmatprep.mubr.msk.f32.mxu0 %vm619_vm1, %v342_v17  ;;  %v343_v59 = vld [vmem:[%s17653_s0 + $0x9b8] sm:$0xff]  ;;  %v15909_v28 = vadd.f32 %v15803_v0, %v18213_v52  ;;  %v18217_v52 = vmax.f32 %v15411_v32, %v15405_v61  ;;  %v346_v32 = vld [vmem:[%s17653_s0 + $0x9d0] sm:$0xff]  ;;  %v15944_v61 = vpop.f32.mrf.mxu1 }
 0x275   :  { %v15885_v8 = vmax.f32 %v18210_v40, %v3474_v35  ;;  %v10726_v21 = vpop.f32.mrf.mxu0  ;;  %18219 = vst [vmem:[#allocation66_spill] sm:$0xff] %v15944_v61 }
 0x276   :  { %v15898_v20 = vmax.f32 %v18212_v44, %v3469_v10  ;;  %v3484_v35 = vadd.f32 %v15803_v0, %v10726_v21  ;;  %v18215_v21 = vld [vmem:[#allocation7_spill] sm:$0xff] }
 0x277   :  { %v3478_v15 = vpop.f32.mrf.mxu0  ;;  %v18216_v17 = vmax.f32 %v15398_v25, %v18215_v21  ;;  %10872 = vmatmul.mubr.msk.f32.gmra.mxu0 %vm619_vm1, %v343_v59  ;;  %v345_v25 = vld [vmem:[%s17653_s0 + $0x9c8] sm:$0xff] }
 0x278   :  { %v3479_v40 = vadd.f32 %v15803_v0, %v3478_v15  ;;  %10874 = vmatprep.mubr.msk.f32.mxu0 %vm619_vm1, %v344_v26  ;;  %v18218_v15 = vld [vmem:[#allocation76_spill] sm:$0xff] }
 0x279   :  { %v15919_v44 = vmax.f32 %v18216_v17, %v3484_v35  ;;  %v10729_v6 = vpop.f32.mrf.mxu0  ;;  %v15939_v21 = vadd.f32 %v15803_v0, %v18218_v15  ;;  %v18222_v15 = vmax.f32 %v15445_v16, %v15439_v24  ;;  %v348_v16 = vld [vmem:[%s17653_s0 + $0x9e0] sm:$0xff]  ;;  %v15970_v24 = vpop.f32.mrf.mxu1 }
 0x27a   :  { %v15928_v48 = vmax.f32 %v18217_v52, %v3479_v40  ;;  %v3494_v23 = vadd.f32 %v15803_v0, %v10729_v6  ;;  %v18220_v6 = vld [vmem:[#allocation40_spill] sm:$0xff]  ;;  %18224 = vst [vmem:[#allocation74_spill] sm:$0xff] %v15970_v24 }
 0x27b   :  { %v3488_v59 = vpop.f32.mrf.mxu0  ;;  %v18221_v26 = vmax.f32 %v15432_v41, %v18220_v6  ;;  %10875 = vmatmul.mubr.msk.f32.gmra.mxu0 %vm619_vm1, %v345_v25  ;;  %v347_v41 = vld [vmem:[%s17653_s0 + $0x9d8] sm:$0xff]  ;;  %v15991_v24 = vpop.f32.mrf.mxu1 }
 0x27c   :  { %v3489_v40 = vadd.f32 %v15803_v0, %v3488_v59  ;;  %10877 = vmatprep.mubr.msk.f32.mxu0 %vm619_vm1, %v346_v32  ;;  %v18223_v59 = vld [vmem:[#allocation14_spill] sm:$0xff]  ;;  %18228 = vst [vmem:[#allocation68_spill] sm:$0xff] %v15991_v24 }
 0x27d   :  { %v15949_v17 = vmax.f32 %v18221_v26, %v3494_v23  ;;  %v10732_v52 = vpop.f32.mrf.mxu0  ;;  %v4764_v6 = vadd.f32 %v15803_v0, %v18223_v59  ;;  %v18225_v26 = vld [vmem:[#allocation10_spill] sm:$0xff]  ;;  %v349_v23 = vld [vmem:[%s17653_s0 + $0x9e8] sm:$0xff] }
 0x27e   :  { %v15956_v35 = vmax.f32 %v18222_v15, %v3489_v40  ;;  %v3504_v10 = vadd.f32 %v15803_v0, %v10732_v52 }
 0x27f   :  { %v3498_v25 = vpop.f32.mrf.mxu0  ;;  %10878 = vmatmul.mubr.msk.f32.gmra.mxu0 %vm619_vm1, %v347_v41  ;;  %v350_v41 = vld [vmem:[%s17653_s0 + $0x9f0] sm:$0xff] }
 0x280   :  { %v5586_v40 = vmax.f32 %v18225_v26, %v3504_v10  ;;  %v15974_v32 = vadd.f32 %v15803_v0, %v3498_v25  ;;  %10880 = vmatprep.mubr.msk.f32.mxu0 %vm619_vm1, %v348_v16  ;;  %v18227_v10 = vld [vmem:[#allocation79_spill] sm:$0xff] }
 0x281   :  { %v10735_v52 = vpop.f32.mrf.mxu0  ;;  %v4774_v25 = vadd.f32 %v15803_v0, %v18227_v10  ;;  %v351_v10 = vld [vmem:[%s17653_s0 + $0x9f8] sm:$0xff] }
 0x282   :  { %v3514_v59 = vadd.f32 %v15803_v0, %v10735_v52  ;;  %v15984_v61 = vmax.f32 %v5586_v40, %v4764_v6  ;;  %v18232_v6 = vld [vmem:[#allocation15_spill] sm:$0xff] }
 0x283   :  { %v3508_v26 = vpop.f32.mrf.mxu0  ;;  %10881 = vmatmul.mubr.msk.f32.gmra.mxu0 %vm619_vm1, %v349_v23  ;;  %v352_v23 = vld [vmem:[%s17653_s0 + $0xa00] sm:$0xff] }
 0x284   :  { %18226 = vst [vmem:[#allocation21_spill] sm:$0xff] %v15984_v61  ;;  %v5588_v52 = vmax.f32 %v15496_v33, %v3514_v59  ;;  %v15995_v16 = vadd.f32 %v15803_v0, %v3508_v26  ;;  %10883 = vmatprep.mubr.msk.f32.mxu0 %vm619_vm1, %v350_v41  ;;  %v18231_v33 = vld [vmem:[#allocation80_spill] sm:$0xff]  ;;  %v16012_v61 = vpop.f32.mrf.mxu1 }
 0x285   :  { %v10738_v15 = vpop.f32.mrf.mxu0  ;;  %v4784_v59 = vadd.f32 %v15803_v0, %v18231_v33  ;;  %v353_v33 = vld [vmem:[%s17653_s0 + $0xa08] sm:$0xff] }
 0x286   :  { %18229 = vst [vmem:[#allocation69_spill] sm:$0xff] %v15995_v16  ;;  %v3524_v40 = vadd.f32 %v15803_v0, %v10738_v15  ;;  %v16005_v24 = vmax.f32 %v5588_v52, %v4774_v25  ;;  %v16033_v53 = vpop.f32.mrf.mxu1 }
 0x287   :  { %v3518_v26 = vpop.f32.mrf.mxu0  ;;  %10884 = vmatmul.mubr.msk.f32.gmra.mxu0 %vm619_vm1, %v351_v10  ;;  %v354_v10 = vld [vmem:[%s17653_s0 + $0xa10] sm:$0xff]  ;;  %18235 = vst [vmem:[#allocation24_spill] sm:$0xff] %v16033_v53 }
 0x288   :  { %18230 = vst [vmem:[#allocation22_spill] sm:$0xff] %v16005_v24  ;;  %v5590_v15 = vmax.f32 %v18232_v6, %v3524_v40  ;;  %v16016_v41 = vadd.f32 %v15803_v0, %v3518_v26  ;;  %10886 = vmatprep.mubr.msk.f32.mxu0 %vm619_vm1, %v352_v23  ;;  %v18234_v6 = vld [vmem:[#allocation82_spill] sm:$0xff] }
 0x289   :  { %v10741_v16 = vpop.f32.mrf.mxu0  ;;  %v4794_v40 = vadd.f32 %v15803_v0, %v18234_v6  ;;  %v355_v6 = vld [vmem:[%s17653_s0 + $0xa18] sm:$0xff] }
 0x28a   :  { %v3534_v52 = vadd.f32 %v15803_v0, %v10741_v16  ;;  %v16026_v24 = vmax.f32 %v5590_v15, %v4784_v59 }
 0x28b   :  { %v3528_v26 = vpop.f32.mrf.mxu0  ;;  %10887 = vmatmul.mubr.msk.f32.gmra.mxu0 %vm619_vm1, %v353_v33  ;;  %v356_v33 = vld [vmem:[%s17653_s0 + $0xa20] sm:$0xff] }
 0x28c   :  { %18233 = vst [vmem:[#allocation23_spill] sm:$0xff] %v16026_v24  ;;  %v5592_v16 = vmax.f32 %v15540_v18, %v3534_v52  ;;  %v16037_v23 = vadd.f32 %v15803_v0, %v3528_v26  ;;  %10889 = vmatprep.mubr.msk.f32.mxu0 %vm619_vm1, %v354_v10  ;;  %v18238_v18 = vld [vmem:[#allocation84_spill] sm:$0xff]  ;;  %v16054_v24 = vpop.f32.mrf.mxu1 }
 0x28d   :  { %v10744_v25 = vpop.f32.mrf.mxu0  ;;  %v4804_v52 = vadd.f32 %v15803_v0, %v18238_v18  ;;  %v357_v18 = vld [vmem:[%s17653_s0 + $0xa28] sm:$0xff] }
 0x28e   :  { %18236 = vst [vmem:[#allocation55_spill] sm:$0xff] %v16037_v23  ;;  %v3544_v15 = vadd.f32 %v15803_v0, %v10744_v25  ;;  %v16047_v53 = vmax.f32 %v5592_v16, %v4794_v40  ;;  %v16075_v23 = vpop.f32.mrf.mxu1 }
 0x28f   :  { %v3538_v26 = vpop.f32.mrf.mxu0  ;;  %10890 = vmatmul.mubr.msk.f32.gmra.mxu0 %vm619_vm1, %v355_v6  ;;  %v358_v6 = vld [vmem:[%s17653_s0 + $0xa30] sm:$0xff]  ;;  %18241 = vst [vmem:[#allocation27_spill] sm:$0xff] %v16075_v23 }
 0x290   :  { %18237 = vst [vmem:[#allocation25_spill] sm:$0xff] %v16047_v53  ;;  %v5594_v25 = vmax.f32 %v15562_v55, %v3544_v15  ;;  %v16058_v10 = vadd.f32 %v15803_v0, %v3538_v26  ;;  %10892 = vmatprep.mubr.msk.f32.mxu0 %vm619_vm1, %v356_v33  ;;  %v18240_v55 = vld [vmem:[#allocation86_spill] sm:$0xff] }
 0x291   :  { %v10747_v59 = vpop.f32.mrf.mxu0  ;;  %v4814_v15 = vadd.f32 %v15803_v0, %v18240_v55  ;;  %v359_v55 = vld [vmem:[%s17653_s0 + $0xa38] sm:$0xff] }
 0x292   :  { %v3554_v16 = vadd.f32 %v15803_v0, %v10747_v59  ;;  %v16068_v53 = vmax.f32 %v5594_v25, %v4804_v52 }
 0x293   :  { %v3548_v26 = vpop.f32.mrf.mxu0  ;;  %10893 = vmatmul.mubr.msk.f32.gmra.mxu0 %vm619_vm1, %v357_v18  ;;  %v360_v18 = vld [vmem:[%s17653_s0 + $0xa40] sm:$0xff] }
 0x294   :  { %18239 = vst [vmem:[#allocation26_spill] sm:$0xff] %v16068_v53  ;;  %v5596_v59 = vmax.f32 %v15584_v42, %v3554_v16  ;;  %v16079_v33 = vadd.f32 %v15803_v0, %v3548_v26  ;;  %10895 = vmatprep.mubr.msk.f32.mxu0 %vm619_vm1, %v358_v6  ;;  %v18244_v42 = vld [vmem:[#allocation3_spill] sm:$0xff]  ;;  %v16096_v53 = vpop.f32.mrf.mxu1 }
 0x295   :  { %v10750_v40 = vpop.f32.mrf.mxu0  ;;  %v4824_v16 = vadd.f32 %v15803_v0, %v18244_v42  ;;  %v361_v42 = vld [vmem:[%s17653_s0 + $0xa48] sm:$0xff] }
 0x296   :  { %18242 = vst [vmem:[#allocation28_spill] sm:$0xff] %v16079_v33  ;;  %v3564_v25 = vadd.f32 %v15803_v0, %v10750_v40  ;;  %v16089_v23 = vmax.f32 %v5596_v59, %v4814_v15  ;;  %v16117_v33 = vpop.f32.mrf.mxu1 }
 0x297   :  { %v3558_v26 = vpop.f32.mrf.mxu0  ;;  %10896 = vmatmul.mubr.msk.f32.gmra.mxu0 %vm619_vm1, %v359_v55  ;;  %v362_v55 = vld [vmem:[%s17653_s0 + $0xa50] sm:$0xff]  ;;  %18246 = vst [vmem:[#allocation30_spill] sm:$0xff] %v16117_v33 }
 0x298   :  { %18243 = vst [vmem:[#allocation29_spill] sm:$0xff] %v16089_v23  ;;  %v5598_v40 = vmax.f32 %v15606_v11, %v3564_v25  ;;  %v16100_v6 = vadd.f32 %v15803_v0, %v3558_v26  ;;  %10898 = vmatprep.mubr.msk.f32.mxu0 %vm619_vm1, %v360_v18  ;;  %v18245_v11 = vld [vmem:[#allocation4_spill] sm:$0xff] }
 0x299   :  { %v10753_v52 = vpop.f32.mrf.mxu0  ;;  %v4834_v25 = vadd.f32 %v15803_v0, %v18245_v11  ;;  %v363_v11 = vld [vmem:[%s17653_s0 + $0xa58] sm:$0xff] }
 0x29a   :  { %v3574_v59 = vadd.f32 %v15803_v0, %v10753_v52  ;;  %v16110_v23 = vmax.f32 %v5598_v40, %v4824_v16  ;;  %v16140_v16 = vpop.f32.mrf.mxu1 }
 0x29b   :  { %v3568_v26 = vpop.f32.mrf.mxu0  ;;  %10899 = vmatmul.mubr.msk.f32.gmra.mxu0 %vm619_vm1, %v361_v42  ;;  %v364_v42 = vld [vmem:[%s17653_s0 + $0xa60] sm:$0xff] }
 0x29c   :  { %v5600_v52 = vmax.f32 %v15628_v37, %v3574_v59  ;;  %v16121_v18 = vadd.f32 %v15803_v0, %v3568_v26  ;;  %10901 = vmatprep.mubr.msk.f32.mxu0 %vm619_vm1, %v362_v55  ;;  %v18249_v37 = vld [vmem:[#allocation39_spill] sm:$0xff] }
 0x29d   :  { %v10756_v15 = vpop.f32.mrf.mxu0  ;;  %v16135_v59 = vadd.f32 %v15803_v0, %v18249_v37 }
 0x29e   :  { %18247 = vst [vmem:[#allocation33_spill] sm:$0xff] %v16121_v18  ;;  %v3584_v40 = vadd.f32 %v15803_v0, %v10756_v15  ;;  %v16131_v33 = vmax.f32 %v5600_v52, %v4834_v25  ;;  %v18250_v15 = vmax.f32 %v15642_v45, %v15632_v5  ;;  %v18251_v52 = vmax.f32 %v15655_v54, %v15649_v39  ;;  %v365_v5 = vld [vmem:[%s17653_s0 + $0xa68] sm:$0xff]  ;;  %v366_v54 = vld [vmem:[%s17653_s0 + $0xa70] sm:$0xff]  ;;  %v16168_v39 = vpop.f32.mrf.mxu1 }
 0x29f   :  { %v3578_v26 = vpop.f32.mrf.mxu0  ;;  %10902 = vmatmul.mubr.msk.f32.gmra.mxu0 %vm619_vm1, %v363_v11  ;;  %18253 = vst [vmem:[#allocation37_spill] sm:$0xff] %v16168_v39 }
 0x2a0   :  { %18248 = vst [vmem:[#allocation34_spill] sm:$0xff] %v16131_v33  ;;  %v16145_v55 = vmax.f32 %v18250_v15, %v3584_v40  ;;  %v3579_v18 = vadd.f32 %v15803_v0, %v3578_v26  ;;  %10904 = vmatprep.mubr.msk.f32.mxu0 %vm619_vm1, %v364_v42  ;;  %v18252_v40 = vld [vmem:[#allocation43_spill] sm:$0xff] }
 0x2a1   :  { %v10759_v25 = vpop.f32.mrf.mxu0  ;;  %v16163_v26 = vadd.f32 %v15803_v0, %v18252_v40 }
 0x2a2   :  { %v16152_v37 = vmax.f32 %v18251_v52, %v3579_v18  ;;  %v3594_v33 = vadd.f32 %v15803_v0, %v10759_v25  ;;  %v18254_v18 = vmax.f32 %v15676_v13, %v15666_v7  ;;  %v18255_v52 = vmax.f32 %v15689_v36, %v15683_v34  ;;  %v367_v7 = vld [vmem:[%s17653_s0 + $0xa78] sm:$0xff]  ;;  %v368_v36 = vld [vmem:[%s17653_s0 + $0xa80] sm:$0xff]  ;;  %v16196_v34 = vpop.f32.mrf.mxu1 }
 0x2a3   :  { %v3588_v11 = vpop.f32.mrf.mxu0  ;;  %10905 = vmatmul.mubr.msk.f32.gmra.mxu0 %vm619_vm1, %v365_v5 }
 0x2a4   :  { %v16173_v42 = vmax.f32 %v18254_v18, %v3594_v33  ;;  %v3589_v15 = vadd.f32 %v15803_v0, %v3588_v11  ;;  %10907 = vmatprep.mubr.msk.f32.mxu0 %vm619_vm1, %v366_v54  ;;  %v18256_v33 = vld [vmem:[#allocation13_spill] sm:$0xff]  ;;  %v18257_v54 = vmax.f32 %v15710_v51, %v15700_v50  ;;  %v369_v50 = vld [vmem:[%s17653_s0 + $0xa88] sm:$0xff] }
 0x2a5   :  { %v10762_v25 = vpop.f32.mrf.mxu0  ;;  %v16191_v11 = vadd.f32 %v15803_v0, %v18256_v33 }
 0x2a6   :  { %v16180_v40 = vmax.f32 %v18255_v52, %v3589_v15  ;;  %v3604_v45 = vadd.f32 %v15803_v0, %v10762_v25  ;;  %v18258_v52 = vmax.f32 %v15723_v62, %v15717_v12  ;;  %v370_v62 = vld [vmem:[%s17653_s0 + $0xa90] sm:$0xff]  ;;  %v16224_v12 = vpop.f32.mrf.mxu1 }
 0x2a7   :  { %v3598_v5 = vpop.f32.mrf.mxu0  ;;  %10908 = vmatmul.mubr.msk.f32.gmra.mxu0 %vm619_vm1, %v367_v7  ;;  %18260 = vst [vmem:[#allocation38_spill] sm:$0xff] %v16224_v12  ;;  %v18266_v12 = vld [vmem:[#allocation53_spill] sm:$0xff] }
 0x2a8   :  { %v16201_v18 = vmax.f32 %v18257_v54, %v3604_v45  ;;  %v3599_v15 = vadd.f32 %v15803_v0, %v3598_v5  ;;  %10910 = vmatprep.mubr.msk.f32.mxu0 %vm619_vm1, %v368_v36  ;;  %v18259_v45 = vld [vmem:[#allocation16_spill] sm:$0xff]  ;;  %v18261_v36 = vmax.f32 %v15744_v58, %v15734_v60  ;;  %v371_v60 = vld [vmem:[%s17653_s0 + $0xa98] sm:$0xff] }
 0x2a9   :  { %v10765_v25 = vpop.f32.mrf.mxu0  ;;  %v16219_v5 = vadd.f32 %v15803_v0, %v18259_v45  ;;  %v18272_v58 = vld [vmem:[#allocation61_spill] sm:$0xff] }
 0x2aa   :  { %v16208_v33 = vmax.f32 %v18258_v52, %v3599_v15  ;;  %v3614_v13 = vadd.f32 %v15803_v0, %v10765_v25  ;;  %v18262_v52 = vmax.f32 %v15757_v57, %v15751_v3  ;;  %v18264_v57 = vmax.f32 %v15778_v63, %v15768_v47 }
 0x2ab   :  { %v3608_v7 = vpop.f32.mrf.mxu0  ;;  %10911 = vmatmul.mubr.msk.f32.gmra.mxu0 %vm619_vm1, %v369_v50  ;;  %v16268_v47 = vadd.f32 %v15803_v0, %v18266_v12  ;;  %v18277_v12 = vld [vmem:[#allocation18_spill] sm:$0xff] }
 0x2ac   :  { %v16229_v54 = vmax.f32 %v18261_v36, %v3614_v13  ;;  %v3609_v15 = vadd.f32 %v15803_v0, %v3608_v7  ;;  %10913 = vmatprep.mubr.msk.f32.mxu0 %vm619_vm1, %v370_v62  ;;  %v18263_v13 = vld [vmem:[#allocation46_spill] sm:$0xff]  ;;  %v16249_v36 = vpop.f32.mrf.mxu1 }
 0x2ad   :  { %v10768_v25 = vpop.f32.mrf.mxu0  ;;  %v16247_v7 = vadd.f32 %v15803_v0, %v18263_v13  ;;  %18267 = vst [vmem:[#allocation41_spill] sm:$0xff] %v16268_v47  ;;  %v16308_v47 = vadd.f32 %v15803_v0, %v18277_v12 }
 0x2ae   :  { %v16236_v45 = vmax.f32 %v18262_v52, %v3609_v15  ;;  %v3624_v51 = vadd.f32 %v15803_v0, %v10768_v25  ;;  %v18265_v25 = vmax.f32 %v15791_v27, %v15785_v29 }
 0x2af   :  { %v3618_v50 = vpop.f32.mrf.mxu0  ;;  %10914 = vmatmul.mubr.msk.f32.gmra.mxu0 %vm619_vm1, %v371_v60  ;;  %18278 = vst [vmem:[#allocation45_spill] sm:$0xff] %v16308_v47  ;;  %v18286_v47 = vld [vmem:[#allocation20_spill] sm:$0xff] }
 0x2b0   :  { %v16254_v3 = vmax.f32 %v18264_v57, %v3624_v51  ;;  %v3619_v62 = vadd.f32 %v15803_v0, %v3618_v50  ;;  %v16270_v51 = vpop.f32.mrf.mxu1  ;;  %v18269_v50 = vld [vmem:[#allocation19_spill] sm:$0xff] }
 0x2b1   :  { %v10771_v15 = vpop.f32.mrf.mxu0  ;;  %18268 = vst [vmem:[#allocation42_spill] sm:$0xff] %v16270_v51  ;;  %v18270_v60 = vmax.f32 %v15817_v19, %v18269_v50  ;;  %v16288_v51 = vadd.f32 %v15803_v0, %v18272_v58  ;;  %v18273_v50 = vld [vmem:[#allocation64_spill] sm:$0xff] }
 0x2b2   :  { %v16261_v52 = vmax.f32 %v18265_v25, %v3619_v62  ;;  %v3634_v13 = vadd.f32 %v15803_v0, %v10771_v15  ;;  %v18271_v62 = vmax.f32 %v15830_v14, %v15824_v38 }
 0x2b3   :  { %v3628_v63 = vpop.f32.mrf.mxu0 }
 0x2b4   :  { %v16275_v57 = vmax.f32 %v18270_v60, %v3634_v13  ;;  %v3629_v27 = vadd.f32 %v15803_v0, %v3628_v63  ;;  %v16290_v13 = vpop.f32.mrf.mxu1  ;;  %v18274_v63 = vld [vmem:[#allocation65_spill] sm:$0xff] }
 0x2b5   :  { %v10774_v29 = vpop.f32.mrf.mxu0  ;;  %v18275_v60 = vmax.f32 %v18273_v50, %v18274_v63  ;;  %v18280_v63 = vld [vmem:[#allocation12_spill] sm:$0xff] }
 0x2b6   :  { %v16281_v15 = vmax.f32 %v18271_v62, %v3629_v27  ;;  %v3644_v25 = vadd.f32 %v15803_v0, %v10774_v29  ;;  %v18276_v27 = vmax.f32 %v15864_v22, %v15858_v30  ;;  %v18281_v22 = vmax.f32 %v15885_v8, %v15875_v2 }
 0x2b7   :  { %v3638_v19 = vpop.f32.mrf.mxu0 }
 0x2b8   :  { %v16295_v39 = vmax.f32 %v18275_v60, %v3644_v25  ;;  %v3639_v14 = vadd.f32 %v15803_v0, %v3638_v19  ;;  %v16310_v25 = vpop.f32.mrf.mxu1  ;;  %v4739_v19 = vadd.f32 %v15803_v0, %v18280_v63 }
 0x2b9   :  { %v10777_v38 = vpop.f32.mrf.mxu0  ;;  %18279 = vst [vmem:[#allocation49_spill] sm:$0xff] %v16310_v25  ;;  %v18283_v25 = vld [vmem:[#allocation63_spill] sm:$0xff] }
 0x2ba   :  { %v16301_v29 = vmax.f32 %v18276_v27, %v3639_v14  ;;  %v3654_v62 = vadd.f32 %v15803_v0, %v10777_v38  ;;  %v18282_v38 = vmax.f32 %v15898_v20, %v15892_v56  ;;  %v16330_v63 = vadd.f32 %v15803_v0, %v18283_v25  ;;  %v16332_v8 = vpop.f32.mrf.mxu1 }
 0x2bb   :  { %v3648_v50 = vpop.f32.mrf.mxu0  ;;  %v18285_v20 = vmax.f32 %v15919_v44, %v15909_v28  ;;  %v18289_v44 = vld [vmem:[#allocation78_spill] sm:$0xff] }
 0x2bc   :  { %v16317_v30 = vmax.f32 %v18281_v22, %v3654_v62  ;;  %v3649_v60 = vadd.f32 %v15803_v0, %v3648_v50  ;;  %v5617_v62 = vmax.f32 %v15928_v48, %v4739_v19  ;;  %v18284_v50 = vld [vmem:[#allocation77_spill] sm:$0xff]  ;;  %v16350_v48 = vadd.f32 %v15803_v0, %v18286_v47 }
 0x2bd   :  { %v10780_v14 = vpop.f32.mrf.mxu0  ;;  %v4749_v22 = vadd.f32 %v15803_v0, %v18284_v50  ;;  %v16352_v50 = vpop.f32.mrf.mxu1 }
 0x2be   :  { %v16323_v27 = vmax.f32 %v18282_v38, %v3649_v60  ;;  %v3664_v12 = vadd.f32 %v15803_v0, %v10780_v14  ;;  %18287 = vst [vmem:[#allocation54_spill] sm:$0xff] %v16350_v48  ;;  %18288 = vst [vmem:[#allocation58_spill] sm:$0xff] %v16352_v50  ;;  %v18293_v50 = vld [vmem:[#allocation74_spill] sm:$0xff] }
 0x2bf   :  { %v3658_v2 = vpop.f32.mrf.mxu0  ;;  %v5619_v28 = vmax.f32 %v15956_v35, %v4749_v22  ;;  %v4944_v35 = vadd.f32 %v15803_v0, %v18293_v50 }
 0x2c0   :  { %v16340_v56 = vmax.f32 %v18285_v20, %v3664_v12  ;;  %v3659_v60 = vadd.f32 %v15803_v0, %v3658_v2  ;;  %v4759_v12 = vadd.f32 %v15803_v0, %v18289_v44  ;;  %v18290_v2 = vmax.f32 %v15949_v17, %v15939_v21  ;;  %v16370_v44 = vpop.f32.mrf.mxu1 }
 0x2c1   :  { %v10783_v14 = vpop.f32.mrf.mxu0  ;;  %v18294_v21 = vmax.f32 %v15485_v4, %v15974_v32  ;;  %v4954_v4 = vadd.f32 %v15803_v0, %v16012_v61 }
 0x2c2   :  { %v16343_v38 = vmax.f32 %v5617_v62, %v3659_v60  ;;  %v3674_v25 = vadd.f32 %v15803_v0, %v10783_v14 }
 0x2c3   :  { %v3668_v19 = vpop.f32.mrf.mxu0  ;;  %v16375_v17 = vmax.f32 %v18294_v21, %v4759_v12  ;;  %v16390_v12 = vpop.f32.mrf.mxu1  ;;  %v18298_v21 = vld [vmem:[#allocation52_spill] sm:$0xff] }
 0x2c4   :  { %v16360_v62 = vmax.f32 %v18290_v2, %v3674_v25  ;;  %v3669_v20 = vadd.f32 %v15803_v0, %v3668_v19  ;;  %v18295_v25 = vld [vmem:[#allocation59_spill] sm:$0xff]  ;;  %18297 = vst [vmem:[#allocation71_spill] sm:$0xff] %v16390_v12 }
 0x2c5   :  { %v10786_v60 = vpop.f32.mrf.mxu0  ;;  %v4769_v19 = vadd.f32 %v15803_v0, %v18295_v25  ;;  %v18299_v25 = vld [vmem:[#allocation69_spill] sm:$0xff] }
 0x2c6   :  { %18291 = vst [vmem:[#allocation62_spill] sm:$0xff] %v16360_v62  ;;  %v16363_v14 = vmax.f32 %v5619_v28, %v3669_v20  ;;  %v3684_v47 = vadd.f32 %v15803_v0, %v10786_v60  ;;  %v18296_v28 = vld [vmem:[#allocation21_spill] sm:$0xff] }
 0x2c7   :  { %v3678_v22 = vpop.f32.mrf.mxu0 }
 0x2c8   :  { %18292 = vst [vmem:[#allocation67_spill] sm:$0xff] %v16363_v14  ;;  %v5658_v2 = vmax.f32 %v18296_v28, %v3684_v47  ;;  %v16381_v20 = vadd.f32 %v15803_v0, %v3678_v22  ;;  %v18300_v47 = vmax.f32 %v18298_v21, %v18299_v25  ;;  %v18301_v22 = vld [vmem:[#allocation81_spill] sm:$0xff]  ;;  %v18302_v14 = vld [vmem:[#allocation22_spill] sm:$0xff]  ;;  %v16410_v25 = vpop.f32.mrf.mxu1 }
 0x2c9   :  { %v10789_v60 = vpop.f32.mrf.mxu0  ;;  %v4779_v62 = vadd.f32 %v15803_v0, %v18301_v22  ;;  %v18307_v22 = vld [vmem:[#allocation23_spill] sm:$0xff] }
 0x2ca   :  { %v3694_v58 = vadd.f32 %v15803_v0, %v10789_v60  ;;  %v16386_v48 = vmax.f32 %v5658_v2, %v4944_v35  ;;  %v16395_v28 = vmax.f32 %v18300_v47, %v4769_v19  ;;  %v4964_v19 = vadd.f32 %v15803_v0, %v16054_v24 }
 0x2cb   :  { %v3688_v32 = vpop.f32.mrf.mxu0 }
 0x2cc   :  { %v5660_v50 = vmax.f32 %v18302_v14, %v3694_v58  ;;  %v16401_v60 = vadd.f32 %v15803_v0, %v3688_v32  ;;  %v18305_v58 = vmax.f32 %v15529_v43, %v16016_v41  ;;  %v18306_v32 = vld [vmem:[#allocation83_spill] sm:$0xff]  ;;  %v4974_v43 = vadd.f32 %v15803_v0, %v16096_v53 }
 0x2cd   :  { %v10792_v35 = vpop.f32.mrf.mxu0  ;;  %v4789_v47 = vadd.f32 %v15803_v0, %v18306_v32 }
 0x2ce   :  { %18303 = vst [vmem:[#allocation72_spill] sm:$0xff] %v16401_v60  ;;  %v3704_v2 = vadd.f32 %v15803_v0, %v10792_v35  ;;  %v16406_v12 = vmax.f32 %v5660_v50, %v4954_v4  ;;  %v16415_v14 = vmax.f32 %v18305_v58, %v4779_v62  ;;  %v16430_v62 = vpop.f32.mrf.mxu1  ;;  %v18310_v58 = vld [vmem:[#allocation55_spill] sm:$0xff]  ;;  %v18313_v60 = vld [vmem:[#allocation25_spill] sm:$0xff] }
 0x2cf   :  { %v3698_v21 = vpop.f32.mrf.mxu0  ;;  %18309 = vst [vmem:[#allocation5_spill] sm:$0xff] %v16430_v62 }
 0x2d0   :  { %18304 = vst [vmem:[#allocation73_spill] sm:$0xff] %v16406_v12  ;;  %v5662_v61 = vmax.f32 %v18307_v22, %v3704_v2  ;;  %v16421_v35 = vadd.f32 %v15803_v0, %v3698_v21  ;;  %v18311_v2 = vmax.f32 %v15551_v49, %v18310_v58  ;;  %v18312_v21 = vld [vmem:[#allocation85_spill] sm:$0xff]  ;;  %v4984_v49 = vadd.f32 %v15803_v0, %v16140_v16  ;;  %v16450_v58 = vpop.f32.mrf.mxu1 }
 0x2d1   :  { %v10795_v50 = vpop.f32.mrf.mxu0  ;;  %v4799_v22 = vadd.f32 %v15803_v0, %v18312_v21  ;;  %v18317_v21 = vld [vmem:[#allocation26_spill] sm:$0xff]  ;;  %v4994_v16 = vadd.f32 %v15803_v0, %v16196_v34  ;;  %v18324_v34 = vld [vmem:[#allocation31_spill] sm:$0xff] }
 0x2d2   :  { %v3714_v4 = vadd.f32 %v15803_v0, %v10795_v50  ;;  %v16426_v12 = vmax.f32 %v5662_v61, %v4964_v19  ;;  %v16435_v32 = vmax.f32 %v18311_v2, %v4789_v47 }
 0x2d3   :  { %v3708_v41 = vpop.f32.mrf.mxu0 }
 0x2d4   :  { %18308 = vst [vmem:[#allocation11_spill] sm:$0xff] %v16426_v12  ;;  %v5664_v24 = vmax.f32 %v18313_v60, %v3714_v4  ;;  %v16441_v50 = vadd.f32 %v15803_v0, %v3708_v41  ;;  %v18315_v60 = vmax.f32 %v15573_v31, %v16058_v10  ;;  %v18316_v41 = vld [vmem:[#allocation2_spill] sm:$0xff] }
 0x2d5   :  { %v10798_v61 = vpop.f32.mrf.mxu0  ;;  %v4809_v2 = vadd.f32 %v15803_v0, %v18316_v41 }
 0x2d6   :  { %v3724_v19 = vadd.f32 %v15803_v0, %v10798_v61  ;;  %v16446_v62 = vmax.f32 %v5664_v24, %v4974_v43  ;;  %v16455_v4 = vmax.f32 %v18315_v60, %v4799_v22  ;;  %v16470_v22 = vpop.f32.mrf.mxu1  ;;  %v18321_v60 = vmov 0.0   ;;  %v18325_v43 = vld [vmem:[#allocation29_spill] sm:$0xff] }
 0x2d7   :  { %v3718_v47 = vpop.f32.mrf.mxu0  ;;  %18320 = vst [vmem:[#allocation6_spill] sm:$0xff] %v16470_v22  ;;  %11274 = vmatprep.mubr.msk.f32.mxu1 %vm11608_vm3, %v18321_v60 }
 0x2d8   :  { %18314 = vst [vmem:[#allocation32_spill] sm:$0xff] %v16446_v62  ;;  %v5666_v53 = vmax.f32 %v18317_v21, %v3724_v19  ;;  %v16461_v61 = vadd.f32 %v15803_v0, %v3718_v47  ;;  %v18322_v19 = vld [vmem:[#allocation28_spill] sm:$0xff]  ;;  %v4819_v21 = vadd.f32 %v15803_v0, %v18324_v34 }
 0x2d9   :  { %v10801_v24 = vpop.f32.mrf.mxu0  ;;  %v18323_v47 = vmax.f32 %v15595_v46, %v18322_v19  ;;  %v5004_v46 = vadd.f32 %v15803_v0, %v16249_v36  ;;  %v16492_v19 = vpop.f32.mrf.mxu1 }
 0x2da   :  { %18318 = vst [vmem:[#allocation44_spill] sm:$0xff] %v16461_v61  ;;  %v3734_v62 = vadd.f32 %v15803_v0, %v10801_v24  ;;  %v16468_v31 = vmax.f32 %v5666_v53, %v4984_v49 }
 0x2db   :  { %v3728_v10 = vpop.f32.mrf.mxu0  ;;  %v16477_v41 = vmax.f32 %v18323_v47, %v4809_v2 }
 0x2dc   :  { %18319 = vst [vmem:[#allocation47_spill] sm:$0xff] %v16468_v31  ;;  %v5668_v61 = vmax.f32 %v18325_v43, %v3734_v62  ;;  %v16483_v53 = vadd.f32 %v15803_v0, %v3728_v10  ;;  %v18327_v62 = vmax.f32 %v15617_v9, %v16100_v6  ;;  %v18328_v10 = vld [vmem:[#allocation36_spill] sm:$0xff]  ;;  %v5014_v9 = vadd.f32 %v15803_v0, %v16290_v13 }
 0x2dd   :  { %v10804_v49 = vpop.f32.mrf.mxu0  ;;  %v4829_v47 = vadd.f32 %v15803_v0, %v18328_v10 }
 0x2de   :  { %v3744_v22 = vadd.f32 %v15803_v0, %v10804_v49  ;;  %v16488_v60 = vmax.f32 %v5668_v61, %v4994_v16  ;;  %v16497_v43 = vmax.f32 %v18327_v62, %v4819_v21  ;;  %v16512_v21 = vpop.f32.mrf.mxu1  ;;  %v18330_v62 = vld [vmem:[#allocation33_spill] sm:$0xff] }
 0x2df   :  { %v3738_v2 = vpop.f32.mrf.mxu0  ;;  %18329 = vst [vmem:[#allocation75_spill] sm:$0xff] %v16512_v21 }
 0x2e0   :  { %18326 = vst [vmem:[#allocation35_spill] sm:$0xff] %v16488_v60  ;;  %v5670_v34 = vmax.f32 %v16110_v23, %v3744_v22  ;;  %v16503_v49 = vadd.f32 %v15803_v0, %v3738_v2  ;;  %v18331_v23 = vmax.f32 %v15645_v1, %v18330_v62  ;;  %v18332_v2 = vld [vmem:[#allocation9_spill] sm:$0xff]  ;;  %v18333_v60 = vld [vmem:[#allocation34_spill] sm:$0xff]  ;;  %v16532_v1 = vadd.f32 %v15803_v0, %v16332_v8  ;;  %v11203_v62 = vpop.f32.mrf.mxu1 }
 0x2e1   :  { %v10807_v61 = vpop.f32.mrf.mxu0  ;;  %v4839_v10 = vadd.f32 %v15803_v0, %v18332_v2 }
 0x2e2   :  { %v3754_v16 = vadd.f32 %v15803_v0, %v10807_v61  ;;  %v16508_v24 = vmax.f32 %v5670_v34, %v5004_v46  ;;  %v16517_v22 = vmax.f32 %v18331_v23, %v4829_v47 }
 0x2e3   :  { %v3748_v6 = vpop.f32.mrf.mxu0  ;;  %v5673_v23 = vmax.f32 %v16152_v37, %v4839_v10  ;;  %v16550_v37 = vadd.f32 %v15803_v0, %v16370_v44 }
 0x2e4   :  { %v5672_v36 = vmax.f32 %v18333_v60, %v3754_v16  ;;  %v16523_v61 = vadd.f32 %v15803_v0, %v3748_v6  ;;  %v18335_v60 = vld [vmem:[#allocation48_spill] sm:$0xff]  ;;  %v18336_v6 = vmax.f32 %v16145_v55, %v16135_v59 }
 0x2e5   :  { %v10810_v46 = vpop.f32.mrf.mxu0  ;;  %v4849_v16 = vadd.f32 %v15803_v0, %v18335_v60  ;;  %v16552_v60 = vpop.f32.mrf.mxu1  ;;  %v18337_v55 = vld [vmem:[#allocation56_spill] sm:$0xff] }
 0x2e6   :  { %v3764_v34 = vadd.f32 %v15803_v0, %v10810_v46  ;;  %v16528_v21 = vmax.f32 %v5672_v36, %v5014_v9 }
 0x2e7   :  { %v3758_v47 = vpop.f32.mrf.mxu0  ;;  %v5675_v59 = vmax.f32 %v16180_v40, %v4849_v16  ;;  %v16570_v40 = vadd.f32 %v15803_v0, %v16410_v25 }
 0x2e8   :  { %18334 = vst [vmem:[#allocation51_spill] sm:$0xff] %v16528_v21  ;;  %v16540_v2 = vmax.f32 %v18336_v6, %v3764_v34  ;;  %v3759_v46 = vadd.f32 %v15803_v0, %v3758_v47  ;;  %v4859_v34 = vadd.f32 %v15803_v0, %v18337_v55  ;;  %v18338_v47 = vmax.f32 %v16173_v42, %v16163_v26  ;;  %v11206_v55 = vpop.f32.mrf.mxu1  ;;  %v18339_v42 = vld [vmem:[#allocation50_spill] sm:$0xff] }
 0x2e9   :  { %v10813_v36 = vpop.f32.mrf.mxu0 }
 0x2ea   :  { %v16543_v9 = vmax.f32 %v5673_v23, %v3759_v46  ;;  %v3774_v8 = vadd.f32 %v15803_v0, %v10813_v36  ;;  %v5677_v26 = vmax.f32 %v16208_v33, %v4859_v34  ;;  %v16588_v33 = vadd.f32 %v15803_v0, %v16450_v58 }
 0x2eb   :  { %v3768_v10 = vpop.f32.mrf.mxu0 }
 0x2ec   :  { %v16560_v23 = vmax.f32 %v18338_v47, %v3774_v8  ;;  %v3769_v6 = vadd.f32 %v15803_v0, %v3768_v10  ;;  %v4869_v8 = vadd.f32 %v15803_v0, %v18339_v42  ;;  %v18340_v10 = vmax.f32 %v16201_v18, %v16191_v11  ;;  %v16590_v42 = vpop.f32.mrf.mxu1  ;;  %v18342_v18 = vld [vmem:[#allocation17_spill] sm:$0xff] }
 0x2ed   :  { %v10816_v46 = vpop.f32.mrf.mxu0  ;;  %18341 = vst [vmem:[#allocation7_spill] sm:$0xff] %v16590_v42 }
 0x2ee   :  { %v16563_v36 = vmax.f32 %v5675_v59, %v3769_v6  ;;  %v3784_v44 = vadd.f32 %v15803_v0, %v10816_v46  ;;  %v5679_v11 = vmax.f32 %v16236_v45, %v4869_v8  ;;  %v16608_v45 = vadd.f32 %v15803_v0, %v16492_v19 }
 0x2ef   :  { %v3778_v16 = vpop.f32.mrf.mxu0 }
 0x2f0   :  { %v16578_v59 = vmax.f32 %v18340_v10, %v3784_v44  ;;  %v3779_v47 = vadd.f32 %v15803_v0, %v3778_v16  ;;  %v4879_v44 = vadd.f32 %v15803_v0, %v18342_v18  ;;  %v18343_v16 = vmax.f32 %v16229_v54, %v16219_v5  ;;  %v11209_v18 = vpop.f32.mrf.mxu1  ;;  %v18344_v54 = vld [vmem:[#allocation60_spill] sm:$0xff] }
 0x2f1   :  { %v10819_v6 = vpop.f32.mrf.mxu0 }
 0x2f2   :  { %v16581_v46 = vmax.f32 %v5677_v26, %v3779_v47  ;;  %v3794_v25 = vadd.f32 %v15803_v0, %v10819_v6  ;;  %v5681_v5 = vmax.f32 %v16261_v52, %v4879_v44  ;;  %v16625_v52 = vadd.f32 %v15803_v0, %v11203_v62 }
 0x2f3   :  { %v3788_v34 = vpop.f32.mrf.mxu0 }
 0x2f4   :  { %v16598_v26 = vmax.f32 %v18343_v16, %v3794_v25  ;;  %v3789_v10 = vadd.f32 %v15803_v0, %v3788_v34  ;;  %v4889_v25 = vadd.f32 %v15803_v0, %v18344_v54  ;;  %v18345_v34 = vmax.f32 %v16254_v3, %v16247_v7  ;;  %v16627_v54 = vpop.f32.mrf.mxu1  ;;  %v18347_v3 = vld [vmem:[#allocation57_spill] sm:$0xff] }
 0x2f5   :  { %v10822_v47 = vpop.f32.mrf.mxu0  ;;  %18346 = vst [vmem:[#allocation76_spill] sm:$0xff] %v16627_v54 }
 0x2f6   :  { %v16601_v6 = vmax.f32 %v5679_v11, %v3789_v10  ;;  %v3804_v58 = vadd.f32 %v15803_v0, %v10822_v47  ;;  %v5683_v7 = vmax.f32 %v16281_v15, %v4889_v25  ;;  %v16644_v15 = vadd.f32 %v15803_v0, %v11206_v55 }
 0x2f7   :  { %v3798_v8 = vpop.f32.mrf.mxu0 }
 0x2f8   :  { %v16616_v11 = vmax.f32 %v18345_v34, %v3804_v58  ;;  %v3799_v16 = vadd.f32 %v15803_v0, %v3798_v8  ;;  %v4899_v58 = vadd.f32 %v15803_v0, %v18347_v3  ;;  %v18348_v8 = vld [vmem:[#allocation41_spill] sm:$0xff]  ;;  %v11212_v3 = vpop.f32.mrf.mxu1 }
 0x2f9   :  { %v10825_v10 = vpop.f32.mrf.mxu0 }
 0x2fa   :  { %v16619_v47 = vmax.f32 %v5681_v5, %v3799_v16  ;;  %v3814_v19 = vadd.f32 %v15803_v0, %v10825_v10  ;;  %v18349_v5 = vmax.f32 %v16275_v57, %v18348_v8  ;;  %v5685_v42 = vmax.f32 %v16301_v29, %v4899_v58  ;;  %v18350_v57 = vld [vmem:[#allocation70_spill] sm:$0xff] }
 0x2fb   :  { %v3808_v44 = vpop.f32.mrf.mxu0  ;;  %v16661_v29 = vadd.f32 %v15803_v0, %v11209_v18 }
 0x2fc   :  { %v16635_v34 = vmax.f32 %v18349_v5, %v3814_v19  ;;  %v3809_v16 = vadd.f32 %v15803_v0, %v3808_v44  ;;  %v4909_v19 = vadd.f32 %v15803_v0, %v18350_v57  ;;  %v18351_v44 = vmax.f32 %v16295_v39, %v16288_v51  ;;  %v16663_v57 = vpop.f32.mrf.mxu1  ;;  %v18354_v51 = vld [vmem:[#allocation8_spill] sm:$0xff] }
 0x2fd   :  { %v10828_v10 = vpop.f32.mrf.mxu0  ;;  %18352 = vst [vmem:[#allocation40_spill] sm:$0xff] %v16661_v29  ;;  %18353 = vst [vmem:[#allocation14_spill] sm:$0xff] %v16663_v57  ;;  %v18360_v29 = vld [vmem:[#allocation68_spill] sm:$0xff] }
 0x2fe   :  { %v16638_v13 = vmax.f32 %v5683_v7, %v3809_v16  ;;  %v3824_v62 = vadd.f32 %v15803_v0, %v10828_v10  ;;  %v5687_v39 = vmax.f32 %v16323_v27, %v4909_v19  ;;  %v16680_v27 = vadd.f32 %v15803_v0, %v11212_v3 }
 0x2ff   :  { %v3818_v25 = vpop.f32.mrf.mxu0 }
 0x300   :  { %v16652_v7 = vmax.f32 %v18351_v44, %v3824_v62  ;;  %v3819_v8 = vadd.f32 %v15803_v0, %v3818_v25  ;;  %v4919_v62 = vadd.f32 %v15803_v0, %v18354_v51  ;;  %v18355_v25 = vld [vmem:[#allocation45_spill] sm:$0xff]  ;;  %v11215_v51 = vpop.f32.mrf.mxu1 }
 0x301   :  { %v10831_v5 = vpop.f32.mrf.mxu0 }
 0x302   :  { %v16655_v16 = vmax.f32 %v5685_v42, %v3819_v8  ;;  %v3834_v55 = vadd.f32 %v15803_v0, %v10831_v5  ;;  %v18356_v42 = vmax.f32 %v16317_v30, %v18355_v25  ;;  %v5689_v57 = vmax.f32 %v16343_v38, %v4919_v62  ;;  %v18357_v30 = vld [vmem:[#allocation66_spill] sm:$0xff] }
 0x303   :  { %v3828_v58 = vpop.f32.mrf.mxu0  ;;  %v16697_v38 = vadd.f32 %v15803_v0, %v11215_v51 }
 0x304   :  { %v16671_v44 = vmax.f32 %v18356_v42, %v3834_v55  ;;  %v3829_v8 = vadd.f32 %v15803_v0, %v3828_v58  ;;  %v4929_v55 = vadd.f32 %v15803_v0, %v18357_v30  ;;  %v18358_v58 = vmax.f32 %v16340_v56, %v16330_v63  ;;  %v18359_v30 = vld [vmem:[#allocation67_spill] sm:$0xff]  ;;  %v18361_v56 = vld [vmem:[#allocation62_spill] sm:$0xff] }
 0x305   :  { %v10834_v5 = vpop.f32.mrf.mxu0  ;;  %v4939_v63 = vadd.f32 %v15803_v0, %v18360_v29  ;;  %v18365_v29 = vmax.f32 %v16375_v17, %v16381_v20  ;;  %v18369_v17 = vld [vmem:[#allocation72_spill] sm:$0xff] }
 0x306   :  { %v16674_v10 = vmax.f32 %v5687_v39, %v3829_v8  ;;  %v3844_v18 = vadd.f32 %v15803_v0, %v10834_v5  ;;  %v5691_v54 = vmax.f32 %v18359_v30, %v4929_v55  ;;  %v18370_v20 = vmax.f32 %v16395_v28, %v18369_v17  ;;  %v18375_v17 = vld [vmem:[#allocation30_spill] sm:$0xff] }
 0x307   :  { %v3838_v19 = vpop.f32.mrf.mxu0  ;;  %v16718_v30 = vmax.f32 %v18365_v29, %v4939_v63  ;;  %v18371_v29 = vld [vmem:[#allocation27_spill] sm:$0xff]  ;;  %v18374_v28 = vmax.f32 %v16415_v14, %v16421_v35  ;;  %v18377_v14 = vmax.f32 %v16435_v32, %v16441_v50 }
 0x308   :  { %v16688_v39 = vmax.f32 %v18358_v58, %v3844_v18  ;;  %v3839_v25 = vadd.f32 %v15803_v0, %v3838_v19  ;;  %v18362_v18 = vld [vmem:[#allocation54_spill] sm:$0xff] }
 0x309   :  { %v10837_v42 = vpop.f32.mrf.mxu0  ;;  %v18363_v19 = vmax.f32 %v18361_v56, %v18362_v18  ;;  %v18366_v56 = vld [vmem:[#allocation24_spill] sm:$0xff] }
 0x30a   :  { %v16691_v8 = vmax.f32 %v5689_v57, %v3839_v25  ;;  %v3854_v3 = vadd.f32 %v15803_v0, %v10837_v42 }
 0x30b   :  { %v3848_v62 = vpop.f32.mrf.mxu0 }
 0x30c   :  { %v16705_v58 = vmax.f32 %v18363_v19, %v3854_v3  ;;  %v3849_v57 = vadd.f32 %v15803_v0, %v3848_v62  ;;  %v4949_v3 = vadd.f32 %v15803_v0, %v18366_v56  ;;  %v4959_v56 = vadd.f32 %v15803_v0, %v18371_v29  ;;  %v18372_v62 = vld [vmem:[#allocation73_spill] sm:$0xff] }
 0x30d   :  { %v10840_v25 = vpop.f32.mrf.mxu0 }
 0x30e   :  { %v16708_v42 = vmax.f32 %v5691_v54, %v3849_v57  ;;  %v16711_v5 = vadd.f32 %v15803_v0, %v10840_v25  ;;  %v16735_v63 = vmax.f32 %v18370_v20, %v4949_v3  ;;  %v16752_v3 = vmax.f32 %v18374_v28, %v4959_v56  ;;  %v16774_v56 = vld [vmem:[%s17654_s2] ss:$0 sm:$0xff] }
 0x30f   :  { %v3858_v55 = vpop.f32.mrf.mxu0  ;;  %v4969_v20 = vadd.f32 %v15803_v0, %v18375_v17 }
 0x310   :  { %18364 = vst [vmem:[#allocation10_spill] sm:$0xff] %v16711_v5  ;;  %v16725_v54 = vadd.f32 %v15803_v0, %v3858_v55 }
 0x311   :  { %v10843_v18 = vpop.f32.mrf.mxu0  ;;  %v16769_v35 = vmax.f32 %v18377_v14, %v4969_v20  ;;  %v18381_v14 = vld [vmem:[#allocation44_spill] sm:$0xff] }
 0x312   :  { %18367 = vst [vmem:[#allocation79_spill] sm:$0xff] %v16725_v54  ;;  %v16730_v57 = vadd.f32 %v15803_v0, %v10843_v18 }
 0x313   :  { %v3868_v25 = vpop.f32.mrf.mxu0 }
 0x314   :  { %18368 = vst [vmem:[#allocation80_spill] sm:$0xff] %v16730_v57  ;;  %v16742_v51 = vadd.f32 %v15803_v0, %v3868_v25 }
 0x315   :  { %v10846_v5 = vpop.f32.mrf.mxu0 }
 0x316   :  { %v16747_v19 = vadd.f32 %v15803_v0, %v10846_v5  ;;  %v18382_v5 = vmax.f32 %v16455_v4, %v18381_v14  ;;  %v18385_v4 = vmax.f32 %v16477_v41, %v16483_v53  ;;  %v18390_v53 = vld [vmem:[#allocation49_spill] sm:$0xff] }
 0x317   :  { %v3878_v54 = vpop.f32.mrf.mxu0 }
 0x318   :  { %18373 = vst [vmem:[#allocation15_spill] sm:$0xff] %v16747_v19  ;;  %v16759_v29 = vadd.f32 %v15803_v0, %v3878_v54  ;;  %v18378_v54 = vld [vmem:[#allocation37_spill] sm:$0xff] }
 0x319   :  { %v10849_v55 = vpop.f32.mrf.mxu0  ;;  %v4979_v28 = vadd.f32 %v16774_v56, %v18378_v54  ;;  %v18383_v54 = vld [vmem:[#allocation38_spill] sm:$0xff] }
 0x31a   :  { %v16764_v18 = vadd.f32 %v15803_v0, %v10849_v55  ;;  %v4989_v12 = vadd.f32 %v16774_v56, %v18383_v54  ;;  %v18387_v54 = vld [vmem:[#allocation35_spill] sm:$0xff] }
 0x31b   :  { %v3888_v57 = vpop.f32.mrf.mxu0  ;;  %v16791_v19 = vmax.f32 %v18382_v5, %v4979_v28  ;;  %v18386_v28 = vld [vmem:[#allocation42_spill] sm:$0xff] }
 0x31c   :  { %18376 = vst [vmem:[#allocation82_spill] sm:$0xff] %v16764_v18  ;;  %v16781_v0 = vadd.f32 %v16774_v56, %v3888_v57  ;;  %v16808_v5 = vmax.f32 %v18385_v4, %v4989_v12  ;;  %v4999_v14 = vadd.f32 %v16774_v56, %v18386_v28  ;;  %v18389_v12 = vmax.f32 %v16497_v43, %v16503_v49 }
 0x31d   :  { %v10852_v55 = vpop.f32.mrf.mxu0  ;;  %v5009_v4 = vadd.f32 %v16774_v56, %v18390_v53  ;;  %v18392_v43 = vmax.f32 %v16517_v22, %v16523_v61  ;;  %v18395_v61 = vld [vmem:[#allocation71_spill] sm:$0xff] }
 0x31e   :  { %v16786_v50 = vadd.f32 %v16774_v56, %v10852_v55  ;;  %v16825_v41 = vmax.f32 %v18389_v12, %v4999_v14  ;;  %v18393_v14 = vld [vmem:[#allocation58_spill] sm:$0xff] }
 0x31f   :  { %v3898_v20 = vpop.f32.mrf.mxu0  ;;  %v16842_v49 = vmax.f32 %v18392_v43, %v5009_v4  ;;  %v5019_v12 = vadd.f32 %v16774_v56, %v18393_v14  ;;  %v5029_v4 = vadd.f32 %v16774_v56, %v18395_v61  ;;  %v18396_v43 = vmax.f32 %v16540_v2, %v16532_v1 }
 0x320   :  { %18380 = vst [vmem:[#allocation84_spill] sm:$0xff] %v16786_v50  ;;  %v16798_v25 = vadd.f32 %v16774_v56, %v3898_v20 }
 0x321   :  { %v10855_v18 = vpop.f32.mrf.mxu0  ;;  %v5745_v22 = vmax.f32 %v16543_v9, %v5019_v12  ;;  %v18398_v12 = vmax.f32 %v16560_v23, %v16550_v37 }
 0x322   :  { %v16803_v32 = vadd.f32 %v16774_v56, %v10855_v18 }
 0x323   :  { %v3908_v17 = vpop.f32.mrf.mxu0 }
 0x324   :  { %18384 = vst [vmem:[#allocation86_spill] sm:$0xff] %v16803_v32  ;;  %v16815_v57 = vadd.f32 %v16774_v56, %v3908_v17 }
 0x325   :  { %v10858_v50 = vpop.f32.mrf.mxu0 }
 0x326   :  { %v16820_v55 = vadd.f32 %v16774_v56, %v10858_v50 }
 0x327   :  { %v3918_v31 = vpop.f32.mrf.mxu0 }
 0x328   :  { %18388 = vst [vmem:[#allocation3_spill] sm:$0xff] %v16820_v55  ;;  %v16832_v28 = vadd.f32 %v16774_v56, %v3918_v31 }
 0x329   :  { %v10861_v20 = vpop.f32.mrf.mxu0 }
 0x32a   :  { %v16837_v18 = vadd.f32 %v16774_v56, %v10861_v20 }
 0x32b   :  { %v3928_v32 = vpop.f32.mrf.mxu0 }
 0x32c   :  { %18391 = vst [vmem:[#allocation4_spill] sm:$0xff] %v16837_v18  ;;  %v16849_v53 = vadd.f32 %v16774_v56, %v3928_v32 }
 0x32d   :  { %v10864_v17 = vpop.f32.mrf.mxu0 }
 0x32e   :  { %18394 = vst [vmem:[#allocation39_spill] sm:$0xff] %v16849_v53  ;;  %v3944_v50 = vadd.f32 %v16774_v56, %v10864_v17  ;;  %v5747_v17 = vmax.f32 %v16563_v36, %v5029_v4  ;;  %v18397_v53 = vld [vmem:[#allocation5_spill] sm:$0xff] }
 0x32f   :  { %v3938_v55 = vpop.f32.mrf.mxu0  ;;  %v5039_v9 = vadd.f32 %v16774_v56, %v18397_v53  ;;  %v18400_v53 = vmax.f32 %v16578_v59, %v16570_v40 }
 0x330   :  { %v16860_v14 = vmax.f32 %v18396_v43, %v3944_v50  ;;  %v3939_v32 = vadd.f32 %v16774_v56, %v3938_v55  ;;  %v18399_v43 = vld [vmem:[#allocation6_spill] sm:$0xff] }
 0x331   :  { %v10867_v31 = vpop.f32.mrf.mxu0  ;;  %v5049_v36 = vadd.f32 %v16774_v56, %v18399_v43  ;;  %v18403_v43 = vmax.f32 %v16616_v11, %v16608_v45  ;;  %v5108_v11 = vpop.f32.mrf.mxu1 }
 0x332   :  { %v16863_v18 = vmax.f32 %v5745_v22, %v3939_v32  ;;  %v3954_v20 = vadd.f32 %v16774_v56, %v10867_v31  ;;  %v5749_v31 = vmax.f32 %v16581_v46, %v5039_v9  ;;  %v18402_v9 = vmax.f32 %v16598_v26, %v16588_v33 }
 0x333   :  { %v3948_v21 = vpop.f32.mrf.mxu0 }
 0x334   :  { %v16872_v61 = vmax.f32 %v18398_v12, %v3954_v20  ;;  %v3949_v1 = vadd.f32 %v16774_v56, %v3948_v21  ;;  %v18401_v12 = vld [vmem:[#allocation75_spill] sm:$0xff] }
 0x335   :  { %v10870_v2 = vpop.f32.mrf.mxu0  ;;  %v5059_v46 = vadd.f32 %v16774_v56, %v18401_v12 }
 0x336   :  { %v16875_v55 = vmax.f32 %v5747_v17, %v3949_v1  ;;  %v3964_v50 = vadd.f32 %v16774_v56, %v10870_v2  ;;  %v5751_v17 = vmax.f32 %v16601_v6, %v5049_v36  ;;  %v5069_v6 = vadd.f32 %v16774_v56, %v16552_v60 }
 0x337   :  { %v3958_v22 = vpop.f32.mrf.mxu0  ;;  %v18405_v60 = vmax.f32 %v16635_v34, %v16625_v52 }
 0x338   :  { %v16884_v4 = vmax.f32 %v18400_v53, %v3964_v50  ;;  %v3959_v37 = vadd.f32 %v16774_v56, %v3958_v22 }
 0x339   :  { %v10873_v23 = vpop.f32.mrf.mxu0 }
 0x33a   :  { %v16887_v21 = vmax.f32 %v5749_v31, %v3959_v37  ;;  %v3974_v20 = vadd.f32 %v16774_v56, %v10873_v23  ;;  %v5753_v31 = vmax.f32 %v16619_v47, %v5059_v46 }
 0x33b   :  { %v3968_v32 = vpop.f32.mrf.mxu0 }
 0x33c   :  { %v16896_v1 = vmax.f32 %v18402_v9, %v3974_v20  ;;  %v3969_v40 = vadd.f32 %v16774_v56, %v3968_v32  ;;  %v5755_v20 = vmax.f32 %v16638_v13, %v5069_v6  ;;  %v18404_v32 = vld [vmem:[#allocation7_spill] sm:$0xff]  ;;  %v18406_v13 = vld [vmem:[#allocation76_spill] sm:$0xff] }
 0x33d   :  { %v10876_v59 = vpop.f32.mrf.mxu0  ;;  %v5079_v47 = vadd.f32 %v16774_v56, %v18404_v32 }
 0x33e   :  { %v16899_v2 = vmax.f32 %v5751_v17, %v3969_v40  ;;  %v3984_v50 = vadd.f32 %v16774_v56, %v10876_v59 }
 0x33f   :  { %v3978_v22 = vpop.f32.mrf.mxu0  ;;  %v5757_v59 = vmax.f32 %v16655_v16, %v5079_v47  ;;  %v18408_v16 = vld [vmem:[#allocation14_spill] sm:$0xff] }
 0x340   :  { %v16908_v36 = vmax.f32 %v18403_v43, %v3984_v50  ;;  %v3979_v33 = vadd.f32 %v16774_v56, %v3978_v22  ;;  %v5089_v50 = vadd.f32 %v16774_v56, %v18406_v13  ;;  %v18407_v22 = vmax.f32 %v16652_v7, %v16644_v15 }
 0x341   :  { %v10879_v26 = vpop.f32.mrf.mxu0 }
 0x342   :  { %v16911_v53 = vmax.f32 %v5753_v31, %v3979_v33  ;;  %v3994_v37 = vadd.f32 %v16774_v56, %v10879_v26  ;;  %v11218_v31 = vpop.f32.mrf.mxu1 }
 0x343   :  { %v3988_v23 = vpop.f32.mrf.mxu0 }
 0x344   :  { %v16920_v17 = vmax.f32 %v18405_v60, %v3994_v37  ;;  %v3989_v45 = vadd.f32 %v16774_v56, %v3988_v23  ;;  %v5759_v37 = vmax.f32 %v16674_v10, %v5089_v50  ;;  %v5099_v23 = vadd.f32 %v16774_v56, %v18408_v16  ;;  %v5118_v47 = vpop.f32.mrf.mxu1 }
 0x345   :  { %v10882_v12 = vpop.f32.mrf.mxu0  ;;  %v5109_v10 = vadd.f32 %v16774_v56, %v5108_v11  ;;  %v5119_v11 = vadd.f32 %v16774_v56, %v5118_v47  ;;  %v18415_v47 = vld [vmem:[#allocation79_spill] sm:$0xff] }
 0x346   :  { %v16923_v46 = vmax.f32 %v5755_v20, %v3989_v45  ;;  %v4004_v9 = vadd.f32 %v16774_v56, %v10882_v12  ;;  %v18409_v20 = vld [vmem:[#allocation40_spill] sm:$0xff]  ;;  %v11221_v50 = vpop.f32.mrf.mxu1 }
 0x347   :  { %v3998_v40 = vpop.f32.mrf.mxu0  ;;  %v18410_v32 = vmax.f32 %v16671_v44, %v18409_v20 }
 0x348   :  { %v16932_v52 = vmax.f32 %v18407_v22, %v4004_v9  ;;  %v3999_v34 = vadd.f32 %v16774_v56, %v3998_v40  ;;  %v5761_v40 = vmax.f32 %v16691_v8, %v5099_v23  ;;  %v5763_v8 = vmax.f32 %v16708_v42, %v5109_v10  ;;  %v5128_v16 = vpop.f32.mrf.mxu1 }
 0x349   :  { %v10885_v6 = vpop.f32.mrf.mxu0 }
 0x34a   :  { %v16935_v43 = vmax.f32 %v5757_v59, %v3999_v34  ;;  %v4014_v33 = vadd.f32 %v16774_v56, %v10885_v6  ;;  %v18411_v59 = vmax.f32 %v16688_v39, %v16680_v27  ;;  %v5124_v34 = vadd.f32 %v16774_v56, %v11218_v31  ;;  %v18413_v31 = vld [vmem:[#allocation10_spill] sm:$0xff]  ;;  %v11224_v10 = vpop.f32.mrf.mxu1 }
 0x34b   :  { %v4008_v26 = vpop.f32.mrf.mxu0  ;;  %v18412_v27 = vmax.f32 %v16705_v58, %v16697_v38  ;;  %v18414_v20 = vmax.f32 %v16386_v48, %v18413_v31  ;;  %v5129_v38 = vadd.f32 %v16774_v56, %v5128_v16  ;;  %v18418_v16 = vmov 0.0  }
 0x34c   :  { %v16944_v15 = vmax.f32 %v18410_v32, %v4014_v33  ;;  %v4009_v7 = vadd.f32 %v16774_v56, %v4008_v26 }
 0x34d   :  { %v10888_v60 = vpop.f32.mrf.mxu0  ;;  %v5766_v32 = vmax.f32 %v18414_v20, %v5124_v34  ;;  %v18419_v20 = vld [vmem:[#allocation80_spill] sm:$0xff] }
 0x34e   :  { %v16947_v45 = vmax.f32 %v5759_v37, %v4009_v7  ;;  %v4024_v12 = vadd.f32 %v16774_v56, %v10888_v60 }
 0x34f   :  { %v4018_v9 = vpop.f32.mrf.mxu0 }
 0x350   :  { %v16955_v13 = vmax.f32 %v18411_v59, %v4024_v12  ;;  %v4019_v44 = vadd.f32 %v16774_v56, %v4018_v9  ;;  %v18416_v12 = vmax.f32 %v16718_v30, %v18415_v47  ;;  %v18417_v30 = vmax.f32 %v16735_v63, %v16742_v51  ;;  %v9538_v63 = vld [vmem:[%s17655_s3 + $0x28] sm:$0x3]  ;;  %v9537_v47 = vld [vmem:[%s17655_s3 + $0x20] sm:$0xff] }
 0x351   :  { %v10891_v22 = vpop.f32.mrf.mxu0 }
 0x352   :  { %v16959_v6 = vmax.f32 %v5761_v40, %v4019_v44  ;;  %v4034_v33 = vadd.f32 %v16774_v56, %v10891_v22  ;;  %v5765_v9 = vmax.f32 %v18416_v12, %v5119_v11  ;;  %v5874_v22 = vld [vmem:[%s17655_s3 + $0x8] sm:$0x3]  ;;  %v5873_v11 = vld [vmem:[%s17655_s3] sm:$0xff] }
 0x353   :  { %v4028_v26 = vpop.f32.mrf.mxu0 }
 0x354   :  { %v16967_v39 = vmax.f32 %v18412_v27, %v4034_v33  ;;  %v4029_v37 = vadd.f32 %v16774_v56, %v4028_v26  ;;  %v5134_v33 = vadd.f32 %v16774_v56, %v11221_v50  ;;  %v5767_v26 = vmax.f32 %v18417_v30, %v5129_v38  ;;  %v5138_v27 = vpop.f32.mrf.mxu1 }
 0x355   :  { %v10894_v23 = vpop.f32.mrf.mxu0 }
 0x356   :  { %v16973_v7 = vmax.f32 %v5763_v8, %v4029_v37  ;;  %v4044_v60 = vadd.f32 %v16774_v56, %v10894_v23  ;;  %v11227_v12 = vpop.f32.mrf.mxu1 }
 0x357   :  { %v4038_v42 = vpop.f32.mrf.mxu0 }
 0x358   :  { %v5802_v58 = vmax.f32 %v5766_v32, %v4044_v60  ;;  %v4039_v40 = vadd.f32 %v16774_v56, %v4038_v42  ;;  %v18420_v32 = vmax.f32 %v18372_v62, %v18419_v20  ;;  %v5139_v42 = vadd.f32 %v16774_v56, %v5138_v27  ;;  %v9550_v20 = vld [vmem:[%s17655_s3 + $0x58] sm:$0x3] }
 0x359   :  { %v10897_v59 = vpop.f32.mrf.mxu0 }
 0x35a   :  { %v5838_v44 = vmax.f32 %v5802_v58, 0.0  ;;  %v5801_v48 = vmax.f32 %v5765_v9, %v4039_v40  ;;  %v4054_v23 = vadd.f32 %v16774_v56, %v10897_v59  ;;  %v5768_v60 = vmax.f32 %v18420_v32, %v5134_v33  ;;  %v9542_v58 = vld [vmem:[%s17655_s3 + $0x38] sm:$0x3] }
 0x35b   :  { %v4048_v34 = vpop.f32.mrf.mxu0  ;;  %v5144_v59 = vadd.f32 %v16774_v56, %v11224_v10 }
 0x35c   :  { %v4049_v8 = vadd.f32 %v16774_v56, %v4048_v34  ;;  %11275 = vmatmul.mubr.msk.f32.vlgmr.msra.gmra.mxu1 %vm5878_vm4, %v5838_v44  ;;  %v5837_v50 = vmax.f32 %v5801_v48, 0.0  ;;  %v5804_v9 = vmax.f32 %v5768_v60, %v4054_v23  ;;  %v18421_v44 = vmax.f32 %v16752_v3, %v16759_v29  ;;  %v5148_v34 = vpop.f32.mrf.mxu1  ;;  %v9546_v3 = vld [vmem:[%s17655_s3 + $0x48] sm:$0x3] }
 0x35d   :  { %v10900_v37 = vpop.f32.mrf.mxu0  ;;  %11278 = vmatpush3.msk.msra.mxu1 %vm5882_vm2, %v5874_v22  ;;  %11281 = vmatprep.mubr.msk.f32.mxu1 %vm11608_vm3, %v18418_v16  ;;  %v9541_v22 = vld [vmem:[%s17655_s3 + $0x30] sm:$0xff]  ;;  %v5154_v60 = vadd.f32 %v16774_v56, %v11227_v12 }
 0x35e   :  { %v5803_v51 = vmax.f32 %v5767_v26, %v4049_v8  ;;  %11279 = vmatprep.subr.mxu1 %v18418_v16  ;;  %v5769_v48 = vmax.f32 %v18421_v44, %v5139_v42  ;;  %v5840_v33 = vmax.f32 %v5804_v9, 0.0  ;;  %v4064_v10 = vadd.f32 %v16774_v56, %v10900_v37  ;;  %v18422_v26 = vld [vmem:[#allocation11_spill] sm:$0xff]  ;;  %v9545_v37 = vld [vmem:[%s17655_s3 + $0x40] sm:$0xff]  ;;  %v11230_v23 = vpop.f32.mrf.mxu1  ;;  %v9549_v9 = vld [vmem:[%s17655_s3 + $0x50] sm:$0xff] }
 0x35f   :  { %v4058_v31 = vpop.f32.mrf.mxu0  ;;  %11280 = vmatpush3.msra.mxu1 %v5873_v11  ;;  %v18423_v8 = vld [vmem:[#allocation15_spill] sm:$0xff]  ;;  %v18425_v42 = vmax.f32 %v16769_v35, %v16781_v0  ;;  %v18427_v44 = vld [vmem:[#allocation82_spill] sm:$0xff] }
 0x360   :  { %11284 = vmatprep.subr.mxu1 %v18418_v16  ;;  %11282 = vmatmul.mubr.msk.f32.vlgmr.msra.gmra.mxu1 %vm5878_vm4, %v5837_v50  ;;  %v5839_v38 = vmax.f32 %v5803_v51, 0.0  ;;  %v4059_v62 = vadd.f32 %v16774_v56, %v4058_v31  ;;  %v18424_v11 = vmax.f32 %v18422_v26, %v18423_v8  ;;  %v5149_v50 = vadd.f32 %v16774_v56, %v5148_v34  ;;  %v9554_v35 = vld [vmem:[%s17655_s3 + $0x68] sm:$0x3] }
 0x361   :  { %11285 = vmatpush3.msk.msra.mxu1 %vm5882_vm2, %v9538_v63  ;;  %11288 = vmatprep.mubr.msk.f32.mxu1 %vm11608_vm3, %v18418_v16  ;;  %v10903_v40 = vpop.f32.mrf.mxu0  ;;  %v5164_v8 = vadd.f32 %v16774_v56, %v11230_v23 }
 0x362   :  { %11286 = vmatprep.subr.mxu1 %v18418_v16  ;;  %v5805_v30 = vmax.f32 %v5769_v48, %v4059_v62  ;;  %v5770_v27 = vmax.f32 %v18424_v11, %v5144_v59  ;;  %v4074_v12 = vadd.f32 %v16774_v56, %v10903_v40  ;;  %v18426_v59 = vld [vmem:[#allocation32_spill] sm:$0xff]  ;;  %v9553_v40 = vld [vmem:[%s17655_s3 + $0x60] sm:$0xff]  ;;  %v18429_v11 = vmax.f32 %v16791_v19, %v16798_v25  ;;  %v9562_v19 = vld [vmem:[%s17655_s3 + $0x88] sm:$0x3] }
 0x363   :  { %11287 = vmatpush3.msra.mxu1 %v9537_v47  ;;  %v4068_v29 = vpop.f32.mrf.mxu0  ;;  %v5771_v47 = vmax.f32 %v18425_v42, %v5149_v50  ;;  %v18428_v48 = vmax.f32 %v18426_v59, %v18427_v44  ;;  %v9557_v50 = vld [vmem:[%s17655_s3 + $0x70] sm:$0xff]  ;;  %v18433_v59 = vmax.f32 %v16808_v5, %v16815_v57  ;;  %v9570_v57 = vld [vmem:[%s17655_s3 + $0xa8] sm:$0x3] }
 0x364   :  { %11291 = vmatprep.subr.mxu1 %v18418_v16  ;;  %11289 = vmatmul.mubr.msk.f32.vlgmr.msra.gmra.mxu1 %vm5878_vm4, %v5839_v38  ;;  %v5806_v51 = vmax.f32 %v5770_v27, %v4064_v10  ;;  %v5841_v63 = vmax.f32 %v5805_v30, 0.0  ;;  %v4069_v31 = vadd.f32 %v16774_v56, %v4068_v29  ;;  %v5158_v38 = vpop.f32.mrf.mxu1  ;;  %v9558_v29 = vld [vmem:[%s17655_s3 + $0x78] sm:$0x3] }
 0x365   :  { %11292 = vmatpush3.msk.msra.mxu1 %vm5882_vm2, %v9542_v58  ;;  %11295 = vmatprep.mubr.msk.f32.mxu1 %vm11608_vm3, %v18418_v16  ;;  %v10906_v32 = vpop.f32.mrf.mxu0  ;;  %v5159_v34 = vadd.f32 %v16774_v56, %v5158_v38 }
 0x366   :  { %11293 = vmatprep.subr.mxu1 %v18418_v16  ;;  %v5842_v62 = vmax.f32 %v5806_v51, 0.0  ;;  %v5807_v58 = vmax.f32 %v5771_v47, %v4069_v31  ;;  %v4084_v23 = vadd.f32 %v16774_v56, %v10906_v32  ;;  %v18430_v31 = vld [vmem:[#allocation47_spill] sm:$0xff]  ;;  %v9561_v32 = vld [vmem:[%s17655_s3 + $0x80] sm:$0xff] }
 0x367   :  { %11294 = vmatpush3.msra.mxu1 %v9541_v22  ;;  %v4078_v0 = vpop.f32.mrf.mxu0  ;;  %v5772_v22 = vmax.f32 %v18428_v48, %v5154_v60  ;;  %v5773_v27 = vmax.f32 %v18429_v11, %v5159_v34  ;;  %v9565_v48 = vld [vmem:[%s17655_s3 + $0x90] sm:$0xff] }
 0x368   :  { %11298 = vmatprep.subr.mxu1 %v18418_v16  ;;  %11296 = vmatmul.mubr.msk.f32.vlgmr.msra.gmra.mxu1 %vm5878_vm4, %v5840_v33  ;;  %v11233_v33 = vpop.f32.mrf.mxu1  ;;  %v5843_v30 = vmax.f32 %v5807_v58, 0.0  ;;  %v9566_v58 = vld [vmem:[%s17655_s3 + $0x98] sm:$0x3] }
 0x369   :  { %11299 = vmatpush3.msk.msra.mxu1 %vm5882_vm2, %v9546_v3  ;;  %11302 = vmatprep.mubr.msk.f32.mxu1 %vm11608_vm3, %v18418_v16  ;;  %v5808_v10 = vmax.f32 %v5772_v22, %v4074_v12  ;;  %v4079_v3 = vadd.f32 %v16774_v56, %v4078_v0  ;;  %v10909_v26 = vpop.f32.mrf.mxu0  ;;  %v5174_v0 = vadd.f32 %v16774_v56, %v11233_v33 }
 0x36a   :  { %11300 = vmatprep.subr.mxu1 %v18418_v16 }
 0x36b   :  { %11301 = vmatpush3.msra.mxu1 %v9545_v37  ;;  %v5168_v37 = vpop.f32.mrf.mxu1  ;;  %v5844_v51 = vmax.f32 %v5808_v10, 0.0  ;;  %v4088_v25 = vpop.f32.mrf.mxu0  ;;  %v18434_v10 = vld [vmem:[#allocation86_spill] sm:$0xff] }
 0x36c   :  { %11305 = vmatprep.subr.mxu1 %v18418_v16  ;;  %11303 = vmatmul.mubr.msk.f32.vlgmr.msra.gmra.mxu1 %vm5878_vm4, %v5841_v63  ;;  %v5809_v63 = vmax.f32 %v5773_v27, %v4079_v3  ;;  %v5169_v47 = vadd.f32 %v16774_v56, %v5168_v37  ;;  %v4089_v12 = vadd.f32 %v16774_v56, %v4088_v25 }
 0x36d   :  { %11306 = vmatpush3.msk.msra.mxu1 %vm5882_vm2, %v9550_v20  ;;  %11309 = vmatprep.mubr.msk.f32.mxu1 %vm11608_vm3, %v18418_v16  ;;  %v18431_v20 = vld [vmem:[#allocation84_spill] sm:$0xff] }
 0x36e   :  { %11307 = vmatprep.subr.mxu1 %v18418_v16  ;;  %v18432_v60 = vmax.f32 %v18430_v31, %v18431_v20  ;;  %v5775_v44 = vmax.f32 %v18433_v59, %v5169_v47  ;;  %v18439_v59 = vld [vmem:[#allocation39_spill] sm:$0xff] }
 0x36f   :  { %11308 = vmatpush3.msra.mxu1 %v9549_v9  ;;  %v11236_v9 = vpop.f32.mrf.mxu1 }
 0x370   :  { %11312 = vmatprep.subr.mxu1 %v18418_v16  ;;  %11310 = vmatmul.mubr.msk.f32.vlgmr.msra.gmra.mxu1 %vm5878_vm4, %v5842_v62  ;;  %v5774_v42 = vmax.f32 %v18432_v60, %v5164_v8  ;;  %v5845_v62 = vmax.f32 %v5809_v63, 0.0  ;;  %v5811_v33 = vmax.f32 %v5775_v44, %v4089_v12  ;;  %v18440_v44 = vmax.f32 %v16842_v49, %v18439_v59  ;;  %v9586_v49 = vld [vmem:[%s17655_s3 + $0xe8] sm:$0x3] }
 0x371   :  { %11313 = vmatpush3.msk.msra.mxu1 %vm5882_vm2, %v9554_v35  ;;  %11316 = vmatprep.mubr.msk.f32.mxu1 %vm11608_vm3, %v18418_v16  ;;  %v10912_v35 = vpop.f32.mrf.mxu0  ;;  %v5178_v22 = vpop.f32.mrf.mxu1 }
 0x372   :  { %11314 = vmatprep.subr.mxu1 %v18418_v16  ;;  %v5810_v38 = vmax.f32 %v5774_v42, %v4084_v23  ;;  %v5847_v27 = vmax.f32 %v5811_v33, 0.0  ;;  %v18436_v23 = vmax.f32 %v16825_v41, %v16832_v28  ;;  %v4104_v20 = vadd.f32 %v16774_v56, %v10912_v35  ;;  %v9578_v41 = vld [vmem:[%s17655_s3 + $0xc8] sm:$0x3] }
 0x373   :  { %11315 = vmatpush3.msra.mxu1 %v9553_v40  ;;  %v4094_v40 = vadd.f32 %v16774_v56, %v10909_v26  ;;  %v4098_v5 = vpop.f32.mrf.mxu0  ;;  %v9569_v26 = vld [vmem:[%s17655_s3 + $0xa0] sm:$0xff]  ;;  %v11239_v8 = vpop.f32.mrf.mxu1  ;;  %v18437_v42 = vld [vmem:[#allocation3_spill] sm:$0xff] }
 0x374   :  { %11319 = vmatprep.subr.mxu1 %v18418_v16  ;;  %11317 = vmatmul.mubr.msk.f32.vlgmr.msra.gmra.mxu1 %vm5878_vm4, %v5843_v30  ;;  %v5846_v34 = vmax.f32 %v5810_v38, 0.0  ;;  %v18435_v30 = vmax.f32 %v18387_v54, %v18434_v10  ;;  %v4099_v54 = vadd.f32 %v16774_v56, %v4098_v5  ;;  %v18438_v47 = vmax.f32 %v16508_v24, %v18437_v42  ;;  %v9577_v38 = vld [vmem:[%s17655_s3 + $0xc0] sm:$0xff]  ;;  %v18441_v5 = vld [vmem:[#allocation51_spill] sm:$0xff]  ;;  %v18442_v10 = vld [vmem:[#allocation4_spill] sm:$0xff] }
 0x375   :  { %11320 = vmatpush3.msk.msra.mxu1 %vm5882_vm2, %v9558_v29  ;;  %11323 = vmatprep.mubr.msk.f32.mxu1 %vm11608_vm3, %v18418_v16  ;;  %v5179_v29 = vadd.f32 %v16774_v56, %v5178_v22  ;;  %v10915_v37 = vpop.f32.mrf.mxu0  ;;  %v5188_v25 = vpop.f32.mrf.mxu1  ;;  %v9581_v22 = vld [vmem:[%s17655_s3 + $0xd0] sm:$0xff] }
 0x376   :  { %11321 = vmatprep.subr.mxu1 %v18418_v16  ;;  %v5776_v3 = vmax.f32 %v18435_v30, %v5174_v0  ;;  %v5194_v0 = vadd.f32 %v16774_v56, %v11239_v8  ;;  %v18443_v30 = vmax.f32 %v18441_v5, %v18442_v10 }
 0x377   :  { %11322 = vmatpush3.msra.mxu1 %v9557_v50  ;;  %v9574_v50 = vld [vmem:[%s17655_s3 + $0xb8] sm:$0x3]  ;;  %v5777_v63 = vmax.f32 %v18436_v23, %v5179_v29  ;;  %v4108_v28 = vpop.f32.mrf.mxu0  ;;  %v11242_v35 = vpop.f32.mrf.mxu1  ;;  %v9585_v29 = vld [vmem:[%s17655_s3 + $0xe0] sm:$0xff] }
 0x378   :  { %11326 = vmatprep.subr.mxu1 %v18418_v16  ;;  %11324 = vmatmul.mubr.msk.f32.vlgmr.msra.gmra.mxu1 %vm5878_vm4, %v5844_v51  ;;  %v5812_v11 = vmax.f32 %v5776_v3, %v4094_v40  ;;  %v5184_v51 = vadd.f32 %v16774_v56, %v11236_v9  ;;  %v5189_v9 = vadd.f32 %v16774_v56, %v5188_v25  ;;  %v9593_v25 = vld [vmem:[%s17655_s3 + $0x100] sm:$0xff] }
 0x379   :  { %11327 = vmatpush3.msk.msra.mxu1 %vm5882_vm2, %v9562_v19  ;;  %11330 = vmatprep.mubr.msk.f32.mxu1 %vm11608_vm3, %v18418_v16  ;;  %v9573_v19 = vld [vmem:[%s17655_s3 + $0xb0] sm:$0xff]  ;;  %v5813_v60 = vmax.f32 %v5777_v63, %v4099_v54  ;;  %v4109_v24 = vadd.f32 %v16774_v56, %v4108_v28  ;;  %v4114_v40 = vadd.f32 %v16774_v56, %v10915_v37  ;;  %v9594_v63 = vld [vmem:[%s17655_s3 + $0x108] sm:$0x3] }
 0x37a   :  { %11328 = vmatprep.subr.mxu1 %v18418_v16  ;;  %v5848_v31 = vmax.f32 %v5812_v11, 0.0  ;;  %v5780_v3 = vmax.f32 %v18443_v30, %v5194_v0  ;;  %v5204_v37 = vadd.f32 %v16774_v56, %v11242_v35  ;;  %v9597_v28 = vld [vmem:[%s17655_s3 + $0x110] sm:$0xff]  ;;  %v9618_v30 = vld [vmem:[%s17655_s3 + $0x168] sm:$0x3] }
 0x37b   :  { %11329 = vmatpush3.msra.mxu1 %v9561_v32  ;;  %v5778_v32 = vmax.f32 %v18438_v47, %v5184_v51  ;;  %v5849_v12 = vmax.f32 %v5813_v60, 0.0  ;;  %v9598_v60 = vld [vmem:[%s17655_s3 + $0x118] sm:$0x3]  ;;  %v9605_v35 = vld [vmem:[%s17655_s3 + $0x130] sm:$0xff] }
 0x37c   :  { %11333 = vmatprep.subr.mxu1 %v18418_v16  ;;  %11331 = vmatmul.mubr.msk.f32.vlgmr.msra.gmra.mxu1 %vm5878_vm4, %v5845_v62  ;;  %v5816_v8 = vmax.f32 %v5780_v3, %v4114_v40 }
 0x37d   :  { %11334 = vmatpush3.msk.msra.mxu1 %vm5882_vm2, %v9566_v58  ;;  %11337 = vmatprep.mubr.msk.f32.mxu1 %vm11608_vm3, %v18418_v16  ;;  %v5814_v62 = vmax.f32 %v5778_v32, %v4104_v20  ;;  %v9582_v58 = vld [vmem:[%s17655_s3 + $0xd8] sm:$0x3]  ;;  %v9602_v32 = vld [vmem:[%s17655_s3 + $0x128] sm:$0x3] }
 0x37e   :  { %11335 = vmatprep.subr.mxu1 %v18418_v16  ;;  %v5852_v23 = vmax.f32 %v5816_v8, 0.0 }
 0x37f   :  { %11336 = vmatpush3.msra.mxu1 %v9565_v48  ;;  %v5779_v48 = vmax.f32 %v18440_v44, %v5189_v9  ;;  %v9610_v44 = vld [vmem:[%s17655_s3 + $0x148] sm:$0x3] }
 0x380   :  { %11340 = vmatprep.subr.mxu1 %v18418_v16  ;;  %11338 = vmatmul.mubr.msk.f32.vlgmr.msra.gmra.mxu1 %vm5878_vm4, %v5846_v34  ;;  %v5850_v34 = vmax.f32 %v5814_v62, 0.0 }
 0x381   :  { %11341 = vmatpush3.msk.msra.mxu1 %vm5882_vm2, %v9570_v57  ;;  %11344 = vmatprep.mubr.msk.f32.mxu1 %vm11608_vm3, %v18418_v16  ;;  %v5815_v33 = vmax.f32 %v5779_v48, %v4109_v24  ;;  %v5198_v57 = vpop.f32.mrf.mxu1  ;;  %v9606_v24 = vld [vmem:[%s17655_s3 + $0x138] sm:$0x3] }
 0x382   :  { %11342 = vmatprep.subr.mxu1 %v18418_v16 }
 0x383   :  { %11343 = vmatpush3.msra.mxu1 %v9569_v26  ;;  %v5199_v26 = vadd.f32 %v16774_v56, %v5198_v57  ;;  %v5851_v11 = vmax.f32 %v5815_v33, 0.0  ;;  %v11245_v54 = vpop.f32.mrf.mxu1  ;;  %v9614_v33 = vld [vmem:[%s17655_s3 + $0x158] sm:$0x3]  ;;  %v9613_v57 = vld [vmem:[%s17655_s3 + $0x150] sm:$0xff] }
 0x384   :  { %11347 = vmatprep.subr.mxu1 %v18418_v16  ;;  %11345 = vmatmul.mubr.msk.f32.vlgmr.msra.gmra.mxu1 %vm5878_vm4, %v5847_v27  ;;  %v9590_v27 = vld [vmem:[%s17655_s3 + $0xf8] sm:$0x3]  ;;  %v5214_v42 = vadd.f32 %v16774_v56, %v11245_v54  ;;  %v9621_v54 = vld [vmem:[%s17655_s3 + $0x170] sm:$0xff] }
 0x385   :  { %11348 = vmatpush3.msk.msra.mxu1 %vm5882_vm2, %v9574_v50  ;;  %11351 = vmatprep.mubr.msk.f32.mxu1 %vm11608_vm3, %v18418_v16  ;;  %v9589_v50 = vld [vmem:[%s17655_s3 + $0xf0] sm:$0xff]  ;;  %v5817_v51 = vmax.f32 %v16863_v18, %v5199_v26  ;;  %v5818_v18 = vmax.f32 %v16860_v14, %v5204_v37 }
 0x386   :  { %11349 = vmatprep.subr.mxu1 %v18418_v16 }
 0x387   :  { %11350 = vmatpush3.msra.mxu1 %v9573_v19  ;;  %v5208_v19 = vpop.f32.mrf.mxu1  ;;  %v5854_v14 = vmax.f32 %v5818_v18, 0.0  ;;  %v9630_v18 = vld [vmem:[%s17655_s3 + $0x198] sm:$0x3] }
 0x388   :  { %11354 = vmatprep.subr.mxu1 %v18418_v16  ;;  %11352 = vmatmul.mubr.msk.f32.vlgmr.msra.gmra.mxu1 %vm5878_vm4, %v5848_v31  ;;  %v5853_v31 = vmax.f32 %v5817_v51, 0.0  ;;  %v5209_v20 = vadd.f32 %v16774_v56, %v5208_v19  ;;  %v9626_v51 = vld [vmem:[%s17655_s3 + $0x188] sm:$0x3] }
 0x389   :  { %11355 = vmatpush3.msk.msra.mxu1 %vm5882_vm2, %v9578_v41  ;;  %11358 = vmatprep.mubr.msk.f32.mxu1 %vm11608_vm3, %v18418_v16  ;;  %v11248_v41 = vpop.f32.mrf.mxu1 }
 0x38a   :  { %11356 = vmatprep.subr.mxu1 %v18418_v16  ;;  %v5819_v47 = vmax.f32 %v16875_v55, %v5209_v20  ;;  %v5820_v55 = vmax.f32 %v16872_v61, %v5214_v42  ;;  %v5224_v0 = vadd.f32 %v16774_v56, %v11248_v41  ;;  %v9629_v20 = vld [vmem:[%s17655_s3 + $0x190] sm:$0xff]  ;;  %v9633_v42 = vld [vmem:[%s17655_s3 + $0x1a0] sm:$0xff] }
 0x38b   :  { %11357 = vmatpush3.msra.mxu1 %v9577_v38  ;;  %v5218_v9 = vpop.f32.mrf.mxu1  ;;  %v9601_v38 = vld [vmem:[%s17655_s3 + $0x120] sm:$0xff] }
 0x38c   :  { %11361 = vmatprep.subr.mxu1 %v18418_v16  ;;  %11359 = vmatmul.mubr.msk.f32.vlgmr.msra.gmra.mxu1 %vm5878_vm4, %v5849_v12  ;;  %v5855_v62 = vmax.f32 %v5819_v47, 0.0  ;;  %v5219_v12 = vadd.f32 %v16774_v56, %v5218_v9  ;;  %v5856_v61 = vmax.f32 %v5820_v55, 0.0  ;;  %v9638_v9 = vld [vmem:[%s17655_s3 + $0x1b8] sm:$0x3]  ;;  %v9637_v55 = vld [vmem:[%s17655_s3 + $0x1b0] sm:$0xff] }
 0x38d   :  { %11362 = vmatpush3.msk.msra.mxu1 %vm5882_vm2, %v9582_v58  ;;  %11365 = vmatprep.mubr.msk.f32.mxu1 %vm11608_vm3, %v18418_v16  ;;  %v11251_v58 = vpop.f32.mrf.mxu1 }
 0x38e   :  { %11363 = vmatprep.subr.mxu1 %v18418_v16  ;;  %v5821_v59 = vmax.f32 %v16887_v21, %v5219_v12  ;;  %v5822_v21 = vmax.f32 %v16884_v4, %v5224_v0  ;;  %v5234_v5 = vadd.f32 %v16774_v56, %v11251_v58 }
 0x38f   :  { %11364 = vmatpush3.msra.mxu1 %v9581_v22  ;;  %v5228_v48 = vpop.f32.mrf.mxu1  ;;  %v9609_v22 = vld [vmem:[%s17655_s3 + $0x140] sm:$0xff] }
 0x390   :  { %11368 = vmatprep.subr.mxu1 %v18418_v16  ;;  %11366 = vmatmul.mubr.msk.f32.vlgmr.msra.gmra.mxu1 %vm5878_vm4, %v5850_v34  ;;  %v5857_v34 = vmax.f32 %v5821_v59, 0.0  ;;  %v5229_v40 = vadd.f32 %v16774_v56, %v5228_v48  ;;  %v5858_v4 = vmax.f32 %v5822_v21, 0.0  ;;  %v9646_v59 = vld [vmem:[%s17655_s3 + $0x1d8] sm:$0x3]  ;;  %v9645_v48 = vld [vmem:[%s17655_s3 + $0x1d0] sm:$0xff] }
 0x391   :  { %11369 = vmatpush3.msk.msra.mxu1 %vm5882_vm2, %v9586_v49  ;;  %11372 = vmatprep.mubr.msk.f32.mxu1 %vm11608_vm3, %v18418_v16  ;;  %v11254_v49 = vpop.f32.mrf.mxu1 }
 0x392   :  { %11370 = vmatprep.subr.mxu1 %v18418_v16  ;;  %v5823_v10 = vmax.f32 %v16899_v2, %v5229_v40  ;;  %v5824_v2 = vmax.f32 %v16896_v1, %v5234_v5 }
 0x393   :  { %11371 = vmatpush3.msra.mxu1 %v9585_v29  ;;  %v5238_v3 = vpop.f32.mrf.mxu1  ;;  %v9617_v29 = vld [vmem:[%s17655_s3 + $0x160] sm:$0xff] }
 0x394   :  { %11375 = vmatprep.subr.mxu1 %v18418_v16  ;;  %11373 = vmatmul.mubr.msk.f32.vlgmr.msra.gmra.mxu1 %vm5878_vm4, %v5851_v11  ;;  %v5859_v26 = vmax.f32 %v5823_v10, 0.0  ;;  %v5239_v8 = vadd.f32 %v16774_v56, %v5238_v3  ;;  %v9622_v11 = vld [vmem:[%s17655_s3 + $0x178] sm:$0x3]  ;;  %v5860_v1 = vmax.f32 %v5824_v2, 0.0  ;;  %v9653_v10 = vld [vmem:[%s17655_s3 + $0x1f0] sm:$0xff] }
 0x395   :  { %11376 = vmatpush3.msk.msra.mxu1 %vm5882_vm2, %v9590_v27  ;;  %11379 = vmatprep.mubr.msk.f32.mxu1 %vm11608_vm3, %v18418_v16  ;;  %v11257_v27 = vpop.f32.mrf.mxu1 }
 0x396   :  { %11377 = vmatprep.subr.mxu1 %v18418_v16  ;;  %v5825_v37 = vmax.f32 %v16911_v53, %v5239_v8 }
 0x397   :  { %11378 = vmatpush3.msra.mxu1 %v9589_v50  ;;  %v5244_v50 = vadd.f32 %v16774_v56, %v11254_v49 }
 0x398   :  { %11382 = vmatprep.subr.mxu1 %v18418_v16  ;;  %11380 = vmatmul.mubr.msk.f32.vlgmr.msra.gmra.mxu1 %vm5878_vm4, %v5852_v23  ;;  %v5248_v23 = vpop.f32.mrf.mxu1  ;;  %v5861_v19 = vmax.f32 %v5825_v37, 0.0  ;;  %v9666_v37 = vld [vmem:[%s17655_s3 + $0x228] sm:$0x3] }
 0x399   :  { %11383 = vmatpush3.msk.msra.mxu1 %vm5882_vm2, %v9594_v63  ;;  %11386 = vmatprep.mubr.msk.f32.mxu1 %vm11608_vm3, %v18418_v16  ;;  %v9625_v63 = vld [vmem:[%s17655_s3 + $0x180] sm:$0xff]  ;;  %v5826_v53 = vmax.f32 %v16908_v36, %v5244_v50 }
 0x39a   :  { %11384 = vmatprep.subr.mxu1 %v18418_v16 }
 0x39b   :  { %11385 = vmatpush3.msra.mxu1 %v9593_v25  ;;  %v5249_v25 = vadd.f32 %v16774_v56, %v5248_v23  ;;  %v5862_v36 = vmax.f32 %v5826_v53, 0.0  ;;  %v9669_v53 = vld [vmem:[%s17655_s3 + $0x230] sm:$0xff] }
 0x39c   :  { %11389 = vmatprep.subr.mxu1 %v18418_v16  ;;  %11387 = vmatmul.mubr.msk.f32.vlgmr.msra.gmra.mxu1 %vm5878_vm4, %v5853_v31  ;;  %v11260_v31 = vpop.f32.mrf.mxu1 }
 0x39d   :  { %11390 = vmatpush3.msk.msra.mxu1 %vm5882_vm2, %v9598_v60  ;;  %11393 = vmatprep.mubr.msk.f32.mxu1 %vm11608_vm3, %v18418_v16  ;;  %v5254_v60 = vadd.f32 %v16774_v56, %v11257_v27  ;;  %v5827_v41 = vmax.f32 %v16923_v46, %v5249_v25  ;;  %v9662_v27 = vld [vmem:[%s17655_s3 + $0x218] sm:$0x3]  ;;  %v8775_v25 = vld [vmem:[%s17656_s5 + $0x70] sm:$0xff] }
 0x39e   :  { %11391 = vmatprep.subr.mxu1 %v18418_v16 }
 0x39f   :  { %11392 = vmatpush3.msra.mxu1 %v9597_v28  ;;  %v9634_v28 = vld [vmem:[%s17655_s3 + $0x1a8] sm:$0x3]  ;;  %v5828_v46 = vmax.f32 %v16920_v17, %v5254_v60  ;;  %v5863_v47 = vmax.f32 %v5827_v41, 0.0 }
 0x3a0   :  { %11396 = vmatprep.subr.mxu1 %v18418_v16  ;;  %11394 = vmatmul.mubr.msk.f32.vlgmr.msra.gmra.mxu1 %vm5878_vm4, %v5854_v14  ;;  %v5258_v14 = vpop.f32.mrf.mxu1  ;;  %v8770_v60 = vld [vmem:[%s17656_s5 + $0x48] sm:$0xff] }
 0x3a1   :  { %11397 = vmatpush3.msk.msra.mxu1 %vm5882_vm2, %v9602_v32  ;;  %11400 = vmatprep.mubr.msk.f32.mxu1 %vm11608_vm3, %v18418_v16  ;;  %v5259_v32 = vadd.f32 %v16774_v56, %v5258_v14  ;;  %v5864_v17 = vmax.f32 %v5828_v46, 0.0 }
 0x3a2   :  { %11398 = vmatprep.subr.mxu1 %v18418_v16 }
 0x3a3   :  { %11399 = vmatpush3.msra.mxu1 %v9601_v38  ;;  %v11263_v38 = vpop.f32.mrf.mxu1  ;;  %v5829_v12 = vmax.f32 %v16935_v43, %v5259_v32  ;;  %v8767_v32 = vld [vmem:[%s17656_s5 + $0x30] sm:$0xff] }
 0x3a4   :  { %11403 = vmatprep.subr.mxu1 %v18418_v16  ;;  %11401 = vmatmul.mubr.msk.f32.vlgmr.msra.gmra.mxu1 %vm5878_vm4, %v5855_v62  ;;  %v5264_v62 = vadd.f32 %v16774_v56, %v11260_v31  ;;  %v8773_v31 = vld [vmem:[%s17656_s5 + $0x60] sm:$0xff] }
 0x3a5   :  { %11404 = vmatpush3.msk.msra.mxu1 %vm5882_vm2, %v9606_v24  ;;  %11407 = vmatprep.mubr.msk.f32.mxu1 %vm11608_vm3, %v18418_v16  ;;  %v9642_v24 = vld [vmem:[%s17655_s3 + $0x1c8] sm:$0x3]  ;;  %v5268_v58 = vpop.f32.mrf.mxu1 }
 0x3a6   :  { %11405 = vmatprep.subr.mxu1 %v18418_v16  ;;  %v5830_v43 = vmax.f32 %v16932_v52, %v5264_v62  ;;  %v5269_v0 = vadd.f32 %v16774_v56, %v5268_v58  ;;  %v11606_v52 = vld [vmem:[%s17654_s2] ss:$0 sm:$0xff] }
 0x3a7   :  { %11406 = vmatpush3.msra.mxu1 %v9605_v35  ;;  %v9641_v35 = vld [vmem:[%s17655_s3 + $0x1c0] sm:$0xff] }
 0x3a8   :  { %11410 = vmatprep.subr.mxu1 %v18418_v16  ;;  %11408 = vmatmul.mubr.msk.f32.vlgmr.msra.gmra.mxu1 %vm5878_vm4, %v5856_v61  ;;  %v5865_v61 = vmax.f32 %v5829_v12, 0.0  ;;  %v5866_v56 = vmax.f32 %v5830_v43, 0.0  ;;  %v5831_v21 = vmax.f32 %v16947_v45, %v5269_v0  ;;  %v8765_v62 = vld [vmem:[%s17656_s5 + $0x20] sm:$0xff]  ;;  %v8763_v43 = vld [vmem:[%s17656_s5 + $0x10] sm:$0xff]  ;;  %v8762_v0 = vld [vmem:[%s17656_s5 + $0x8] sm:$0xff] }
 0x3a9   :  { %11411 = vmatpush3.msk.msra.mxu1 %vm5882_vm2, %v9610_v44  ;;  %11414 = vmatprep.mubr.msk.f32.mxu1 %vm11608_vm3, %v18418_v16  ;;  %v11266_v44 = vpop.f32.mrf.mxu1 }
 0x3aa   :  { %11412 = vmatprep.subr.mxu1 %v18418_v16  ;;  %v5867_v49 = vmax.f32 %v5831_v21, 0.0 }
 0x3ab   :  { %11413 = vmatpush3.msra.mxu1 %v9609_v22  ;;  %v5274_v22 = vadd.f32 %v11606_v52, %v11263_v38  ;;  %v5278_v40 = vpop.f32.mrf.mxu1  ;;  %v8766_v38 = vld [vmem:[%s17656_s5 + $0x28] sm:$0xff] }
 0x3ac   :  { %11417 = vmatprep.subr.mxu1 %v18418_v16  ;;  %11415 = vmatmul.mubr.msk.f32.vlgmr.msra.gmra.mxu1 %vm5878_vm4, %v5857_v34  ;;  %v9650_v34 = vld [vmem:[%s17655_s3 + $0x1e8] sm:$0x3] }
 0x3ad   :  { %11418 = vmatpush3.msk.msra.mxu1 %vm5882_vm2, %v9614_v33  ;;  %11421 = vmatprep.mubr.msk.f32.mxu1 %vm11608_vm3, %v18418_v16  ;;  %v9649_v33 = vld [vmem:[%s17655_s3 + $0x1e0] sm:$0xff]  ;;  %v5832_v45 = vmax.f32 %v16944_v15, %v5274_v22  ;;  %v11269_v5 = vpop.f32.mrf.mxu1 }
 0x3ae   :  { %11419 = vmatprep.subr.mxu1 %v18418_v16 }
 0x3af   :  { %11420 = vmatpush3.msra.mxu1 %v9613_v57  ;;  %v5279_v57 = vadd.f32 %v11606_v52, %v5278_v40  ;;  %v5868_v15 = vmax.f32 %v5832_v45, 0.0  ;;  %v5288_v2 = vpop.f32.mrf.mxu1 }
 0x3b0   :  { %11424 = vmatprep.subr.mxu1 %v18418_v16  ;;  %11422 = vmatmul.mubr.msk.f32.vlgmr.msra.gmra.mxu1 %vm5878_vm4, %v5858_v4  ;;  %v9654_v4 = vld [vmem:[%s17655_s3 + $0x1f8] sm:$0x3] }
 0x3b1   :  { %11425 = vmatpush3.msk.msra.mxu1 %vm5882_vm2, %v9618_v30  ;;  %11428 = vmatprep.mubr.msk.f32.mxu1 %vm11608_vm3, %v18418_v16  ;;  %v5284_v30 = vadd.f32 %v11606_v52, %v11266_v44  ;;  %v5833_v3 = vmax.f32 %v16959_v6, %v5279_v57  ;;  %v8761_v44 = vld [vmem:[%s17656_s5] sm:$0xff] }
 0x3b2   :  { %11426 = vmatprep.subr.mxu1 %v18418_v16 }
 0x3b3   :  { %11427 = vmatpush3.msra.mxu1 %v9617_v29  ;;  %v9658_v29 = vld [vmem:[%s17655_s3 + $0x208] sm:$0x3]  ;;  %v5834_v6 = vmax.f32 %v16955_v13, %v5284_v30  ;;  %v5869_v8 = vmax.f32 %v5833_v3, 0.0 }
 0x3b4   :  { %11431 = vmatprep.subr.mxu1 %v18418_v16  ;;  %11429 = vmatmul.mubr.msk.f32.vlgmr.msra.gmra.mxu1 %vm5878_vm4, %v5859_v26  ;;  %v9657_v26 = vld [vmem:[%s17655_s3 + $0x200] sm:$0xff] }
 0x3b5   :  { %11432 = vmatpush3.msk.msra.mxu1 %vm5882_vm2, %v9622_v11  ;;  %11435 = vmatprep.mubr.msk.f32.mxu1 %vm11608_vm3, %v18418_v16  ;;  %v5289_v11 = vadd.f32 %v11606_v52, %v5288_v2  ;;  %v5870_v13 = vmax.f32 %v5834_v6, 0.0 }
 0x3b6   :  { %11433 = vmatprep.subr.mxu1 %v18418_v16 }
 0x3b7   :  { %11434 = vmatpush3.msra.mxu1 %v9621_v54  ;;  %v9661_v54 = vld [vmem:[%s17655_s3 + $0x210] sm:$0xff]  ;;  %v5835_v50 = vmax.f32 %v16973_v7, %v5289_v11 }
 0x3b8   :  { %11438 = vmatprep.subr.mxu1 %v18418_v16  ;;  %11436 = vmatmul.mubr.msk.f32.vlgmr.msra.gmra.mxu1 %vm5878_vm4, %v5860_v1  ;;  %v5294_v1 = vadd.f32 %v11606_v52, %v11269_v5 }
 0x3b9   :  { %11439 = vmatpush3.msk.msra.mxu1 %vm5882_vm2, %v9626_v51  ;;  %11442 = vmatprep.mubr.msk.f32.mxu1 %vm11608_vm3, %v18418_v16  ;;  %v9665_v51 = vld [vmem:[%s17655_s3 + $0x220] sm:$0xff]  ;;  %v5871_v23 = vmax.f32 %v5835_v50, 0.0 }
 0x3ba   :  { %11440 = vmatprep.subr.mxu1 %v18418_v16  ;;  %v5836_v7 = vmax.f32 %v16967_v39, %v5294_v1 }
 0x3bb   :  { %11441 = vmatpush3.msra.mxu1 %v9625_v63  ;;  %v9670_v63 = vld [vmem:[%s17655_s3 + $0x238] sm:$0x3] }
 0x3bc   :  { %11445 = vmatprep.subr.mxu1 %v18418_v16  ;;  %11443 = vmatmul.mubr.msk.f32.vlgmr.msra.gmra.mxu1 %vm5878_vm4, %v5861_v19  ;;  %v5872_v39 = vmax.f32 %v5836_v7, 0.0  ;;  %v8776_v19 = vld [vmem:[%s17656_s5 + $0x78] sm:$0xff] }
 0x3bd   :  { %11446 = vmatpush3.msk.msra.mxu1 %vm5882_vm2, %v9630_v18  ;;  %11449 = vmatprep.mubr.msk.f32.mxu1 %vm11608_vm3, %v18418_v16  ;;  %v8774_v18 = vld [vmem:[%s17656_s5 + $0x68] sm:$0xff] }
 0x3be   :  { %11447 = vmatprep.subr.mxu1 %v18418_v16 }
 0x3bf   :  { %11448 = vmatpush3.msra.mxu1 %v9629_v20  ;;  %v8772_v20 = vld [vmem:[%s17656_s5 + $0x58] sm:$0xff] }
 0x3c0   :  { %11452 = vmatprep.subr.mxu1 %v18418_v16  ;;  %11450 = vmatmul.mubr.msk.f32.vlgmr.msra.gmra.mxu1 %vm5878_vm4, %v5862_v36  ;;  %v8771_v36 = vld [vmem:[%s17656_s5 + $0x50] sm:$0xff] }
 0x3c1   :  { %11453 = vmatpush3.msk.msra.mxu1 %vm5882_vm2, %v9634_v28  ;;  %11456 = vmatprep.mubr.msk.f32.mxu1 %vm11608_vm3, %v18418_v16  ;;  %v8769_v28 = vld [vmem:[%s17656_s5 + $0x40] sm:$0xff] }
 0x3c2   :  { %11454 = vmatprep.subr.mxu1 %v18418_v16 }
 0x3c3   :  { %11455 = vmatpush3.msra.mxu1 %v9633_v42  ;;  %v8768_v42 = vld [vmem:[%s17656_s5 + $0x38] sm:$0xff] }
 0x3c4   :  { %11459 = vmatprep.subr.mxu1 %v18418_v16  ;;  %11457 = vmatmul.mubr.msk.f32.vlgmr.msra.gmra.mxu1 %vm5878_vm4, %v5863_v47 }
 0x3c5   :  { %11460 = vmatpush3.msk.msra.mxu1 %vm5882_vm2, %v9638_v9  ;;  %11463 = vmatprep.mubr.msk.f32.mxu1 %vm11608_vm3, %v18418_v16 }
 0x3c6   :  { %11461 = vmatprep.subr.mxu1 %v18418_v16 }
 0x3c7   :  { %11462 = vmatpush3.msra.mxu1 %v9637_v55 }
 0x3c8   :  { %11466 = vmatprep.subr.mxu1 %v18418_v16  ;;  %11464 = vmatmul.mubr.msk.f32.vlgmr.msra.gmra.mxu1 %vm5878_vm4, %v5864_v17 }
 0x3c9   :  { %11467 = vmatpush3.msk.msra.mxu1 %vm5882_vm2, %v9642_v24  ;;  %11470 = vmatprep.mubr.msk.f32.mxu1 %vm11608_vm3, %v18418_v16  ;;  %v8764_v24 = vld [vmem:[%s17656_s5 + $0x18] sm:$0xff] }
 0x3ca   :  { %11468 = vmatprep.subr.mxu1 %v18418_v16 }
 0x3cb   :  { %11469 = vmatpush3.msra.mxu1 %v9641_v35 }
 0x3cc   :  { %11473 = vmatprep.subr.mxu1 %v18418_v16  ;;  %11471 = vmatmul.mubr.msk.f32.vlgmr.msra.gmra.mxu1 %vm5878_vm4, %v5865_v61 }
 0x3cd   :  { %11474 = vmatpush3.msk.msra.mxu1 %vm5882_vm2, %v9646_v59  ;;  %11477 = vmatprep.mubr.msk.f32.mxu1 %vm11608_vm3, %v18418_v16 }
 0x3ce   :  { %11475 = vmatprep.subr.mxu1 %v18418_v16 }
 0x3cf   :  { %11476 = vmatpush3.msra.mxu1 %v9645_v48 }
 0x3d0   :  { %11480 = vmatprep.subr.mxu1 %v18418_v16  ;;  %11478 = vmatmul.mubr.msk.f32.vlgmr.msra.gmra.mxu1 %vm5878_vm4, %v5866_v56 }
 0x3d1   :  { %11481 = vmatpush3.msk.msra.mxu1 %vm5882_vm2, %v9650_v34  ;;  %11484 = vmatprep.mubr.msk.f32.mxu1 %vm11608_vm3, %v18418_v16 }
 0x3d2   :  { %11482 = vmatprep.subr.mxu1 %v18418_v16 }
 0x3d3   :  { %11483 = vmatpush3.msra.mxu1 %v9649_v33 }
 0x3d4   :  { %11487 = vmatprep.subr.mxu1 %v18418_v16  ;;  %11485 = vmatmul.mubr.msk.f32.vlgmr.msra.gmra.mxu1 %vm5878_vm4, %v5867_v49 }
 0x3d5   :  { %11488 = vmatpush3.msk.msra.mxu1 %vm5882_vm2, %v9654_v4  ;;  %11491 = vmatprep.mubr.msk.f32.mxu1 %vm11608_vm3, %v18418_v16 }
 0x3d6   :  { %11489 = vmatprep.subr.mxu1 %v18418_v16 }
 0x3d7   :  { %11490 = vmatpush3.msra.mxu1 %v9653_v10 }
 0x3d8   :  { %11494 = vmatprep.subr.mxu1 %v18418_v16  ;;  %11492 = vmatmul.mubr.msk.f32.vlgmr.msra.gmra.mxu1 %vm5878_vm4, %v5868_v15 }
 0x3d9   :  { %11495 = vmatpush3.msk.msra.mxu1 %vm5882_vm2, %v9658_v29  ;;  %11498 = vmatprep.mubr.msk.f32.mxu1 %vm11608_vm3, %v18418_v16 }
 0x3da   :  { %11496 = vmatprep.subr.mxu1 %v18418_v16 }
 0x3db   :  { %11497 = vmatpush3.msra.mxu1 %v9657_v26 }
 0x3dc   :  { %11501 = vmatprep.subr.mxu1 %v18418_v16  ;;  %11499 = vmatmul.mubr.msk.f32.vlgmr.msra.gmra.mxu1 %vm5878_vm4, %v5869_v8 }
 0x3dd   :  { %11502 = vmatpush3.msk.msra.mxu1 %vm5882_vm2, %v9662_v27  ;;  %11505 = vmatprep.mubr.msk.f32.mxu1 %vm11608_vm3, %v18418_v16 }
 0x3de   :  { %11503 = vmatprep.subr.mxu1 %v18418_v16 }
 0x3df   :  { %11504 = vmatpush3.msra.mxu1 %v9661_v54 }
 0x3e0   :  { %11508 = vmatprep.subr.mxu1 %v18418_v16  ;;  %11506 = vmatmul.mubr.msk.f32.vlgmr.msra.gmra.mxu1 %vm5878_vm4, %v5870_v13 }
 0x3e1   :  { %11509 = vmatpush3.msk.msra.mxu1 %vm5882_vm2, %v9666_v37  ;;  %11512 = vmatprep.mubr.msk.f32.mxu1 %vm11608_vm3, %v18418_v16 }
 0x3e2   :  { %11510 = vmatprep.subr.mxu1 %v18418_v16 }
 0x3e3   :  { %11511 = vmatpush3.msra.mxu1 %v9665_v51 }
 0x3e4   :  { %11515 = vmatprep.subr.mxu1 %v18418_v16  ;;  %11513 = vmatmul.mubr.msk.f32.vlgmr.msra.gmra.mxu1 %vm5878_vm4, %v5871_v23 }
 0x3e5   :  { %11516 = vmatpush3.msk.msra.mxu1 %vm5882_vm2, %v9670_v63  ;;  %11519 = vmatprep.mubr.msk.f32.mxu1 %vm11608_vm3, %v18418_v16 }
 0x3e6   :  { %11517 = vmatprep.subr.mxu1 %v18418_v16 }
 0x3e7   :  { %11518 = vmatpush3.msra.mxu1 %v9669_v53 }
 0x3e8   :  { %11520 = vmatmul.mubr.msk.f32.vlgmr.msra.gmra.mxu1 %vm5878_vm4, %v5872_v39  ;;  %11522 = vmatprep.subr.mxu1 %v18418_v16 }
 0x3e9   :  { %11554 = vmatprep.mubr.msk.f32.mxu1 %vm11608_vm3, %v18418_v16  ;;  %11523 = vmatpush3.msra.mxu1 %v8776_v19 }
 0x3ea   :  { %11524 = vmatprep.subr.mxu1 %v18418_v16 }
 0x3eb   :  { %11525 = vmatpush3.msra.mxu1 %v8775_v25 }
 0x3ec   :  { %11526 = vmatprep.subr.mxu1 %v18418_v16 }
 0x3ed   :  { %11527 = vmatpush3.msra.mxu1 %v8774_v18 }
 0x3ee   :  { %11528 = vmatprep.subr.mxu1 %v18418_v16 }
 0x3ef   :  { %11529 = vmatpush3.msra.mxu1 %v8773_v31 }
 0x3f0   :  { %11530 = vmatprep.subr.mxu1 %v18418_v16 }
 0x3f1   :  { %11531 = vmatpush3.msra.mxu1 %v8772_v20 }
 0x3f2   :  { %11532 = vmatprep.subr.mxu1 %v18418_v16 }
 0x3f3   :  { %11533 = vmatpush3.msra.mxu1 %v8771_v36 }
 0x3f4   :  { %11534 = vmatprep.subr.mxu1 %v18418_v16 }
 0x3f5   :  { %11535 = vmatpush3.msra.mxu1 %v8770_v60 }
 0x3f6   :  { %11536 = vmatprep.subr.mxu1 %v18418_v16 }
 0x3f7   :  { %11537 = vmatpush3.msra.mxu1 %v8769_v28 }
 0x3f8   :  { %11538 = vmatprep.subr.mxu1 %v18418_v16 }
 0x3f9   :  { %11539 = vmatpush3.msra.mxu1 %v8768_v42 }
 0x3fa   :  { %11540 = vmatprep.subr.mxu1 %v18418_v16 }
 0x3fb   :  { %11541 = vmatpush3.msra.mxu1 %v8767_v32 }
 0x3fc   :  { %11542 = vmatprep.subr.mxu1 %v18418_v16 }
 0x3fd   :  { %11543 = vmatpush3.msra.mxu1 %v8766_v38 }
 0x3fe   :  { %11544 = vmatprep.subr.mxu1 %v18418_v16 }
 0x3ff   :  { %11545 = vmatpush3.msra.mxu1 %v8765_v62 }
 0x400   :  { %11546 = vmatprep.subr.mxu1 %v18418_v16 }
 0x401   :  { %11547 = vmatpush3.msra.mxu1 %v8764_v24 }
 0x402   :  { %11548 = vmatprep.subr.mxu1 %v18418_v16 }
 0x403   :  { %11549 = vmatpush3.msra.mxu1 %v8763_v43 }
 0x404   :  { %11550 = vmatprep.subr.mxu1 %v18418_v16 }
 0x405   :  { %11551 = vmatpush3.msra.mxu1 %v8762_v0 }
 0x406   :  { %11552 = vmatprep.subr.mxu1 %v18418_v16 }
 0x407   :  { %11553 = vmatpush3.msra.mxu1 %v8761_v44 }
 0x408   :  { %11557 = vmatprep.subr.mxu1 %v18418_v16 }
 0x41c   :  { %v5952_v41 = vpop.f32.mrf.mxu1 }
 0x41e   :  { %v11276_v14 = vpop.f32.mrf.mxu1 }
 0x420   :  { %v6028_v46 = vpop.f32.mrf.mxu1 }
 0x421   :  { %v6029_v47 = vadd.f32 %v6028_v46, %v5952_v41 }
 0x422   :  { %v11283_v9 = vpop.f32.mrf.mxu1 }
 0x424   :  { %v6107_v55 = vpop.f32.mrf.mxu1 }
 0x425   :  { %v6111_v17 = vadd.f32 %v6107_v55, %v6029_v47 }
 0x426   :  { %v11290_v12 = vpop.f32.mrf.mxu1 }
 0x428   :  { %v6187_v58 = vpop.f32.mrf.mxu1 }
 0x429   :  { %v6191_v35 = vadd.f32 %v6187_v58, %v6111_v17 }
 0x42a   :  { %v11297_v61 = vpop.f32.mrf.mxu1 }
 0x42c   :  { %v6267_v59 = vpop.f32.mrf.mxu1 }
 0x42d   :  { %v6271_v23 = vadd.f32 %v6267_v59, %v6191_v35 }
 0x42e   :  { %v11304_v48 = vpop.f32.mrf.mxu1 }
 0x430   :  { %v6347_v56 = vpop.f32.mrf.mxu1 }
 0x431   :  { %v6351_v53 = vadd.f32 %v6347_v56, %v6271_v23 }
 0x432   :  { %v11311_v52 = vpop.f32.mrf.mxu1 }
 0x434   :  { %v6427_v22 = vpop.f32.mrf.mxu1 }
 0x435   :  { %v6431_v19 = vadd.f32 %v6427_v22, %v6351_v53 }
 0x436   :  { %v11318_v21 = vpop.f32.mrf.mxu1 }
 0x438   :  { %v6507_v34 = vpop.f32.mrf.mxu1 }
 0x439   :  { %v6511_v18 = vadd.f32 %v6507_v34, %v6431_v19  ;;  %v8870_v19 = vld [vmem:[%s17658_s7 + $0x78] sm:$0xff] }
 0x43a   :  { %v11325_v40 = vpop.f32.mrf.mxu1 }
 0x43c   :  { %v6587_v33 = vpop.f32.mrf.mxu1 }
 0x43d   :  { %v6591_v20 = vadd.f32 %v6587_v33, %v6511_v18  ;;  %v8868_v18 = vld [vmem:[%s17658_s7 + $0x68] sm:$0xff] }
 0x43e   :  { %v11332_v45 = vpop.f32.mrf.mxu1 }
 0x440   :  { %v6667_v49 = vpop.f32.mrf.mxu1 }
 0x441   :  { %v6671_v60 = vadd.f32 %v6667_v49, %v6591_v20  ;;  %v8866_v20 = vld [vmem:[%s17658_s7 + $0x58] sm:$0xff] }
 0x442   :  { %v11339_v57 = vpop.f32.mrf.mxu1 }
 0x444   :  { %v6747_v4 = vpop.f32.mrf.mxu1 }
 0x445   :  { %v6751_v28 = vadd.f32 %v6747_v4, %v6671_v60  ;;  %v8864_v60 = vld [vmem:[%s17658_s7 + $0x48] sm:$0xff] }
 0x446   :  { %v11346_v5 = vpop.f32.mrf.mxu1 }
 0x448   :  { %v6827_v10 = vpop.f32.mrf.mxu1 }
 0x449   :  { %v6831_v42 = vadd.f32 %v6827_v10, %v6751_v28  ;;  %v8862_v28 = vld [vmem:[%s17658_s7 + $0x38] sm:$0xff] }
 0x44a   :  { %v11353_v15 = vpop.f32.mrf.mxu1 }
 0x44c   :  { %v6907_v30 = vpop.f32.mrf.mxu1 }
 0x44d   :  { %v6911_v47 = vadd.f32 %v6907_v30, %v6831_v42  ;;  %v8860_v42 = vld [vmem:[%s17658_s7 + $0x28] sm:$0xff] }
 0x44e   :  { %v11360_v3 = vpop.f32.mrf.mxu1 }
 0x450   :  { %v6987_v29 = vpop.f32.mrf.mxu1 }
 0x451   :  { %v6991_v9 = vadd.f32 %v6987_v29, %v6911_v47  ;;  %v8858_v47 = vld [vmem:[%s17658_s7 + $0x18] sm:$0xff] }
 0x452   :  { %v11367_v2 = vpop.f32.mrf.mxu1 }
 0x454   :  { %v7067_v26 = vpop.f32.mrf.mxu1 }
 0x455   :  { %v7071_v55 = vadd.f32 %v7067_v26, %v6991_v9  ;;  %v8856_v9 = vld [vmem:[%s17658_s7 + $0x8] sm:$0xff] }
 0x456   :  { %v11374_v6 = vpop.f32.mrf.mxu1 }
 0x458   :  { %v7147_v8 = vpop.f32.mrf.mxu1 }
 0x459   :  { %v7151_v62 = vadd.f32 %v7147_v8, %v7071_v55  ;;  %v9674_v55 = vld [vmem:[%s17659_s6] ss:$0 sm:$0xff] }
 0x45a   :  { %v11381_v11 = vpop.f32.mrf.mxu1 }
 0x45c   :  { %v7227_v27 = vpop.f32.mrf.mxu1 }
 0x45d   :  { %v7231_v24 = vadd.f32 %v7227_v27, %v7151_v62 }
 0x45e   :  { %v11388_v54 = vpop.f32.mrf.mxu1 }
 0x460   :  { %v7307_v13 = vpop.f32.mrf.mxu1 }
 0x461   :  { %v7311_v35 = vadd.f32 %v7307_v13, %v7231_v24 }
 0x462   :  { %v11395_v1 = vpop.f32.mrf.mxu1 }
 0x464   :  { %v7387_v50 = vpop.f32.mrf.mxu1 }
 0x465   :  { %v7391_v61 = vadd.f32 %v7387_v50, %v7311_v35 }
 0x466   :  { %v11402_v37 = vpop.f32.mrf.mxu1 }
 0x468   :  { %v7467_v51 = vpop.f32.mrf.mxu1 }
 0x469   :  { %v7471_v59 = vadd.f32 %v7467_v51, %v7391_v61 }
 0x46a   :  { %v11409_v7 = vpop.f32.mrf.mxu1 }
 0x46b   :  { %v9673_v7 = vld [vmem:[%s17657_s4] ss:$0 sm:$0xff] }
 0x46c   :  { %v7547_v63 = vpop.f32.mrf.mxu1 }
 0x46d   :  { %v7551_v48 = vadd.f32 %v7547_v63, %v7471_v59 }
 0x46e   :  { %v11416_v39 = vpop.f32.mrf.mxu1 }
 0x470   :  { %v7627_v25 = vpop.f32.mrf.mxu1 }
 0x471   :  { %v7631_v52 = vadd.f32 %v7627_v25, %v7551_v48  ;;  %v8869_v25 = vld [vmem:[%s17658_s7 + $0x70] sm:$0xff] }
 0x472   :  { %v11423_v31 = vpop.f32.mrf.mxu1 }
 0x473   :  { %v8867_v31 = vld [vmem:[%s17658_s7 + $0x60] sm:$0xff] }
 0x474   :  { %v7707_v36 = vpop.f32.mrf.mxu1 }
 0x475   :  { %v7711_v21 = vadd.f32 %v7707_v36, %v7631_v52  ;;  %v8865_v36 = vld [vmem:[%s17658_s7 + $0x50] sm:$0xff] }
 0x476   :  { %v11430_v41 = vpop.f32.mrf.mxu1 }
 0x477   :  { %v8863_v41 = vld [vmem:[%s17658_s7 + $0x40] sm:$0xff] }
 0x478   :  { %v7787_v14 = vpop.f32.mrf.mxu1 }
 0x479   :  { %v7791_v40 = vadd.f32 %v7787_v14, %v7711_v21  ;;  %v8861_v14 = vld [vmem:[%s17658_s7 + $0x30] sm:$0xff] }
 0x47a   :  { %v11437_v46 = vpop.f32.mrf.mxu1 }
 0x47b   :  { %v8859_v46 = vld [vmem:[%s17658_s7 + $0x20] sm:$0xff] }
 0x47c   :  { %v7867_v32 = vpop.f32.mrf.mxu1 }
 0x47d   :  { %v7871_v45 = vadd.f32 %v7867_v32, %v7791_v40  ;;  %v8857_v32 = vld [vmem:[%s17658_s7 + $0x10] sm:$0xff] }
 0x47e   :  { %v11444_v38 = vpop.f32.mrf.mxu1 }
 0x47f   :  { %v8855_v38 = vld [vmem:[%s17658_s7] sm:$0xff] }
 0x480   :  { %v7947_v17 = vpop.f32.mrf.mxu1 }
 0x481   :  { %v7951_v57 = vadd.f32 %v7947_v17, %v7871_v45 }
 0x482   :  { %v11451_v12 = vpop.f32.mrf.mxu1 }
 0x484   :  { %v8027_v58 = vpop.f32.mrf.mxu1 }
 0x485   :  { %v8031_v5 = vadd.f32 %v8027_v58, %v7951_v57  ;;  %v9675_v58 = vld [vmem:[%s17660_s8] ss:$0 sm:$0xff] }
 0x486   :  { %v11458_v43 = vpop.f32.mrf.mxu1 }
 0x488   :  { %v8107_v0 = vpop.f32.mrf.mxu1 }
 0x489   :  { %v8111_v15 = vadd.f32 %v8107_v0, %v8031_v5 }
 0x48a   :  { %v11465_v44 = vpop.f32.mrf.mxu1 }
 0x48c   :  { %v8187_v56 = vpop.f32.mrf.mxu1 }
 0x48d   :  { %v8191_v3 = vadd.f32 %v8187_v56, %v8111_v15 }
 0x48e   :  { %v11472_v22 = vpop.f32.mrf.mxu1 }
 0x490   :  { %v8267_v34 = vpop.f32.mrf.mxu1 }
 0x491   :  { %v8271_v2 = vadd.f32 %v8267_v34, %v8191_v3 }
 0x492   :  { %v11479_v33 = vpop.f32.mrf.mxu1 }
 0x494   :  { %v8347_v49 = vpop.f32.mrf.mxu1 }
 0x495   :  { %v8351_v6 = vadd.f32 %v8347_v49, %v8271_v2 }
 0x496   :  { %v11486_v4 = vpop.f32.mrf.mxu1 }
 0x498   :  { %v8427_v10 = vpop.f32.mrf.mxu1 }
 0x499   :  { %v8431_v11 = vadd.f32 %v8427_v10, %v8351_v6 }
 0x49a   :  { %v11493_v30 = vpop.f32.mrf.mxu1 }
 0x49c   :  { %v8507_v29 = vpop.f32.mrf.mxu1 }
 0x49d   :  { %v8511_v54 = vadd.f32 %v8507_v29, %v8431_v11 }
 0x49e   :  { %v11500_v26 = vpop.f32.mrf.mxu1 }
 0x4a0   :  { %v8587_v8 = vpop.f32.mrf.mxu1 }
 0x4a1   :  { %v8591_v1 = vadd.f32 %v8587_v8, %v8511_v54 }
 0x4a2   :  { %v11507_v27 = vpop.f32.mrf.mxu1 }
 0x4a4   :  { %v8667_v13 = vpop.f32.mrf.mxu1 }
 0x4a5   :  { %v8671_v37 = vadd.f32 %v8667_v13, %v8591_v1 }
 0x4a6   :  { %v11514_v50 = vpop.f32.mrf.mxu1 }
 0x4a8   :  { %v8747_v51 = vpop.f32.mrf.mxu1 }
 0x4a9   :  { %v8751_v23 = vadd.f32 %v8747_v51, %v8671_v37 }
 0x4aa   :  { %v11521_v63 = vpop.f32.mrf.mxu1 }
 0x4ab   :  { %v8759_v53 = vadd.f32 %v9673_v7, %v8751_v23 }
 0x4ad   :  { %v8760_v39 = vmax.f32 %v8759_v53, 0.0 }
 0x4af   :  { %11555 = vmatmul.mubr.f32.vlgmr.msra.gmra.mxu1 %v8760_v39 }
 0x4b0   :  { %11558 = vmatpush3.msra.mxu1 %v8870_v19  ;;  %11589 = vmatprep.mubr.msk.f32.mxu1 %vm11608_vm3, %v18418_v16 }
 0x4b1   :  { %11559 = vmatprep.subr.mxu1 %v18418_v16 }
 0x4b2   :  { %11560 = vmatpush3.msra.mxu1 %v8869_v25 }
 0x4b3   :  { %11561 = vmatprep.subr.mxu1 %v18418_v16 }
 0x4b4   :  { %11562 = vmatpush3.msra.mxu1 %v8868_v18 }
 0x4b5   :  { %11563 = vmatprep.subr.mxu1 %v18418_v16 }
 0x4b6   :  { %11564 = vmatpush3.msra.mxu1 %v8867_v31 }
 0x4b7   :  { %11565 = vmatprep.subr.mxu1 %v18418_v16 }
 0x4b8   :  { %11566 = vmatpush3.msra.mxu1 %v8866_v20 }
 0x4b9   :  { %11567 = vmatprep.subr.mxu1 %v18418_v16 }
 0x4ba   :  { %11568 = vmatpush3.msra.mxu1 %v8865_v36 }
 0x4bb   :  { %11569 = vmatprep.subr.mxu1 %v18418_v16 }
 0x4bc   :  { %11570 = vmatpush3.msra.mxu1 %v8864_v60 }
 0x4bd   :  { %11571 = vmatprep.subr.mxu1 %v18418_v16 }
 0x4be   :  { %11572 = vmatpush3.msra.mxu1 %v8863_v41 }
 0x4bf   :  { %11573 = vmatprep.subr.mxu1 %v18418_v16 }
 0x4c0   :  { %11574 = vmatpush3.msra.mxu1 %v8862_v28 }
 0x4c1   :  { %11575 = vmatprep.subr.mxu1 %v18418_v16 }
 0x4c2   :  { %11576 = vmatpush3.msra.mxu1 %v8861_v14 }
 0x4c3   :  { %11577 = vmatprep.subr.mxu1 %v18418_v16 }
 0x4c4   :  { %11578 = vmatpush3.msra.mxu1 %v8860_v42 }
 0x4c5   :  { %11579 = vmatprep.subr.mxu1 %v18418_v16 }
 0x4c6   :  { %11580 = vmatpush3.msra.mxu1 %v8859_v46 }
 0x4c7   :  { %11581 = vmatprep.subr.mxu1 %v18418_v16 }
 0x4c8   :  { %11582 = vmatpush3.msra.mxu1 %v8858_v47 }
 0x4c9   :  { %11583 = vmatprep.subr.mxu1 %v18418_v16 }
 0x4ca   :  { %11584 = vmatpush3.msra.mxu1 %v8857_v32 }
 0x4cb   :  { %11585 = vmatprep.subr.mxu1 %v18418_v16 }
 0x4cc   :  { %11586 = vmatpush3.msra.mxu1 %v8856_v9 }
 0x4cd   :  { %11587 = vmatprep.subr.mxu1 %v18418_v16 }
 0x4ce   :  { %11588 = vmatpush3.msra.mxu1 %v8855_v38 }
 0x56f   :  { %v8850_v17 = vpop.f32.mrf.mxu1 }
 0x570   :  { %v8851_v62 = vadd.f32 %v9674_v55, %v8850_v17 }
 0x571   :  { %v11556_v12 = vpop.f32.mrf.mxu1 }
 0x572   :  { %v8854_v24 = vmax.f32 %v8851_v62, 0.0 }
 0x574   :  { %11590 = vmatmul.mubr.f32.vlgmr.msra.gmra.mxu1 %v8854_v24 }
 0x634   :  { %v8944_v35 = vpop.f32.mrf.mxu1 }
 0x635   :  { %v8945_v16 = vadd.f32 %v9675_v58, %v8944_v35 }
 0x636   :  { %v11591_v43 = vpop.f32.mrf.mxu1 }
 0x637   :  { %8948 = vst [vmem:[%s17661_s9] sm:$0xff] %v8945_v16 }

</bundles_post_ra>
